<compile_context>
chip_gen: v6e
topology: v6e:2x2x1
jax: 0.10.0
libtpu: 0.0.40
codegen_flags: <defaults>
</compile_context>

<pallas_src>
import jax
import jax.numpy as jnp
from jax.experimental import pallas as pl
from jax.experimental.pallas import tpu as pltpu

LANE = 128
SUBLANE = 8
BF16_SUBLANE = 16


def _round_up(n, m):
    return (n + m - 1) // m * m


def _make_dqn_kernel(layer_dims):
    """Build the fused kernel for a fixed (static) list of (din, dout, relu)."""
    n_layers = len(layer_dims)

    def kernel(*refs):
        x_ref = refs[0]
        w_hbm = refs[1:1 + 2 * n_layers:2]          # HBM refs (pl.ANY)
        b_hbm = refs[2:2 + 2 * n_layers:2]          # HBM refs (pl.ANY)
        o_ref = refs[1 + 2 * n_layers]
        w_buf, b_buf, w_sem, b_sem = refs[2 + 2 * n_layers:]

        copies = [None] * n_layers

        def start_fetch(i):
            slot = i & 1
            din, dout, _ = layer_dims[i]
            cw = pltpu.make_async_copy(
                w_hbm[i], w_buf.at[slot, :din, :dout], w_sem.at[slot])
            cb = pltpu.make_async_copy(
                b_hbm[i], b_buf.at[slot], b_sem.at[slot])
            cw.start()
            cb.start()
            copies[i] = (cw, cb)

        # Prime the double buffer: layers 0 and 1 in flight.
        start_fetch(0)
        if n_layers > 1:
            start_fetch(1)

        h = x_ref[...]                              # (B_pad, In_pad) f32
        for i, (din, dout, relu) in enumerate(layer_dims):
            slot = i & 1
            cw, cb = copies[i]
            cw.wait()
            cb.wait()
            w = w_buf[slot, :din, :dout]            # bf16 slab
            b = b_buf[slot, :1, :dout]              # (1, dout) f32
            y = jnp.dot(h.astype(w_buf.dtype), w,
                        preferred_element_type=jnp.float32)
            y = y + b
            h = jnp.maximum(y, 0.0) if relu else y
            # Buffer `slot` is free now (loads above are in program order
            # before this DMA start) -> prefetch layer i+2 into it.
            if i + 2 < n_layers:
                start_fetch(i + 2)

        o_ref[...] = h.astype(o_ref.dtype)          # lane-dense (B_pad, out_pad)

    return kernel


def init_dqn_params(key, input_size, num_actions):
    """Deterministic init mirroring nn.Linear shapes (stored transposed, f32)."""
    dims = [(input_size, 1024), (1024, 1024), (1024, 1024), (1024, 512),
            (512, num_actions)]
    params = []
    for fan_in, fan_out in dims:
        key, kw, kb = jax.random.split(key, 3)
        bound = 1.0 / jnp.sqrt(jnp.float32(fan_in))
        w = jax.random.uniform(kw, (fan_in, fan_out), jnp.float32,
                               minval=-bound, maxval=bound)
        b = jax.random.uniform(kb, (fan_out,), jnp.float32,
                               minval=-bound, maxval=bound)
        params.append((w, b))
    return params


def prepare_kernel_params(params):
    """bf16 weights, f32 (1, max_out) biases; pad in-dim of layer 0 to a
    multiple of 16 (bf16 tile) and out-dim of the last layer to 128 lanes."""
    n = len(params)
    padded = []
    for i, (w, b) in enumerate(params):
        fan_in, fan_out = w.shape
        in_pad = _round_up(fan_in, BF16_SUBLANE) if i == 0 else fan_in
        out_pad = _round_up(fan_out, LANE) if i == n - 1 else fan_out
        w = jnp.pad(w, ((0, in_pad - fan_in), (0, out_pad - fan_out)))
        b = jnp.pad(b, (0, out_pad - fan_out))
        padded.append((w, b))

    max_out = max(w.shape[1] for w, _ in padded)
    kparams = []
    for w, b in padded:
        b = jnp.pad(b, (0, max_out - b.shape[0]))   # uniform bias width
        kparams.append((w.astype(jnp.bfloat16),
                        b.reshape(1, -1).astype(jnp.float32)))
    return kparams


def dqn_forward(kparams, x, num_actions):
    """Fused forward pass. kparams from prepare_kernel_params; x: (B, In) f32."""
    B, in_size = x.shape
    in_pad = kparams[0][0].shape[0]
    out_pad = kparams[-1][0].shape[1]
    bias_w = kparams[0][1].shape[1]
    B_pad = max(_round_up(B, SUBLANE), SUBLANE)

    # Pad batch (sublane) and feature (layer-0 weight rows) dims with zeros.
    x_p = jnp.pad(x.astype(jnp.float32),
                  ((0, B_pad - B), (0, in_pad - in_size)))

    n = len(kparams)
    layer_dims = tuple((int(w.shape[0]), int(w.shape[1]), i < n - 1)
                       for i, (w, _) in enumerate(kparams))
    max_in = max(d for d, _, _ in layer_dims)
    max_out = max(o for _, o, _ in layer_dims)

    flat_args = [x_p]
    in_specs = [pl.BlockSpec((B_pad, in_pad), lambda: (0, 0))]
    for w, b in kparams:
        flat_args += [w, b]
        in_specs += [pl.BlockSpec(memory_space=pl.ANY),   # weights stay in HBM
                     pl.BlockSpec(memory_space=pl.ANY)]   # biases stay in HBM

    scratch_shapes = [
        pltpu.VMEM((2, max_in, max_out), jnp.bfloat16),   # weight double buffer
        pltpu.VMEM((2, 1, bias_w), jnp.float32),          # bias double buffer
        pltpu.SemaphoreType.DMA((2,)),                    # weight DMA sems
        pltpu.SemaphoreType.DMA((2,)),                    # bias DMA sems
    ]

    flops = 2 * B_pad * sum(int(w.shape[0]) * int(w.shape[1])
                            for w, _ in kparams)
    bytes_accessed = (
        sum(int(w.size) * w.dtype.itemsize + int(b.size) * 4
            for w, b in kparams)
        + int(x_p.size) * 4 + B_pad * out_pad * 4)

    out = pl.pallas_call(
        _make_dqn_kernel(layer_dims),
        out_shape=jax.ShapeDtypeStruct((B_pad, out_pad), jnp.float32),
        in_specs=in_specs,
        out_specs=pl.BlockSpec((B_pad, out_pad), lambda: (0, 0)),
        scratch_shapes=scratch_shapes,
        compiler_params=pltpu.CompilerParams(
            vmem_limit_bytes=32 << 20),       # footprint ~4.2 MiB; fits all gens
        cost_estimate=pl.CostEstimate(
            flops=flops, transcendentals=0, bytes_accessed=bytes_accessed),
    )(*flat_args)
    return out[:B, :num_actions]


def dqn_reference(kparams, x, num_actions):
    """Pure-JAX reference with the same bf16-weight / f32-accum math."""
    B, in_size = x.shape
    in_pad = kparams[0][0].shape[0]
    h = jnp.pad(x.astype(jnp.float32), ((0, 0), (0, in_pad - in_size)))
    n = len(kparams)
    for i, (w, b) in enumerate(kparams):
        dout = w.shape[1]
        y = jnp.dot(h.astype(jnp.bfloat16), w,
                    preferred_element_type=jnp.float32) + b[:, :dout]
        h = jnp.maximum(y, 0.0) if i < n - 1 else y
    return h[:, :num_actions]


if __name__ == "__main__":
    key = jax.random.PRNGKey(0)
    k_params, k_x = jax.random.split(key)

    batch = 2
    input_size = 16      # flattened state vector
    num_actions = 4

    params = init_dqn_params(k_params, input_size, num_actions)
    kparams = prepare_kernel_params(params)
    x = jax.random.normal(k_x, (batch, input_size), jnp.float32)

    out = dqn_forward(kparams, x, num_actions)
    out = jax.block_until_ready(out)

    ref = dqn_reference(kparams, x, num_actions)
    assert out.shape == (batch, num_actions)
    assert jnp.allclose(out, ref, atol=1e-2, rtol=1e-2)

    print("KERNEL_OK")
</pallas_src>

<mosaic_0001>
module attributes {stable_mosaic.version = 11 : i64} {
  func.func @kernel(%arg0: memref<8x16xf32, #tpu.memory_space<vmem>>, %arg1: memref<16x1024xbf16, #tpu.memory_space<any>>, %arg2: memref<1x1024xf32, #tpu.memory_space<any>>, %arg3: memref<1024x1024xbf16, #tpu.memory_space<any>>, %arg4: memref<1x1024xf32, #tpu.memory_space<any>>, %arg5: memref<1024x1024xbf16, #tpu.memory_space<any>>, %arg6: memref<1x1024xf32, #tpu.memory_space<any>>, %arg7: memref<1024x512xbf16, #tpu.memory_space<any>>, %arg8: memref<1x1024xf32, #tpu.memory_space<any>>, %arg9: memref<512x128xbf16, #tpu.memory_space<any>>, %arg10: memref<1x1024xf32, #tpu.memory_space<any>>, %arg11: memref<8x128xf32, #tpu.memory_space<vmem>>, %arg12: memref<2x1024x1024xbf16, #tpu.memory_space<vmem>>, %arg13: memref<2x1x1024xf32, #tpu.memory_space<vmem>>, %arg14: memref<2x!tpu.dma_semaphore, #tpu.memory_space<semaphore_mem>>, %arg15: memref<2x!tpu.dma_semaphore, #tpu.memory_space<semaphore_mem>>) attributes {dimension_semantics = [], scalar_prefetch = 0 : i64, scratch_operands = 4 : i64, tpu.core_type = #tpu.core_type<tc>} {
    %c0_i32 = arith.constant 0 : i32
    %c0_i32_0 = arith.constant 0 : i32
    %c0_i32_1 = arith.constant 0 : i32
    %c0_i32_2 = arith.constant 0 : i32
    %0 = tpu.memref_slice %arg12[%c0_i32, %c0_i32_1, %c0_i32_2] : memref<2x1024x1024xbf16, #tpu.memory_space<vmem>> -> memref<1x16x1024xbf16, #tpu.memory_space<vmem>>
    %1 = tpu.memref_squeeze %0 : memref<1x16x1024xbf16, #tpu.memory_space<vmem>> -> memref<16x1024xbf16, #tpu.memory_space<vmem>>
    %2 = tpu.memref_slice %arg14[%c0_i32_0] : memref<2x!tpu.dma_semaphore, #tpu.memory_space<semaphore_mem>> -> memref<1x!tpu.dma_semaphore, #tpu.memory_space<semaphore_mem>>
    %3 = tpu.memref_squeeze %2 : memref<1x!tpu.dma_semaphore, #tpu.memory_space<semaphore_mem>> -> memref<!tpu.dma_semaphore, #tpu.memory_space<semaphore_mem>>
    tpu.enqueue_dma source(%arg1 : memref<16x1024xbf16, #tpu.memory_space<any>>) target(%1 : memref<16x1024xbf16, #tpu.memory_space<vmem>>) target_semaphore(%3 : memref<!tpu.dma_semaphore, #tpu.memory_space<semaphore_mem>>)
    %c0_i32_3 = arith.constant 0 : i32
    %c0_i32_4 = arith.constant 0 : i32
    %c0_i32_5 = arith.constant 0 : i32
    %c0_i32_6 = arith.constant 0 : i32
    %4 = tpu.memref_slice %arg13[%c0_i32_3, %c0_i32_5, %c0_i32_6] : memref<2x1x1024xf32, #tpu.memory_space<vmem>> -> memref<1x1x1024xf32, #tpu.memory_space<vmem>>
    %5 = tpu.memref_squeeze %4 : memref<1x1x1024xf32, #tpu.memory_space<vmem>> -> memref<1x1024xf32, #tpu.memory_space<vmem>>
    %6 = tpu.memref_slice %arg15[%c0_i32_4] : memref<2x!tpu.dma_semaphore, #tpu.memory_space<semaphore_mem>> -> memref<1x!tpu.dma_semaphore, #tpu.memory_space<semaphore_mem>>
    %7 = tpu.memref_squeeze %6 : memref<1x!tpu.dma_semaphore, #tpu.memory_space<semaphore_mem>> -> memref<!tpu.dma_semaphore, #tpu.memory_space<semaphore_mem>>
    tpu.enqueue_dma source(%arg2 : memref<1x1024xf32, #tpu.memory_space<any>>) target(%5 : memref<1x1024xf32, #tpu.memory_space<vmem>>) target_semaphore(%7 : memref<!tpu.dma_semaphore, #tpu.memory_space<semaphore_mem>>)
    %c1_i32 = arith.constant 1 : i32
    %c1_i32_7 = arith.constant 1 : i32
    %c0_i32_8 = arith.constant 0 : i32
    %c0_i32_9 = arith.constant 0 : i32
    %8 = tpu.memref_slice %arg12[%c1_i32, %c0_i32_8, %c0_i32_9] : memref<2x1024x1024xbf16, #tpu.memory_space<vmem>> -> memref<1x1024x1024xbf16, #tpu.memory_space<vmem>>
    %9 = tpu.memref_squeeze %8 : memref<1x1024x1024xbf16, #tpu.memory_space<vmem>> -> memref<1024x1024xbf16, #tpu.memory_space<vmem>>
    %10 = tpu.memref_slice %arg14[%c1_i32_7] : memref<2x!tpu.dma_semaphore, #tpu.memory_space<semaphore_mem>> -> memref<1x!tpu.dma_semaphore, #tpu.memory_space<semaphore_mem>>
    %11 = tpu.memref_squeeze %10 : memref<1x!tpu.dma_semaphore, #tpu.memory_space<semaphore_mem>> -> memref<!tpu.dma_semaphore, #tpu.memory_space<semaphore_mem>>
    tpu.enqueue_dma source(%arg3 : memref<1024x1024xbf16, #tpu.memory_space<any>>) target(%9 : memref<1024x1024xbf16, #tpu.memory_space<vmem>>) target_semaphore(%11 : memref<!tpu.dma_semaphore, #tpu.memory_space<semaphore_mem>>)
    %c1_i32_10 = arith.constant 1 : i32
    %c1_i32_11 = arith.constant 1 : i32
    %c0_i32_12 = arith.constant 0 : i32
    %c0_i32_13 = arith.constant 0 : i32
    %12 = tpu.memref_slice %arg13[%c1_i32_10, %c0_i32_12, %c0_i32_13] : memref<2x1x1024xf32, #tpu.memory_space<vmem>> -> memref<1x1x1024xf32, #tpu.memory_space<vmem>>
    %13 = tpu.memref_squeeze %12 : memref<1x1x1024xf32, #tpu.memory_space<vmem>> -> memref<1x1024xf32, #tpu.memory_space<vmem>>
    %14 = tpu.memref_slice %arg15[%c1_i32_11] : memref<2x!tpu.dma_semaphore, #tpu.memory_space<semaphore_mem>> -> memref<1x!tpu.dma_semaphore, #tpu.memory_space<semaphore_mem>>
    %15 = tpu.memref_squeeze %14 : memref<1x!tpu.dma_semaphore, #tpu.memory_space<semaphore_mem>> -> memref<!tpu.dma_semaphore, #tpu.memory_space<semaphore_mem>>
    tpu.enqueue_dma source(%arg4 : memref<1x1024xf32, #tpu.memory_space<any>>) target(%13 : memref<1x1024xf32, #tpu.memory_space<vmem>>) target_semaphore(%15 : memref<!tpu.dma_semaphore, #tpu.memory_space<semaphore_mem>>)
    %c0 = arith.constant 0 : index
    %c0_14 = arith.constant 0 : index
    %16 = vector.load %arg0[%c0, %c0_14] : memref<8x16xf32, #tpu.memory_space<vmem>>, vector<8x16xf32>
    %c0_i32_15 = arith.constant 0 : i32
    %c0_i32_16 = arith.constant 0 : i32
    %c0_i32_17 = arith.constant 0 : i32
    %c0_i32_18 = arith.constant 0 : i32
    %17 = tpu.memref_slice %arg12[%c0_i32_15, %c0_i32_17, %c0_i32_18] : memref<2x1024x1024xbf16, #tpu.memory_space<vmem>> -> memref<1x16x1024xbf16, #tpu.memory_space<vmem>>
    %18 = tpu.memref_squeeze %17 : memref<1x16x1024xbf16, #tpu.memory_space<vmem>> -> memref<16x1024xbf16, #tpu.memory_space<vmem>>
    %19 = tpu.memref_slice %arg14[%c0_i32_16] : memref<2x!tpu.dma_semaphore, #tpu.memory_space<semaphore_mem>> -> memref<1x!tpu.dma_semaphore, #tpu.memory_space<semaphore_mem>>
    %20 = tpu.memref_squeeze %19 : memref<1x!tpu.dma_semaphore, #tpu.memory_space<semaphore_mem>> -> memref<!tpu.dma_semaphore, #tpu.memory_space<semaphore_mem>>
    tpu.wait_dma2 semaphore(%20 : memref<!tpu.dma_semaphore, #tpu.memory_space<semaphore_mem>>) src(%arg1 : memref<16x1024xbf16, #tpu.memory_space<any>>) dst(%18 : memref<16x1024xbf16, #tpu.memory_space<vmem>>)
    %c0_i32_19 = arith.constant 0 : i32
    %c0_i32_20 = arith.constant 0 : i32
    %c0_i32_21 = arith.constant 0 : i32
    %c0_i32_22 = arith.constant 0 : i32
    %21 = tpu.memref_slice %arg13[%c0_i32_19, %c0_i32_21, %c0_i32_22] : memref<2x1x1024xf32, #tpu.memory_space<vmem>> -> memref<1x1x1024xf32, #tpu.memory_space<vmem>>
    %22 = tpu.memref_squeeze %21 : memref<1x1x1024xf32, #tpu.memory_space<vmem>> -> memref<1x1024xf32, #tpu.memory_space<vmem>>
    %23 = tpu.memref_slice %arg15[%c0_i32_20] : memref<2x!tpu.dma_semaphore, #tpu.memory_space<semaphore_mem>> -> memref<1x!tpu.dma_semaphore, #tpu.memory_space<semaphore_mem>>
    %24 = tpu.memref_squeeze %23 : memref<1x!tpu.dma_semaphore, #tpu.memory_space<semaphore_mem>> -> memref<!tpu.dma_semaphore, #tpu.memory_space<semaphore_mem>>
    tpu.wait_dma2 semaphore(%24 : memref<!tpu.dma_semaphore, #tpu.memory_space<semaphore_mem>>) src(%arg2 : memref<1x1024xf32, #tpu.memory_space<any>>) dst(%22 : memref<1x1024xf32, #tpu.memory_space<vmem>>)
    %c0_23 = arith.constant 0 : index
    %c0_24 = arith.constant 0 : index
    %c0_25 = arith.constant 0 : index
    %25 = vector.load %arg12[%c0_23, %c0_24, %c0_25] : memref<2x1024x1024xbf16, #tpu.memory_space<vmem>>, vector<1x16x1024xbf16>
    %26 = vector.shape_cast %25 : vector<1x16x1024xbf16> to vector<16x1024xbf16>
    %c0_26 = arith.constant 0 : index
    %c0_27 = arith.constant 0 : index
    %c0_28 = arith.constant 0 : index
    %27 = vector.load %arg13[%c0_26, %c0_27, %c0_28] : memref<2x1x1024xf32, #tpu.memory_space<vmem>>, vector<1x1x1024xf32>
    %28 = vector.shape_cast %27 : vector<1x1x1024xf32> to vector<1x1024xf32>
    %29 = arith.truncf %16 : vector<8x16xf32> to vector<8x16xbf16>
    %cst = arith.constant dense<0.000000e+00> : vector<8x1024xf32>
    %30 = tpu.matmul %29, %26, %cst {dimension_numbers = #tpu.dot_dimension_numbers<[1], [0], [0], [1], [0, 0, 1, 1], [], []>} : vector<8x16xbf16>, vector<16x1024xbf16>, vector<8x1024xf32> -> vector<8x1024xf32>
    %31 = vector.broadcast %28 : vector<1x1024xf32> to vector<8x1024xf32>
    %32 = arith.addf %30, %31 : vector<8x1024xf32>
    %cst_29 = arith.constant 0.000000e+00 : f32
    %33 = vector.broadcast %cst_29 : f32 to vector<8x1024xf32>
    %34 = arith.maximumf %32, %33 : vector<8x1024xf32>
    %c0_i32_30 = arith.constant 0 : i32
    %c0_i32_31 = arith.constant 0 : i32
    %c0_i32_32 = arith.constant 0 : i32
    %c0_i32_33 = arith.constant 0 : i32
    %35 = tpu.memref_slice %arg12[%c0_i32_30, %c0_i32_32, %c0_i32_33] : memref<2x1024x1024xbf16, #tpu.memory_space<vmem>> -> memref<1x1024x1024xbf16, #tpu.memory_space<vmem>>
    %36 = tpu.memref_squeeze %35 : memref<1x1024x1024xbf16, #tpu.memory_space<vmem>> -> memref<1024x1024xbf16, #tpu.memory_space<vmem>>
    %37 = tpu.memref_slice %arg14[%c0_i32_31] : memref<2x!tpu.dma_semaphore, #tpu.memory_space<semaphore_mem>> -> memref<1x!tpu.dma_semaphore, #tpu.memory_space<semaphore_mem>>
    %38 = tpu.memref_squeeze %37 : memref<1x!tpu.dma_semaphore, #tpu.memory_space<semaphore_mem>> -> memref<!tpu.dma_semaphore, #tpu.memory_space<semaphore_mem>>
    tpu.enqueue_dma source(%arg5 : memref<1024x1024xbf16, #tpu.memory_space<any>>) target(%36 : memref<1024x1024xbf16, #tpu.memory_space<vmem>>) target_semaphore(%38 : memref<!tpu.dma_semaphore, #tpu.memory_space<semaphore_mem>>)
    %c0_i32_34 = arith.constant 0 : i32
    %c0_i32_35 = arith.constant 0 : i32
    %c0_i32_36 = arith.constant 0 : i32
    %c0_i32_37 = arith.constant 0 : i32
    %39 = tpu.memref_slice %arg13[%c0_i32_34, %c0_i32_36, %c0_i32_37] : memref<2x1x1024xf32, #tpu.memory_space<vmem>> -> memref<1x1x1024xf32, #tpu.memory_space<vmem>>
    %40 = tpu.memref_squeeze %39 : memref<1x1x1024xf32, #tpu.memory_space<vmem>> -> memref<1x1024xf32, #tpu.memory_space<vmem>>
    %41 = tpu.memref_slice %arg15[%c0_i32_35] : memref<2x!tpu.dma_semaphore, #tpu.memory_space<semaphore_mem>> -> memref<1x!tpu.dma_semaphore, #tpu.memory_space<semaphore_mem>>
    %42 = tpu.memref_squeeze %41 : memref<1x!tpu.dma_semaphore, #tpu.memory_space<semaphore_mem>> -> memref<!tpu.dma_semaphore, #tpu.memory_space<semaphore_mem>>
    tpu.enqueue_dma source(%arg6 : memref<1x1024xf32, #tpu.memory_space<any>>) target(%40 : memref<1x1024xf32, #tpu.memory_space<vmem>>) target_semaphore(%42 : memref<!tpu.dma_semaphore, #tpu.memory_space<semaphore_mem>>)
    %c1_i32_38 = arith.constant 1 : i32
    %c1_i32_39 = arith.constant 1 : i32
    %c0_i32_40 = arith.constant 0 : i32
    %c0_i32_41 = arith.constant 0 : i32
    %43 = tpu.memref_slice %arg12[%c1_i32_38, %c0_i32_40, %c0_i32_41] : memref<2x1024x1024xbf16, #tpu.memory_space<vmem>> -> memref<1x1024x1024xbf16, #tpu.memory_space<vmem>>
    %44 = tpu.memref_squeeze %43 : memref<1x1024x1024xbf16, #tpu.memory_space<vmem>> -> memref<1024x1024xbf16, #tpu.memory_space<vmem>>
    %45 = tpu.memref_slice %arg14[%c1_i32_39] : memref<2x!tpu.dma_semaphore, #tpu.memory_space<semaphore_mem>> -> memref<1x!tpu.dma_semaphore, #tpu.memory_space<semaphore_mem>>
    %46 = tpu.memref_squeeze %45 : memref<1x!tpu.dma_semaphore, #tpu.memory_space<semaphore_mem>> -> memref<!tpu.dma_semaphore, #tpu.memory_space<semaphore_mem>>
    tpu.wait_dma2 semaphore(%46 : memref<!tpu.dma_semaphore, #tpu.memory_space<semaphore_mem>>) src(%arg3 : memref<1024x1024xbf16, #tpu.memory_space<any>>) dst(%44 : memref<1024x1024xbf16, #tpu.memory_space<vmem>>)
    %c1_i32_42 = arith.constant 1 : i32
    %c1_i32_43 = arith.constant 1 : i32
    %c0_i32_44 = arith.constant 0 : i32
    %c0_i32_45 = arith.constant 0 : i32
    %47 = tpu.memref_slice %arg13[%c1_i32_42, %c0_i32_44, %c0_i32_45] : memref<2x1x1024xf32, #tpu.memory_space<vmem>> -> memref<1x1x1024xf32, #tpu.memory_space<vmem>>
    %48 = tpu.memref_squeeze %47 : memref<1x1x1024xf32, #tpu.memory_space<vmem>> -> memref<1x1024xf32, #tpu.memory_space<vmem>>
    %49 = tpu.memref_slice %arg15[%c1_i32_43] : memref<2x!tpu.dma_semaphore, #tpu.memory_space<semaphore_mem>> -> memref<1x!tpu.dma_semaphore, #tpu.memory_space<semaphore_mem>>
    %50 = tpu.memref_squeeze %49 : memref<1x!tpu.dma_semaphore, #tpu.memory_space<semaphore_mem>> -> memref<!tpu.dma_semaphore, #tpu.memory_space<semaphore_mem>>
    tpu.wait_dma2 semaphore(%50 : memref<!tpu.dma_semaphore, #tpu.memory_space<semaphore_mem>>) src(%arg4 : memref<1x1024xf32, #tpu.memory_space<any>>) dst(%48 : memref<1x1024xf32, #tpu.memory_space<vmem>>)
    %c1 = arith.constant 1 : index
    %c0_46 = arith.constant 0 : index
    %c0_47 = arith.constant 0 : index
    %51 = vector.load %arg12[%c1, %c0_46, %c0_47] : memref<2x1024x1024xbf16, #tpu.memory_space<vmem>>, vector<1x1024x1024xbf16>
    %52 = vector.shape_cast %51 : vector<1x1024x1024xbf16> to vector<1024x1024xbf16>
    %c1_48 = arith.constant 1 : index
    %c0_49 = arith.constant 0 : index
    %c0_50 = arith.constant 0 : index
    %53 = vector.load %arg13[%c1_48, %c0_49, %c0_50] : memref<2x1x1024xf32, #tpu.memory_space<vmem>>, vector<1x1x1024xf32>
    %54 = vector.shape_cast %53 : vector<1x1x1024xf32> to vector<1x1024xf32>
    %55 = arith.truncf %34 : vector<8x1024xf32> to vector<8x1024xbf16>
    %cst_51 = arith.constant dense<0.000000e+00> : vector<8x1024xf32>
    %56 = tpu.matmul %55, %52, %cst_51 {dimension_numbers = #tpu.dot_dimension_numbers<[1], [0], [0], [1], [0, 0, 1, 1], [], []>} : vector<8x1024xbf16>, vector<1024x1024xbf16>, vector<8x1024xf32> -> vector<8x1024xf32>
    %57 = vector.broadcast %54 : vector<1x1024xf32> to vector<8x1024xf32>
    %58 = arith.addf %56, %57 : vector<8x1024xf32>
    %cst_52 = arith.constant 0.000000e+00 : f32
    %59 = vector.broadcast %cst_52 : f32 to vector<8x1024xf32>
    %60 = arith.maximumf %58, %59 : vector<8x1024xf32>
    %c1_i32_53 = arith.constant 1 : i32
    %c1_i32_54 = arith.constant 1 : i32
    %c0_i32_55 = arith.constant 0 : i32
    %c0_i32_56 = arith.constant 0 : i32
    %61 = tpu.memref_slice %arg12[%c1_i32_53, %c0_i32_55, %c0_i32_56] : memref<2x1024x1024xbf16, #tpu.memory_space<vmem>> -> memref<1x1024x512xbf16, #tpu.memory_space<vmem>>
    %62 = tpu.memref_squeeze %61 : memref<1x1024x512xbf16, #tpu.memory_space<vmem>> -> memref<1024x512xbf16, #tpu.memory_space<vmem>>
    %63 = tpu.memref_slice %arg14[%c1_i32_54] : memref<2x!tpu.dma_semaphore, #tpu.memory_space<semaphore_mem>> -> memref<1x!tpu.dma_semaphore, #tpu.memory_space<semaphore_mem>>
    %64 = tpu.memref_squeeze %63 : memref<1x!tpu.dma_semaphore, #tpu.memory_space<semaphore_mem>> -> memref<!tpu.dma_semaphore, #tpu.memory_space<semaphore_mem>>
    tpu.enqueue_dma source(%arg7 : memref<1024x512xbf16, #tpu.memory_space<any>>) target(%62 : memref<1024x512xbf16, #tpu.memory_space<vmem>>) target_semaphore(%64 : memref<!tpu.dma_semaphore, #tpu.memory_space<semaphore_mem>>)
    %c1_i32_57 = arith.constant 1 : i32
    %c1_i32_58 = arith.constant 1 : i32
    %c0_i32_59 = arith.constant 0 : i32
    %c0_i32_60 = arith.constant 0 : i32
    %65 = tpu.memref_slice %arg13[%c1_i32_57, %c0_i32_59, %c0_i32_60] : memref<2x1x1024xf32, #tpu.memory_space<vmem>> -> memref<1x1x1024xf32, #tpu.memory_space<vmem>>
    %66 = tpu.memref_squeeze %65 : memref<1x1x1024xf32, #tpu.memory_space<vmem>> -> memref<1x1024xf32, #tpu.memory_space<vmem>>
    %67 = tpu.memref_slice %arg15[%c1_i32_58] : memref<2x!tpu.dma_semaphore, #tpu.memory_space<semaphore_mem>> -> memref<1x!tpu.dma_semaphore, #tpu.memory_space<semaphore_mem>>
    %68 = tpu.memref_squeeze %67 : memref<1x!tpu.dma_semaphore, #tpu.memory_space<semaphore_mem>> -> memref<!tpu.dma_semaphore, #tpu.memory_space<semaphore_mem>>
    tpu.enqueue_dma source(%arg8 : memref<1x1024xf32, #tpu.memory_space<any>>) target(%66 : memref<1x1024xf32, #tpu.memory_space<vmem>>) target_semaphore(%68 : memref<!tpu.dma_semaphore, #tpu.memory_space<semaphore_mem>>)
    %c0_i32_61 = arith.constant 0 : i32
    %c0_i32_62 = arith.constant 0 : i32
    %c0_i32_63 = arith.constant 0 : i32
    %c0_i32_64 = arith.constant 0 : i32
    %69 = tpu.memref_slice %arg12[%c0_i32_61, %c0_i32_63, %c0_i32_64] : memref<2x1024x1024xbf16, #tpu.memory_space<vmem>> -> memref<1x1024x1024xbf16, #tpu.memory_space<vmem>>
    %70 = tpu.memref_squeeze %69 : memref<1x1024x1024xbf16, #tpu.memory_space<vmem>> -> memref<1024x1024xbf16, #tpu.memory_space<vmem>>
    %71 = tpu.memref_slice %arg14[%c0_i32_62] : memref<2x!tpu.dma_semaphore, #tpu.memory_space<semaphore_mem>> -> memref<1x!tpu.dma_semaphore, #tpu.memory_space<semaphore_mem>>
    %72 = tpu.memref_squeeze %71 : memref<1x!tpu.dma_semaphore, #tpu.memory_space<semaphore_mem>> -> memref<!tpu.dma_semaphore, #tpu.memory_space<semaphore_mem>>
    tpu.wait_dma2 semaphore(%72 : memref<!tpu.dma_semaphore, #tpu.memory_space<semaphore_mem>>) src(%arg5 : memref<1024x1024xbf16, #tpu.memory_space<any>>) dst(%70 : memref<1024x1024xbf16, #tpu.memory_space<vmem>>)
    %c0_i32_65 = arith.constant 0 : i32
    %c0_i32_66 = arith.constant 0 : i32
    %c0_i32_67 = arith.constant 0 : i32
    %c0_i32_68 = arith.constant 0 : i32
    %73 = tpu.memref_slice %arg13[%c0_i32_65, %c0_i32_67, %c0_i32_68] : memref<2x1x1024xf32, #tpu.memory_space<vmem>> -> memref<1x1x1024xf32, #tpu.memory_space<vmem>>
    %74 = tpu.memref_squeeze %73 : memref<1x1x1024xf32, #tpu.memory_space<vmem>> -> memref<1x1024xf32, #tpu.memory_space<vmem>>
    %75 = tpu.memref_slice %arg15[%c0_i32_66] : memref<2x!tpu.dma_semaphore, #tpu.memory_space<semaphore_mem>> -> memref<1x!tpu.dma_semaphore, #tpu.memory_space<semaphore_mem>>
    %76 = tpu.memref_squeeze %75 : memref<1x!tpu.dma_semaphore, #tpu.memory_space<semaphore_mem>> -> memref<!tpu.dma_semaphore, #tpu.memory_space<semaphore_mem>>
    tpu.wait_dma2 semaphore(%76 : memref<!tpu.dma_semaphore, #tpu.memory_space<semaphore_mem>>) src(%arg6 : memref<1x1024xf32, #tpu.memory_space<any>>) dst(%74 : memref<1x1024xf32, #tpu.memory_space<vmem>>)
    %c0_69 = arith.constant 0 : index
    %c0_70 = arith.constant 0 : index
    %c0_71 = arith.constant 0 : index
    %77 = vector.load %arg12[%c0_69, %c0_70, %c0_71] : memref<2x1024x1024xbf16, #tpu.memory_space<vmem>>, vector<1x1024x1024xbf16>
    %78 = vector.shape_cast %77 : vector<1x1024x1024xbf16> to vector<1024x1024xbf16>
    %c0_72 = arith.constant 0 : index
    %c0_73 = arith.constant 0 : index
    %c0_74 = arith.constant 0 : index
    %79 = vector.load %arg13[%c0_72, %c0_73, %c0_74] : memref<2x1x1024xf32, #tpu.memory_space<vmem>>, vector<1x1x1024xf32>
    %80 = vector.shape_cast %79 : vector<1x1x1024xf32> to vector<1x1024xf32>
    %81 = arith.truncf %60 : vector<8x1024xf32> to vector<8x1024xbf16>
    %cst_75 = arith.constant dense<0.000000e+00> : vector<8x1024xf32>
    %82 = tpu.matmul %81, %78, %cst_75 {dimension_numbers = #tpu.dot_dimension_numbers<[1], [0], [0], [1], [0, 0, 1, 1], [], []>} : vector<8x1024xbf16>, vector<1024x1024xbf16>, vector<8x1024xf32> -> vector<8x1024xf32>
    %83 = vector.broadcast %80 : vector<1x1024xf32> to vector<8x1024xf32>
    %84 = arith.addf %82, %83 : vector<8x1024xf32>
    %cst_76 = arith.constant 0.000000e+00 : f32
    %85 = vector.broadcast %cst_76 : f32 to vector<8x1024xf32>
    %86 = arith.maximumf %84, %85 : vector<8x1024xf32>
    %c0_i32_77 = arith.constant 0 : i32
    %c0_i32_78 = arith.constant 0 : i32
    %c0_i32_79 = arith.constant 0 : i32
    %c0_i32_80 = arith.constant 0 : i32
    %87 = tpu.memref_slice %arg12[%c0_i32_77, %c0_i32_79, %c0_i32_80] : memref<2x1024x1024xbf16, #tpu.memory_space<vmem>> -> memref<1x512x128xbf16, #tpu.memory_space<vmem>>
    %88 = tpu.memref_squeeze %87 : memref<1x512x128xbf16, #tpu.memory_space<vmem>> -> memref<512x128xbf16, #tpu.memory_space<vmem>>
    %89 = tpu.memref_slice %arg14[%c0_i32_78] : memref<2x!tpu.dma_semaphore, #tpu.memory_space<semaphore_mem>> -> memref<1x!tpu.dma_semaphore, #tpu.memory_space<semaphore_mem>>
    %90 = tpu.memref_squeeze %89 : memref<1x!tpu.dma_semaphore, #tpu.memory_space<semaphore_mem>> -> memref<!tpu.dma_semaphore, #tpu.memory_space<semaphore_mem>>
    tpu.enqueue_dma source(%arg9 : memref<512x128xbf16, #tpu.memory_space<any>>) target(%88 : memref<512x128xbf16, #tpu.memory_space<vmem>>) target_semaphore(%90 : memref<!tpu.dma_semaphore, #tpu.memory_space<semaphore_mem>>)
    %c0_i32_81 = arith.constant 0 : i32
    %c0_i32_82 = arith.constant 0 : i32
    %c0_i32_83 = arith.constant 0 : i32
    %c0_i32_84 = arith.constant 0 : i32
    %91 = tpu.memref_slice %arg13[%c0_i32_81, %c0_i32_83, %c0_i32_84] : memref<2x1x1024xf32, #tpu.memory_space<vmem>> -> memref<1x1x1024xf32, #tpu.memory_space<vmem>>
    %92 = tpu.memref_squeeze %91 : memref<1x1x1024xf32, #tpu.memory_space<vmem>> -> memref<1x1024xf32, #tpu.memory_space<vmem>>
    %93 = tpu.memref_slice %arg15[%c0_i32_82] : memref<2x!tpu.dma_semaphore, #tpu.memory_space<semaphore_mem>> -> memref<1x!tpu.dma_semaphore, #tpu.memory_space<semaphore_mem>>
    %94 = tpu.memref_squeeze %93 : memref<1x!tpu.dma_semaphore, #tpu.memory_space<semaphore_mem>> -> memref<!tpu.dma_semaphore, #tpu.memory_space<semaphore_mem>>
    tpu.enqueue_dma source(%arg10 : memref<1x1024xf32, #tpu.memory_space<any>>) target(%92 : memref<1x1024xf32, #tpu.memory_space<vmem>>) target_semaphore(%94 : memref<!tpu.dma_semaphore, #tpu.memory_space<semaphore_mem>>)
    %c1_i32_85 = arith.constant 1 : i32
    %c1_i32_86 = arith.constant 1 : i32
    %c0_i32_87 = arith.constant 0 : i32
    %c0_i32_88 = arith.constant 0 : i32
    %95 = tpu.memref_slice %arg12[%c1_i32_85, %c0_i32_87, %c0_i32_88] : memref<2x1024x1024xbf16, #tpu.memory_space<vmem>> -> memref<1x1024x512xbf16, #tpu.memory_space<vmem>>
    %96 = tpu.memref_squeeze %95 : memref<1x1024x512xbf16, #tpu.memory_space<vmem>> -> memref<1024x512xbf16, #tpu.memory_space<vmem>>
    %97 = tpu.memref_slice %arg14[%c1_i32_86] : memref<2x!tpu.dma_semaphore, #tpu.memory_space<semaphore_mem>> -> memref<1x!tpu.dma_semaphore, #tpu.memory_space<semaphore_mem>>
    %98 = tpu.memref_squeeze %97 : memref<1x!tpu.dma_semaphore, #tpu.memory_space<semaphore_mem>> -> memref<!tpu.dma_semaphore, #tpu.memory_space<semaphore_mem>>
    tpu.wait_dma2 semaphore(%98 : memref<!tpu.dma_semaphore, #tpu.memory_space<semaphore_mem>>) src(%arg7 : memref<1024x512xbf16, #tpu.memory_space<any>>) dst(%96 : memref<1024x512xbf16, #tpu.memory_space<vmem>>)
    %c1_i32_89 = arith.constant 1 : i32
    %c1_i32_90 = arith.constant 1 : i32
    %c0_i32_91 = arith.constant 0 : i32
    %c0_i32_92 = arith.constant 0 : i32
    %99 = tpu.memref_slice %arg13[%c1_i32_89, %c0_i32_91, %c0_i32_92] : memref<2x1x1024xf32, #tpu.memory_space<vmem>> -> memref<1x1x1024xf32, #tpu.memory_space<vmem>>
    %100 = tpu.memref_squeeze %99 : memref<1x1x1024xf32, #tpu.memory_space<vmem>> -> memref<1x1024xf32, #tpu.memory_space<vmem>>
    %101 = tpu.memref_slice %arg15[%c1_i32_90] : memref<2x!tpu.dma_semaphore, #tpu.memory_space<semaphore_mem>> -> memref<1x!tpu.dma_semaphore, #tpu.memory_space<semaphore_mem>>
    %102 = tpu.memref_squeeze %101 : memref<1x!tpu.dma_semaphore, #tpu.memory_space<semaphore_mem>> -> memref<!tpu.dma_semaphore, #tpu.memory_space<semaphore_mem>>
    tpu.wait_dma2 semaphore(%102 : memref<!tpu.dma_semaphore, #tpu.memory_space<semaphore_mem>>) src(%arg8 : memref<1x1024xf32, #tpu.memory_space<any>>) dst(%100 : memref<1x1024xf32, #tpu.memory_space<vmem>>)
    %c1_93 = arith.constant 1 : index
    %c0_94 = arith.constant 0 : index
    %c0_95 = arith.constant 0 : index
    %103 = vector.load %arg12[%c1_93, %c0_94, %c0_95] : memref<2x1024x1024xbf16, #tpu.memory_space<vmem>>, vector<1x1024x512xbf16>
    %104 = vector.shape_cast %103 : vector<1x1024x512xbf16> to vector<1024x512xbf16>
    %c1_96 = arith.constant 1 : index
    %c0_97 = arith.constant 0 : index
    %c0_98 = arith.constant 0 : index
    %105 = vector.load %arg13[%c1_96, %c0_97, %c0_98] : memref<2x1x1024xf32, #tpu.memory_space<vmem>>, vector<1x1x512xf32>
    %106 = vector.shape_cast %105 : vector<1x1x512xf32> to vector<1x512xf32>
    %107 = arith.truncf %86 : vector<8x1024xf32> to vector<8x1024xbf16>
    %cst_99 = arith.constant dense<0.000000e+00> : vector<8x512xf32>
    %108 = tpu.matmul %107, %104, %cst_99 {dimension_numbers = #tpu.dot_dimension_numbers<[1], [0], [0], [1], [0, 0, 1, 1], [], []>} : vector<8x1024xbf16>, vector<1024x512xbf16>, vector<8x512xf32> -> vector<8x512xf32>
    %109 = vector.broadcast %106 : vector<1x512xf32> to vector<8x512xf32>
    %110 = arith.addf %108, %109 : vector<8x512xf32>
    %cst_100 = arith.constant 0.000000e+00 : f32
    %111 = vector.broadcast %cst_100 : f32 to vector<8x512xf32>
    %112 = arith.maximumf %110, %111 : vector<8x512xf32>
    %c0_i32_101 = arith.constant 0 : i32
    %c0_i32_102 = arith.constant 0 : i32
    %c0_i32_103 = arith.constant 0 : i32
    %c0_i32_104 = arith.constant 0 : i32
    %113 = tpu.memref_slice %arg12[%c0_i32_101, %c0_i32_103, %c0_i32_104] : memref<2x1024x1024xbf16, #tpu.memory_space<vmem>> -> memref<1x512x128xbf16, #tpu.memory_space<vmem>>
    %114 = tpu.memref_squeeze %113 : memref<1x512x128xbf16, #tpu.memory_space<vmem>> -> memref<512x128xbf16, #tpu.memory_space<vmem>>
    %115 = tpu.memref_slice %arg14[%c0_i32_102] : memref<2x!tpu.dma_semaphore, #tpu.memory_space<semaphore_mem>> -> memref<1x!tpu.dma_semaphore, #tpu.memory_space<semaphore_mem>>
    %116 = tpu.memref_squeeze %115 : memref<1x!tpu.dma_semaphore, #tpu.memory_space<semaphore_mem>> -> memref<!tpu.dma_semaphore, #tpu.memory_space<semaphore_mem>>
    tpu.wait_dma2 semaphore(%116 : memref<!tpu.dma_semaphore, #tpu.memory_space<semaphore_mem>>) src(%arg9 : memref<512x128xbf16, #tpu.memory_space<any>>) dst(%114 : memref<512x128xbf16, #tpu.memory_space<vmem>>)
    %c0_i32_105 = arith.constant 0 : i32
    %c0_i32_106 = arith.constant 0 : i32
    %c0_i32_107 = arith.constant 0 : i32
    %c0_i32_108 = arith.constant 0 : i32
    %117 = tpu.memref_slice %arg13[%c0_i32_105, %c0_i32_107, %c0_i32_108] : memref<2x1x1024xf32, #tpu.memory_space<vmem>> -> memref<1x1x1024xf32, #tpu.memory_space<vmem>>
    %118 = tpu.memref_squeeze %117 : memref<1x1x1024xf32, #tpu.memory_space<vmem>> -> memref<1x1024xf32, #tpu.memory_space<vmem>>
    %119 = tpu.memref_slice %arg15[%c0_i32_106] : memref<2x!tpu.dma_semaphore, #tpu.memory_space<semaphore_mem>> -> memref<1x!tpu.dma_semaphore, #tpu.memory_space<semaphore_mem>>
    %120 = tpu.memref_squeeze %119 : memref<1x!tpu.dma_semaphore, #tpu.memory_space<semaphore_mem>> -> memref<!tpu.dma_semaphore, #tpu.memory_space<semaphore_mem>>
    tpu.wait_dma2 semaphore(%120 : memref<!tpu.dma_semaphore, #tpu.memory_space<semaphore_mem>>) src(%arg10 : memref<1x1024xf32, #tpu.memory_space<any>>) dst(%118 : memref<1x1024xf32, #tpu.memory_space<vmem>>)
    %c0_109 = arith.constant 0 : index
    %c0_110 = arith.constant 0 : index
    %c0_111 = arith.constant 0 : index
    %121 = vector.load %arg12[%c0_109, %c0_110, %c0_111] : memref<2x1024x1024xbf16, #tpu.memory_space<vmem>>, vector<1x512x128xbf16>
    %122 = vector.shape_cast %121 : vector<1x512x128xbf16> to vector<512x128xbf16>
    %c0_112 = arith.constant 0 : index
    %c0_113 = arith.constant 0 : index
    %c0_114 = arith.constant 0 : index
    %123 = vector.load %arg13[%c0_112, %c0_113, %c0_114] : memref<2x1x1024xf32, #tpu.memory_space<vmem>>, vector<1x1x128xf32>
    %124 = vector.shape_cast %123 : vector<1x1x128xf32> to vector<1x128xf32>
    %125 = arith.truncf %112 : vector<8x512xf32> to vector<8x512xbf16>
    %cst_115 = arith.constant dense<0.000000e+00> : vector<8x128xf32>
    %126 = tpu.matmul %125, %122, %cst_115 {dimension_numbers = #tpu.dot_dimension_numbers<[1], [0], [0], [1], [0, 0, 1, 1], [], []>} : vector<8x512xbf16>, vector<512x128xbf16>, vector<8x128xf32> -> vector<8x128xf32>
    %127 = vector.broadcast %124 : vector<1x128xf32> to vector<8x128xf32>
    %128 = arith.addf %126, %127 : vector<8x128xf32>
    %c0_116 = arith.constant 0 : index
    %c0_117 = arith.constant 0 : index
    %129 = vector.load %arg11[%c0_116, %c0_117] : memref<8x128xf32, #tpu.memory_space<vmem>>, vector<8x128xf32>
    tpu.vector_store %arg11[%c0_116, %c0_117], %128 {strides = array<i32>} : memref<8x128xf32, #tpu.memory_space<vmem>>, vector<8x128xf32>,
    return
  }
}

</mosaic_0001>

<bundles_post_ra>
// kernel: tpu_custom_call.1
= control target key start
LH: loop header
LB: loop body
LE: loop exit
PB: predicated region body
PF: predicated region fallthrough
CT: control target
= control target key end

     0   :  { %16 = vsyncpa [#allocation7], 0  ;;  %s12514_s0 = inlined_call_operand.hbm [shape: f32[8,16], index: 0, kind: input, shape index: {}]   ;;  %s12515_s1 = inlined_call_operand.hbm [shape: bf16[16,1024], index: 1, kind: input, shape index: {}]   ;;  %s12516_s2 = inlined_call_operand.hbm [shape: f32[1,1024], index: 2, kind: input, shape index: {}]   ;;  %s12517_s3 = inlined_call_operand.hbm [shape: bf16[1024,1024], index: 3, kind: input, shape index: {}]   ;;  %s12518_s4 = inlined_call_operand.hbm [shape: f32[1,1024], index: 4, kind: input, shape index: {}]   ;;  %s12519_s5 = inlined_call_operand.hbm [shape: bf16[1024,1024], index: 5, kind: input, shape index: {}]   ;;  %s12520_s6 = inlined_call_operand.hbm [shape: f32[1,1024], index: 6, kind: input, shape index: {}]   ;;  %s12521_s7 = inlined_call_operand.hbm [shape: bf16[1024,512], index: 7, kind: input, shape index: {}]   ;;  %s12522_s8 = inlined_call_operand.hbm [shape: f32[1,1024], index: 8, kind: input, shape index: {}]   ;;  %s12523_s9 = inlined_call_operand.hbm [shape: bf16[512,128], index: 9, kind: input, shape index: {}]   ;;  %s12524_s10 = inlined_call_operand.hbm [shape: f32[1,1024], index: 10, kind: input, shape index: {}]   ;;  %s12525_s11 = inlined_call_operand.hbm [shape: f32[8,128], index: 11, kind: output, shape index: {}]  }
   0x1   :  { %17 = vsyncpa [#allocation8], 0  ;;  %s11938_s17 = smov [#allocation6]  }
   0x2   :  { %s24_s18 = sshll.u32 %s11938_s17, 4  ;;  %s25_s18 = int_to_ptr.vmem [resolvable:$true] %s24_s18 }
   0x3   :  { %s11682_s19 = scalar_lea.vmem %s25_s18, 128  ;;  %p11687_p1 = scmp.lt.s32.totalorder %s25_s18, %s25_s18 }
   0x4   :  { %p11683_p0 = scmp.ne.s32.totalorder %s25_s18, %s11682_s19  ;;  %p11688_p2 = scmp.lt.s32.totalorder %s11682_s19, %s11682_s19 }
   0x6   :  { %p11689_p3 = por %p11688_p2, %p11687_p1 }
   0x8   :  { %p11690_p4 = pnand %p11689_p3, %p11683_p0 }
   0xa   :  { %11693 = shalt.err (!%p11690_p4)
}
   0xb   :  { %27 = dma.hbm_to_vmem [thread:$0]  %s12514_s0, 128, %s25_s18, [#allocation7]  }
   0xc   :  { %11914 = dma.done.wait [#allocation7], 128  }
   0xd   :  { %11915 = vsyncadd [#allocation7], 4294967168  ;;  %s11939_s22 = smov [#allocation2]   ;;  %s11940_s24 = smov [#allocation3]  }
   0xe   :  { %s39_s23 = sshll.u32 %s11939_s22, 4  ;;  %s50_s25 = sshll.u32 %s11940_s24, 4  ;;  %s12013_s23 = int_to_ptr.vmem [resolvable:$true] %s39_s23  ;;  %s12015_s25 = int_to_ptr.vmem [resolvable:$true] %s50_s25 }
   0xf   :  { %s11702_s26 = scalar_lea.vmem %s12013_s23, 1024  ;;  %s12020_s27 = scalar_lea.vmem %s12013_s23, 131072 }
  0x10   :  { %p11703_p5 = scmp.ne.s32.totalorder %s12013_s23, %s11702_s26  ;;  %p11707_p6 = scmp.lt.s32.totalorder %s12013_s23, %s12013_s23 }
  0x11   :  { %p11708_p7 = scmp.lt.s32.totalorder %s12020_s27, %s11702_s26 }
  0x13   :  { %p11709_p8 = por %p11708_p7, %p11707_p6 }
  0x15   :  { %p11710_p9 = pnand %p11709_p8, %p11703_p5 }
  0x17   :  { %11713 = shalt.err (!%p11710_p9)  }
  0x18   :  { %42 = dma.hbm_to_vmem [thread:$0]  %s12515_s1, 1024, %s12013_s23, [#allocation4] }
  0x19   :  { %s11722_s29 = scalar_lea.vmem %s12015_s25, 128  ;;  %s11726_s30 = scalar_lea.vmem %s12015_s25, 256 }
  0x1a   :  { %p11723_p10 = scmp.ne.s32.totalorder %s12015_s25, %s11722_s29  ;;  %p11727_p11 = scmp.lt.s32.totalorder %s12015_s25, %s12015_s25 }
  0x1b   :  { %p11728_p12 = scmp.lt.s32.totalorder %s11726_s30, %s11722_s29 }
  0x1d   :  { %p11729_p13 = por %p11728_p12, %p11727_p11 }
  0x1f   :  { %p12037_p0 = pnand %p11729_p13, %p11723_p10 }
  0x21   :  { %11733 = shalt.err (!%p12037_p0)  }
  0x22   :  { %53 = dma.hbm_to_vmem [thread:$0]  %s12516_s2, 128, %s12015_s25, [#allocation5]  ;;  %v80_v0 = vld [vmem:[#allocation6] sm:$0xff] }
  0x23   :  { %s11941_s1 = smov [#allocation2 + $0x1000]   ;;  %s11942_s16 = smov [#allocation3 + $0x8]  }
  0x24   :  { %s63_s15 = sshll.u32 %s11941_s1, 4  ;;  %s76_s17 = sshll.u32 %s11942_s16, 4  ;;  %s12047_s15 = int_to_ptr.vmem [resolvable:$true] %s63_s15  ;;  %s12049_s17 = int_to_ptr.vmem [resolvable:$true] %s76_s17 }
  0x25   :  { %s11742_s18 = scalar_lea.vmem %s12047_s15, 65536  ;;  %p11747_p2 = scmp.lt.s32.totalorder %s12047_s15, %s12013_s23 }
  0x26   :  { %p11743_p1 = scmp.ne.s32.totalorder %s12047_s15, %s11742_s18  ;;  %p11748_p3 = scmp.lt.s32.totalorder %s12020_s27, %s11742_s18 }
  0x28   :  { %p11749_p4 = por %p11748_p3, %p11747_p2 }
  0x2a   :  { %p11750_p5 = pnand %p11749_p4, %p11743_p1 }
  0x2c   :  { %11753 = shalt.err (!%p11750_p5)  }
  0x2d   :  { %66 = dma.hbm_to_vmem [thread:$0]  %s12517_s3, 65536, %s12047_s15, [#allocation4 + $0x1] }
  0x2e   :  { %s11762_s20 = scalar_lea.vmem %s12049_s17, 128  ;;  %p11767_p8 = scmp.lt.s32.totalorder %s12049_s17, %s12015_s25 }
  0x2f   :  { %p12065_p7 = scmp.ne.s32.totalorder %s12049_s17, %s11762_s20  ;;  %p11768_p9 = scmp.lt.s32.totalorder %s11726_s30, %s11762_s20 }
  0x31   :  { %p12071_p10 = por %p11768_p9, %p11767_p8 }
  0x33   :  { %p11770_p11 = pnand %p12071_p10, %p12065_p7 }
  0x35   :  { %11773 = shalt.err (!%p11770_p11)  }
  0x36   :  { %79 = dma.hbm_to_vmem [thread:$0]  %s12518_s4, 128, %s12049_s17, [#allocation5 + $0x1] }
  0x37   :  { %11916 = dma.done.wait [#allocation4], 1024 }
  0x38   :  { %11917 = vsyncadd [#allocation4], 4294966272 }
  0x39   :  { %11918 = dma.done.wait [#allocation5], 128 }
  0x3a   :  { %11919 = vsyncadd [#allocation5], 4294967168  ;;  %v11943_v1 = vmov 0   ;;  %v88_v2 = vld [vmem:[#allocation2] sm:$0xff]  ;;  %v89_v4 = vld [vmem:[#allocation2 + $0x8] sm:$0xff]  ;;  %v97_v15 = vpack.c.bf16 %v80_v0, %v80_v0  ;;  %s11782_s4 = scalar_lea.vmem %s12013_s23, 65536 }
  0x3b   :  { %215 = vmatprep.mubr.bf16.mxu0 %v11943_v1  ;;  %256 = vmatprep.mubr.bf16.mxu1 %v11943_v1  ;;  %v92_v3 = vld [vmem:[#allocation2 + $0x20] sm:$0xff]  ;;  %v93_v6 = vld [vmem:[#allocation2 + $0x28] sm:$0xff]  ;;  %v90_v8 = vld [vmem:[#allocation2 + $0x10] sm:$0xff]  ;;  %p11783_p12 = scmp.ne.s32.totalorder %s12013_s23, %s11782_s4  ;;  %p11788_p13 = scmp.lt.s32.totalorder %s12020_s27, %s11782_s4 }
  0x3c   :  { %v10290_v5 = vcombine.high %v88_v2, %v92_v3  ;;  %v10289_v7 = vcombine.low %v88_v2, %v92_v3  ;;  %v94_v9 = vld [vmem:[#allocation2 + $0x30] sm:$0xff]  ;;  %v10292_v10 = vcombine.high %v89_v4, %v93_v6  ;;  %v10291_v11 = vcombine.low %v89_v4, %v93_v6  ;;  %v91_v13 = vld [vmem:[#allocation2 + $0x18] sm:$0xff]  ;;  %v12088_v17 = vld [vmem:[#allocation3] sm:$0xff] }
  0x3d   :  { %v10294_v12 = vcombine.high %v90_v8, %v94_v9  ;;  %v95_v14 = vld [vmem:[#allocation2 + $0x38] sm:$0xff]  ;;  %p11789_p1 = por %p11788_p13, %p11707_p6 }
  0x3e   :  { %197 = vmatprep.subr.bf16.mxu0 %v10290_v5  ;;  %v10296_v16 = vcombine.high %v91_v13, %v95_v14 }
  0x3f   :  { %p11790_p3 = pnand %p11789_p1, %p11783_p12 }
  0x41   :  { %11793 = shalt.err (!%p11790_p3)  }
  0x42   :  { %365 = dma.hbm_to_vmem [thread:$0]  %s12519_s5, 65536, %s12013_s23, [#allocation4]  ;;  %238 = vmatprep.subr.bf16.mxu1 %v10292_v10  ;;  %198 = vmatpush1.bf16.msra.mxu0 %v10289_v7  ;;  %vm179_vm0 = vcmask 130048   ;;  %v10293_v18 = vcombine.low %v90_v8, %v94_v9 }
  0x43   :  { %11813 = shalt.err (!%p12037_p0)  }
  0x44   :  { %376 = dma.hbm_to_vmem [thread:$0]  %s12520_s6, 128, %s12015_s25, [#allocation5]  ;;  %239 = vmatpush1.bf16.msra.mxu1 %v10291_v11  ;;  %279 = vmatprep.subr.bf16.mxu0 %v10294_v12  ;;  %v10295_v19 = vcombine.low %v91_v13, %v95_v14  ;;  %v99_v20 = vlaneseq }
  0x45   :  { %320 = vmatprep.subr.bf16.mxu1 %v10296_v16  ;;  %10297 = vmatmul.mubr.msk.bf16.vlgmr.msra.gmra.mxu0 %vm179_vm0, %v97_v15 }
  0x46   :  { %280 = vmatpush1.bf16.msra.mxu0 %v10293_v18  ;;  %297 = vmatprep.mubr.bf16.mxu0 %v11943_v1  ;;  %v100_v21 = vshrl.u32 %v99_v20, 7 }
  0x47   :  { %10298 = vmatmul.mubr.msk.bf16.vlgmr.msra.gmra.mxu1 %vm179_vm0, %v97_v15 }
  0x48   :  { %321 = vmatpush1.bf16.msra.mxu1 %v10295_v19  ;;  %338 = vmatprep.mubr.bf16.mxu1 %v11943_v1  ;;  %v12106_v22 = vsub.s32 0, %v100_v21  ;;  %v12108_v23 = vsub.s32 2, %v100_v21  ;;  %v12110_v24 = vsub.s32 1, %v100_v21  ;;  %v12112_v25 = vsub.s32 3, %v100_v21 }
  0x49   :  { %v12124_v33 = vsub.s32 4, %v100_v21  ;;  %v12128_v36 = vsub.s32 6, %v100_v21  ;;  %v12131_v40 = vsub.s32 5, %v100_v21  ;;  %v12134_v44 = vsub.s32 7, %v100_v21 }
  0x4a   :  { %v102_v26 = vrot.slane %v12088_v17, %v12106_v22  ;;  %v110_v27 = vrot.slane %v12088_v17, %v12108_v23  ;;  %v106_v28 = vrot.slane %v12088_v17, %v12110_v24  ;;  %v114_v30 = vrot.slane %v12088_v17, %v12112_v25 }
  0x4b   :  { %v118_v47 = vrot.slane %v12088_v17, %v12124_v33  ;;  %v126_v50 = vrot.slane %v12088_v17, %v12128_v36  ;;  %v122_v52 = vrot.slane %v12088_v17, %v12131_v40  ;;  %v130_v54 = vrot.slane %v12088_v17, %v12134_v44 }
  0x4d   :  { %10299 = vmatmul.mubr.msk.bf16.vlgmr.msra.gmra.mxu0 %vm179_vm0, %v97_v15 }
  0x4f   :  { %10300 = vmatmul.mubr.msk.bf16.vlgmr.msra.gmra.mxu1 %vm179_vm0, %v97_v15 }
 0x105   :  { %v217_v29 = vpop.f32.mrf.mxu0 }
 0x106   :  { %v12122_v31 = vadd.f32 %v217_v29, %v102_v26 }
 0x107   :  { %v258_v32 = vpop.f32.mrf.mxu1  ;;  %v219_v35 = vpop.f32.mrf.mxu0 }
 0x108   :  { %v12126_v34 = vadd.f32 %v258_v32, %v110_v27  ;;  %v347_v37 = vmax.f32 %v12122_v31, 0.0  ;;  %v220_v38 = vadd.f32 %v219_v35, %v106_v28 }
 0x109   :  { %v260_v39 = vpop.f32.mrf.mxu1  ;;  %v221_v43 = vpop.f32.mrf.mxu0 }
 0x10a   :  { %v349_v41 = vmax.f32 %v12126_v34, 0.0  ;;  %v261_v42 = vadd.f32 %v260_v39, %v114_v30  ;;  %v348_v45 = vmax.f32 %v220_v38, 0.0 }
 0x10b   :  { %v262_v46 = vpop.f32.mrf.mxu1  ;;  %v222_v49 = vpop.f32.mrf.mxu0 }
 0x10c   :  { %v350_v48 = vmax.f32 %v261_v42, 0.0 }
 0x10d   :  { %v263_v51 = vpop.f32.mrf.mxu1  ;;  %v299_v53 = vpop.f32.mrf.mxu0 }
 0x10e   :  { %v12144_v55 = vadd.f32 %v299_v53, %v118_v47 }
 0x10f   :  { %v340_v56 = vpop.f32.mrf.mxu1  ;;  %v301_v58 = vpop.f32.mrf.mxu0 }
 0x110   :  { %v12146_v57 = vadd.f32 %v340_v56, %v126_v50  ;;  %v351_v59 = vmax.f32 %v12144_v55, 0.0  ;;  %v12149_v60 = vadd.f32 %v301_v58, %v122_v52 }
 0x111   :  { %v342_v61 = vpop.f32.mrf.mxu1  ;;  %v303_v0 = vpop.f32.mrf.mxu0 }
 0x112   :  { %v353_v62 = vmax.f32 %v12146_v57, 0.0  ;;  %v12152_v63 = vadd.f32 %v342_v61, %v130_v54  ;;  %v352_v1 = vmax.f32 %v12149_v60, 0.0 }
 0x113   :  { %v344_v2 = vpop.f32.mrf.mxu1  ;;  %v304_v4 = vpop.f32.mrf.mxu0 }
 0x114   :  { %v354_v3 = vmax.f32 %v12152_v63, 0.0 }
 0x115   :  { %v345_v5 = vpop.f32.mrf.mxu1 }
 0x116   :  { %11920 = dma.done.wait [#allocation4 + $0x1], 65536 }
 0x117   :  { %11921 = vsyncadd [#allocation4 + $0x1], 4294901760 }
 0x118   :  { %11922 = dma.done.wait [#allocation5 + $0x1], 128 }
 0x119   :  { %11923 = vsyncadd [#allocation5 + $0x1], 4294967168  ;;  %v12156_v6 = vpack.c.bf16 %v348_v45, %v348_v45  ;;  %v12158_v7 = vpack.c.bf16 %v350_v48, %v350_v48  ;;  %v439_v8 = vld [vmem:[#allocation2 + $0x11c0] sm:$0xff] }
 0x11a   :  { %v443_v9 = vld [vmem:[#allocation2 + $0x11e0] sm:$0xff] }
 0x11b   :  { %3537 = vmatprep.mubr.bf16.mxu0 %v12156_v6  ;;  %3578 = vmatprep.mubr.bf16.mxu1 %v12158_v7  ;;  %v567_v10 = vld [vmem:[#allocation2 + $0x15c0] sm:$0xff]  ;;  %v10358_v11 = vcombine.high %v439_v8, %v443_v9  ;;  %v10357_v13 = vcombine.low %v439_v8, %v443_v9 }
 0x11c   :  { %v571_v12 = vld [vmem:[#allocation2 + $0x15e0] sm:$0xff] }
 0x11d   :  { %v431_v14 = vld [vmem:[#allocation2 + $0x1180] sm:$0xff]  ;;  %v10486_v16 = vcombine.high %v567_v10, %v571_v12  ;;  %v10485_v17 = vcombine.low %v567_v10, %v571_v12  ;;  %3505 = vmatprep.subr.bf16.mxu0 %v10358_v11 }
 0x11e   :  { %v435_v15 = vld [vmem:[#allocation2 + $0x11a0] sm:$0xff]  ;;  %3506 = vmatpush1.bf16.msra.mxu0 %v10357_v13 }
 0x11f   :  { %v10350_v18 = vcombine.high %v431_v14, %v435_v15  ;;  %v559_v19 = vld [vmem:[#allocation2 + $0x1580] sm:$0xff]  ;;  %3546 = vmatprep.subr.bf16.mxu1 %v10486_v16  ;;  %v10349_v30 = vcombine.low %v431_v14, %v435_v15 }
 0x120   :  { %v563_v20 = vld [vmem:[#allocation2 + $0x15a0] sm:$0xff]  ;;  %3547 = vmatpush1.bf16.msra.mxu1 %v10485_v17 }
 0x121   :  { %v423_v21 = vld [vmem:[#allocation2 + $0x1140] sm:$0xff]  ;;  %v10478_v26 = vcombine.high %v559_v19, %v563_v20  ;;  %3507 = vmatprep.subr.bf16.mxu0 %v10350_v18  ;;  %v10477_v32 = vcombine.low %v559_v19, %v563_v20 }
 0x122   :  { %v427_v27 = vld [vmem:[#allocation2 + $0x1160] sm:$0xff]  ;;  %3508 = vmatpush1.bf16.msra.mxu0 %v10349_v30 }
 0x123   :  { %v551_v28 = vld [vmem:[#allocation2 + $0x1540] sm:$0xff]  ;;  %v10342_v35 = vcombine.high %v423_v21, %v427_v27  ;;  %3548 = vmatprep.subr.bf16.mxu1 %v10478_v26  ;;  %v10341_v46 = vcombine.low %v423_v21, %v427_v27 }
 0x124   :  { %v555_v29 = vld [vmem:[#allocation2 + $0x1560] sm:$0xff]  ;;  %3549 = vmatpush1.bf16.msra.mxu1 %v10477_v32 }
 0x125   :  { %v10470_v38 = vcombine.high %v551_v28, %v555_v29  ;;  %v415_v39 = vld [vmem:[#allocation2 + $0x1100] sm:$0xff]  ;;  %3509 = vmatprep.subr.bf16.mxu0 %v10342_v35  ;;  %v10469_v47 = vcombine.low %v551_v28, %v555_v29 }
 0x126   :  { %v419_v42 = vld [vmem:[#allocation2 + $0x1120] sm:$0xff]  ;;  %3510 = vmatpush1.bf16.msra.mxu0 %v10341_v46 }
 0x127   :  { %v543_v43 = vld [vmem:[#allocation2 + $0x1500] sm:$0xff]  ;;  %v10334_v48 = vcombine.high %v415_v39, %v419_v42  ;;  %3550 = vmatprep.subr.bf16.mxu1 %v10470_v38  ;;  %v10333_v54 = vcombine.low %v415_v39, %v419_v42 }
 0x128   :  { %v547_v45 = vld [vmem:[#allocation2 + $0x1520] sm:$0xff]  ;;  %3551 = vmatpush1.bf16.msra.mxu1 %v10469_v47 }
 0x129   :  { %v10462_v49 = vcombine.high %v543_v43, %v547_v45  ;;  %v407_v50 = vld [vmem:[#allocation2 + $0x10c0] sm:$0xff]  ;;  %3511 = vmatprep.subr.bf16.mxu0 %v10334_v48  ;;  %v10461_v56 = vcombine.low %v543_v43, %v547_v45 }
 0x12a   :  { %v411_v51 = vld [vmem:[#allocation2 + $0x10e0] sm:$0xff]  ;;  %3512 = vmatpush1.bf16.msra.mxu0 %v10333_v54 }
 0x12b   :  { %v535_v52 = vld [vmem:[#allocation2 + $0x14c0] sm:$0xff]  ;;  %v10326_v58 = vcombine.high %v407_v50, %v411_v51  ;;  %3552 = vmatprep.subr.bf16.mxu1 %v10462_v49  ;;  %v10325_v8 = vcombine.low %v407_v50, %v411_v51 }
 0x12c   :  { %v539_v53 = vld [vmem:[#allocation2 + $0x14e0] sm:$0xff]  ;;  %3553 = vmatpush1.bf16.msra.mxu1 %v10461_v56 }
 0x12d   :  { %v10454_v61 = vcombine.high %v535_v52, %v539_v53  ;;  %v399_v0 = vld [vmem:[#allocation2 + $0x1080] sm:$0xff]  ;;  %3513 = vmatprep.subr.bf16.mxu0 %v10326_v58  ;;  %v10453_v9 = vcombine.low %v535_v52, %v539_v53 }
 0x12e   :  { %v403_v2 = vld [vmem:[#allocation2 + $0x10a0] sm:$0xff]  ;;  %3514 = vmatpush1.bf16.msra.mxu0 %v10325_v8 }
 0x12f   :  { %v527_v4 = vld [vmem:[#allocation2 + $0x1480] sm:$0xff]  ;;  %v10318_v10 = vcombine.high %v399_v0, %v403_v2  ;;  %3554 = vmatprep.subr.bf16.mxu1 %v10454_v61  ;;  %v10317_v16 = vcombine.low %v399_v0, %v403_v2 }
 0x130   :  { %v531_v5 = vld [vmem:[#allocation2 + $0x14a0] sm:$0xff]  ;;  %3555 = vmatpush1.bf16.msra.mxu1 %v10453_v9 }
 0x131   :  { %v10446_v11 = vcombine.high %v527_v4, %v531_v5  ;;  %v391_v12 = vld [vmem:[#allocation2 + $0x1040] sm:$0xff]  ;;  %3515 = vmatprep.subr.bf16.mxu0 %v10318_v10  ;;  %v10445_v17 = vcombine.low %v527_v4, %v531_v5 }
 0x132   :  { %v395_v13 = vld [vmem:[#allocation2 + $0x1060] sm:$0xff]  ;;  %3516 = vmatpush1.bf16.msra.mxu0 %v10317_v16 }
 0x133   :  { %v519_v14 = vld [vmem:[#allocation2 + $0x1440] sm:$0xff]  ;;  %v10310_v18 = vcombine.high %v391_v12, %v395_v13  ;;  %3556 = vmatprep.subr.bf16.mxu1 %v10446_v11  ;;  %v10309_v28 = vcombine.low %v391_v12, %v395_v13 }
 0x134   :  { %v523_v15 = vld [vmem:[#allocation2 + $0x1460] sm:$0xff]  ;;  %3557 = vmatpush1.bf16.msra.mxu1 %v10445_v17 }
 0x135   :  { %v10438_v19 = vcombine.high %v519_v14, %v523_v15  ;;  %v383_v20 = vld [vmem:[#allocation2 + $0x1000] sm:$0xff]  ;;  %3517 = vmatprep.subr.bf16.mxu0 %v10310_v18  ;;  %v10437_v29 = vcombine.low %v519_v14, %v523_v15 }
 0x136   :  { %v387_v21 = vld [vmem:[#allocation2 + $0x1020] sm:$0xff]  ;;  %3518 = vmatpush1.bf16.msra.mxu0 %v10309_v28 }
 0x137   :  { %v511_v26 = vld [vmem:[#allocation2 + $0x1400] sm:$0xff]  ;;  %v10302_v30 = vcombine.high %v383_v20, %v387_v21  ;;  %3558 = vmatprep.subr.bf16.mxu1 %v10438_v19  ;;  %v10301_v43 = vcombine.low %v383_v20, %v387_v21 }
 0x138   :  { %v515_v27 = vld [vmem:[#allocation2 + $0x1420] sm:$0xff]  ;;  %3559 = vmatpush1.bf16.msra.mxu1 %v10437_v29 }
 0x139   :  { %v10430_v32 = vcombine.high %v511_v26, %v515_v27  ;;  %v503_v35 = vld [vmem:[#allocation2 + $0x13c0] sm:$0xff]  ;;  %3519 = vmatprep.subr.bf16.mxu0 %v10302_v30  ;;  %v10429_v45 = vcombine.low %v511_v26, %v515_v27 }
 0x13a   :  { %v507_v38 = vld [vmem:[#allocation2 + $0x13e0] sm:$0xff]  ;;  %3520 = vmatpush1.bf16.msra.mxu0 %v10301_v43 }
 0x13b   :  { %v631_v39 = vld [vmem:[#allocation2 + $0x17c0] sm:$0xff]  ;;  %v10422_v46 = vcombine.high %v503_v35, %v507_v38  ;;  %3560 = vmatprep.subr.bf16.mxu1 %v10430_v32  ;;  %v10421_v52 = vcombine.low %v503_v35, %v507_v38 }
 0x13c   :  { %v635_v42 = vld [vmem:[#allocation2 + $0x17e0] sm:$0xff]  ;;  %3561 = vmatpush1.bf16.msra.mxu1 %v10429_v45 }
 0x13d   :  { %v10550_v47 = vcombine.high %v631_v39, %v635_v42  ;;  %v495_v48 = vld [vmem:[#allocation2 + $0x1380] sm:$0xff]  ;;  %3521 = vmatprep.subr.bf16.mxu0 %v10422_v46  ;;  %v10549_v53 = vcombine.low %v631_v39, %v635_v42 }
 0x13e   :  { %v499_v49 = vld [vmem:[#allocation2 + $0x13a0] sm:$0xff]  ;;  %3522 = vmatpush2.bf16.msra.mxu0 %v10421_v52 }
 0x13f   :  { %v623_v50 = vld [vmem:[#allocation2 + $0x1780] sm:$0xff]  ;;  %v10414_v54 = vcombine.high %v495_v48, %v499_v49  ;;  %3562 = vmatprep.subr.bf16.mxu1 %v10550_v47  ;;  %v10413_v4 = vcombine.low %v495_v48, %v499_v49 }
 0x140   :  { %v627_v51 = vld [vmem:[#allocation2 + $0x17a0] sm:$0xff]  ;;  %3563 = vmatpush2.bf16.msra.mxu1 %v10549_v53 }
 0x141   :  { %v10542_v56 = vcombine.high %v623_v50, %v627_v51  ;;  %v487_v58 = vld [vmem:[#allocation2 + $0x1340] sm:$0xff]  ;;  %3523 = vmatprep.subr.bf16.mxu0 %v10414_v54  ;;  %v10541_v5 = vcombine.low %v623_v50, %v627_v51 }
 0x142   :  { %v491_v61 = vld [vmem:[#allocation2 + $0x1360] sm:$0xff]  ;;  %3524 = vmatpush2.bf16.msra.mxu0 %v10413_v4 }
 0x143   :  { %v615_v0 = vld [vmem:[#allocation2 + $0x1740] sm:$0xff]  ;;  %v10406_v8 = vcombine.high %v487_v58, %v491_v61  ;;  %3564 = vmatprep.subr.bf16.mxu1 %v10542_v56  ;;  %v10405_v14 = vcombine.low %v487_v58, %v491_v61 }
 0x144   :  { %v619_v2 = vld [vmem:[#allocation2 + $0x1760] sm:$0xff]  ;;  %3565 = vmatpush2.bf16.msra.mxu1 %v10541_v5 }
 0x145   :  { %v10534_v9 = vcombine.high %v615_v0, %v619_v2  ;;  %v479_v10 = vld [vmem:[#allocation2 + $0x1300] sm:$0xff]  ;;  %3525 = vmatprep.subr.bf16.mxu0 %v10406_v8  ;;  %v10533_v15 = vcombine.low %v615_v0, %v619_v2 }
 0x146   :  { %v483_v11 = vld [vmem:[#allocation2 + $0x1320] sm:$0xff]  ;;  %3526 = vmatpush2.bf16.msra.mxu0 %v10405_v14 }
 0x147   :  { %v607_v12 = vld [vmem:[#allocation2 + $0x1700] sm:$0xff]  ;;  %v10398_v16 = vcombine.high %v479_v10, %v483_v11  ;;  %3566 = vmatprep.subr.bf16.mxu1 %v10534_v9  ;;  %v10397_v26 = vcombine.low %v479_v10, %v483_v11 }
 0x148   :  { %v611_v13 = vld [vmem:[#allocation2 + $0x1720] sm:$0xff]  ;;  %3567 = vmatpush2.bf16.msra.mxu1 %v10533_v15 }
 0x149   :  { %v10526_v17 = vcombine.high %v607_v12, %v611_v13  ;;  %v471_v18 = vld [vmem:[#allocation2 + $0x12c0] sm:$0xff]  ;;  %3527 = vmatprep.subr.bf16.mxu0 %v10398_v16  ;;  %v10525_v27 = vcombine.low %v607_v12, %v611_v13 }
 0x14a   :  { %v475_v19 = vld [vmem:[#allocation2 + $0x12e0] sm:$0xff]  ;;  %3528 = vmatpush2.bf16.msra.mxu0 %v10397_v26 }
 0x14b   :  { %v599_v20 = vld [vmem:[#allocation2 + $0x16c0] sm:$0xff]  ;;  %v10390_v28 = vcombine.high %v471_v18, %v475_v19  ;;  %3568 = vmatprep.subr.bf16.mxu1 %v10526_v17  ;;  %v10389_v39 = vcombine.low %v471_v18, %v475_v19  ;;  %v12165_v18 = vpack.c.bf16 %v347_v37, %v347_v37  ;;  %v12175_v37 = vpack.c.bf16 %v352_v1, %v352_v1 }
 0x14c   :  { %v603_v21 = vld [vmem:[#allocation2 + $0x16e0] sm:$0xff]  ;;  %3569 = vmatpush2.bf16.msra.mxu1 %v10525_v27 }
 0x14d   :  { %v10518_v29 = vcombine.high %v599_v20, %v603_v21  ;;  %v463_v30 = vld [vmem:[#allocation2 + $0x1280] sm:$0xff]  ;;  %3529 = vmatprep.subr.bf16.mxu0 %v10390_v28  ;;  %v10517_v42 = vcombine.low %v599_v20, %v603_v21  ;;  %v12170_v21 = vpack.c.bf16 %v349_v41, %v349_v41  ;;  %v12181_v41 = vpack.c.bf16 %v354_v3, %v354_v3 }
 0x14e   :  { %v467_v32 = vld [vmem:[#allocation2 + $0x12a0] sm:$0xff]  ;;  %3530 = vmatpush2.bf16.msra.mxu0 %v10389_v39 }
 0x14f   :  { %v591_v35 = vld [vmem:[#allocation2 + $0x1680] sm:$0xff]  ;;  %v10382_v43 = vcombine.high %v463_v30, %v467_v32  ;;  %3570 = vmatprep.subr.bf16.mxu1 %v10518_v29  ;;  %v10381_v50 = vcombine.low %v463_v30, %v467_v32 }
 0x150   :  { %v595_v38 = vld [vmem:[#allocation2 + $0x16a0] sm:$0xff]  ;;  %3571 = vmatpush2.bf16.msra.mxu1 %v10517_v42 }
 0x151   :  { %v10510_v45 = vcombine.high %v591_v35, %v595_v38  ;;  %v455_v46 = vld [vmem:[#allocation2 + $0x1240] sm:$0xff]  ;;  %3531 = vmatprep.subr.bf16.mxu0 %v10382_v43  ;;  %v10509_v51 = vcombine.low %v591_v35, %v595_v38 }
 0x152   :  { %v459_v47 = vld [vmem:[#allocation2 + $0x1260] sm:$0xff]  ;;  %3532 = vmatpush2.bf16.msra.mxu0 %v10381_v50 }
 0x153   :  { %v583_v48 = vld [vmem:[#allocation2 + $0x1640] sm:$0xff]  ;;  %v10374_v52 = vcombine.high %v455_v46, %v459_v47  ;;  %3572 = vmatprep.subr.bf16.mxu1 %v10510_v45  ;;  %v10373_v0 = vcombine.low %v455_v46, %v459_v47 }
 0x154   :  { %v587_v49 = vld [vmem:[#allocation2 + $0x1660] sm:$0xff]  ;;  %3573 = vmatpush2.bf16.msra.mxu1 %v10509_v51 }
 0x155   :  { %v10502_v53 = vcombine.high %v583_v48, %v587_v49  ;;  %v447_v54 = vld [vmem:[#allocation2 + $0x1200] sm:$0xff]  ;;  %3533 = vmatprep.subr.bf16.mxu0 %v10374_v52  ;;  %v10501_v2 = vcombine.low %v583_v48, %v587_v49 }
 0x156   :  { %v451_v56 = vld [vmem:[#allocation2 + $0x1220] sm:$0xff]  ;;  %3534 = vmatpush2.bf16.msra.mxu0 %v10373_v0 }
 0x157   :  { %v575_v58 = vld [vmem:[#allocation2 + $0x1600] sm:$0xff]  ;;  %v10366_v4 = vcombine.high %v447_v54, %v451_v56  ;;  %3574 = vmatprep.subr.bf16.mxu1 %v10502_v53  ;;  %v10365_v12 = vcombine.low %v447_v54, %v451_v56 }
 0x158   :  { %v579_v61 = vld [vmem:[#allocation2 + $0x1620] sm:$0xff]  ;;  %3575 = vmatpush2.bf16.msra.mxu1 %v10501_v2 }
 0x159   :  { %v10494_v5 = vcombine.high %v575_v58, %v579_v61  ;;  %v695_v8 = vld [vmem:[#allocation2 + $0x19c0] sm:$0xff]  ;;  %3535 = vmatprep.subr.bf16.mxu0 %v10366_v4  ;;  %v10493_v13 = vcombine.low %v575_v58, %v579_v61 }
 0x15a   :  { %v699_v9 = vld [vmem:[#allocation2 + $0x19e0] sm:$0xff]  ;;  %3536 = vmatpush2.bf16.msra.mxu0 %v10365_v12 }
 0x15b   :  { %v823_v10 = vld [vmem:[#allocation2 + $0x1dc0] sm:$0xff]  ;;  %v10614_v14 = vcombine.high %v695_v8, %v699_v9  ;;  %3576 = vmatprep.subr.bf16.mxu1 %v10494_v5  ;;  %v10613_v26 = vcombine.low %v695_v8, %v699_v9 }
 0x15c   :  { %v827_v11 = vld [vmem:[#allocation2 + $0x1de0] sm:$0xff]  ;;  %3577 = vmatpush2.bf16.msra.mxu1 %v10493_v13 }
 0x15d   :  { %v10742_v15 = vcombine.high %v823_v10, %v827_v11  ;;  %v687_v16 = vld [vmem:[#allocation2 + $0x1980] sm:$0xff]  ;;  %3587 = vmatprep.subr.bf16.mxu0 %v10614_v14  ;;  %v10741_v27 = vcombine.low %v823_v10, %v827_v11  ;;  %3538 = vmatmul.mubr.bf16.vlgmr.msra.gmra.mxu0 %v12165_v18 }
 0x15e   :  { %v691_v17 = vld [vmem:[#allocation2 + $0x19a0] sm:$0xff]  ;;  %3588 = vmatpush1.bf16.msra.mxu0 %v10613_v26  ;;  %3619 = vmatprep.mubr.bf16.mxu0 %v12175_v37 }
 0x15f   :  { %v815_v19 = vld [vmem:[#allocation2 + $0x1d80] sm:$0xff]  ;;  %v10606_v28 = vcombine.high %v687_v16, %v691_v17  ;;  %3628 = vmatprep.subr.bf16.mxu1 %v10742_v15  ;;  %3579 = vmatmul.mubr.bf16.vlgmr.msra.gmra.mxu1 %v12170_v21  ;;  %v10605_v35 = vcombine.low %v687_v16, %v691_v17 }
 0x160   :  { %v819_v20 = vld [vmem:[#allocation2 + $0x1da0] sm:$0xff]  ;;  %3629 = vmatpush1.bf16.msra.mxu1 %v10741_v27  ;;  %3660 = vmatprep.mubr.bf16.mxu1 %v12181_v41 }
 0x161   :  { %v10734_v29 = vcombine.high %v815_v19, %v819_v20  ;;  %v679_v30 = vld [vmem:[#allocation2 + $0x1940] sm:$0xff]  ;;  %3589 = vmatprep.subr.bf16.mxu0 %v10606_v28  ;;  %v10733_v38 = vcombine.low %v815_v19, %v819_v20 }
 0x162   :  { %v683_v31 = vld [vmem:[#allocation2 + $0x1960] sm:$0xff]  ;;  %3590 = vmatpush1.bf16.msra.mxu0 %v10605_v35 }
 0x163   :  { %v807_v34 = vld [vmem:[#allocation2 + $0x1d40] sm:$0xff]  ;;  %v10598_v60 = vcombine.high %v679_v30, %v683_v31  ;;  %3630 = vmatprep.subr.bf16.mxu1 %v10734_v29  ;;  %v10597_v63 = vcombine.low %v679_v30, %v683_v31 }
 0x164   :  { %v811_v32 = vld [vmem:[#allocation2 + $0x1d60] sm:$0xff]  ;;  %3631 = vmatpush1.bf16.msra.mxu1 %v10733_v38 }
 0x165   :  { %v10726_v1 = vcombine.high %v807_v34, %v811_v32  ;;  %v671_v39 = vld [vmem:[#allocation2 + $0x1900] sm:$0xff]  ;;  %3591 = vmatprep.subr.bf16.mxu0 %v10598_v60  ;;  %v10725_v3 = vcombine.low %v807_v34, %v811_v32 }
 0x166   :  { %v675_v42 = vld [vmem:[#allocation2 + $0x1920] sm:$0xff]  ;;  %3592 = vmatpush1.bf16.msra.mxu0 %v10597_v63 }
 0x167   :  { %v799_v43 = vld [vmem:[#allocation2 + $0x1d00] sm:$0xff]  ;;  %v10590_v46 = vcombine.high %v671_v39, %v675_v42  ;;  %3632 = vmatprep.subr.bf16.mxu1 %v10726_v1  ;;  %v10589_v52 = vcombine.low %v671_v39, %v675_v42 }
 0x168   :  { %v803_v45 = vld [vmem:[#allocation2 + $0x1d20] sm:$0xff]  ;;  %3633 = vmatpush1.bf16.msra.mxu1 %v10725_v3 }
 0x169   :  { %v10718_v47 = vcombine.high %v799_v43, %v803_v45  ;;  %v663_v48 = vld [vmem:[#allocation2 + $0x18c0] sm:$0xff]  ;;  %3593 = vmatprep.subr.bf16.mxu0 %v10590_v46  ;;  %v10717_v53 = vcombine.low %v799_v43, %v803_v45 }
 0x16a   :  { %v667_v49 = vld [vmem:[#allocation2 + $0x18e0] sm:$0xff]  ;;  %3594 = vmatpush1.bf16.msra.mxu0 %v10589_v52 }
 0x16b   :  { %v791_v50 = vld [vmem:[#allocation2 + $0x1cc0] sm:$0xff]  ;;  %v10582_v54 = vcombine.high %v663_v48, %v667_v49  ;;  %3634 = vmatprep.subr.bf16.mxu1 %v10718_v47  ;;  %v10581_v4 = vcombine.low %v663_v48, %v667_v49 }
 0x16c   :  { %v795_v51 = vld [vmem:[#allocation2 + $0x1ce0] sm:$0xff]  ;;  %3635 = vmatpush1.bf16.msra.mxu1 %v10717_v53 }
 0x16d   :  { %v10710_v56 = vcombine.high %v791_v50, %v795_v51  ;;  %v655_v58 = vld [vmem:[#allocation2 + $0x1880] sm:$0xff]  ;;  %3595 = vmatprep.subr.bf16.mxu0 %v10582_v54  ;;  %v10709_v5 = vcombine.low %v791_v50, %v795_v51 }
 0x16e   :  { %v659_v61 = vld [vmem:[#allocation2 + $0x18a0] sm:$0xff]  ;;  %3596 = vmatpush1.bf16.msra.mxu0 %v10581_v4 }
 0x16f   :  { %v783_v0 = vld [vmem:[#allocation2 + $0x1c80] sm:$0xff]  ;;  %v10574_v8 = vcombine.high %v655_v58, %v659_v61  ;;  %3636 = vmatprep.subr.bf16.mxu1 %v10710_v56  ;;  %v10573_v14 = vcombine.low %v655_v58, %v659_v61 }
 0x170   :  { %v787_v2 = vld [vmem:[#allocation2 + $0x1ca0] sm:$0xff]  ;;  %3637 = vmatpush1.bf16.msra.mxu1 %v10709_v5 }
 0x171   :  { %v10702_v9 = vcombine.high %v783_v0, %v787_v2  ;;  %v647_v10 = vld [vmem:[#allocation2 + $0x1840] sm:$0xff]  ;;  %3597 = vmatprep.subr.bf16.mxu0 %v10574_v8  ;;  %v10701_v15 = vcombine.low %v783_v0, %v787_v2 }
 0x172   :  { %v651_v11 = vld [vmem:[#allocation2 + $0x1860] sm:$0xff]  ;;  %3598 = vmatpush1.bf16.msra.mxu0 %v10573_v14 }
 0x173   :  { %v775_v12 = vld [vmem:[#allocation2 + $0x1c40] sm:$0xff]  ;;  %v10566_v16 = vcombine.high %v647_v10, %v651_v11  ;;  %3638 = vmatprep.subr.bf16.mxu1 %v10702_v9  ;;  %v10565_v28 = vcombine.low %v647_v10, %v651_v11 }
 0x174   :  { %v779_v13 = vld [vmem:[#allocation2 + $0x1c60] sm:$0xff]  ;;  %3639 = vmatpush1.bf16.msra.mxu1 %v10701_v15 }
 0x175   :  { %v10694_v17 = vcombine.high %v775_v12, %v779_v13  ;;  %v639_v19 = vld [vmem:[#allocation2 + $0x1800] sm:$0xff]  ;;  %3599 = vmatprep.subr.bf16.mxu0 %v10566_v16  ;;  %v10693_v29 = vcombine.low %v775_v12, %v779_v13 }
 0x176   :  { %v643_v20 = vld [vmem:[#allocation2 + $0x1820] sm:$0xff]  ;;  %3600 = vmatpush1.bf16.msra.mxu0 %v10565_v28 }
 0x177   :  { %v767_v26 = vld [vmem:[#allocation2 + $0x1c00] sm:$0xff]  ;;  %v10558_v30 = vcombine.high %v639_v19, %v643_v20  ;;  %3640 = vmatprep.subr.bf16.mxu1 %v10694_v17  ;;  %v10557_v60 = vcombine.low %v639_v19, %v643_v20 }
 0x178   :  { %v771_v27 = vld [vmem:[#allocation2 + $0x1c20] sm:$0xff]  ;;  %3641 = vmatpush1.bf16.msra.mxu1 %v10693_v29 }
 0x179   :  { %v10686_v31 = vcombine.high %v767_v26, %v771_v27  ;;  %v759_v34 = vld [vmem:[#allocation2 + $0x1bc0] sm:$0xff]  ;;  %3601 = vmatprep.subr.bf16.mxu0 %v10558_v30  ;;  %v10685_v1 = vcombine.low %v767_v26, %v771_v27 }
 0x17a   :  { %v763_v32 = vld [vmem:[#allocation2 + $0x1be0] sm:$0xff]  ;;  %3602 = vmatpush1.bf16.msra.mxu0 %v10557_v60 }
 0x17b   :  { %v887_v35 = vld [vmem:[#allocation2 + $0x1fc0] sm:$0xff]  ;;  %v10678_v39 = vcombine.high %v759_v34, %v763_v32  ;;  %3642 = vmatprep.subr.bf16.mxu1 %v10686_v31  ;;  %v10677_v46 = vcombine.low %v759_v34, %v763_v32 }
 0x17c   :  { %v891_v38 = vld [vmem:[#allocation2 + $0x1fe0] sm:$0xff]  ;;  %3643 = vmatpush1.bf16.msra.mxu1 %v10685_v1 }
 0x17d   :  { %v10806_v42 = vcombine.high %v887_v35, %v891_v38  ;;  %v751_v43 = vld [vmem:[#allocation2 + $0x1b80] sm:$0xff]  ;;  %3603 = vmatprep.subr.bf16.mxu0 %v10678_v39  ;;  %v10805_v47 = vcombine.low %v887_v35, %v891_v38 }
 0x17e   :  { %v755_v45 = vld [vmem:[#allocation2 + $0x1ba0] sm:$0xff]  ;;  %3604 = vmatpush2.bf16.msra.mxu0 %v10677_v46 }
 0x17f   :  { %v879_v63 = vld [vmem:[#allocation2 + $0x1f80] sm:$0xff]  ;;  %v10670_v48 = vcombine.high %v751_v43, %v755_v45  ;;  %3644 = vmatprep.subr.bf16.mxu1 %v10806_v42  ;;  %v10669_v54 = vcombine.low %v751_v43, %v755_v45 }
 0x180   :  { %v883_v3 = vld [vmem:[#allocation2 + $0x1fa0] sm:$0xff]  ;;  %3645 = vmatpush2.bf16.msra.mxu1 %v10805_v47 }
 0x181   :  { %v10798_v49 = vcombine.high %v879_v63, %v883_v3  ;;  %v743_v50 = vld [vmem:[#allocation2 + $0x1b40] sm:$0xff]  ;;  %3605 = vmatprep.subr.bf16.mxu0 %v10670_v48  ;;  %v10797_v56 = vcombine.low %v879_v63, %v883_v3 }
 0x182   :  { %v747_v51 = vld [vmem:[#allocation2 + $0x1b60] sm:$0xff]  ;;  %3606 = vmatpush2.bf16.msra.mxu0 %v10669_v54  ;;  %v568_v54 = vld [vmem:[#allocation2 + $0x15c8] sm:$0xff] }
 0x183   :  { %v871_v52 = vld [vmem:[#allocation2 + $0x1f40] sm:$0xff]  ;;  %v10662_v58 = vcombine.high %v743_v50, %v747_v51  ;;  %3646 = vmatprep.subr.bf16.mxu1 %v10798_v49  ;;  %v10661_v8 = vcombine.low %v743_v50, %v747_v51 }
 0x184   :  { %v875_v53 = vld [vmem:[#allocation2 + $0x1f60] sm:$0xff]  ;;  %3647 = vmatpush2.bf16.msra.mxu1 %v10797_v56  ;;  %v572_v56 = vld [vmem:[#allocation2 + $0x15e8] sm:$0xff] }
 0x185   :  { %v10790_v61 = vcombine.high %v871_v52, %v875_v53  ;;  %v735_v0 = vld [vmem:[#allocation2 + $0x1b00] sm:$0xff]  ;;  %3607 = vmatprep.subr.bf16.mxu0 %v10662_v58  ;;  %v10789_v9 = vcombine.low %v871_v52, %v875_v53  ;;  %v440_v52 = vld [vmem:[#allocation2 + $0x11c8] sm:$0xff] }
 0x186   :  { %v739_v2 = vld [vmem:[#allocation2 + $0x1b20] sm:$0xff]  ;;  %3608 = vmatpush2.bf16.msra.mxu0 %v10661_v8  ;;  %v444_v53 = vld [vmem:[#allocation2 + $0x11e8] sm:$0xff]  ;;  %v12189_v8 = vpack.c.bf16 %v351_v59, %v351_v59 }
 0x187   :  { %v863_v4 = vld [vmem:[#allocation2 + $0x1f00] sm:$0xff]  ;;  %v10654_v10 = vcombine.high %v735_v0, %v739_v2  ;;  %3648 = vmatprep.subr.bf16.mxu1 %v10790_v61  ;;  %v10653_v16 = vcombine.low %v735_v0, %v739_v2  ;;  %v10360_v0 = vcombine.high %v440_v52, %v444_v53  ;;  %v10488_v2 = vcombine.high %v568_v54, %v572_v56  ;;  %v428_v59 = vld [vmem:[#allocation2 + $0x1168] sm:$0xff] }
 0x188   :  { %v867_v5 = vld [vmem:[#allocation2 + $0x1f20] sm:$0xff]  ;;  %3649 = vmatpush2.bf16.msra.mxu1 %v10789_v9  ;;  %v560_v9 = vld [vmem:[#allocation2 + $0x1588] sm:$0xff] }
 0x189   :  { %v10782_v11 = vcombine.high %v863_v4, %v867_v5  ;;  %v727_v12 = vld [vmem:[#allocation2 + $0x1ac0] sm:$0xff]  ;;  %3609 = vmatprep.subr.bf16.mxu0 %v10654_v10  ;;  %v10781_v17 = vcombine.low %v863_v4, %v867_v5  ;;  %v432_v4 = vld [vmem:[#allocation2 + $0x1188] sm:$0xff] }
 0x18a   :  { %v731_v13 = vld [vmem:[#allocation2 + $0x1ae0] sm:$0xff]  ;;  %3610 = vmatpush2.bf16.msra.mxu0 %v10653_v16  ;;  %v436_v5 = vld [vmem:[#allocation2 + $0x11a8] sm:$0xff] }
 0x18b   :  { %v855_v14 = vld [vmem:[#allocation2 + $0x1ec0] sm:$0xff]  ;;  %v10646_v19 = vcombine.high %v727_v12, %v731_v13  ;;  %3650 = vmatprep.subr.bf16.mxu1 %v10782_v11  ;;  %v10645_v30 = vcombine.low %v727_v12, %v731_v13  ;;  %v564_v10 = vld [vmem:[#allocation2 + $0x15a8] sm:$0xff]  ;;  %v12194_v11 = vpack.c.bf16 %v353_v62, %v353_v62  ;;  %v10359_v12 = vcombine.low %v440_v52, %v444_v53 }
 0x18c   :  { %v859_v15 = vld [vmem:[#allocation2 + $0x1ee0] sm:$0xff]  ;;  %3651 = vmatpush2.bf16.msra.mxu1 %v10781_v17  ;;  %v10487_v13 = vcombine.low %v568_v54, %v572_v56  ;;  %v10480_v55 = vcombine.high %v560_v9, %v564_v10  ;;  %v424_v16 = vld [vmem:[#allocation2 + $0x1148] sm:$0xff] }
 0x18d   :  { %v10774_v20 = vcombine.high %v855_v14, %v859_v15  ;;  %v719_v26 = vld [vmem:[#allocation2 + $0x1a80] sm:$0xff]  ;;  %3611 = vmatprep.subr.bf16.mxu0 %v10646_v19  ;;  %v10773_v31 = vcombine.low %v855_v14, %v859_v15  ;;  %v10352_v14 = vcombine.high %v432_v4, %v436_v5  ;;  %v12196_v15 = vld [vmem:[#allocation3 + $0x8] sm:$0xff] }
 0x18e   :  { %v723_v27 = vld [vmem:[#allocation2 + $0x1aa0] sm:$0xff]  ;;  %3612 = vmatpush2.bf16.msra.mxu0 %v10645_v30 }
 0x18f   :  { %v847_v28 = vld [vmem:[#allocation2 + $0x1e80] sm:$0xff]  ;;  %v10638_v34 = vcombine.high %v719_v26, %v723_v27  ;;  %3652 = vmatprep.subr.bf16.mxu1 %v10774_v20  ;;  %v10637_v39 = vcombine.low %v719_v26, %v723_v27 }
 0x190   :  { %v851_v29 = vld [vmem:[#allocation2 + $0x1ea0] sm:$0xff]  ;;  %3653 = vmatpush2.bf16.msra.mxu1 %v10773_v31 }
 0x191   :  { %v10766_v32 = vcombine.high %v847_v28, %v851_v29  ;;  %v711_v35 = vld [vmem:[#allocation2 + $0x1a40] sm:$0xff]  ;;  %3613 = vmatprep.subr.bf16.mxu0 %v10638_v34  ;;  %v10765_v42 = vcombine.low %v847_v28, %v851_v29 }
 0x192   :  { %v715_v38 = vld [vmem:[#allocation2 + $0x1a60] sm:$0xff]  ;;  %3614 = vmatpush2.bf16.msra.mxu0 %v10637_v39 }
 0x193   :  { %v839_v60 = vld [vmem:[#allocation2 + $0x1e40] sm:$0xff]  ;;  %v10630_v43 = vcombine.high %v711_v35, %v715_v38  ;;  %3654 = vmatprep.subr.bf16.mxu1 %v10766_v32  ;;  %v10629_v48 = vcombine.low %v711_v35, %v715_v38 }
 0x194   :  { %v843_v1 = vld [vmem:[#allocation2 + $0x1e60] sm:$0xff]  ;;  %3655 = vmatpush2.bf16.msra.mxu1 %v10765_v42 }
 0x195   :  { %v10758_v45 = vcombine.high %v839_v60, %v843_v1  ;;  %v703_v63 = vld [vmem:[#allocation2 + $0x1a00] sm:$0xff]  ;;  %3615 = vmatprep.subr.bf16.mxu0 %v10630_v43  ;;  %v10757_v49 = vcombine.low %v839_v60, %v843_v1 }
 0x196   :  { %v707_v3 = vld [vmem:[#allocation2 + $0x1a20] sm:$0xff]  ;;  %3616 = vmatpush2.bf16.msra.mxu0 %v10629_v48 }
 0x197   :  { %v831_v46 = vld [vmem:[#allocation2 + $0x1e00] sm:$0xff]  ;;  %v10622_v50 = vcombine.high %v703_v63, %v707_v3  ;;  %3656 = vmatprep.subr.bf16.mxu1 %v10758_v45  ;;  %v10621_v58 = vcombine.low %v703_v63, %v707_v3 }
 0x198   :  { %v835_v47 = vld [vmem:[#allocation2 + $0x1e20] sm:$0xff]  ;;  %3657 = vmatpush2.bf16.msra.mxu1 %v10757_v49 }
 0x199   :  { %v10750_v51 = vcombine.high %v831_v46, %v835_v47  ;;  %3617 = vmatprep.subr.bf16.mxu0 %v10622_v50  ;;  %v10749_v61 = vcombine.low %v831_v46, %v835_v47 }
 0x19a   :  { %3618 = vmatpush2.bf16.msra.mxu0 %v10621_v58 }
 0x19b   :  { %3658 = vmatprep.subr.bf16.mxu1 %v10750_v51  ;;  %3669 = vmatprep.subr.bf16.mxu0 %v10360_v0 }
 0x19c   :  { %3659 = vmatpush2.bf16.msra.mxu1 %v10749_v61 }
 0x19d   :  { %3710 = vmatprep.subr.bf16.mxu1 %v10488_v2 }
 0x19e   :  { %11833 = shalt.err (!%p11770_p11)  }
 0x19f   :  { %4184 = dma.hbm_to_vmem [thread:$0]  %s12522_s8, 128, %s12049_s17, [#allocation5 + $0x1]  ;;  %3620 = vmatmul.mubr.bf16.vlgmr.msra.gmra.mxu0 %v12189_v8  ;;  %v552_v57 = vld [vmem:[#allocation2 + $0x1548] sm:$0xff]  ;;  %3661 = vmatmul.mubr.bf16.vlgmr.msra.gmra.mxu1 %v12194_v11  ;;  %v10351_v17 = vcombine.low %v432_v4, %v436_v5  ;;  %v10479_v19 = vcombine.low %v560_v9, %v564_v10  ;;  %v10344_v20 = vcombine.high %v424_v16, %v428_v59 }
 0x1a0   :  { %v556_v62 = vld [vmem:[#allocation2 + $0x1568] sm:$0xff]  ;;  %3670 = vmatpush1.bf16.msra.mxu0 %v10359_v12  ;;  %3711 = vmatpush1.bf16.msra.mxu1 %v10487_v13  ;;  %v10343_v31 = vcombine.low %v424_v16, %v428_v59  ;;  %s11842_s8 = scalar_lea.vmem %s12047_s15, 32768 }
 0x1a1   :  { %3671 = vmatprep.subr.bf16.mxu0 %v10352_v14  ;;  %3712 = vmatprep.subr.bf16.mxu1 %v10480_v55  ;;  %v10472_v26 = vcombine.high %v552_v57, %v556_v62  ;;  %v416_v27 = vld [vmem:[#allocation2 + $0x1108] sm:$0xff]  ;;  %v10471_v34 = vcombine.low %v552_v57, %v556_v62  ;;  %p11843_p4 = scmp.ne.s32.totalorder %s12047_s15, %s11842_s8  ;;  %p11848_p5 = scmp.lt.s32.totalorder %s12020_s27, %s11842_s8 }
 0x1a2   :  { %v420_v28 = vld [vmem:[#allocation2 + $0x1128] sm:$0xff]  ;;  %3701 = vmatprep.mubr.bf16.mxu0 %v12156_v6  ;;  %3742 = vmatprep.mubr.bf16.mxu1 %v12158_v7 }
 0x1a3   :  { %v544_v29 = vld [vmem:[#allocation2 + $0x1508] sm:$0xff]  ;;  %v10336_v32 = vcombine.high %v416_v27, %v420_v28  ;;  %v10335_v42 = vcombine.low %v416_v27, %v420_v28  ;;  %p11849_p7 = por %p11848_p5, %p11747_p2 }
 0x1a4   :  { %v548_v30 = vld [vmem:[#allocation2 + $0x1528] sm:$0xff]  ;;  %3672 = vmatpush1.bf16.msra.mxu0 %v10351_v17  ;;  %3713 = vmatpush1.bf16.msra.mxu1 %v10479_v19 }
 0x1a5   :  { %3673 = vmatprep.subr.bf16.mxu0 %v10344_v20  ;;  %3714 = vmatprep.subr.bf16.mxu1 %v10472_v26  ;;  %v10464_v35 = vcombine.high %v544_v29, %v548_v30  ;;  %v408_v38 = vld [vmem:[#allocation2 + $0x10c8] sm:$0xff]  ;;  %v10463_v43 = vcombine.low %v544_v29, %v548_v30  ;;  %p11850_p8 = pnand %p11849_p7, %p11843_p4 }
 0x1a6   :  { %v412_v60 = vld [vmem:[#allocation2 + $0x10e8] sm:$0xff] }
 0x1a7   :  { %v536_v1 = vld [vmem:[#allocation2 + $0x14c8] sm:$0xff]  ;;  %v10328_v45 = vcombine.high %v408_v38, %v412_v60  ;;  %v10327_v49 = vcombine.low %v408_v38, %v412_v60 }
 0x1a8   :  { %v540_v39 = vld [vmem:[#allocation2 + $0x14e8] sm:$0xff]  ;;  %3674 = vmatpush1.bf16.msra.mxu0 %v10343_v31  ;;  %3715 = vmatpush1.bf16.msra.mxu1 %v10471_v34 }
 0x1a9   :  { %3675 = vmatprep.subr.bf16.mxu0 %v10336_v32  ;;  %3716 = vmatprep.subr.bf16.mxu1 %v10464_v35  ;;  %v10456_v63 = vcombine.high %v536_v1, %v540_v39  ;;  %v400_v3 = vld [vmem:[#allocation2 + $0x1088] sm:$0xff]  ;;  %v10455_v50 = vcombine.low %v536_v1, %v540_v39 }
 0x1aa   :  { %v404_v46 = vld [vmem:[#allocation2 + $0x10a8] sm:$0xff] }
 0x1ab   :  { %v528_v47 = vld [vmem:[#allocation2 + $0x1488] sm:$0xff]  ;;  %v10320_v51 = vcombine.high %v400_v3, %v404_v46  ;;  %v10319_v61 = vcombine.low %v400_v3, %v404_v46 }
 0x1ac   :  { %v532_v48 = vld [vmem:[#allocation2 + $0x14a8] sm:$0xff]  ;;  %3676 = vmatpush1.bf16.msra.mxu0 %v10335_v42  ;;  %3717 = vmatpush1.bf16.msra.mxu1 %v10463_v43 }
 0x1ad   :  { %3677 = vmatprep.subr.bf16.mxu0 %v10328_v45  ;;  %3718 = vmatprep.subr.bf16.mxu1 %v10456_v63  ;;  %v10448_v52 = vcombine.high %v528_v47, %v532_v48  ;;  %v392_v53 = vld [vmem:[#allocation2 + $0x1048] sm:$0xff]  ;;  %v10447_v0 = vcombine.low %v528_v47, %v532_v48 }
 0x1ae   :  { %v396_v54 = vld [vmem:[#allocation2 + $0x1068] sm:$0xff] }
 0x1af   :  { %v520_v56 = vld [vmem:[#allocation2 + $0x1448] sm:$0xff]  ;;  %v10312_v2 = vcombine.high %v392_v53, %v396_v54  ;;  %v10311_v13 = vcombine.low %v392_v53, %v396_v54 }
 0x1b0   :  { %v524_v58 = vld [vmem:[#allocation2 + $0x1468] sm:$0xff]  ;;  %3678 = vmatpush1.bf16.msra.mxu0 %v10327_v49  ;;  %3719 = vmatpush1.bf16.msra.mxu1 %v10455_v50 }
 0x1b1   :  { %3679 = vmatprep.subr.bf16.mxu0 %v10320_v51  ;;  %3720 = vmatprep.subr.bf16.mxu1 %v10448_v52  ;;  %v10440_v4 = vcombine.high %v520_v56, %v524_v58  ;;  %v384_v5 = vld [vmem:[#allocation2 + $0x1008] sm:$0xff]  ;;  %v10439_v14 = vcombine.low %v520_v56, %v524_v58 }
 0x1b2   :  { %v388_v9 = vld [vmem:[#allocation2 + $0x1028] sm:$0xff] }
 0x1b3   :  { %v512_v10 = vld [vmem:[#allocation2 + $0x1408] sm:$0xff]  ;;  %v10304_v55 = vcombine.high %v384_v5, %v388_v9  ;;  %v10303_v19 = vcombine.low %v384_v5, %v388_v9 }
 0x1b4   :  { %v516_v12 = vld [vmem:[#allocation2 + $0x1428] sm:$0xff]  ;;  %3680 = vmatpush1.bf16.msra.mxu0 %v10319_v61  ;;  %3721 = vmatpush1.bf16.msra.mxu1 %v10447_v0 }
 0x1b5   :  { %3681 = vmatprep.subr.bf16.mxu0 %v10312_v2  ;;  %3722 = vmatprep.subr.bf16.mxu1 %v10440_v4  ;;  %v10432_v16 = vcombine.high %v512_v10, %v516_v12  ;;  %v504_v59 = vld [vmem:[#allocation2 + $0x13c8] sm:$0xff]  ;;  %v10431_v20 = vcombine.low %v512_v10, %v516_v12 }
 0x1b6   :  { %v508_v57 = vld [vmem:[#allocation2 + $0x13e8] sm:$0xff] }
 0x1b7   :  { %v632_v62 = vld [vmem:[#allocation2 + $0x17c8] sm:$0xff]  ;;  %v10424_v26 = vcombine.high %v504_v59, %v508_v57  ;;  %v10423_v34 = vcombine.low %v504_v59, %v508_v57 }
 0x1b8   :  { %v636_v17 = vld [vmem:[#allocation2 + $0x17e8] sm:$0xff]  ;;  %3682 = vmatpush1.bf16.msra.mxu0 %v10311_v13  ;;  %3723 = vmatpush1.bf16.msra.mxu1 %v10439_v14 }
 0x1b9   :  { %3683 = vmatprep.subr.bf16.mxu0 %v10304_v55  ;;  %3724 = vmatprep.subr.bf16.mxu1 %v10432_v16  ;;  %v10552_v27 = vcombine.high %v632_v62, %v636_v17  ;;  %v496_v28 = vld [vmem:[#allocation2 + $0x1388] sm:$0xff]  ;;  %v10551_v32 = vcombine.low %v632_v62, %v636_v17 }
 0x1ba   :  { %v500_v29 = vld [vmem:[#allocation2 + $0x13a8] sm:$0xff] }
 0x1bb   :  { %v624_v30 = vld [vmem:[#allocation2 + $0x1788] sm:$0xff]  ;;  %v10416_v35 = vcombine.high %v496_v28, %v500_v29  ;;  %v10415_v43 = vcombine.low %v496_v28, %v500_v29 }
 0x1bc   :  { %v628_v31 = vld [vmem:[#allocation2 + $0x17a8] sm:$0xff]  ;;  %3684 = vmatpush1.bf16.msra.mxu0 %v10303_v19  ;;  %3725 = vmatpush1.bf16.msra.mxu1 %v10431_v20 }
 0x1bd   :  { %3685 = vmatprep.subr.bf16.mxu0 %v10424_v26  ;;  %3726 = vmatprep.subr.bf16.mxu1 %v10552_v27  ;;  %v10544_v38 = vcombine.high %v624_v30, %v628_v31  ;;  %v488_v60 = vld [vmem:[#allocation2 + $0x1348] sm:$0xff]  ;;  %v10543_v45 = vcombine.low %v624_v30, %v628_v31 }
 0x1be   :  { %v492_v1 = vld [vmem:[#allocation2 + $0x1368] sm:$0xff] }
 0x1bf   :  { %v616_v39 = vld [vmem:[#allocation2 + $0x1748] sm:$0xff]  ;;  %v10408_v63 = vcombine.high %v488_v60, %v492_v1  ;;  %v10407_v50 = vcombine.low %v488_v60, %v492_v1 }
 0x1c0   :  { %v620_v42 = vld [vmem:[#allocation2 + $0x1768] sm:$0xff]  ;;  %3686 = vmatpush2.bf16.msra.mxu0 %v10423_v34  ;;  %3727 = vmatpush2.bf16.msra.mxu1 %v10551_v32 }
 0x1c1   :  { %3687 = vmatprep.subr.bf16.mxu0 %v10416_v35  ;;  %3728 = vmatprep.subr.bf16.mxu1 %v10544_v38  ;;  %v10536_v3 = vcombine.high %v616_v39, %v620_v42  ;;  %v480_v46 = vld [vmem:[#allocation2 + $0x1308] sm:$0xff]  ;;  %v10535_v51 = vcombine.low %v616_v39, %v620_v42 }
 0x1c2   :  { %v484_v47 = vld [vmem:[#allocation2 + $0x1328] sm:$0xff] }
 0x1c3   :  { %v608_v48 = vld [vmem:[#allocation2 + $0x1708] sm:$0xff]  ;;  %v10400_v52 = vcombine.high %v480_v46, %v484_v47  ;;  %v10399_v0 = vcombine.low %v480_v46, %v484_v47 }
 0x1c4   :  { %v612_v49 = vld [vmem:[#allocation2 + $0x1728] sm:$0xff]  ;;  %3688 = vmatpush2.bf16.msra.mxu0 %v10415_v43  ;;  %3729 = vmatpush2.bf16.msra.mxu1 %v10543_v45 }
 0x1c5   :  { %3689 = vmatprep.subr.bf16.mxu0 %v10408_v63  ;;  %3730 = vmatprep.subr.bf16.mxu1 %v10536_v3  ;;  %v10528_v53 = vcombine.high %v608_v48, %v612_v49  ;;  %v472_v54 = vld [vmem:[#allocation2 + $0x12c8] sm:$0xff]  ;;  %v10527_v2 = vcombine.low %v608_v48, %v612_v49 }
 0x1c6   :  { %v476_v56 = vld [vmem:[#allocation2 + $0x12e8] sm:$0xff] }
 0x1c7   :  { %v600_v58 = vld [vmem:[#allocation2 + $0x16c8] sm:$0xff]  ;;  %v10392_v4 = vcombine.high %v472_v54, %v476_v56  ;;  %v10391_v14 = vcombine.low %v472_v54, %v476_v56 }
 0x1c8   :  { %v604_v61 = vld [vmem:[#allocation2 + $0x16e8] sm:$0xff]  ;;  %3690 = vmatpush2.bf16.msra.mxu0 %v10407_v50  ;;  %3731 = vmatpush2.bf16.msra.mxu1 %v10535_v51 }
 0x1c9   :  { %3691 = vmatprep.subr.bf16.mxu0 %v10400_v52  ;;  %3732 = vmatprep.subr.bf16.mxu1 %v10528_v53  ;;  %v10520_v5 = vcombine.high %v600_v58, %v604_v61  ;;  %v464_v9 = vld [vmem:[#allocation2 + $0x1288] sm:$0xff]  ;;  %v10519_v55 = vcombine.low %v600_v58, %v604_v61 }
 0x1ca   :  { %v468_v10 = vld [vmem:[#allocation2 + $0x12a8] sm:$0xff] }
 0x1cb   :  { %v592_v12 = vld [vmem:[#allocation2 + $0x1688] sm:$0xff]  ;;  %v10384_v16 = vcombine.high %v464_v9, %v468_v10  ;;  %v10383_v20 = vcombine.low %v464_v9, %v468_v10 }
 0x1cc   :  { %v596_v13 = vld [vmem:[#allocation2 + $0x16a8] sm:$0xff]  ;;  %3692 = vmatpush2.bf16.msra.mxu0 %v10399_v0  ;;  %3733 = vmatpush2.bf16.msra.mxu1 %v10527_v2 }
 0x1cd   :  { %3693 = vmatprep.subr.bf16.mxu0 %v10392_v4  ;;  %3734 = vmatprep.subr.bf16.mxu1 %v10520_v5  ;;  %v10512_v59 = vcombine.high %v592_v12, %v596_v13  ;;  %v456_v57 = vld [vmem:[#allocation2 + $0x1248] sm:$0xff]  ;;  %v10511_v26 = vcombine.low %v592_v12, %v596_v13 }
 0x1ce   :  { %v460_v62 = vld [vmem:[#allocation2 + $0x1268] sm:$0xff] }
 0x1cf   :  { %v584_v17 = vld [vmem:[#allocation2 + $0x1648] sm:$0xff]  ;;  %v10376_v27 = vcombine.high %v456_v57, %v460_v62  ;;  %v10375_v32 = vcombine.low %v456_v57, %v460_v62 }
 0x1d0   :  { %v588_v19 = vld [vmem:[#allocation2 + $0x1668] sm:$0xff]  ;;  %3694 = vmatpush2.bf16.msra.mxu0 %v10391_v14  ;;  %3735 = vmatpush2.bf16.msra.mxu1 %v10519_v55 }
 0x1d1   :  { %3695 = vmatprep.subr.bf16.mxu0 %v10384_v16  ;;  %3736 = vmatprep.subr.bf16.mxu1 %v10512_v59  ;;  %v10504_v28 = vcombine.high %v584_v17, %v588_v19  ;;  %v448_v29 = vld [vmem:[#allocation2 + $0x1208] sm:$0xff]  ;;  %v10503_v35 = vcombine.low %v584_v17, %v588_v19 }
 0x1d2   :  { %v452_v30 = vld [vmem:[#allocation2 + $0x1228] sm:$0xff] }
 0x1d3   :  { %v576_v31 = vld [vmem:[#allocation2 + $0x1608] sm:$0xff]  ;;  %v10368_v38 = vcombine.high %v448_v29, %v452_v30  ;;  %v10367_v45 = vcombine.low %v448_v29, %v452_v30 }
 0x1d4   :  { %v580_v34 = vld [vmem:[#allocation2 + $0x1628] sm:$0xff]  ;;  %3696 = vmatpush2.bf16.msra.mxu0 %v10383_v20  ;;  %3737 = vmatpush2.bf16.msra.mxu1 %v10511_v26 }
 0x1d5   :  { %3697 = vmatprep.subr.bf16.mxu0 %v10376_v27  ;;  %3738 = vmatprep.subr.bf16.mxu1 %v10504_v28  ;;  %v10496_v60 = vcombine.high %v576_v31, %v580_v34  ;;  %v696_v1 = vld [vmem:[#allocation2 + $0x19c8] sm:$0xff]  ;;  %v10495_v63 = vcombine.low %v576_v31, %v580_v34 }
 0x1d6   :  { %v700_v39 = vld [vmem:[#allocation2 + $0x19e8] sm:$0xff] }
 0x1d7   :  { %v824_v42 = vld [vmem:[#allocation2 + $0x1dc8] sm:$0xff]  ;;  %v10616_v3 = vcombine.high %v696_v1, %v700_v39  ;;  %v10615_v51 = vcombine.low %v696_v1, %v700_v39 }
 0x1d8   :  { %v828_v43 = vld [vmem:[#allocation2 + $0x1de8] sm:$0xff]  ;;  %3698 = vmatpush2.bf16.msra.mxu0 %v10375_v32  ;;  %3739 = vmatpush2.bf16.msra.mxu1 %v10503_v35 }
 0x1d9   :  { %3699 = vmatprep.subr.bf16.mxu0 %v10368_v38  ;;  %3740 = vmatprep.subr.bf16.mxu1 %v10496_v60  ;;  %v10744_v46 = vcombine.high %v824_v42, %v828_v43  ;;  %v688_v47 = vld [vmem:[#allocation2 + $0x1988] sm:$0xff]  ;;  %v10743_v52 = vcombine.low %v824_v42, %v828_v43 }
 0x1da   :  { %v692_v48 = vld [vmem:[#allocation2 + $0x19a8] sm:$0xff] }
 0x1db   :  { %v816_v49 = vld [vmem:[#allocation2 + $0x1d88] sm:$0xff]  ;;  %v10608_v53 = vcombine.high %v688_v47, %v692_v48  ;;  %v10607_v2 = vcombine.low %v688_v47, %v692_v48 }
 0x1dc   :  { %v820_v50 = vld [vmem:[#allocation2 + $0x1da8] sm:$0xff]  ;;  %3700 = vmatpush2.bf16.msra.mxu0 %v10367_v45  ;;  %3741 = vmatpush2.bf16.msra.mxu1 %v10495_v63 }
 0x1dd   :  { %3751 = vmatprep.subr.bf16.mxu0 %v10616_v3  ;;  %3792 = vmatprep.subr.bf16.mxu1 %v10744_v46  ;;  %v10736_v54 = vcombine.high %v816_v49, %v820_v50  ;;  %v680_v56 = vld [vmem:[#allocation2 + $0x1948] sm:$0xff]  ;;  %v10735_v4 = vcombine.low %v816_v49, %v820_v50 }
 0x1de   :  { %v684_v58 = vld [vmem:[#allocation2 + $0x1968] sm:$0xff] }
 0x1df   :  { %3702 = vmatmul.mubr.bf16.vlgmr.msra.gmra.mxu0 %v12165_v18  ;;  %v808_v61 = vld [vmem:[#allocation2 + $0x1d48] sm:$0xff]  ;;  %3743 = vmatmul.mubr.bf16.vlgmr.msra.gmra.mxu1 %v12170_v21  ;;  %v10600_v5 = vcombine.high %v680_v56, %v684_v58  ;;  %v10599_v55 = vcombine.low %v680_v56, %v684_v58 }
 0x1e0   :  { %v812_v0 = vld [vmem:[#allocation2 + $0x1d68] sm:$0xff]  ;;  %3752 = vmatpush1.bf16.msra.mxu0 %v10615_v51  ;;  %3793 = vmatpush1.bf16.msra.mxu1 %v10743_v52 }
 0x1e1   :  { %3753 = vmatprep.subr.bf16.mxu0 %v10608_v53  ;;  %3794 = vmatprep.subr.bf16.mxu1 %v10736_v54  ;;  %v10728_v9 = vcombine.high %v808_v61, %v812_v0  ;;  %v672_v10 = vld [vmem:[#allocation2 + $0x1908] sm:$0xff]  ;;  %v10727_v16 = vcombine.low %v808_v61, %v812_v0 }
 0x1e2   :  { %v676_v12 = vld [vmem:[#allocation2 + $0x1928] sm:$0xff]  ;;  %3783 = vmatprep.mubr.bf16.mxu0 %v12175_v37  ;;  %3824 = vmatprep.mubr.bf16.mxu1 %v12181_v41 }
 0x1e3   :  { %v800_v13 = vld [vmem:[#allocation2 + $0x1d08] sm:$0xff]  ;;  %v10592_v59 = vcombine.high %v672_v10, %v676_v12  ;;  %v10591_v26 = vcombine.low %v672_v10, %v676_v12 }
 0x1e4   :  { %v804_v14 = vld [vmem:[#allocation2 + $0x1d28] sm:$0xff]  ;;  %3754 = vmatpush1.bf16.msra.mxu0 %v10607_v2  ;;  %3795 = vmatpush1.bf16.msra.mxu1 %v10735_v4 }
 0x1e5   :  { %3755 = vmatprep.subr.bf16.mxu0 %v10600_v5  ;;  %3796 = vmatprep.subr.bf16.mxu1 %v10728_v9  ;;  %v10720_v57 = vcombine.high %v800_v13, %v804_v14  ;;  %v664_v62 = vld [vmem:[#allocation2 + $0x18c8] sm:$0xff]  ;;  %v10719_v27 = vcombine.low %v800_v13, %v804_v14 }
 0x1e6   :  { %v668_v17 = vld [vmem:[#allocation2 + $0x18e8] sm:$0xff] }
 0x1e7   :  { %v792_v19 = vld [vmem:[#allocation2 + $0x1cc8] sm:$0xff]  ;;  %v10584_v28 = vcombine.high %v664_v62, %v668_v17  ;;  %v10583_v35 = vcombine.low %v664_v62, %v668_v17 }
 0x1e8   :  { %v796_v20 = vld [vmem:[#allocation2 + $0x1ce8] sm:$0xff]  ;;  %3756 = vmatpush1.bf16.msra.mxu0 %v10599_v55  ;;  %3797 = vmatpush1.bf16.msra.mxu1 %v10727_v16 }
 0x1e9   :  { %3757 = vmatprep.subr.bf16.mxu0 %v10592_v59  ;;  %3798 = vmatprep.subr.bf16.mxu1 %v10720_v57  ;;  %v10712_v29 = vcombine.high %v792_v19, %v796_v20  ;;  %v656_v30 = vld [vmem:[#allocation2 + $0x1888] sm:$0xff]  ;;  %v10711_v38 = vcombine.low %v792_v19, %v796_v20 }
 0x1ea   :  { %v660_v31 = vld [vmem:[#allocation2 + $0x18a8] sm:$0xff] }
 0x1eb   :  { %v784_v34 = vld [vmem:[#allocation2 + $0x1c88] sm:$0xff]  ;;  %v10576_v60 = vcombine.high %v656_v30, %v660_v31  ;;  %v10575_v63 = vcombine.low %v656_v30, %v660_v31 }
 0x1ec   :  { %v788_v32 = vld [vmem:[#allocation2 + $0x1ca8] sm:$0xff]  ;;  %3758 = vmatpush1.bf16.msra.mxu0 %v10591_v26  ;;  %3799 = vmatpush1.bf16.msra.mxu1 %v10719_v27 }
 0x1ed   :  { %3759 = vmatprep.subr.bf16.mxu0 %v10584_v28  ;;  %3800 = vmatprep.subr.bf16.mxu1 %v10712_v29  ;;  %v10704_v1 = vcombine.high %v784_v34, %v788_v32  ;;  %v648_v39 = vld [vmem:[#allocation2 + $0x1848] sm:$0xff]  ;;  %v10703_v3 = vcombine.low %v784_v34, %v788_v32 }
 0x1ee   :  { %v652_v42 = vld [vmem:[#allocation2 + $0x1868] sm:$0xff] }
 0x1ef   :  { %v776_v43 = vld [vmem:[#allocation2 + $0x1c48] sm:$0xff]  ;;  %v10568_v46 = vcombine.high %v648_v39, %v652_v42  ;;  %v10567_v52 = vcombine.low %v648_v39, %v652_v42 }
 0x1f0   :  { %v780_v45 = vld [vmem:[#allocation2 + $0x1c68] sm:$0xff]  ;;  %3760 = vmatpush1.bf16.msra.mxu0 %v10583_v35  ;;  %3801 = vmatpush1.bf16.msra.mxu1 %v10711_v38 }
 0x1f1   :  { %3761 = vmatprep.subr.bf16.mxu0 %v10576_v60  ;;  %3802 = vmatprep.subr.bf16.mxu1 %v10704_v1  ;;  %v10696_v47 = vcombine.high %v776_v43, %v780_v45  ;;  %v640_v48 = vld [vmem:[#allocation2 + $0x1808] sm:$0xff]  ;;  %v10695_v53 = vcombine.low %v776_v43, %v780_v45 }
 0x1f2   :  { %v644_v49 = vld [vmem:[#allocation2 + $0x1828] sm:$0xff] }
 0x1f3   :  { %v768_v50 = vld [vmem:[#allocation2 + $0x1c08] sm:$0xff]  ;;  %v10560_v54 = vcombine.high %v640_v48, %v644_v49  ;;  %v10559_v4 = vcombine.low %v640_v48, %v644_v49 }
 0x1f4   :  { %v772_v51 = vld [vmem:[#allocation2 + $0x1c28] sm:$0xff]  ;;  %3762 = vmatpush1.bf16.msra.mxu0 %v10575_v63  ;;  %3803 = vmatpush1.bf16.msra.mxu1 %v10703_v3 }
 0x1f5   :  { %3763 = vmatprep.subr.bf16.mxu0 %v10568_v46  ;;  %3804 = vmatprep.subr.bf16.mxu1 %v10696_v47  ;;  %v10688_v56 = vcombine.high %v768_v50, %v772_v51  ;;  %v760_v58 = vld [vmem:[#allocation2 + $0x1bc8] sm:$0xff]  ;;  %v10687_v5 = vcombine.low %v768_v50, %v772_v51 }
 0x1f6   :  { %v764_v61 = vld [vmem:[#allocation2 + $0x1be8] sm:$0xff] }
 0x1f7   :  { %v888_v0 = vld [vmem:[#allocation2 + $0x1fc8] sm:$0xff]  ;;  %v10680_v9 = vcombine.high %v760_v58, %v764_v61  ;;  %v10679_v16 = vcombine.low %v760_v58, %v764_v61 }
 0x1f8   :  { %v892_v2 = vld [vmem:[#allocation2 + $0x1fe8] sm:$0xff]  ;;  %3764 = vmatpush1.bf16.msra.mxu0 %v10567_v52  ;;  %3805 = vmatpush1.bf16.msra.mxu1 %v10695_v53 }
 0x1f9   :  { %3765 = vmatprep.subr.bf16.mxu0 %v10560_v54  ;;  %3806 = vmatprep.subr.bf16.mxu1 %v10688_v56  ;;  %v10808_v10 = vcombine.high %v888_v0, %v892_v2  ;;  %v752_v12 = vld [vmem:[#allocation2 + $0x1b88] sm:$0xff]  ;;  %v10807_v59 = vcombine.low %v888_v0, %v892_v2 }
 0x1fa   :  { %v756_v13 = vld [vmem:[#allocation2 + $0x1ba8] sm:$0xff] }
 0x1fb   :  { %v880_v14 = vld [vmem:[#allocation2 + $0x1f88] sm:$0xff]  ;;  %v10672_v57 = vcombine.high %v752_v12, %v756_v13  ;;  %v10671_v27 = vcombine.low %v752_v12, %v756_v13 }
 0x1fc   :  { %v884_v55 = vld [vmem:[#allocation2 + $0x1fa8] sm:$0xff]  ;;  %3766 = vmatpush1.bf16.msra.mxu0 %v10559_v4  ;;  %3807 = vmatpush1.bf16.msra.mxu1 %v10687_v5 }
 0x1fd   :  { %3767 = vmatprep.subr.bf16.mxu0 %v10680_v9  ;;  %3808 = vmatprep.subr.bf16.mxu1 %v10808_v10  ;;  %v10800_v62 = vcombine.high %v880_v14, %v884_v55  ;;  %v744_v17 = vld [vmem:[#allocation2 + $0x1b48] sm:$0xff]  ;;  %v10799_v28 = vcombine.low %v880_v14, %v884_v55 }
 0x1fe   :  { %v748_v19 = vld [vmem:[#allocation2 + $0x1b68] sm:$0xff] }
 0x1ff   :  { %v872_v20 = vld [vmem:[#allocation2 + $0x1f48] sm:$0xff]  ;;  %v10664_v29 = vcombine.high %v744_v17, %v748_v19  ;;  %v10663_v38 = vcombine.low %v744_v17, %v748_v19  ;;  %v441_v19 = vld [vmem:[#allocation2 + $0x11d0] sm:$0xff] }
 0x200   :  { %v876_v26 = vld [vmem:[#allocation2 + $0x1f68] sm:$0xff]  ;;  %3768 = vmatpush2.bf16.msra.mxu0 %v10679_v16  ;;  %3809 = vmatpush2.bf16.msra.mxu1 %v10807_v59 }
 0x201   :  { %3769 = vmatprep.subr.bf16.mxu0 %v10672_v57  ;;  %3810 = vmatprep.subr.bf16.mxu1 %v10800_v62  ;;  %v10792_v30 = vcombine.high %v872_v20, %v876_v26  ;;  %v736_v31 = vld [vmem:[#allocation2 + $0x1b08] sm:$0xff]  ;;  %v10791_v60 = vcombine.low %v872_v20, %v876_v26  ;;  %v445_v20 = vld [vmem:[#allocation2 + $0x11f0] sm:$0xff] }
 0x202   :  { %v740_v34 = vld [vmem:[#allocation2 + $0x1b28] sm:$0xff]  ;;  %v569_v26 = vld [vmem:[#allocation2 + $0x15d0] sm:$0xff] }
 0x203   :  { %v864_v32 = vld [vmem:[#allocation2 + $0x1f08] sm:$0xff]  ;;  %v10656_v1 = vcombine.high %v736_v31, %v740_v34  ;;  %v10655_v3 = vcombine.low %v736_v31, %v740_v34  ;;  %v433_v34 = vld [vmem:[#allocation2 + $0x1190] sm:$0xff] }
 0x204   :  { %v868_v35 = vld [vmem:[#allocation2 + $0x1f28] sm:$0xff]  ;;  %3770 = vmatpush2.bf16.msra.mxu0 %v10671_v27  ;;  %3811 = vmatpush2.bf16.msra.mxu1 %v10799_v28  ;;  %v573_v27 = vld [vmem:[#allocation2 + $0x15f0] sm:$0xff] }
 0x205   :  { %3771 = vmatprep.subr.bf16.mxu0 %v10664_v29  ;;  %3812 = vmatprep.subr.bf16.mxu1 %v10792_v30  ;;  %v10784_v39 = vcombine.high %v864_v32, %v868_v35  ;;  %v728_v42 = vld [vmem:[#allocation2 + $0x1ac8] sm:$0xff]  ;;  %v10783_v46 = vcombine.low %v864_v32, %v868_v35  ;;  %v10362_v30 = vcombine.high %v441_v19, %v445_v20  ;;  %v437_v32 = vld [vmem:[#allocation2 + $0x11b0] sm:$0xff] }
 0x206   :  { %v732_v43 = vld [vmem:[#allocation2 + $0x1ae8] sm:$0xff]  ;;  %v10490_v31 = vcombine.high %v569_v26, %v573_v27  ;;  %v561_v35 = vld [vmem:[#allocation2 + $0x1590] sm:$0xff] }
 0x207   :  { %v856_v45 = vld [vmem:[#allocation2 + $0x1ec8] sm:$0xff]  ;;  %v10648_v47 = vcombine.high %v728_v42, %v732_v43  ;;  %v10647_v53 = vcombine.low %v728_v42, %v732_v43  ;;  %v10354_v42 = vcombine.high %v433_v34, %v437_v32  ;;  %v912_v43 = vrot.slane %v12196_v15, %v12110_v24 }
 0x208   :  { %v860_v63 = vld [vmem:[#allocation2 + $0x1ee8] sm:$0xff]  ;;  %3772 = vmatpush2.bf16.msra.mxu0 %v10663_v38  ;;  %3813 = vmatpush2.bf16.msra.mxu1 %v10791_v60  ;;  %v565_v38 = vld [vmem:[#allocation2 + $0x15b0] sm:$0xff]  ;;  %v908_v60 = vrot.slane %v12196_v15, %v12106_v22 }
 0x209   :  { %3773 = vmatprep.subr.bf16.mxu0 %v10656_v1  ;;  %3814 = vmatprep.subr.bf16.mxu1 %v10784_v39  ;;  %v10776_v48 = vcombine.high %v856_v45, %v860_v63  ;;  %v720_v49 = vld [vmem:[#allocation2 + $0x1a88] sm:$0xff]  ;;  %v10775_v54 = vcombine.low %v856_v45, %v860_v63  ;;  %v10361_v1 = vcombine.low %v441_v19, %v445_v20  ;;  %v425_v63 = vld [vmem:[#allocation2 + $0x1150] sm:$0xff] }
 0x20a   :  { %v724_v50 = vld [vmem:[#allocation2 + $0x1aa8] sm:$0xff]  ;;  %v10489_v39 = vcombine.low %v569_v26, %v573_v27  ;;  %v10482_v45 = vcombine.high %v561_v35, %v565_v38  ;;  %v413_v19 = vld [vmem:[#allocation2 + $0x10f0] sm:$0xff] }
 0x20b   :  { %v848_v51 = vld [vmem:[#allocation2 + $0x1e88] sm:$0xff]  ;;  %v10640_v56 = vcombine.high %v720_v49, %v724_v50  ;;  %v10639_v5 = vcombine.low %v720_v49, %v724_v50  ;;  %v537_v20 = vld [vmem:[#allocation2 + $0x14d0] sm:$0xff] }
 0x20c   :  { %v852_v52 = vld [vmem:[#allocation2 + $0x1ea8] sm:$0xff]  ;;  %3774 = vmatpush2.bf16.msra.mxu0 %v10655_v3  ;;  %3815 = vmatpush2.bf16.msra.mxu1 %v10783_v46  ;;  %v429_v3 = vld [vmem:[#allocation2 + $0x1170] sm:$0xff] }
 0x20d   :  { %3775 = vmatprep.subr.bf16.mxu0 %v10648_v47  ;;  %3816 = vmatprep.subr.bf16.mxu1 %v10776_v48  ;;  %v10768_v58 = vcombine.high %v848_v51, %v852_v52  ;;  %v712_v61 = vld [vmem:[#allocation2 + $0x1a48] sm:$0xff]  ;;  %v10767_v9 = vcombine.low %v848_v51, %v852_v52  ;;  %v553_v47 = vld [vmem:[#allocation2 + $0x1550] sm:$0xff]  ;;  %v10353_v51 = vcombine.low %v433_v34, %v437_v32 }
 0x20e   :  { %v716_v0 = vld [vmem:[#allocation2 + $0x1a68] sm:$0xff]  ;;  %v557_v48 = vld [vmem:[#allocation2 + $0x1570] sm:$0xff] }
 0x20f   :  { %v840_v2 = vld [vmem:[#allocation2 + $0x1e48] sm:$0xff]  ;;  %v10632_v10 = vcombine.high %v712_v61, %v716_v0  ;;  %v10631_v59 = vcombine.low %v712_v61, %v716_v0  ;;  %v10474_v0 = vcombine.high %v553_v47, %v557_v48  ;;  %v541_v26 = vld [vmem:[#allocation2 + $0x14f0] sm:$0xff] }
 0x210   :  { %v844_v4 = vld [vmem:[#allocation2 + $0x1e68] sm:$0xff]  ;;  %3776 = vmatpush2.bf16.msra.mxu0 %v10647_v53  ;;  %3817 = vmatpush2.bf16.msra.mxu1 %v10775_v54  ;;  %v10481_v53 = vcombine.low %v561_v35, %v565_v38  ;;  %v10346_v54 = vcombine.high %v425_v63, %v429_v3  ;;  %v405_v34 = vld [vmem:[#allocation2 + $0x10b0] sm:$0xff] }
 0x211   :  { %3777 = vmatprep.subr.bf16.mxu0 %v10640_v56  ;;  %3818 = vmatprep.subr.bf16.mxu1 %v10768_v58  ;;  %v10760_v12 = vcombine.high %v840_v2, %v844_v4  ;;  %v704_v13 = vld [vmem:[#allocation2 + $0x1a08] sm:$0xff]  ;;  %v10759_v57 = vcombine.low %v840_v2, %v844_v4  ;;  %v417_v2 = vld [vmem:[#allocation2 + $0x1110] sm:$0xff] }
 0x212   :  { %v708_v14 = vld [vmem:[#allocation2 + $0x1a28] sm:$0xff]  ;;  %v421_v4 = vld [vmem:[#allocation2 + $0x1130] sm:$0xff] }
 0x213   :  { %v832_v55 = vld [vmem:[#allocation2 + $0x1e08] sm:$0xff]  ;;  %v10624_v62 = vcombine.high %v704_v13, %v708_v14  ;;  %v10623_v28 = vcombine.low %v704_v13, %v708_v14  ;;  %v10345_v14 = vcombine.low %v425_v63, %v429_v3  ;;  %v10337_v27 = vcombine.low %v417_v2, %v421_v4  ;;  %v529_v32 = vld [vmem:[#allocation2 + $0x1490] sm:$0xff] }
 0x214   :  { %v836_v16 = vld [vmem:[#allocation2 + $0x1e28] sm:$0xff]  ;;  %3778 = vmatpush2.bf16.msra.mxu0 %v10639_v5  ;;  %3819 = vmatpush2.bf16.msra.mxu1 %v10767_v9  ;;  %v545_v9 = vld [vmem:[#allocation2 + $0x1510] sm:$0xff] }
 0x215   :  { %3779 = vmatprep.subr.bf16.mxu0 %v10632_v10  ;;  %3820 = vmatprep.subr.bf16.mxu1 %v10760_v12  ;;  %v10752_v17 = vcombine.high %v832_v55, %v836_v16  ;;  %v10751_v29 = vcombine.low %v832_v55, %v836_v16  ;;  %v549_v10 = vld [vmem:[#allocation2 + $0x1530] sm:$0xff]  ;;  %v10473_v16 = vcombine.low %v553_v47, %v557_v48 }
 0x216   :  { %v533_v35 = vld [vmem:[#allocation2 + $0x14b0] sm:$0xff] }
 0x217   :  { %v525_v63 = vld [vmem:[#allocation2 + $0x1470] sm:$0xff] }
 0x218   :  { %3780 = vmatpush2.bf16.msra.mxu0 %v10631_v59  ;;  %3821 = vmatpush2.bf16.msra.mxu1 %v10759_v57  ;;  %v10338_v59 = vcombine.high %v417_v2, %v421_v4  ;;  %v509_v2 = vld [vmem:[#allocation2 + $0x13f0] sm:$0xff] }
 0x219   :  { %3781 = vmatprep.subr.bf16.mxu0 %v10624_v62  ;;  %3822 = vmatprep.subr.bf16.mxu1 %v10752_v17  ;;  %v10466_v62 = vcombine.high %v545_v9, %v549_v10  ;;  %v409_v17 = vld [vmem:[#allocation2 + $0x10d0] sm:$0xff] }
 0x21a   :  { %v10329_v38 = vcombine.low %v409_v17, %v413_v19  ;;  %v633_v4 = vld [vmem:[#allocation2 + $0x17d0] sm:$0xff] }
 0x21c   :  { %3782 = vmatpush2.bf16.msra.mxu0 %v10623_v28  ;;  %3823 = vmatpush2.bf16.msra.mxu1 %v10751_v29  ;;  %v10465_v28 = vcombine.low %v545_v9, %v549_v10  ;;  %v10330_v29 = vcombine.high %v409_v17, %v413_v19 }
 0x21d   :  { %3833 = vmatprep.subr.bf16.mxu0 %v10362_v30  ;;  %3874 = vmatprep.subr.bf16.mxu1 %v10490_v31  ;;  %v3539_v46 = vpop.f32.mrf.mxu0  ;;  %v10458_v30 = vcombine.high %v537_v20, %v541_v26  ;;  %v401_v31 = vld [vmem:[#allocation2 + $0x1090] sm:$0xff] }
 0x21e   :  { %v3540_v49 = vadd.f32 %v3539_v46, %v908_v60  ;;  %v10457_v60 = vcombine.low %v537_v20, %v541_v26  ;;  %v10321_v3 = vcombine.low %v401_v31, %v405_v34  ;;  %v10449_v46 = vcombine.low %v529_v32, %v533_v35  ;;  %v489_v26 = vld [vmem:[#allocation2 + $0x1350] sm:$0xff] }
 0x21f   :  { %3784 = vmatmul.mubr.bf16.vlgmr.msra.gmra.mxu0 %v12189_v8  ;;  %v3580_v50 = vpop.f32.mrf.mxu1  ;;  %3825 = vmatmul.mubr.bf16.vlgmr.msra.gmra.mxu1 %v12194_v11  ;;  %v3541_v52 = vpop.f32.mrf.mxu0 }
 0x220   :  { %3834 = vmatpush1.bf16.msra.mxu0 %v10361_v1  ;;  %3875 = vmatpush1.bf16.msra.mxu1 %v10489_v39  ;;  %v12221_v56 = vadd.f32 %v3580_v50, %v3540_v49  ;;  %v3542_v58 = vadd.f32 %v3541_v52, %v912_v43  ;;  %v10322_v1 = vcombine.high %v401_v31, %v405_v34  ;;  %v397_v43 = vld [vmem:[#allocation2 + $0x1070] sm:$0xff] }
 0x221   :  { %3835 = vmatprep.subr.bf16.mxu0 %v10354_v42  ;;  %v3582_v61 = vpop.f32.mrf.mxu1  ;;  %3876 = vmatprep.subr.bf16.mxu1 %v10482_v45  ;;  %v3543_v5 = vpop.f32.mrf.mxu0  ;;  %v10450_v39 = vcombine.high %v529_v32, %v533_v35  ;;  %v393_v42 = vld [vmem:[#allocation2 + $0x1050] sm:$0xff] }
 0x222   :  { %3865 = vmatprep.mubr.bf16.mxu0 %v12156_v6  ;;  %3906 = vmatprep.mubr.bf16.mxu1 %v12158_v7  ;;  %v12225_v12 = vadd.f32 %v3582_v61, %v3542_v58  ;;  %v521_v45 = vld [vmem:[#allocation2 + $0x1450] sm:$0xff]  ;;  %v10314_v47 = vcombine.high %v393_v42, %v397_v43 }
 0x223   :  { %v3584_v13 = vpop.f32.mrf.mxu1  ;;  %v3544_v55 = vpop.f32.mrf.mxu0  ;;  %v10442_v48 = vcombine.high %v521_v45, %v525_v63  ;;  %v385_v49 = vld [vmem:[#allocation2 + $0x1010] sm:$0xff] }
 0x224   :  { %3836 = vmatpush1.bf16.msra.mxu0 %v10353_v51  ;;  %3877 = vmatpush1.bf16.msra.mxu1 %v10481_v53  ;;  %v389_v50 = vld [vmem:[#allocation2 + $0x1030] sm:$0xff]  ;;  %v10313_v53 = vcombine.low %v393_v42, %v397_v43 }
 0x225   :  { %3837 = vmatprep.subr.bf16.mxu0 %v10346_v54  ;;  %v3585_v57 = vpop.f32.mrf.mxu1  ;;  %3878 = vmatprep.subr.bf16.mxu1 %v10474_v0  ;;  %v513_v51 = vld [vmem:[#allocation2 + $0x1410] sm:$0xff]  ;;  %v10441_v54 = vcombine.low %v521_v45, %v525_v63  ;;  %v10306_v58 = vcombine.high %v385_v49, %v389_v50  ;;  %v10305_v9 = vcombine.low %v385_v49, %v389_v50 }
 0x226   :  { %v517_v52 = vld [vmem:[#allocation2 + $0x1430] sm:$0xff] }
 0x227   :  { %v10434_v61 = vcombine.high %v513_v51, %v517_v52  ;;  %v505_v0 = vld [vmem:[#allocation2 + $0x13d0] sm:$0xff]  ;;  %v10433_v10 = vcombine.low %v513_v51, %v517_v52 }
 0x228   :  { %3838 = vmatpush1.bf16.msra.mxu0 %v10345_v14  ;;  %3879 = vmatpush1.bf16.msra.mxu1 %v10473_v16  ;;  %v637_v5 = vld [vmem:[#allocation2 + $0x17f0] sm:$0xff]  ;;  %v10426_v13 = vcombine.high %v505_v0, %v509_v2 }
 0x229   :  { %3839 = vmatprep.subr.bf16.mxu0 %v10338_v59  ;;  %3880 = vmatprep.subr.bf16.mxu1 %v10466_v62  ;;  %v10554_v14 = vcombine.high %v633_v4, %v637_v5  ;;  %v497_v55 = vld [vmem:[#allocation2 + $0x1390] sm:$0xff]  ;;  %v10425_v62 = vcombine.low %v505_v0, %v509_v2  ;;  %v10553_v17 = vcombine.low %v633_v4, %v637_v5 }
 0x22a   :  { %v501_v16 = vld [vmem:[#allocation2 + $0x13b0] sm:$0xff] }
 0x22b   :  { %v625_v59 = vld [vmem:[#allocation2 + $0x1790] sm:$0xff]  ;;  %v10418_v19 = vcombine.high %v497_v55, %v501_v16 }
 0x22c   :  { %3840 = vmatpush1.bf16.msra.mxu0 %v10337_v27  ;;  %3881 = vmatpush1.bf16.msra.mxu1 %v10465_v28  ;;  %v629_v57 = vld [vmem:[#allocation2 + $0x17b0] sm:$0xff] }
 0x22d   :  { %3841 = vmatprep.subr.bf16.mxu0 %v10330_v29  ;;  %3882 = vmatprep.subr.bf16.mxu1 %v10458_v30  ;;  %v10546_v20 = vcombine.high %v625_v59, %v629_v57  ;;  %v493_v27 = vld [vmem:[#allocation2 + $0x1370] sm:$0xff]  ;;  %v10417_v30 = vcombine.low %v497_v55, %v501_v16  ;;  %v10545_v31 = vcombine.low %v625_v59, %v629_v57 }
 0x22e   :  { %v617_v28 = vld [vmem:[#allocation2 + $0x1750] sm:$0xff]  ;;  %v10410_v34 = vcombine.high %v489_v26, %v493_v27 }
 0x22f   :  { %v621_v29 = vld [vmem:[#allocation2 + $0x1770] sm:$0xff] }
 0x230   :  { %3842 = vmatpush1.bf16.msra.mxu0 %v10329_v38  ;;  %3883 = vmatpush1.bf16.msra.mxu1 %v10457_v60  ;;  %v10538_v32 = vcombine.high %v617_v28, %v621_v29  ;;  %v481_v35 = vld [vmem:[#allocation2 + $0x1310] sm:$0xff]  ;;  %v10537_v42 = vcombine.low %v617_v28, %v621_v29 }
 0x231   :  { %3843 = vmatprep.subr.bf16.mxu0 %v10322_v1  ;;  %3884 = vmatprep.subr.bf16.mxu1 %v10450_v39  ;;  %v485_v38 = vld [vmem:[#allocation2 + $0x1330] sm:$0xff]  ;;  %v10409_v39 = vcombine.low %v489_v26, %v493_v27 }
 0x232   :  { %v609_v60 = vld [vmem:[#allocation2 + $0x1710] sm:$0xff]  ;;  %v10402_v43 = vcombine.high %v481_v35, %v485_v38 }
 0x233   :  { %v613_v1 = vld [vmem:[#allocation2 + $0x1730] sm:$0xff] }
 0x234   :  { %3844 = vmatpush1.bf16.msra.mxu0 %v10321_v3  ;;  %3885 = vmatpush1.bf16.msra.mxu1 %v10449_v46  ;;  %v10530_v45 = vcombine.high %v609_v60, %v613_v1  ;;  %v473_v63 = vld [vmem:[#allocation2 + $0x12d0] sm:$0xff]  ;;  %v10529_v49 = vcombine.low %v609_v60, %v613_v1 }
 0x235   :  { %3845 = vmatprep.subr.bf16.mxu0 %v10314_v47  ;;  %3886 = vmatprep.subr.bf16.mxu1 %v10442_v48  ;;  %v477_v3 = vld [vmem:[#allocation2 + $0x12f0] sm:$0xff]  ;;  %v10401_v48 = vcombine.low %v481_v35, %v485_v38 }
 0x236   :  { %v601_v46 = vld [vmem:[#allocation2 + $0x16d0] sm:$0xff]  ;;  %v10394_v50 = vcombine.high %v473_v63, %v477_v3 }
 0x237   :  { %v605_v47 = vld [vmem:[#allocation2 + $0x16f0] sm:$0xff] }
 0x238   :  { %3846 = vmatpush1.bf16.msra.mxu0 %v10313_v53  ;;  %3887 = vmatpush1.bf16.msra.mxu1 %v10441_v54  ;;  %v10522_v51 = vcombine.high %v601_v46, %v605_v47  ;;  %v465_v52 = vld [vmem:[#allocation2 + $0x1290] sm:$0xff]  ;;  %v10521_v0 = vcombine.low %v601_v46, %v605_v47 }
 0x239   :  { %3847 = vmatprep.subr.bf16.mxu0 %v10306_v58  ;;  %3888 = vmatprep.subr.bf16.mxu1 %v10434_v61  ;;  %v469_v53 = vld [vmem:[#allocation2 + $0x12b0] sm:$0xff]  ;;  %v10393_v61 = vcombine.low %v473_v63, %v477_v3 }
 0x23a   :  { %v593_v54 = vld [vmem:[#allocation2 + $0x1690] sm:$0xff]  ;;  %v10386_v2 = vcombine.high %v465_v52, %v469_v53 }
 0x23b   :  { %v597_v58 = vld [vmem:[#allocation2 + $0x16b0] sm:$0xff] }
 0x23c   :  { %3848 = vmatpush1.bf16.msra.mxu0 %v10305_v9  ;;  %3889 = vmatpush1.bf16.msra.mxu1 %v10433_v10  ;;  %v10514_v4 = vcombine.high %v593_v54, %v597_v58  ;;  %v457_v5 = vld [vmem:[#allocation2 + $0x1250] sm:$0xff]  ;;  %v10513_v55 = vcombine.low %v593_v54, %v597_v58 }
 0x23d   :  { %3849 = vmatprep.subr.bf16.mxu0 %v10426_v13  ;;  %3890 = vmatprep.subr.bf16.mxu1 %v10554_v14  ;;  %v461_v9 = vld [vmem:[#allocation2 + $0x1270] sm:$0xff]  ;;  %v10385_v14 = vcombine.low %v465_v52, %v469_v53 }
 0x23e   :  { %v585_v10 = vld [vmem:[#allocation2 + $0x1650] sm:$0xff]  ;;  %v10378_v16 = vcombine.high %v457_v5, %v461_v9 }
 0x23f   :  { %v589_v13 = vld [vmem:[#allocation2 + $0x1670] sm:$0xff] }
 0x240   :  { %3850 = vmatpush2.bf16.msra.mxu0 %v10425_v62  ;;  %3891 = vmatpush2.bf16.msra.mxu1 %v10553_v17  ;;  %v10506_v59 = vcombine.high %v585_v10, %v589_v13  ;;  %v449_v57 = vld [vmem:[#allocation2 + $0x1210] sm:$0xff]  ;;  %v10505_v26 = vcombine.low %v585_v10, %v589_v13 }
 0x241   :  { %3851 = vmatprep.subr.bf16.mxu0 %v10418_v19  ;;  %3892 = vmatprep.subr.bf16.mxu1 %v10546_v20  ;;  %v453_v62 = vld [vmem:[#allocation2 + $0x1230] sm:$0xff]  ;;  %v10377_v20 = vcombine.low %v457_v5, %v461_v9 }
 0x242   :  { %v577_v17 = vld [vmem:[#allocation2 + $0x1610] sm:$0xff]  ;;  %v10370_v27 = vcombine.high %v449_v57, %v453_v62 }
 0x243   :  { %v581_v19 = vld [vmem:[#allocation2 + $0x1630] sm:$0xff] }
 0x244   :  { %3852 = vmatpush2.bf16.msra.mxu0 %v10417_v30  ;;  %3893 = vmatpush2.bf16.msra.mxu1 %v10545_v31  ;;  %v10498_v28 = vcombine.high %v577_v17, %v581_v19  ;;  %v697_v29 = vld [vmem:[#allocation2 + $0x19d0] sm:$0xff]  ;;  %v10497_v35 = vcombine.low %v577_v17, %v581_v19 }
 0x245   :  { %3853 = vmatprep.subr.bf16.mxu0 %v10410_v34  ;;  %3894 = vmatprep.subr.bf16.mxu1 %v10538_v32  ;;  %v701_v30 = vld [vmem:[#allocation2 + $0x19f0] sm:$0xff]  ;;  %v10369_v32 = vcombine.low %v449_v57, %v453_v62 }
 0x246   :  { %v825_v31 = vld [vmem:[#allocation2 + $0x1dd0] sm:$0xff]  ;;  %v10618_v38 = vcombine.high %v697_v29, %v701_v30 }
 0x247   :  { %v829_v34 = vld [vmem:[#allocation2 + $0x1df0] sm:$0xff] }
 0x248   :  { %3854 = vmatpush2.bf16.msra.mxu0 %v10409_v39  ;;  %3895 = vmatpush2.bf16.msra.mxu1 %v10537_v42  ;;  %v10746_v60 = vcombine.high %v825_v31, %v829_v34  ;;  %v689_v1 = vld [vmem:[#allocation2 + $0x1990] sm:$0xff]  ;;  %v10745_v63 = vcombine.low %v825_v31, %v829_v34 }
 0x249   :  { %3855 = vmatprep.subr.bf16.mxu0 %v10402_v43  ;;  %3896 = vmatprep.subr.bf16.mxu1 %v10530_v45  ;;  %v693_v39 = vld [vmem:[#allocation2 + $0x19b0] sm:$0xff]  ;;  %v10617_v45 = vcombine.low %v697_v29, %v701_v30 }
 0x24a   :  { %v817_v42 = vld [vmem:[#allocation2 + $0x1d90] sm:$0xff]  ;;  %v10610_v3 = vcombine.high %v689_v1, %v693_v39  ;;  %v10609_v54 = vcombine.low %v689_v1, %v693_v39 }
 0x24b   :  { %v821_v43 = vld [vmem:[#allocation2 + $0x1db0] sm:$0xff] }
 0x24c   :  { %3856 = vmatpush2.bf16.msra.mxu0 %v10401_v48  ;;  %3897 = vmatpush2.bf16.msra.mxu1 %v10529_v49  ;;  %v10738_v46 = vcombine.high %v817_v42, %v821_v43  ;;  %v681_v47 = vld [vmem:[#allocation2 + $0x1950] sm:$0xff] }
 0x24d   :  { %3857 = vmatprep.subr.bf16.mxu0 %v10394_v50  ;;  %3898 = vmatprep.subr.bf16.mxu1 %v10522_v51  ;;  %v685_v48 = vld [vmem:[#allocation2 + $0x1970] sm:$0xff] }
 0x24e   :  { %v809_v50 = vld [vmem:[#allocation2 + $0x1d50] sm:$0xff]  ;;  %v10601_v62 = vcombine.low %v681_v47, %v685_v48 }
 0x24f   :  { %v813_v51 = vld [vmem:[#allocation2 + $0x1d70] sm:$0xff] }
 0x250   :  { %3858 = vmatpush2.bf16.msra.mxu0 %v10393_v61  ;;  %3899 = vmatpush2.bf16.msra.mxu1 %v10521_v0  ;;  %v10737_v61 = vcombine.low %v817_v42, %v821_v43  ;;  %v10602_v0 = vcombine.high %v681_v47, %v685_v48  ;;  %v10730_v9 = vcombine.high %v809_v50, %v813_v51  ;;  %v673_v10 = vld [vmem:[#allocation2 + $0x1910] sm:$0xff] }
 0x251   :  { %3859 = vmatprep.subr.bf16.mxu0 %v10386_v2  ;;  %3900 = vmatprep.subr.bf16.mxu1 %v10514_v4  ;;  %v677_v13 = vld [vmem:[#allocation2 + $0x1930] sm:$0xff]  ;;  %v10729_v17 = vcombine.low %v809_v50, %v813_v51 }
 0x252   :  { %v10594_v19 = vcombine.high %v673_v10, %v677_v13  ;;  %v669_v29 = vld [vmem:[#allocation2 + $0x18f0] sm:$0xff]  ;;  %v10593_v34 = vcombine.low %v673_v10, %v677_v13 }
 0x253   :  { %v793_v30 = vld [vmem:[#allocation2 + $0x1cd0] sm:$0xff] }
 0x254   :  { %3860 = vmatpush2.bf16.msra.mxu0 %v10385_v14  ;;  %3901 = vmatpush2.bf16.msra.mxu1 %v10513_v55  ;;  %v801_v14 = vld [vmem:[#allocation2 + $0x1d10] sm:$0xff] }
 0x255   :  { %3861 = vmatprep.subr.bf16.mxu0 %v10378_v16  ;;  %3902 = vmatprep.subr.bf16.mxu1 %v10506_v59  ;;  %v805_v55 = vld [vmem:[#allocation2 + $0x1d30] sm:$0xff] }
 0x256   :  { %v797_v31 = vld [vmem:[#allocation2 + $0x1cf0] sm:$0xff] }
 0x257   :  { %v661_v1 = vld [vmem:[#allocation2 + $0x18b0] sm:$0xff] }
 0x258   :  { %3862 = vmatpush2.bf16.msra.mxu0 %v10377_v20  ;;  %3903 = vmatpush2.bf16.msra.mxu1 %v10505_v26  ;;  %v785_v39 = vld [vmem:[#allocation2 + $0x1c90] sm:$0xff] }
 0x259   :  { %3863 = vmatprep.subr.bf16.mxu0 %v10370_v27  ;;  %3904 = vmatprep.subr.bf16.mxu1 %v10498_v28  ;;  %v10722_v27 = vcombine.high %v801_v14, %v805_v55  ;;  %v665_v28 = vld [vmem:[#allocation2 + $0x18d0] sm:$0xff] }
 0x25a   :  { %v789_v42 = vld [vmem:[#allocation2 + $0x1cb0] sm:$0xff]  ;;  %v10585_v43 = vcombine.low %v665_v28, %v669_v29 }
 0x25b   :  { %v653_v47 = vld [vmem:[#allocation2 + $0x1870] sm:$0xff]  ;;  %v10705_v51 = vcombine.low %v785_v39, %v789_v42 }
 0x25c   :  { %3864 = vmatpush2.bf16.msra.mxu0 %v10369_v32  ;;  %3905 = vmatpush2.bf16.msra.mxu1 %v10497_v35  ;;  %v10721_v32 = vcombine.low %v801_v14, %v805_v55  ;;  %v10586_v35 = vcombine.high %v665_v28, %v669_v29  ;;  %v777_v48 = vld [vmem:[#allocation2 + $0x1c50] sm:$0xff] }
 0x25d   :  { %3915 = vmatprep.subr.bf16.mxu0 %v10618_v38  ;;  %3956 = vmatprep.subr.bf16.mxu1 %v10746_v60  ;;  %v10714_v38 = vcombine.high %v793_v30, %v797_v31  ;;  %v657_v60 = vld [vmem:[#allocation2 + $0x1890] sm:$0xff] }
 0x25e   :  { %v10577_v50 = vcombine.low %v657_v60, %v661_v1  ;;  %v761_v13 = vld [vmem:[#allocation2 + $0x1bd0] sm:$0xff] }
 0x25f   :  { %v3621_v49 = vpop.f32.mrf.mxu0  ;;  %3866 = vmatmul.mubr.bf16.vlgmr.msra.gmra.mxu0 %v12165_v18  ;;  %v3662_v53 = vpop.f32.mrf.mxu1  ;;  %3907 = vmatmul.mubr.bf16.vlgmr.msra.gmra.mxu1 %v12170_v21  ;;  %v889_v14 = vld [vmem:[#allocation2 + $0x1fd0] sm:$0xff] }
 0x260   :  { %v3622_v52 = vadd.f32 %v3621_v49, %v12221_v56  ;;  %3916 = vmatpush1.bf16.msra.mxu0 %v10617_v45  ;;  %3957 = vmatpush1.bf16.msra.mxu1 %v10745_v63  ;;  %v10713_v45 = vcombine.low %v793_v30, %v797_v31  ;;  %v10578_v63 = vcombine.high %v657_v60, %v661_v1  ;;  %v781_v49 = vld [vmem:[#allocation2 + $0x1c70] sm:$0xff] }
 0x261   :  { %v3623_v58 = vpop.f32.mrf.mxu0  ;;  %3917 = vmatprep.subr.bf16.mxu0 %v10610_v3  ;;  %v3664_v5 = vpop.f32.mrf.mxu1  ;;  %3958 = vmatprep.subr.bf16.mxu1 %v10738_v46  ;;  %v10706_v3 = vcombine.high %v785_v39, %v789_v42  ;;  %v649_v46 = vld [vmem:[#allocation2 + $0x1850] sm:$0xff] }
 0x262   :  { %v12230_v2 = vadd.f32 %v3662_v53, %v3622_v52  ;;  %v3624_v4 = vadd.f32 %v3623_v58, %v12225_v12  ;;  %3947 = vmatprep.mubr.bf16.mxu0 %v12175_v37  ;;  %3988 = vmatprep.mubr.bf16.mxu1 %v12181_v41  ;;  %v10570_v52 = vcombine.high %v649_v46, %v653_v47  ;;  %v645_v58 = vld [vmem:[#allocation2 + $0x1830] sm:$0xff] }
 0x263   :  { %v3625_v56 = vpop.f32.mrf.mxu0  ;;  %v3666_v57 = vpop.f32.mrf.mxu1  ;;  %v10698_v53 = vcombine.high %v777_v48, %v781_v49  ;;  %v893_v55 = vld [vmem:[#allocation2 + $0x1ff0] sm:$0xff] }
 0x264   :  { %v4161_v16 = vmax.f32 %v12230_v2, 0.0  ;;  %v12236_v59 = vadd.f32 %v3664_v5, %v3624_v4  ;;  %3918 = vmatpush1.bf16.msra.mxu0 %v10609_v54  ;;  %3959 = vmatpush1.bf16.msra.mxu1 %v10737_v61  ;;  %v641_v54 = vld [vmem:[#allocation2 + $0x1810] sm:$0xff]  ;;  %v10569_v4 = vcombine.low %v649_v46, %v653_v47  ;;  %v10697_v5 = vcombine.low %v777_v48, %v781_v49 }
 0x265   :  { %v3626_v12 = vpop.f32.mrf.mxu0  ;;  %3919 = vmatprep.subr.bf16.mxu0 %v10602_v0  ;;  %v3667_v26 = vpop.f32.mrf.mxu1  ;;  %3960 = vmatprep.subr.bf16.mxu1 %v10730_v9  ;;  %v769_v61 = vld [vmem:[#allocation2 + $0x1c10] sm:$0xff]  ;;  %v10562_v9 = vcombine.high %v641_v54, %v645_v58  ;;  %v10561_v57 = vcombine.low %v641_v54, %v645_v58  ;;  %v10809_v30 = vcombine.low %v889_v14, %v893_v55 }
 0x266   :  { %v4162_v20 = vmax.f32 %v12236_v59, 0.0  ;;  %v773_v0 = vld [vmem:[#allocation2 + $0x1c30] sm:$0xff] }
 0x267   :  { %v10690_v10 = vcombine.high %v769_v61, %v773_v0  ;;  %v765_v56 = vld [vmem:[#allocation2 + $0x1bf0] sm:$0xff] }
 0x268   :  { %3920 = vmatpush1.bf16.msra.mxu0 %v10601_v62  ;;  %3961 = vmatpush1.bf16.msra.mxu1 %v10729_v17  ;;  %v10689_v62 = vcombine.low %v769_v61, %v773_v0  ;;  %v10682_v12 = vcombine.high %v761_v13, %v765_v56  ;;  %v10810_v17 = vcombine.high %v889_v14, %v893_v55  ;;  %v757_v26 = vld [vmem:[#allocation2 + $0x1bb0] sm:$0xff] }
 0x269   :  { %3921 = vmatprep.subr.bf16.mxu0 %v10594_v19  ;;  %3962 = vmatprep.subr.bf16.mxu1 %v10722_v27  ;;  %v753_v19 = vld [vmem:[#allocation2 + $0x1b90] sm:$0xff]  ;;  %v10681_v29 = vcombine.low %v761_v13, %v765_v56 }
 0x26a   :  { %v881_v27 = vld [vmem:[#allocation2 + $0x1f90] sm:$0xff]  ;;  %v10674_v31 = vcombine.high %v753_v19, %v757_v26  ;;  %v10673_v1 = vcombine.low %v753_v19, %v757_v26 }
 0x26b   :  { %v885_v28 = vld [vmem:[#allocation2 + $0x1fb0] sm:$0xff] }
 0x26c   :  { %3922 = vmatpush1.bf16.msra.mxu0 %v10593_v34  ;;  %3963 = vmatpush1.bf16.msra.mxu1 %v10721_v32  ;;  %v10802_v34 = vcombine.high %v881_v27, %v885_v28  ;;  %v745_v32 = vld [vmem:[#allocation2 + $0x1b50] sm:$0xff]  ;;  %v10801_v39 = vcombine.low %v881_v27, %v885_v28 }
 0x26d   :  { %3923 = vmatprep.subr.bf16.mxu0 %v10586_v35  ;;  %3964 = vmatprep.subr.bf16.mxu1 %v10714_v38  ;;  %v749_v35 = vld [vmem:[#allocation2 + $0x1b70] sm:$0xff] }
 0x26e   :  { %v873_v38 = vld [vmem:[#allocation2 + $0x1f50] sm:$0xff]  ;;  %v10666_v42 = vcombine.high %v745_v32, %v749_v35  ;;  %v10665_v47 = vcombine.low %v745_v32, %v749_v35 }
 0x26f   :  { %v877_v60 = vld [vmem:[#allocation2 + $0x1f70] sm:$0xff] }
 0x270   :  { %3924 = vmatpush1.bf16.msra.mxu0 %v10585_v43  ;;  %3965 = vmatpush1.bf16.msra.mxu1 %v10713_v45  ;;  %v10794_v43 = vcombine.high %v873_v38, %v877_v60  ;;  %v737_v45 = vld [vmem:[#allocation2 + $0x1b10] sm:$0xff]  ;;  %v10793_v48 = vcombine.low %v873_v38, %v877_v60 }
 0x271   :  { %3925 = vmatprep.subr.bf16.mxu0 %v10578_v63  ;;  %3966 = vmatprep.subr.bf16.mxu1 %v10706_v3  ;;  %v741_v63 = vld [vmem:[#allocation2 + $0x1b30] sm:$0xff] }
 0x272   :  { %v865_v3 = vld [vmem:[#allocation2 + $0x1f10] sm:$0xff]  ;;  %v10658_v49 = vcombine.high %v737_v45, %v741_v63  ;;  %v10657_v58 = vcombine.low %v737_v45, %v741_v63  ;;  %v574_v45 = vld [vmem:[#allocation2 + $0x15f8] sm:$0xff] }
 0x273   :  { %v869_v46 = vld [vmem:[#allocation2 + $0x1f30] sm:$0xff] }
 0x274   :  { %3926 = vmatpush1.bf16.msra.mxu0 %v10577_v50  ;;  %3967 = vmatpush1.bf16.msra.mxu1 %v10705_v51  ;;  %v10786_v50 = vcombine.high %v865_v3, %v869_v46  ;;  %v729_v51 = vld [vmem:[#allocation2 + $0x1ad0] sm:$0xff]  ;;  %v10785_v61 = vcombine.low %v865_v3, %v869_v46 }
 0x275   :  { %3927 = vmatprep.subr.bf16.mxu0 %v10570_v52  ;;  %3968 = vmatprep.subr.bf16.mxu1 %v10698_v53  ;;  %v733_v52 = vld [vmem:[#allocation2 + $0x1af0] sm:$0xff] }
 0x276   :  { %v857_v53 = vld [vmem:[#allocation2 + $0x1ed0] sm:$0xff]  ;;  %v10650_v0 = vcombine.high %v729_v51, %v733_v52  ;;  %v10649_v56 = vcombine.low %v729_v51, %v733_v52  ;;  %v566_v51 = vld [vmem:[#allocation2 + $0x15b8] sm:$0xff]  ;;  %v916_v52 = vrot.slane %v12196_v15, %v12108_v23 }
 0x277   :  { %v861_v54 = vld [vmem:[#allocation2 + $0x1ef0] sm:$0xff] }
 0x278   :  { %3928 = vmatpush1.bf16.msra.mxu0 %v10569_v4  ;;  %3969 = vmatpush1.bf16.msra.mxu1 %v10697_v5  ;;  %v10778_v4 = vcombine.high %v857_v53, %v861_v54  ;;  %v721_v5 = vld [vmem:[#allocation2 + $0x1a90] sm:$0xff]  ;;  %v10777_v14 = vcombine.low %v857_v53, %v861_v54 }
 0x279   :  { %3929 = vmatprep.subr.bf16.mxu0 %v10562_v9  ;;  %3970 = vmatprep.subr.bf16.mxu1 %v10690_v10  ;;  %v725_v9 = vld [vmem:[#allocation2 + $0x1ab0] sm:$0xff] }
 0x27a   :  { %v849_v10 = vld [vmem:[#allocation2 + $0x1e90] sm:$0xff]  ;;  %v10642_v55 = vcombine.high %v721_v5, %v725_v9  ;;  %v10641_v26 = vcombine.low %v721_v5, %v725_v9  ;;  %v430_v5 = vld [vmem:[#allocation2 + $0x1178] sm:$0xff] }
 0x27b   :  { %v853_v13 = vld [vmem:[#allocation2 + $0x1eb0] sm:$0xff] }
 0x27c   :  { %3930 = vmatpush1.bf16.msra.mxu0 %v10561_v57  ;;  %3971 = vmatpush1.bf16.msra.mxu1 %v10689_v62  ;;  %v10770_v57 = vcombine.high %v849_v10, %v853_v13  ;;  %v713_v62 = vld [vmem:[#allocation2 + $0x1a50] sm:$0xff]  ;;  %v10769_v27 = vcombine.low %v849_v10, %v853_v13  ;;  %v554_v10 = vld [vmem:[#allocation2 + $0x1558] sm:$0xff] }
 0x27d   :  { %3931 = vmatprep.subr.bf16.mxu0 %v10682_v12  ;;  %3972 = vmatprep.subr.bf16.mxu1 %v10810_v17  ;;  %v717_v12 = vld [vmem:[#allocation2 + $0x1a70] sm:$0xff]  ;;  %v558_v13 = vld [vmem:[#allocation2 + $0x1578] sm:$0xff] }
 0x27e   :  { %v841_v17 = vld [vmem:[#allocation2 + $0x1e50] sm:$0xff]  ;;  %v10634_v28 = vcombine.high %v713_v62, %v717_v12  ;;  %v10633_v35 = vcombine.low %v713_v62, %v717_v12 }
 0x27f   :  { %v845_v19 = vld [vmem:[#allocation2 + $0x1e70] sm:$0xff] }
 0x280   :  { %3932 = vmatpush2.bf16.msra.mxu0 %v10681_v29  ;;  %3973 = vmatpush2.bf16.msra.mxu1 %v10809_v30  ;;  %v10762_v29 = vcombine.high %v841_v17, %v845_v19  ;;  %v705_v30 = vld [vmem:[#allocation2 + $0x1a10] sm:$0xff]  ;;  %v10761_v38 = vcombine.low %v841_v17, %v845_v19 }
 0x281   :  { %3933 = vmatprep.subr.bf16.mxu0 %v10674_v31  ;;  %3974 = vmatprep.subr.bf16.mxu1 %v10802_v34  ;;  %v709_v31 = vld [vmem:[#allocation2 + $0x1a30] sm:$0xff] }
 0x282   :  { %v833_v34 = vld [vmem:[#allocation2 + $0x1e10] sm:$0xff]  ;;  %v10626_v60 = vcombine.high %v705_v30, %v709_v31  ;;  %v10625_v63 = vcombine.low %v705_v30, %v709_v31  ;;  %v546_v31 = vld [vmem:[#allocation2 + $0x1518] sm:$0xff] }
 0x283   :  { %v837_v32 = vld [vmem:[#allocation2 + $0x1e30] sm:$0xff] }
 0x284   :  { %3934 = vmatpush2.bf16.msra.mxu0 %v10673_v1  ;;  %3975 = vmatpush2.bf16.msra.mxu1 %v10801_v39  ;;  %v10754_v1 = vcombine.high %v833_v34, %v837_v32  ;;  %v442_v39 = vld [vmem:[#allocation2 + $0x11d8] sm:$0xff]  ;;  %v10753_v3 = vcombine.low %v833_v34, %v837_v32 }
 0x285   :  { %3935 = vmatprep.subr.bf16.mxu0 %v10666_v42  ;;  %3976 = vmatprep.subr.bf16.mxu1 %v10794_v43  ;;  %v446_v42 = vld [vmem:[#allocation2 + $0x11f8] sm:$0xff] }
 0x286   :  { %v570_v43 = vld [vmem:[#allocation2 + $0x15d8] sm:$0xff]  ;;  %v10364_v46 = vcombine.high %v442_v39, %v446_v42  ;;  %v10363_v53 = vcombine.low %v442_v39, %v446_v42 }
 0x287   :  { %v10491_v54 = vcombine.low %v570_v43, %v574_v45  ;;  %v550_v34 = vld [vmem:[#allocation2 + $0x1538] sm:$0xff] }
 0x288   :  { %3936 = vmatpush2.bf16.msra.mxu0 %v10665_v47  ;;  %3977 = vmatpush2.bf16.msra.mxu1 %v10793_v48  ;;  %v10492_v47 = vcombine.high %v570_v43, %v574_v45  ;;  %v434_v48 = vld [vmem:[#allocation2 + $0x1198] sm:$0xff]  ;;  %v10468_v43 = vcombine.high %v546_v31, %v550_v34 }
 0x289   :  { %3937 = vmatprep.subr.bf16.mxu0 %v10658_v49  ;;  %3978 = vmatprep.subr.bf16.mxu1 %v10786_v50  ;;  %v438_v49 = vld [vmem:[#allocation2 + $0x11b8] sm:$0xff] }
 0x28a   :  { %v562_v50 = vld [vmem:[#allocation2 + $0x1598] sm:$0xff] }
 0x28b   :  { %v10483_v62 = vcombine.low %v562_v50, %v566_v51  ;;  %v410_v45 = vld [vmem:[#allocation2 + $0x10d8] sm:$0xff] }
 0x28c   :  { %3938 = vmatpush2.bf16.msra.mxu0 %v10657_v58  ;;  %3979 = vmatpush2.bf16.msra.mxu1 %v10785_v61  ;;  %v10356_v58 = vcombine.high %v434_v48, %v438_v49  ;;  %v920_v61 = vrot.slane %v12196_v15, %v12112_v25 }
 0x28d   :  { %3939 = vmatprep.subr.bf16.mxu0 %v10650_v0  ;;  %3980 = vmatprep.subr.bf16.mxu1 %v10778_v4  ;;  %v10484_v0 = vcombine.high %v562_v50, %v566_v51  ;;  %v426_v4 = vld [vmem:[#allocation2 + $0x1158] sm:$0xff] }
 0x28e   :  { %v10348_v12 = vcombine.high %v426_v4, %v430_v5  ;;  %v406_v50 = vld [vmem:[#allocation2 + $0x10b8] sm:$0xff] }
 0x28f   :  { %v530_v51 = vld [vmem:[#allocation2 + $0x1498] sm:$0xff] }
 0x290   :  { %3940 = vmatpush2.bf16.msra.mxu0 %v10649_v56  ;;  %3981 = vmatpush2.bf16.msra.mxu1 %v10777_v14 }
 0x291   :  { %3941 = vmatprep.subr.bf16.mxu0 %v10642_v55  ;;  %3982 = vmatprep.subr.bf16.mxu1 %v10770_v57  ;;  %v10355_v55 = vcombine.low %v434_v48, %v438_v49  ;;  %v402_v49 = vld [vmem:[#allocation2 + $0x1098] sm:$0xff] }
 0x294   :  { %3942 = vmatpush2.bf16.msra.mxu0 %v10641_v26  ;;  %3983 = vmatpush2.bf16.msra.mxu1 %v10769_v27  ;;  %v10476_v27 = vcombine.high %v554_v10, %v558_v13 }
 0x295   :  { %3943 = vmatprep.subr.bf16.mxu0 %v10634_v28  ;;  %3984 = vmatprep.subr.bf16.mxu1 %v10762_v29  ;;  %v418_v28 = vld [vmem:[#allocation2 + $0x1118] sm:$0xff] }
 0x296   :  { %v422_v29 = vld [vmem:[#allocation2 + $0x1138] sm:$0xff] }
 0x297   :  { %v10340_v39 = vcombine.high %v418_v28, %v422_v29 }
 0x298   :  { %3944 = vmatpush2.bf16.msra.mxu0 %v10633_v35  ;;  %3985 = vmatpush2.bf16.msra.mxu1 %v10761_v38  ;;  %v10347_v38 = vcombine.low %v426_v4, %v430_v5  ;;  %v398_v4 = vld [vmem:[#allocation2 + $0x1078] sm:$0xff] }
 0x299   :  { %3945 = vmatprep.subr.bf16.mxu0 %v10626_v60  ;;  %3986 = vmatprep.subr.bf16.mxu1 %v10754_v1  ;;  %v10475_v1 = vcombine.low %v554_v10, %v558_v13  ;;  %v522_v5 = vld [vmem:[#allocation2 + $0x1458] sm:$0xff]  ;;  %v10323_v10 = vcombine.low %v402_v49, %v406_v50 }
 0x29c   :  { %3946 = vmatpush2.bf16.msra.mxu0 %v10625_v63  ;;  %3987 = vmatpush2.bf16.msra.mxu1 %v10753_v3  ;;  %v538_v63 = vld [vmem:[#allocation2 + $0x14d8] sm:$0xff] }
 0x29d   :  { %3997 = vmatprep.subr.bf16.mxu0 %v10364_v46  ;;  %4038 = vmatprep.subr.bf16.mxu1 %v10492_v47  ;;  %v542_v3 = vld [vmem:[#allocation2 + $0x14f8] sm:$0xff]  ;;  %v10339_v46 = vcombine.low %v418_v28, %v422_v29 }
 0x29e   :  { %v10460_v48 = vcombine.high %v538_v63, %v542_v3  ;;  %v506_v29 = vld [vmem:[#allocation2 + $0x13d8] sm:$0xff] }
 0x29f   :  { %v3703_v9 = vpop.f32.mrf.mxu0  ;;  %3948 = vmatmul.mubr.bf16.vlgmr.msra.gmra.mxu0 %v12189_v8  ;;  %v3744_v14 = vpop.f32.mrf.mxu1  ;;  %3989 = vmatmul.mubr.bf16.vlgmr.msra.gmra.mxu1 %v12194_v11 }
 0x2a0   :  { %v3704_v56 = vadd.f32 %v3703_v9, %v916_v52  ;;  %3998 = vmatpush1.bf16.msra.mxu0 %v10363_v53  ;;  %4039 = vmatpush1.bf16.msra.mxu1 %v10491_v54  ;;  %v534_v52 = vld [vmem:[#allocation2 + $0x14b8] sm:$0xff]  ;;  %v10459_v54 = vcombine.low %v538_v63, %v542_v3 }
 0x2a1   :  { %v3705_v57 = vpop.f32.mrf.mxu0  ;;  %3999 = vmatprep.subr.bf16.mxu0 %v10356_v58  ;;  %v3746_v26 = vpop.f32.mrf.mxu1  ;;  %4040 = vmatprep.subr.bf16.mxu1 %v10484_v0  ;;  %v10324_v58 = vcombine.high %v402_v49, %v406_v50  ;;  %v394_v0 = vld [vmem:[#allocation2 + $0x1058] sm:$0xff]  ;;  %v10451_v13 = vcombine.low %v530_v51, %v534_v52 }
 0x2a2   :  { %v12245_v17 = vadd.f32 %v3744_v14, %v3704_v56  ;;  %v3706_v19 = vadd.f32 %v3705_v57, %v920_v61  ;;  %4029 = vmatprep.mubr.bf16.mxu0 %v12156_v6  ;;  %4070 = vmatprep.mubr.bf16.mxu1 %v12158_v7  ;;  %v414_v6 = vld [vmem:[#allocation2 + $0x10f8] sm:$0xff]  ;;  %v10467_v7 = vcombine.low %v546_v31, %v550_v34 }
 0x2a3   :  { %v3707_v30 = vpop.f32.mrf.mxu0  ;;  %v3748_v35 = vpop.f32.mrf.mxu1  ;;  %v10332_v47 = vcombine.high %v410_v45, %v414_v6  ;;  %v10331_v53 = vcombine.low %v410_v45, %v414_v6  ;;  %v10452_v61 = vcombine.high %v530_v51, %v534_v52  ;;  %v526_v9 = vld [vmem:[#allocation2 + $0x1478] sm:$0xff]  ;;  %v10316_v56 = vcombine.high %v394_v0, %v398_v4 }
 0x2a4   :  { %v12249_v32 = vadd.f32 %v3746_v26, %v3706_v19  ;;  %4000 = vmatpush1.bf16.msra.mxu0 %v10355_v55  ;;  %4041 = vmatpush1.bf16.msra.mxu1 %v10483_v62  ;;  %v10444_v14 = vcombine.high %v522_v5, %v526_v9  ;;  %v386_v55 = vld [vmem:[#allocation2 + $0x1018] sm:$0xff]  ;;  %v10315_v19 = vcombine.low %v394_v0, %v398_v4 }
 0x2a5   :  { %v3708_v60 = vpop.f32.mrf.mxu0  ;;  %4001 = vmatprep.subr.bf16.mxu0 %v10348_v12  ;;  %v3749_v42 = vpop.f32.mrf.mxu1  ;;  %4042 = vmatprep.subr.bf16.mxu1 %v10476_v27  ;;  %v390_v57 = vld [vmem:[#allocation2 + $0x1038] sm:$0xff]  ;;  %v10443_v26 = vcombine.low %v522_v5, %v526_v9 }
 0x2a6   :  { %v514_v62 = vld [vmem:[#allocation2 + $0x1418] sm:$0xff]  ;;  %v10308_v27 = vcombine.high %v386_v55, %v390_v57  ;;  %v10307_v35 = vcombine.low %v386_v55, %v390_v57 }
 0x2a7   :  { %v518_v12 = vld [vmem:[#allocation2 + $0x1438] sm:$0xff] }
 0x2a8   :  { %4002 = vmatpush1.bf16.msra.mxu0 %v10347_v38  ;;  %4043 = vmatpush1.bf16.msra.mxu1 %v10475_v1  ;;  %v10436_v28 = vcombine.high %v514_v62, %v518_v12  ;;  %v510_v30 = vld [vmem:[#allocation2 + $0x13f8] sm:$0xff]  ;;  %v10435_v38 = vcombine.low %v514_v62, %v518_v12 }
 0x2a9   :  { %4003 = vmatprep.subr.bf16.mxu0 %v10340_v39  ;;  %4044 = vmatprep.subr.bf16.mxu1 %v10468_v43  ;;  %v634_v31 = vld [vmem:[#allocation2 + $0x17d8] sm:$0xff]  ;;  %v10428_v60 = vcombine.high %v506_v29, %v510_v30  ;;  %v10427_v6 = vcombine.low %v506_v29, %v510_v30 }
 0x2aa   :  { %v638_v34 = vld [vmem:[#allocation2 + $0x17f8] sm:$0xff] }
 0x2ab   :  { %v10556_v1 = vcombine.high %v634_v31, %v638_v34  ;;  %v498_v39 = vld [vmem:[#allocation2 + $0x1398] sm:$0xff]  ;;  %v10555_v63 = vcombine.low %v634_v31, %v638_v34 }
 0x2ac   :  { %4004 = vmatpush1.bf16.msra.mxu0 %v10339_v46  ;;  %4045 = vmatpush1.bf16.msra.mxu1 %v10467_v7  ;;  %v502_v42 = vld [vmem:[#allocation2 + $0x13b8] sm:$0xff] }
 0x2ad   :  { %4005 = vmatprep.subr.bf16.mxu0 %v10332_v47  ;;  %4046 = vmatprep.subr.bf16.mxu1 %v10460_v48  ;;  %v626_v43 = vld [vmem:[#allocation2 + $0x1798] sm:$0xff]  ;;  %v10420_v3 = vcombine.high %v498_v39, %v502_v42  ;;  %v10419_v50 = vcombine.low %v498_v39, %v502_v42 }
 0x2ae   :  { %v630_v45 = vld [vmem:[#allocation2 + $0x17b8] sm:$0xff] }
 0x2af   :  { %v10548_v46 = vcombine.high %v626_v43, %v630_v45  ;;  %v490_v7 = vld [vmem:[#allocation2 + $0x1358] sm:$0xff]  ;;  %v10547_v51 = vcombine.low %v626_v43, %v630_v45 }
 0x2b0   :  { %4006 = vmatpush1.bf16.msra.mxu0 %v10331_v53  ;;  %4047 = vmatpush1.bf16.msra.mxu1 %v10459_v54  ;;  %v494_v47 = vld [vmem:[#allocation2 + $0x1378] sm:$0xff] }
 0x2b1   :  { %4007 = vmatprep.subr.bf16.mxu0 %v10324_v58  ;;  %4048 = vmatprep.subr.bf16.mxu1 %v10452_v61  ;;  %v618_v48 = vld [vmem:[#allocation2 + $0x1758] sm:$0xff]  ;;  %v10412_v52 = vcombine.high %v490_v7, %v494_v47  ;;  %v10411_v4 = vcombine.low %v490_v7, %v494_v47 }
 0x2b2   :  { %v622_v49 = vld [vmem:[#allocation2 + $0x1778] sm:$0xff] }
 0x2b3   :  { %v10540_v53 = vcombine.high %v618_v48, %v622_v49  ;;  %v482_v54 = vld [vmem:[#allocation2 + $0x1318] sm:$0xff]  ;;  %v10539_v5 = vcombine.low %v618_v48, %v622_v49 }
 0x2b4   :  { %4008 = vmatpush1.bf16.msra.mxu0 %v10323_v10  ;;  %4049 = vmatpush1.bf16.msra.mxu1 %v10451_v13  ;;  %v486_v58 = vld [vmem:[#allocation2 + $0x1338] sm:$0xff] }
 0x2b5   :  { %4009 = vmatprep.subr.bf16.mxu0 %v10316_v56  ;;  %4050 = vmatprep.subr.bf16.mxu1 %v10444_v14  ;;  %v610_v61 = vld [vmem:[#allocation2 + $0x1718] sm:$0xff]  ;;  %v10404_v9 = vcombine.high %v482_v54, %v486_v58  ;;  %v10403_v57 = vcombine.low %v482_v54, %v486_v58 }
 0x2b6   :  { %v614_v0 = vld [vmem:[#allocation2 + $0x1738] sm:$0xff] }
 0x2b7   :  { %v10532_v10 = vcombine.high %v610_v61, %v614_v0  ;;  %v474_v13 = vld [vmem:[#allocation2 + $0x12d8] sm:$0xff]  ;;  %v10531_v62 = vcombine.low %v610_v61, %v614_v0 }
 0x2b8   :  { %4010 = vmatpush1.bf16.msra.mxu0 %v10315_v19  ;;  %4051 = vmatpush1.bf16.msra.mxu1 %v10443_v26  ;;  %v478_v56 = vld [vmem:[#allocation2 + $0x12f8] sm:$0xff] }
 0x2b9   :  { %4011 = vmatprep.subr.bf16.mxu0 %v10308_v27  ;;  %4052 = vmatprep.subr.bf16.mxu1 %v10436_v28  ;;  %v602_v14 = vld [vmem:[#allocation2 + $0x16d8] sm:$0xff]  ;;  %v10396_v12 = vcombine.high %v474_v13, %v478_v56  ;;  %v10395_v30 = vcombine.low %v474_v13, %v478_v56 }
 0x2ba   :  { %v606_v55 = vld [vmem:[#allocation2 + $0x16f8] sm:$0xff] }
 0x2bb   :  { %v10524_v19 = vcombine.high %v602_v14, %v606_v55  ;;  %v466_v26 = vld [vmem:[#allocation2 + $0x1298] sm:$0xff]  ;;  %v10523_v31 = vcombine.low %v602_v14, %v606_v55 }
 0x2bc   :  { %4012 = vmatpush1.bf16.msra.mxu0 %v10307_v35  ;;  %4053 = vmatpush1.bf16.msra.mxu1 %v10435_v38  ;;  %v470_v27 = vld [vmem:[#allocation2 + $0x12b8] sm:$0xff] }
 0x2bd   :  { %4013 = vmatprep.subr.bf16.mxu0 %v10428_v60  ;;  %4054 = vmatprep.subr.bf16.mxu1 %v10556_v1  ;;  %v594_v28 = vld [vmem:[#allocation2 + $0x1698] sm:$0xff]  ;;  %v10388_v34 = vcombine.high %v466_v26, %v470_v27  ;;  %v10387_v42 = vcombine.low %v466_v26, %v470_v27 }
 0x2be   :  { %v598_v29 = vld [vmem:[#allocation2 + $0x16b8] sm:$0xff] }
 0x2bf   :  { %v10516_v35 = vcombine.high %v594_v28, %v598_v29  ;;  %v458_v38 = vld [vmem:[#allocation2 + $0x1258] sm:$0xff]  ;;  %v10515_v43 = vcombine.low %v594_v28, %v598_v29 }
 0x2c0   :  { %4014 = vmatpush2.bf16.msra.mxu0 %v10427_v6  ;;  %4055 = vmatpush2.bf16.msra.mxu1 %v10555_v63  ;;  %v462_v60 = vld [vmem:[#allocation2 + $0x1278] sm:$0xff] }
 0x2c1   :  { %4015 = vmatprep.subr.bf16.mxu0 %v10420_v3  ;;  %4056 = vmatprep.subr.bf16.mxu1 %v10548_v46  ;;  %v586_v1 = vld [vmem:[#allocation2 + $0x1658] sm:$0xff]  ;;  %v10380_v45 = vcombine.high %v458_v38, %v462_v60  ;;  %v10379_v47 = vcombine.low %v458_v38, %v462_v60 }
 0x2c2   :  { %v590_v39 = vld [vmem:[#allocation2 + $0x1678] sm:$0xff] }
 0x2c3   :  { %v10508_v6 = vcombine.high %v586_v1, %v590_v39  ;;  %v450_v63 = vld [vmem:[#allocation2 + $0x1218] sm:$0xff]  ;;  %v10507_v48 = vcombine.low %v586_v1, %v590_v39 }
 0x2c4   :  { %4016 = vmatpush2.bf16.msra.mxu0 %v10419_v50  ;;  %4057 = vmatpush2.bf16.msra.mxu1 %v10547_v51  ;;  %v454_v3 = vld [vmem:[#allocation2 + $0x1238] sm:$0xff] }
 0x2c5   :  { %4017 = vmatprep.subr.bf16.mxu0 %v10412_v52  ;;  %4058 = vmatprep.subr.bf16.mxu1 %v10540_v53  ;;  %v578_v46 = vld [vmem:[#allocation2 + $0x1618] sm:$0xff]  ;;  %v10372_v49 = vcombine.high %v450_v63, %v454_v3  ;;  %v10371_v58 = vcombine.low %v450_v63, %v454_v3 }
 0x2c6   :  { %v582_v7 = vld [vmem:[#allocation2 + $0x1638] sm:$0xff] }
 0x2c7   :  { %v10500_v50 = vcombine.high %v578_v46, %v582_v7  ;;  %v698_v51 = vld [vmem:[#allocation2 + $0x19d8] sm:$0xff]  ;;  %v10499_v61 = vcombine.low %v578_v46, %v582_v7 }
 0x2c8   :  { %4018 = vmatpush2.bf16.msra.mxu0 %v10411_v4  ;;  %4059 = vmatpush2.bf16.msra.mxu1 %v10539_v5  ;;  %v702_v52 = vld [vmem:[#allocation2 + $0x19f8] sm:$0xff] }
 0x2c9   :  { %4019 = vmatprep.subr.bf16.mxu0 %v10404_v9  ;;  %4060 = vmatprep.subr.bf16.mxu1 %v10532_v10  ;;  %v826_v53 = vld [vmem:[#allocation2 + $0x1dd8] sm:$0xff]  ;;  %v10620_v0 = vcombine.high %v698_v51, %v702_v52  ;;  %v10619_v56 = vcombine.low %v698_v51, %v702_v52 }
 0x2ca   :  { %v830_v54 = vld [vmem:[#allocation2 + $0x1df8] sm:$0xff] }
 0x2cb   :  { %v10748_v4 = vcombine.high %v826_v53, %v830_v54  ;;  %v690_v5 = vld [vmem:[#allocation2 + $0x1998] sm:$0xff]  ;;  %v10747_v14 = vcombine.low %v826_v53, %v830_v54 }
 0x2cc   :  { %4020 = vmatpush2.bf16.msra.mxu0 %v10403_v57  ;;  %4061 = vmatpush2.bf16.msra.mxu1 %v10531_v62  ;;  %v694_v9 = vld [vmem:[#allocation2 + $0x19b8] sm:$0xff] }
 0x2cd   :  { %4021 = vmatprep.subr.bf16.mxu0 %v10396_v12  ;;  %4062 = vmatprep.subr.bf16.mxu1 %v10524_v19  ;;  %v818_v10 = vld [vmem:[#allocation2 + $0x1d98] sm:$0xff]  ;;  %v10612_v55 = vcombine.high %v690_v5, %v694_v9 }
 0x2ce   :  { %v822_v13 = vld [vmem:[#allocation2 + $0x1db8] sm:$0xff] }
 0x2cf   :  { %v10740_v57 = vcombine.high %v818_v10, %v822_v13  ;;  %v682_v62 = vld [vmem:[#allocation2 + $0x1958] sm:$0xff] }
 0x2d0   :  { %4022 = vmatpush2.bf16.msra.mxu0 %v10395_v30  ;;  %4063 = vmatpush2.bf16.msra.mxu1 %v10523_v31  ;;  %v686_v12 = vld [vmem:[#allocation2 + $0x1978] sm:$0xff]  ;;  %v10611_v30 = vcombine.low %v690_v5, %v694_v9 }
 0x2d1   :  { %4023 = vmatprep.subr.bf16.mxu0 %v10388_v34  ;;  %4064 = vmatprep.subr.bf16.mxu1 %v10516_v35  ;;  %v810_v26 = vld [vmem:[#allocation2 + $0x1d58] sm:$0xff]  ;;  %v10739_v34 = vcombine.low %v818_v10, %v822_v13  ;;  %v10604_v35 = vcombine.high %v682_v62, %v686_v12  ;;  %v10603_v3 = vcombine.low %v682_v62, %v686_v12 }
 0x2d2   :  { %v814_v27 = vld [vmem:[#allocation2 + $0x1d78] sm:$0xff] }
 0x2d3   :  { %v674_v39 = vld [vmem:[#allocation2 + $0x1918] sm:$0xff]  ;;  %v10731_v46 = vcombine.low %v810_v26, %v814_v27 }
 0x2d4   :  { %4024 = vmatpush2.bf16.msra.mxu0 %v10387_v42  ;;  %4065 = vmatpush2.bf16.msra.mxu1 %v10515_v43  ;;  %v678_v42 = vld [vmem:[#allocation2 + $0x1938] sm:$0xff] }
 0x2d5   :  { %4025 = vmatprep.subr.bf16.mxu0 %v10380_v45  ;;  %4066 = vmatprep.subr.bf16.mxu1 %v10508_v6  ;;  %v806_v43 = vld [vmem:[#allocation2 + $0x1d38] sm:$0xff]  ;;  %v10596_v7 = vcombine.high %v674_v39, %v678_v42  ;;  %v10595_v52 = vcombine.low %v674_v39, %v678_v42 }
 0x2d6   :  { %v798_v51 = vld [vmem:[#allocation2 + $0x1cf8] sm:$0xff] }
 0x2d7   :  { %v790_v5 = vld [vmem:[#allocation2 + $0x1cb8] sm:$0xff] }
 0x2d8   :  { %4026 = vmatpush2.bf16.msra.mxu0 %v10379_v47  ;;  %4067 = vmatpush2.bf16.msra.mxu1 %v10507_v48  ;;  %v782_v62 = vld [vmem:[#allocation2 + $0x1c78] sm:$0xff] }
 0x2d9   :  { %4027 = vmatprep.subr.bf16.mxu0 %v10372_v49  ;;  %4068 = vmatprep.subr.bf16.mxu1 %v10500_v50  ;;  %v666_v49 = vld [vmem:[#allocation2 + $0x18d8] sm:$0xff] }
 0x2da   :  { %v670_v50 = vld [vmem:[#allocation2 + $0x18f8] sm:$0xff] }
 0x2db   :  { %v10588_v54 = vcombine.high %v666_v49, %v670_v50  ;;  %v10587_v9 = vcombine.low %v666_v49, %v670_v50  ;;  %v766_v39 = vld [vmem:[#allocation2 + $0x1bf8] sm:$0xff] }
 0x2dc   :  { %4028 = vmatpush2.bf16.msra.mxu0 %v10371_v58  ;;  %4069 = vmatpush2.bf16.msra.mxu1 %v10499_v61  ;;  %v658_v61 = vld [vmem:[#allocation2 + $0x1898] sm:$0xff] }
 0x2dd   :  { %4079 = vmatprep.subr.bf16.mxu0 %v10620_v0  ;;  %4120 = vmatprep.subr.bf16.mxu1 %v10748_v4  ;;  %v662_v0 = vld [vmem:[#allocation2 + $0x18b8] sm:$0xff] }
 0x2de   :  { %v786_v4 = vld [vmem:[#allocation2 + $0x1c98] sm:$0xff]  ;;  %v10580_v13 = vcombine.high %v658_v61, %v662_v0  ;;  %v10579_v12 = vcombine.low %v658_v61, %v662_v0 }
 0x2df   :  { %v3785_v19 = vpop.f32.mrf.mxu0  ;;  %4030 = vmatmul.mubr.bf16.vlgmr.msra.gmra.mxu0 %v12165_v18  ;;  %v3826_v29 = vpop.f32.mrf.mxu1  ;;  %4071 = vmatmul.mubr.bf16.vlgmr.msra.gmra.mxu1 %v12170_v21  ;;  %v10732_v18 = vcombine.high %v810_v26, %v814_v27  ;;  %v802_v21 = vld [vmem:[#allocation2 + $0x1d18] sm:$0xff] }
 0x2e0   :  { %v3786_v28 = vadd.f32 %v3785_v19, %v12245_v17  ;;  %4080 = vmatpush1.bf16.msra.mxu0 %v10619_v56  ;;  %4121 = vmatpush1.bf16.msra.mxu1 %v10747_v14  ;;  %v10724_v48 = vcombine.high %v802_v21, %v806_v43  ;;  %v10723_v53 = vcombine.low %v802_v21, %v806_v43  ;;  %v650_v14 = vld [vmem:[#allocation2 + $0x1858] sm:$0xff] }
 0x2e1   :  { %v3787_v31 = vpop.f32.mrf.mxu0  ;;  %4081 = vmatprep.subr.bf16.mxu0 %v10612_v55  ;;  %v3828_v1 = vpop.f32.mrf.mxu1  ;;  %4122 = vmatprep.subr.bf16.mxu1 %v10740_v57  ;;  %v10708_v56 = vcombine.high %v786_v4, %v790_v5  ;;  %v654_v55 = vld [vmem:[#allocation2 + $0x1878] sm:$0xff]  ;;  %v10707_v19 = vcombine.low %v786_v4, %v790_v5 }
 0x2e2   :  { %v12254_v38 = vadd.f32 %v3826_v29, %v3786_v28  ;;  %v3788_v60 = vadd.f32 %v3787_v31, %v12249_v32  ;;  %4111 = vmatprep.mubr.bf16.mxu0 %v12175_v37  ;;  %4152 = vmatprep.mubr.bf16.mxu1 %v12181_v41  ;;  %v794_v41 = vld [vmem:[#allocation2 + $0x1cd8] sm:$0xff]  ;;  %v10572_v26 = vcombine.high %v650_v14, %v654_v55 }
 0x2e3   :  { %v3789_v17 = vpop.f32.mrf.mxu0  ;;  %v3830_v63 = vpop.f32.mrf.mxu1  ;;  %v10716_v58 = vcombine.high %v794_v41, %v798_v51  ;;  %v10715_v10 = vcombine.low %v794_v41, %v798_v51  ;;  %v778_v57 = vld [vmem:[#allocation2 + $0x1c58] sm:$0xff] }
 0x2e4   :  { %v4163_v45 = vmax.f32 %v12254_v38, 0.0  ;;  %v12260_v6 = vadd.f32 %v3828_v1, %v3788_v60  ;;  %4082 = vmatpush1.bf16.msra.mxu0 %v10611_v30  ;;  %4123 = vmatpush1.bf16.msra.mxu1 %v10739_v34  ;;  %v10700_v27 = vcombine.high %v778_v57, %v782_v62  ;;  %v642_v28 = vld [vmem:[#allocation2 + $0x1818] sm:$0xff]  ;;  %v10571_v34 = vcombine.low %v650_v14, %v654_v55 }
 0x2e5   :  { %v3790_v32 = vpop.f32.mrf.mxu0  ;;  %4083 = vmatprep.subr.bf16.mxu0 %v10604_v35  ;;  %v3831_v37 = vpop.f32.mrf.mxu1  ;;  %4124 = vmatprep.subr.bf16.mxu1 %v10732_v18  ;;  %v646_v29 = vld [vmem:[#allocation2 + $0x1838] sm:$0xff]  ;;  %v10699_v35 = vcombine.low %v778_v57, %v782_v62 }
 0x2e6   :  { %v4164_v47 = vmax.f32 %v12260_v6, 0.0  ;;  %v770_v30 = vld [vmem:[#allocation2 + $0x1c18] sm:$0xff]  ;;  %v10564_v60 = vcombine.high %v642_v28, %v646_v29  ;;  %v10563_v21 = vcombine.low %v642_v28, %v646_v29 }
 0x2e7   :  { %v774_v31 = vld [vmem:[#allocation2 + $0x1c38] sm:$0xff] }
 0x2e8   :  { %4084 = vmatpush1.bf16.msra.mxu0 %v10603_v3  ;;  %4125 = vmatpush1.bf16.msra.mxu1 %v10731_v46  ;;  %v10692_v1 = vcombine.high %v770_v30, %v774_v31  ;;  %v762_v18 = vld [vmem:[#allocation2 + $0x1bd8] sm:$0xff]  ;;  %v10691_v43 = vcombine.low %v770_v30, %v774_v31 }
 0x2e9   :  { %4085 = vmatprep.subr.bf16.mxu0 %v10596_v7  ;;  %4126 = vmatprep.subr.bf16.mxu1 %v10724_v48  ;;  %v890_v42 = vld [vmem:[#allocation2 + $0x1fd8] sm:$0xff]  ;;  %v10684_v63 = vcombine.high %v762_v18, %v766_v39  ;;  %v10683_v48 = vcombine.low %v762_v18, %v766_v39 }
 0x2ea   :  { %v894_v17 = vld [vmem:[#allocation2 + $0x1ff8] sm:$0xff] }
 0x2eb   :  { %v10812_v3 = vcombine.high %v890_v42, %v894_v17  ;;  %v754_v32 = vld [vmem:[#allocation2 + $0x1b98] sm:$0xff]  ;;  %v10811_v49 = vcombine.low %v890_v42, %v894_v17 }
 0x2ec   :  { %4086 = vmatpush1.bf16.msra.mxu0 %v10595_v52  ;;  %4127 = vmatpush1.bf16.msra.mxu1 %v10723_v53  ;;  %v758_v46 = vld [vmem:[#allocation2 + $0x1bb8] sm:$0xff] }
 0x2ed   :  { %4087 = vmatprep.subr.bf16.mxu0 %v10588_v54  ;;  %4128 = vmatprep.subr.bf16.mxu1 %v10716_v58  ;;  %v882_v7 = vld [vmem:[#allocation2 + $0x1f98] sm:$0xff]  ;;  %v10676_v50 = vcombine.high %v754_v32, %v758_v46  ;;  %v10675_v58 = vcombine.low %v754_v32, %v758_v46 }
 0x2ee   :  { %v886_v37 = vld [vmem:[#allocation2 + $0x1fb8] sm:$0xff] }
 0x2ef   :  { %v10804_v41 = vcombine.high %v882_v7, %v886_v37  ;;  %v746_v51 = vld [vmem:[#allocation2 + $0x1b58] sm:$0xff]  ;;  %v10803_v61 = vcombine.low %v882_v7, %v886_v37 }
 0x2f0   :  { %4088 = vmatpush1.bf16.msra.mxu0 %v10587_v9  ;;  %4129 = vmatpush1.bf16.msra.mxu1 %v10715_v10  ;;  %v750_v52 = vld [vmem:[#allocation2 + $0x1b78] sm:$0xff] }
 0x2f1   :  { %4089 = vmatprep.subr.bf16.mxu0 %v10580_v13  ;;  %4130 = vmatprep.subr.bf16.mxu1 %v10708_v56  ;;  %v874_v53 = vld [vmem:[#allocation2 + $0x1f58] sm:$0xff]  ;;  %v10668_v0 = vcombine.high %v746_v51, %v750_v52  ;;  %v10667_v56 = vcombine.low %v746_v51, %v750_v52 }
 0x2f2   :  { %v878_v54 = vld [vmem:[#allocation2 + $0x1f78] sm:$0xff] }
 0x2f3   :  { %v10796_v4 = vcombine.high %v874_v53, %v878_v54  ;;  %v738_v5 = vld [vmem:[#allocation2 + $0x1b18] sm:$0xff]  ;;  %v10795_v14 = vcombine.low %v874_v53, %v878_v54 }
 0x2f4   :  { %4090 = vmatpush1.bf16.msra.mxu0 %v10579_v12  ;;  %4131 = vmatpush1.bf16.msra.mxu1 %v10707_v19  ;;  %v742_v9 = vld [vmem:[#allocation2 + $0x1b38] sm:$0xff] }
 0x2f5   :  { %4091 = vmatprep.subr.bf16.mxu0 %v10572_v26  ;;  %4132 = vmatprep.subr.bf16.mxu1 %v10700_v27  ;;  %v866_v10 = vld [vmem:[#allocation2 + $0x1f18] sm:$0xff]  ;;  %v10660_v55 = vcombine.high %v738_v5, %v742_v9  ;;  %v10659_v27 = vcombine.low %v738_v5, %v742_v9 }
 0x2f6   :  { %v870_v13 = vld [vmem:[#allocation2 + $0x1f38] sm:$0xff] }
 0x2f7   :  { %v10788_v57 = vcombine.high %v866_v10, %v870_v13  ;;  %v730_v62 = vld [vmem:[#allocation2 + $0x1ad8] sm:$0xff]  ;;  %v10787_v28 = vcombine.low %v866_v10, %v870_v13 }
 0x2f8   :  { %4092 = vmatpush1.bf16.msra.mxu0 %v10571_v34  ;;  %4133 = vmatpush1.bf16.msra.mxu1 %v10699_v35  ;;  %v734_v12 = vld [vmem:[#allocation2 + $0x1af8] sm:$0xff] }
 0x2f9   :  { %4093 = vmatprep.subr.bf16.mxu0 %v10564_v60  ;;  %4134 = vmatprep.subr.bf16.mxu1 %v10692_v1  ;;  %v858_v19 = vld [vmem:[#allocation2 + $0x1ed8] sm:$0xff]  ;;  %v10652_v29 = vcombine.high %v730_v62, %v734_v12  ;;  %v10651_v1 = vcombine.low %v730_v62, %v734_v12 }
 0x2fa   :  { %v862_v26 = vld [vmem:[#allocation2 + $0x1ef8] sm:$0xff] }
 0x2fb   :  { %v10780_v30 = vcombine.high %v858_v19, %v862_v26  ;;  %v722_v31 = vld [vmem:[#allocation2 + $0x1a98] sm:$0xff]  ;;  %v10779_v18 = vcombine.low %v858_v19, %v862_v26 }
 0x2fc   :  { %4094 = vmatpush1.bf16.msra.mxu0 %v10563_v21  ;;  %4135 = vmatpush1.bf16.msra.mxu1 %v10691_v43  ;;  %v726_v34 = vld [vmem:[#allocation2 + $0x1ab8] sm:$0xff] }
 0x2fd   :  { %4095 = vmatprep.subr.bf16.mxu0 %v10684_v63  ;;  %4136 = vmatprep.subr.bf16.mxu1 %v10812_v3  ;;  %v850_v35 = vld [vmem:[#allocation2 + $0x1e98] sm:$0xff]  ;;  %v10644_v39 = vcombine.high %v722_v31, %v726_v34  ;;  %v10643_v3 = vcombine.low %v722_v31, %v726_v34 }
 0x2fe   :  { %v854_v60 = vld [vmem:[#allocation2 + $0x1eb8] sm:$0xff] }
 0x2ff   :  { %v10772_v42 = vcombine.high %v850_v35, %v854_v60  ;;  %v714_v17 = vld [vmem:[#allocation2 + $0x1a58] sm:$0xff]  ;;  %v10771_v32 = vcombine.low %v850_v35, %v854_v60 }
 0x300   :  { %4096 = vmatpush2.bf16.msra.mxu0 %v10683_v48  ;;  %4137 = vmatpush2.bf16.msra.mxu1 %v10811_v49  ;;  %v718_v21 = vld [vmem:[#allocation2 + $0x1a78] sm:$0xff] }
 0x301   :  { %4097 = vmatprep.subr.bf16.mxu0 %v10676_v50  ;;  %4138 = vmatprep.subr.bf16.mxu1 %v10804_v41  ;;  %v842_v43 = vld [vmem:[#allocation2 + $0x1e58] sm:$0xff]  ;;  %v10636_v46 = vcombine.high %v714_v17, %v718_v21  ;;  %v10635_v41 = vcombine.low %v714_v17, %v718_v21 }
 0x302   :  { %v846_v63 = vld [vmem:[#allocation2 + $0x1e78] sm:$0xff] }
 0x303   :  { %v10764_v7 = vcombine.high %v842_v43, %v846_v63  ;;  %v706_v37 = vld [vmem:[#allocation2 + $0x1a18] sm:$0xff]  ;;  %v10763_v51 = vcombine.low %v842_v43, %v846_v63 }
 0x304   :  { %4098 = vmatpush2.bf16.msra.mxu0 %v10675_v58  ;;  %4139 = vmatpush2.bf16.msra.mxu1 %v10803_v61  ;;  %v710_v48 = vld [vmem:[#allocation2 + $0x1a38] sm:$0xff]  ;;  %v924_v61 = vrot.slane %v12196_v15, %v12124_v33 }
 0x305   :  { %4099 = vmatprep.subr.bf16.mxu0 %v10668_v0  ;;  %4140 = vmatprep.subr.bf16.mxu1 %v10796_v4  ;;  %v834_v49 = vld [vmem:[#allocation2 + $0x1e18] sm:$0xff]  ;;  %v10628_v52 = vcombine.high %v706_v37, %v710_v48  ;;  %v10627_v54 = vcombine.low %v706_v37, %v710_v48  ;;  %v928_v0 = vrot.slane %v12196_v15, %v12131_v40 }
 0x306   :  { %v838_v50 = vld [vmem:[#allocation2 + $0x1e38] sm:$0xff] }
 0x307   :  { %v10756_v53 = vcombine.high %v834_v49, %v838_v50  ;;  %v10755_v58 = vcombine.low %v834_v49, %v838_v50 }
 0x308   :  { %4100 = vmatpush2.bf16.msra.mxu0 %v10667_v56  ;;  %4141 = vmatpush2.bf16.msra.mxu1 %v10795_v14 }
 0x309   :  { %4101 = vmatprep.subr.bf16.mxu0 %v10660_v55  ;;  %4142 = vmatprep.subr.bf16.mxu1 %v10788_v57 }
 0x30c   :  { %4102 = vmatpush2.bf16.msra.mxu0 %v10659_v27  ;;  %4143 = vmatpush2.bf16.msra.mxu1 %v10787_v28 }
 0x30d   :  { %4103 = vmatprep.subr.bf16.mxu0 %v10652_v29  ;;  %4144 = vmatprep.subr.bf16.mxu1 %v10780_v30 }
 0x310   :  { %4104 = vmatpush2.bf16.msra.mxu0 %v10651_v1  ;;  %4145 = vmatpush2.bf16.msra.mxu1 %v10779_v18 }
 0x311   :  { %4105 = vmatprep.subr.bf16.mxu0 %v10644_v39  ;;  %4146 = vmatprep.subr.bf16.mxu1 %v10772_v42 }
 0x314   :  { %4106 = vmatpush2.bf16.msra.mxu0 %v10643_v3  ;;  %4147 = vmatpush2.bf16.msra.mxu1 %v10771_v32 }
 0x315   :  { %4107 = vmatprep.subr.bf16.mxu0 %v10636_v46  ;;  %4148 = vmatprep.subr.bf16.mxu1 %v10764_v7 }
 0x318   :  { %4108 = vmatpush2.bf16.msra.mxu0 %v10635_v41  ;;  %4149 = vmatpush2.bf16.msra.mxu1 %v10763_v51 }
 0x319   :  { %4109 = vmatprep.subr.bf16.mxu0 %v10628_v52  ;;  %4150 = vmatprep.subr.bf16.mxu1 %v10756_v53 }
 0x31c   :  { %4110 = vmatpush2.bf16.msra.mxu0 %v10627_v54  ;;  %4151 = vmatpush2.bf16.msra.mxu1 %v10755_v58 }
 0x31f   :  { %v3867_v4 = vpop.f32.mrf.mxu0  ;;  %4112 = vmatmul.mubr.bf16.vlgmr.msra.gmra.mxu0 %v12189_v8  ;;  %v3908_v9 = vpop.f32.mrf.mxu1  ;;  %4153 = vmatmul.mubr.bf16.vlgmr.msra.gmra.mxu1 %v12194_v11 }
 0x320   :  { %v3868_v5 = vadd.f32 %v3867_v4, %v924_v61 }
 0x321   :  { %v3869_v10 = vpop.f32.mrf.mxu0  ;;  %v3910_v14 = vpop.f32.mrf.mxu1 }
 0x322   :  { %v3909_v13 = vadd.f32 %v3908_v9, %v3868_v5  ;;  %v3870_v56 = vadd.f32 %v3869_v10, %v928_v0 }
 0x323   :  { %v3871_v55 = vpop.f32.mrf.mxu0  ;;  %v3912_v62 = vpop.f32.mrf.mxu1 }
 0x324   :  { %v3911_v57 = vadd.f32 %v3910_v14, %v3870_v56 }
 0x325   :  { %v3872_v12 = vpop.f32.mrf.mxu0  ;;  %v3913_v19 = vpop.f32.mrf.mxu1 }
 0x35f   :  { %v3949_v26 = vpop.f32.mrf.mxu0  ;;  %v3990_v8 = vpop.f32.mrf.mxu1 }
 0x360   :  { %v3950_v27 = vadd.f32 %v3949_v26, %v3909_v13 }
 0x361   :  { %v3951_v28 = vpop.f32.mrf.mxu0  ;;  %v3992_v30 = vpop.f32.mrf.mxu1 }
 0x362   :  { %v12269_v29 = vadd.f32 %v3990_v8, %v3950_v27  ;;  %v3952_v11 = vadd.f32 %v3951_v28, %v3911_v57 }
 0x363   :  { %v3953_v31 = vpop.f32.mrf.mxu0  ;;  %v3994_v60 = vpop.f32.mrf.mxu1 }
 0x364   :  { %v4165_v34 = vmax.f32 %v12269_v29, 0.0  ;;  %v12272_v35 = vadd.f32 %v3992_v30, %v3952_v11 }
 0x365   :  { %v3954_v1 = vpop.f32.mrf.mxu0  ;;  %v3995_v39 = vpop.f32.mrf.mxu1 }
 0x366   :  { %v4166_v18 = vmax.f32 %v12272_v35, 0.0 }
 0x367   :  { %11853 = shalt.err (!%p11850_p8)  }
 0x368   :  { %s11944_s30 = smov 256   ;;  %s11945_s13 = smov 512   ;;  %v932_v7 = vrot.slane %v12196_v15, %v12128_v36  ;;  %v936_v37 = vrot.slane %v12196_v15, %v12134_v44 }
 0x369   :  { %s11946_s14 = smov 16  }
 0x36a   :  { %4173 = dma.hbm_to_vmem [thread:$0]  %s12521_s7, 32768, %s12047_s15, [#allocation4 + $0x1], %s11944_s30, %s11945_s13, %s11946_s14 }
 0x39f   :  { %v4031_v42 = vpop.f32.mrf.mxu0  ;;  %v4072_v17 = vpop.f32.mrf.mxu1 }
 0x3a0   :  { %v4032_v48 = vadd.f32 %v4031_v42, %v932_v7 }
 0x3a1   :  { %v4033_v21 = vpop.f32.mrf.mxu0  ;;  %v4074_v43 = vpop.f32.mrf.mxu1 }
 0x3a2   :  { %v4034_v49 = vadd.f32 %v4033_v21, %v936_v37  ;;  %v4073_v50 = vadd.f32 %v4072_v17, %v4032_v48 }
 0x3a3   :  { %v4035_v63 = vpop.f32.mrf.mxu0  ;;  %v4076_v3 = vpop.f32.mrf.mxu1 }
 0x3a4   :  { %v4075_v51 = vadd.f32 %v4074_v43, %v4034_v49 }
 0x3a5   :  { %v4036_v32 = vpop.f32.mrf.mxu0  ;;  %v4077_v46 = vpop.f32.mrf.mxu1 }
 0x3df   :  { %v4113_v41 = vpop.f32.mrf.mxu0  ;;  %v4154_v53 = vpop.f32.mrf.mxu1 }
 0x3e0   :  { %v4114_v52 = vadd.f32 %v4113_v41, %v4073_v50 }
 0x3e1   :  { %v4115_v54 = vpop.f32.mrf.mxu0  ;;  %v4156_v0 = vpop.f32.mrf.mxu1 }
 0x3e2   :  { %v12290_v58 = vadd.f32 %v4154_v53, %v4114_v52  ;;  %v4116_v61 = vadd.f32 %v4115_v54, %v4075_v51 }
 0x3e3   :  { %v4117_v4 = vpop.f32.mrf.mxu0  ;;  %v4158_v10 = vpop.f32.mrf.mxu1 }
 0x3e4   :  { %v4167_v5 = vmax.f32 %v12290_v58, 0.0  ;;  %v12293_v9 = vadd.f32 %v4156_v0, %v4116_v61 }
 0x3e5   :  { %v4118_v13 = vpop.f32.mrf.mxu0  ;;  %v4159_v56 = vpop.f32.mrf.mxu1 }
 0x3e6   :  { %v4168_v15 = vmax.f32 %v12293_v9, 0.0 }
 0x3e7   :  { %11924 = dma.done.wait [#allocation4], 65536 }
 0x3e8   :  { %11925 = vsyncadd [#allocation4], 4294901760 }
 0x3e9   :  { %11926 = dma.done.wait [#allocation5], 128 }
 0x3ea   :  { %11927 = vsyncadd [#allocation5], 4294967168  ;;  %v12299_v14 = vpack.c.bf16 %v4162_v20, %v4162_v20  ;;  %v12304_v55 = vpack.c.bf16 %v4164_v47, %v4164_v47  ;;  %v4245_v57 = vld [vmem:[#allocation2 + $0x1c0] sm:$0xff] }
 0x3eb   :  { %v4249_v62 = vld [vmem:[#allocation2 + $0x1e0] sm:$0xff] }
 0x3ec   :  { %7343 = vmatprep.mubr.bf16.mxu0 %v12299_v14  ;;  %7384 = vmatprep.mubr.bf16.mxu1 %v12304_v55  ;;  %v4373_v12 = vld [vmem:[#allocation2 + $0x5c0] sm:$0xff]  ;;  %v10870_v19 = vcombine.high %v4245_v57, %v4249_v62  ;;  %v10869_v27 = vcombine.low %v4245_v57, %v4249_v62 }
 0x3ed   :  { %v4377_v26 = vld [vmem:[#allocation2 + $0x5e0] sm:$0xff] }
 0x3ee   :  { %v4237_v8 = vld [vmem:[#allocation2 + $0x180] sm:$0xff]  ;;  %v10998_v28 = vcombine.high %v4373_v12, %v4377_v26  ;;  %v10997_v20 = vcombine.low %v4373_v12, %v4377_v26  ;;  %7311 = vmatprep.subr.bf16.mxu0 %v10870_v19 }
 0x3ef   :  { %v4241_v59 = vld [vmem:[#allocation2 + $0x1a0] sm:$0xff]  ;;  %7312 = vmatpush1.bf16.msra.mxu0 %v10869_v27 }
 0x3f0   :  { %v10862_v11 = vcombine.high %v4237_v8, %v4241_v59  ;;  %v4365_v30 = vld [vmem:[#allocation2 + $0x580] sm:$0xff]  ;;  %7352 = vmatprep.subr.bf16.mxu1 %v10998_v28  ;;  %v10861_v42 = vcombine.low %v4237_v8, %v4241_v59 }
 0x3f1   :  { %v4369_v6 = vld [vmem:[#allocation2 + $0x5a0] sm:$0xff]  ;;  %7353 = vmatpush1.bf16.msra.mxu1 %v10997_v20 }
 0x3f2   :  { %v4229_v31 = vld [vmem:[#allocation2 + $0x140] sm:$0xff]  ;;  %v10990_v47 = vcombine.high %v4365_v30, %v4369_v6  ;;  %7313 = vmatprep.subr.bf16.mxu0 %v10862_v11  ;;  %v10989_v17 = vcombine.low %v4365_v30, %v4369_v6 }
 0x3f3   :  { %v4233_v60 = vld [vmem:[#allocation2 + $0x160] sm:$0xff]  ;;  %7314 = vmatpush1.bf16.msra.mxu0 %v10861_v42 }
 0x3f4   :  { %v4357_v1 = vld [vmem:[#allocation2 + $0x540] sm:$0xff]  ;;  %v10854_v21 = vcombine.high %v4229_v31, %v4233_v60  ;;  %7354 = vmatprep.subr.bf16.mxu1 %v10990_v47  ;;  %v10853_v7 = vcombine.low %v4229_v31, %v4233_v60 }
 0x3f5   :  { %v4361_v39 = vld [vmem:[#allocation2 + $0x560] sm:$0xff]  ;;  %7355 = vmatpush1.bf16.msra.mxu1 %v10989_v17 }
 0x3f6   :  { %v10982_v43 = vcombine.high %v4357_v1, %v4361_v39  ;;  %v4221_v63 = vld [vmem:[#allocation2 + $0x100] sm:$0xff]  ;;  %7315 = vmatprep.subr.bf16.mxu0 %v10854_v21  ;;  %v10981_v37 = vcombine.low %v4357_v1, %v4361_v39 }
 0x3f7   :  { %v4225_v3 = vld [vmem:[#allocation2 + $0x120] sm:$0xff]  ;;  %7316 = vmatpush1.bf16.msra.mxu0 %v10853_v7 }
 0x3f8   :  { %v4349_v32 = vld [vmem:[#allocation2 + $0x500] sm:$0xff]  ;;  %v10846_v48 = vcombine.high %v4221_v63, %v4225_v3  ;;  %7356 = vmatprep.subr.bf16.mxu1 %v10982_v43  ;;  %v10845_v53 = vcombine.low %v4221_v63, %v4225_v3 }
 0x3f9   :  { %v4353_v46 = vld [vmem:[#allocation2 + $0x520] sm:$0xff]  ;;  %7357 = vmatpush1.bf16.msra.mxu1 %v10981_v37 }
 0x3fa   :  { %v10974_v49 = vcombine.high %v4349_v32, %v4353_v46  ;;  %v4213_v50 = vld [vmem:[#allocation2 + $0xc0] sm:$0xff]  ;;  %7317 = vmatprep.subr.bf16.mxu0 %v10846_v48  ;;  %v10973_v54 = vcombine.low %v4349_v32, %v4353_v46 }
 0x3fb   :  { %v4217_v41 = vld [vmem:[#allocation2 + $0xe0] sm:$0xff]  ;;  %7318 = vmatpush1.bf16.msra.mxu0 %v10845_v53 }
 0x3fc   :  { %v4341_v51 = vld [vmem:[#allocation2 + $0x4c0] sm:$0xff]  ;;  %v10838_v61 = vcombine.high %v4213_v50, %v4217_v41  ;;  %7358 = vmatprep.subr.bf16.mxu1 %v10974_v49  ;;  %v10837_v57 = vcombine.low %v4213_v50, %v4217_v41 }
 0x3fd   :  { %v4345_v52 = vld [vmem:[#allocation2 + $0x4e0] sm:$0xff]  ;;  %7359 = vmatpush1.bf16.msra.mxu1 %v10973_v54 }
 0x3fe   :  { %v10966_v0 = vcombine.high %v4341_v51, %v4345_v52  ;;  %v4205_v4 = vld [vmem:[#allocation2 + $0x80] sm:$0xff]  ;;  %7319 = vmatprep.subr.bf16.mxu0 %v10838_v61  ;;  %v10965_v62 = vcombine.low %v4341_v51, %v4345_v52 }
 0x3ff   :  { %v4209_v10 = vld [vmem:[#allocation2 + $0xa0] sm:$0xff]  ;;  %7320 = vmatpush1.bf16.msra.mxu0 %v10837_v57 }
 0x400   :  { %v4333_v13 = vld [vmem:[#allocation2 + $0x480] sm:$0xff]  ;;  %v10830_v12 = vcombine.high %v4205_v4, %v4209_v10  ;;  %7360 = vmatprep.subr.bf16.mxu1 %v10966_v0  ;;  %v10829_v28 = vcombine.low %v4205_v4, %v4209_v10 }
 0x401   :  { %v4337_v56 = vld [vmem:[#allocation2 + $0x4a0] sm:$0xff]  ;;  %7361 = vmatpush1.bf16.msra.mxu1 %v10965_v62 }
 0x402   :  { %v10958_v19 = vcombine.high %v4333_v13, %v4337_v56  ;;  %v4197_v26 = vld [vmem:[#allocation2 + $0x40] sm:$0xff]  ;;  %7321 = vmatprep.subr.bf16.mxu0 %v10830_v12  ;;  %v10957_v20 = vcombine.low %v4333_v13, %v4337_v56 }
 0x403   :  { %v4201_v27 = vld [vmem:[#allocation2 + $0x60] sm:$0xff]  ;;  %7322 = vmatpush1.bf16.msra.mxu0 %v10829_v28 }
 0x404   :  { %v4325_v8 = vld [vmem:[#allocation2 + $0x440] sm:$0xff]  ;;  %v10822_v11 = vcombine.high %v4197_v26, %v4201_v27  ;;  %7362 = vmatprep.subr.bf16.mxu1 %v10958_v19  ;;  %v10821_v1 = vcombine.low %v4197_v26, %v4201_v27 }
 0x405   :  { %v4329_v59 = vld [vmem:[#allocation2 + $0x460] sm:$0xff]  ;;  %7363 = vmatpush1.bf16.msra.mxu1 %v10957_v20 }
 0x406   :  { %v10950_v30 = vcombine.high %v4325_v8, %v4329_v59  ;;  %v4189_v6 = vld [vmem:[#allocation2] sm:$0xff]  ;;  %7323 = vmatprep.subr.bf16.mxu0 %v10822_v11  ;;  %v10949_v39 = vcombine.low %v4325_v8, %v4329_v59 }
 0x407   :  { %v4193_v31 = vld [vmem:[#allocation2 + $0x20] sm:$0xff]  ;;  %7324 = vmatpush1.bf16.msra.mxu0 %v10821_v1 }
 0x408   :  { %v4317_v47 = vld [vmem:[#allocation2 + $0x400] sm:$0xff]  ;;  %v10814_v42 = vcombine.high %v4189_v6, %v4193_v31  ;;  %7364 = vmatprep.subr.bf16.mxu1 %v10950_v30  ;;  %v10813_v32 = vcombine.low %v4189_v6, %v4193_v31 }
 0x409   :  { %v4321_v60 = vld [vmem:[#allocation2 + $0x420] sm:$0xff]  ;;  %7365 = vmatpush1.bf16.msra.mxu1 %v10949_v39 }
 0x40a   :  { %v10942_v17 = vcombine.high %v4317_v47, %v4321_v60  ;;  %v4309_v21 = vld [vmem:[#allocation2 + $0x3c0] sm:$0xff]  ;;  %7325 = vmatprep.subr.bf16.mxu0 %v10814_v42  ;;  %v10941_v46 = vcombine.low %v4317_v47, %v4321_v60 }
 0x40b   :  { %v4313_v43 = vld [vmem:[#allocation2 + $0x3e0] sm:$0xff]  ;;  %7326 = vmatpush1.bf16.msra.mxu0 %v10813_v32 }
 0x40c   :  { %v4437_v63 = vld [vmem:[#allocation2 + $0x7c0] sm:$0xff]  ;;  %v10934_v7 = vcombine.high %v4309_v21, %v4313_v43  ;;  %7366 = vmatprep.subr.bf16.mxu1 %v10942_v17  ;;  %v10933_v51 = vcombine.low %v4309_v21, %v4313_v43 }
 0x40d   :  { %v4441_v3 = vld [vmem:[#allocation2 + $0x7e0] sm:$0xff]  ;;  %7367 = vmatpush1.bf16.msra.mxu1 %v10941_v46 }
 0x40e   :  { %v11062_v37 = vcombine.high %v4437_v63, %v4441_v3  ;;  %v4301_v48 = vld [vmem:[#allocation2 + $0x380] sm:$0xff]  ;;  %7327 = vmatprep.subr.bf16.mxu0 %v10934_v7  ;;  %v11061_v52 = vcombine.low %v4437_v63, %v4441_v3 }
 0x40f   :  { %v4305_v49 = vld [vmem:[#allocation2 + $0x3a0] sm:$0xff]  ;;  %7328 = vmatpush2.bf16.msra.mxu0 %v10933_v51 }
 0x410   :  { %v4429_v50 = vld [vmem:[#allocation2 + $0x780] sm:$0xff]  ;;  %v10926_v53 = vcombine.high %v4301_v48, %v4305_v49  ;;  %7368 = vmatprep.subr.bf16.mxu1 %v11062_v37  ;;  %v10925_v13 = vcombine.low %v4301_v48, %v4305_v49 }
 0x411   :  { %v4433_v41 = vld [vmem:[#allocation2 + $0x7a0] sm:$0xff]  ;;  %7369 = vmatpush2.bf16.msra.mxu1 %v11061_v52 }
 0x412   :  { %v11054_v54 = vcombine.high %v4429_v50, %v4433_v41  ;;  %v4293_v61 = vld [vmem:[#allocation2 + $0x340] sm:$0xff]  ;;  %7329 = vmatprep.subr.bf16.mxu0 %v10926_v53  ;;  %v11053_v56 = vcombine.low %v4429_v50, %v4433_v41 }
 0x413   :  { %v4297_v0 = vld [vmem:[#allocation2 + $0x360] sm:$0xff]  ;;  %7330 = vmatpush2.bf16.msra.mxu0 %v10925_v13 }
 0x414   :  { %v4421_v4 = vld [vmem:[#allocation2 + $0x740] sm:$0xff]  ;;  %v10918_v57 = vcombine.high %v4293_v61, %v4297_v0  ;;  %7370 = vmatprep.subr.bf16.mxu1 %v11054_v54  ;;  %v10917_v8 = vcombine.low %v4293_v61, %v4297_v0 }
 0x415   :  { %v4425_v10 = vld [vmem:[#allocation2 + $0x760] sm:$0xff]  ;;  %7371 = vmatpush2.bf16.msra.mxu1 %v11053_v56 }
 0x416   :  { %v11046_v62 = vcombine.high %v4421_v4, %v4425_v10  ;;  %v4285_v12 = vld [vmem:[#allocation2 + $0x300] sm:$0xff]  ;;  %7331 = vmatprep.subr.bf16.mxu0 %v10918_v57  ;;  %v11045_v59 = vcombine.low %v4421_v4, %v4425_v10 }
 0x417   :  { %v4289_v19 = vld [vmem:[#allocation2 + $0x320] sm:$0xff]  ;;  %7332 = vmatpush2.bf16.msra.mxu0 %v10917_v8 }
 0x418   :  { %v4413_v26 = vld [vmem:[#allocation2 + $0x700] sm:$0xff]  ;;  %v10910_v28 = vcombine.high %v4285_v12, %v4289_v19  ;;  %7372 = vmatprep.subr.bf16.mxu1 %v11046_v62  ;;  %v10909_v47 = vcombine.low %v4285_v12, %v4289_v19 }
 0x419   :  { %v4417_v27 = vld [vmem:[#allocation2 + $0x720] sm:$0xff]  ;;  %7373 = vmatpush2.bf16.msra.mxu1 %v11045_v59 }
 0x41a   :  { %v11038_v20 = vcombine.high %v4413_v26, %v4417_v27  ;;  %v4277_v11 = vld [vmem:[#allocation2 + $0x2c0] sm:$0xff]  ;;  %7333 = vmatprep.subr.bf16.mxu0 %v10910_v28  ;;  %v11037_v60 = vcombine.low %v4413_v26, %v4417_v27 }
 0x41b   :  { %v4281_v30 = vld [vmem:[#allocation2 + $0x2e0] sm:$0xff]  ;;  %7334 = vmatpush2.bf16.msra.mxu0 %v10909_v47 }
 0x41c   :  { %v4405_v6 = vld [vmem:[#allocation2 + $0x6c0] sm:$0xff]  ;;  %v10902_v1 = vcombine.high %v4277_v11, %v4281_v30  ;;  %7374 = vmatprep.subr.bf16.mxu1 %v11038_v20  ;;  %v10901_v63 = vcombine.low %v4277_v11, %v4281_v30  ;;  %v12311_v11 = vpack.c.bf16 %v4161_v16, %v4161_v16  ;;  %v12321_v16 = vpack.c.bf16 %v4166_v18, %v4166_v18 }
 0x41d   :  { %v4409_v31 = vld [vmem:[#allocation2 + $0x6e0] sm:$0xff]  ;;  %7375 = vmatpush2.bf16.msra.mxu1 %v11037_v60 }
 0x41e   :  { %v11030_v39 = vcombine.high %v4405_v6, %v4409_v31  ;;  %v4269_v42 = vld [vmem:[#allocation2 + $0x280] sm:$0xff]  ;;  %7335 = vmatprep.subr.bf16.mxu0 %v10902_v1  ;;  %v11029_v3 = vcombine.low %v4405_v6, %v4409_v31  ;;  %v12316_v31 = vpack.c.bf16 %v4163_v45, %v4163_v45  ;;  %v12327_v45 = vpack.c.bf16 %v4168_v15, %v4168_v15 }
 0x41f   :  { %v4273_v17 = vld [vmem:[#allocation2 + $0x2a0] sm:$0xff]  ;;  %7336 = vmatpush2.bf16.msra.mxu0 %v10901_v63 }
 0x420   :  { %v4397_v21 = vld [vmem:[#allocation2 + $0x680] sm:$0xff]  ;;  %v10894_v32 = vcombine.high %v4269_v42, %v4273_v17  ;;  %7376 = vmatprep.subr.bf16.mxu1 %v11030_v39  ;;  %v10893_v50 = vcombine.low %v4269_v42, %v4273_v17 }
 0x421   :  { %v4401_v43 = vld [vmem:[#allocation2 + $0x6a0] sm:$0xff]  ;;  %7377 = vmatpush2.bf16.msra.mxu1 %v11029_v3 }
 0x422   :  { %v11022_v46 = vcombine.high %v4397_v21, %v4401_v43  ;;  %v4261_v7 = vld [vmem:[#allocation2 + $0x240] sm:$0xff]  ;;  %7337 = vmatprep.subr.bf16.mxu0 %v10894_v32  ;;  %v11021_v41 = vcombine.low %v4397_v21, %v4401_v43 }
 0x423   :  { %v4265_v37 = vld [vmem:[#allocation2 + $0x260] sm:$0xff]  ;;  %7338 = vmatpush2.bf16.msra.mxu0 %v10893_v50 }
 0x424   :  { %v4389_v48 = vld [vmem:[#allocation2 + $0x640] sm:$0xff]  ;;  %v10886_v51 = vcombine.high %v4261_v7, %v4265_v37  ;;  %7378 = vmatprep.subr.bf16.mxu1 %v11022_v46  ;;  %v10885_v4 = vcombine.low %v4261_v7, %v4265_v37 }
 0x425   :  { %v4393_v49 = vld [vmem:[#allocation2 + $0x660] sm:$0xff]  ;;  %7379 = vmatpush2.bf16.msra.mxu1 %v11021_v41 }
 0x426   :  { %v11014_v52 = vcombine.high %v4389_v48, %v4393_v49  ;;  %v4253_v53 = vld [vmem:[#allocation2 + $0x200] sm:$0xff]  ;;  %7339 = vmatprep.subr.bf16.mxu0 %v10886_v51  ;;  %v11013_v10 = vcombine.low %v4389_v48, %v4393_v49 }
 0x427   :  { %v4257_v54 = vld [vmem:[#allocation2 + $0x220] sm:$0xff]  ;;  %7340 = vmatpush2.bf16.msra.mxu0 %v10885_v4 }
 0x428   :  { %v4381_v61 = vld [vmem:[#allocation2 + $0x600] sm:$0xff]  ;;  %v10878_v13 = vcombine.high %v4253_v53, %v4257_v54  ;;  %7380 = vmatprep.subr.bf16.mxu1 %v11014_v52  ;;  %v10877_v26 = vcombine.low %v4253_v53, %v4257_v54 }
 0x429   :  { %v4385_v0 = vld [vmem:[#allocation2 + $0x620] sm:$0xff]  ;;  %7381 = vmatpush2.bf16.msra.mxu1 %v11013_v10 }
 0x42a   :  { %v11006_v56 = vcombine.high %v4381_v61, %v4385_v0  ;;  %v4501_v57 = vld [vmem:[#allocation2 + $0x9c0] sm:$0xff]  ;;  %7341 = vmatprep.subr.bf16.mxu0 %v10878_v13  ;;  %v11005_v27 = vcombine.low %v4381_v61, %v4385_v0 }
 0x42b   :  { %v4505_v62 = vld [vmem:[#allocation2 + $0x9e0] sm:$0xff]  ;;  %7342 = vmatpush2.bf16.msra.mxu0 %v10877_v26 }
 0x42c   :  { %v4629_v12 = vld [vmem:[#allocation2 + $0xdc0] sm:$0xff]  ;;  %v11126_v8 = vcombine.high %v4501_v57, %v4505_v62  ;;  %7382 = vmatprep.subr.bf16.mxu1 %v11006_v56  ;;  %v11125_v47 = vcombine.low %v4501_v57, %v4505_v62 }
 0x42d   :  { %v4633_v19 = vld [vmem:[#allocation2 + $0xde0] sm:$0xff]  ;;  %7383 = vmatpush2.bf16.msra.mxu1 %v11005_v27 }
 0x42e   :  { %v11254_v59 = vcombine.high %v4629_v12, %v4633_v19  ;;  %v4493_v28 = vld [vmem:[#allocation2 + $0x980] sm:$0xff]  ;;  %7393 = vmatprep.subr.bf16.mxu0 %v11126_v8  ;;  %v11253_v60 = vcombine.low %v4629_v12, %v4633_v19  ;;  %7344 = vmatmul.mubr.bf16.vlgmr.msra.gmra.mxu0 %v12311_v11 }
 0x42f   :  { %v4497_v20 = vld [vmem:[#allocation2 + $0x9a0] sm:$0xff]  ;;  %7394 = vmatpush1.bf16.msra.mxu0 %v11125_v47  ;;  %7425 = vmatprep.mubr.bf16.mxu0 %v12321_v16 }
 0x430   :  { %v4621_v30 = vld [vmem:[#allocation2 + $0xd80] sm:$0xff]  ;;  %v11118_v1 = vcombine.high %v4493_v28, %v4497_v20  ;;  %7434 = vmatprep.subr.bf16.mxu1 %v11254_v59  ;;  %7385 = vmatmul.mubr.bf16.vlgmr.msra.gmra.mxu1 %v12316_v31  ;;  %v11117_v21 = vcombine.low %v4493_v28, %v4497_v20 }
 0x431   :  { %v4625_v6 = vld [vmem:[#allocation2 + $0xda0] sm:$0xff]  ;;  %7435 = vmatpush1.bf16.msra.mxu1 %v11253_v60  ;;  %7466 = vmatprep.mubr.bf16.mxu1 %v12327_v45 }
 0x432   :  { %v11246_v39 = vcombine.high %v4621_v30, %v4625_v6  ;;  %v4485_v42 = vld [vmem:[#allocation2 + $0x940] sm:$0xff]  ;;  %7395 = vmatprep.subr.bf16.mxu0 %v11118_v1  ;;  %v11245_v43 = vcombine.low %v4621_v30, %v4625_v6 }
 0x433   :  { %v4489_v2 = vld [vmem:[#allocation2 + $0x960] sm:$0xff]  ;;  %7396 = vmatpush1.bf16.msra.mxu0 %v11117_v21 }
 0x434   :  { %v4613_v38 = vld [vmem:[#allocation2 + $0xd40] sm:$0xff]  ;;  %v11110_v35 = vcombine.high %v4485_v42, %v4489_v2  ;;  %7436 = vmatprep.subr.bf16.mxu1 %v11246_v39  ;;  %v11109_v9 = vcombine.low %v4485_v42, %v4489_v2 }
 0x435   :  { %v4617_v17 = vld [vmem:[#allocation2 + $0xd60] sm:$0xff]  ;;  %7437 = vmatpush1.bf16.msra.mxu1 %v11245_v43 }
 0x436   :  { %v11238_v18 = vcombine.high %v4613_v38, %v4617_v17  ;;  %v4477_v63 = vld [vmem:[#allocation2 + $0x900] sm:$0xff]  ;;  %7397 = vmatprep.subr.bf16.mxu0 %v11110_v35  ;;  %v11237_v15 = vcombine.low %v4613_v38, %v4617_v17 }
 0x437   :  { %v4481_v3 = vld [vmem:[#allocation2 + $0x920] sm:$0xff]  ;;  %7398 = vmatpush1.bf16.msra.mxu0 %v11109_v9 }
 0x438   :  { %v4605_v32 = vld [vmem:[#allocation2 + $0xd00] sm:$0xff]  ;;  %v11102_v7 = vcombine.high %v4477_v63, %v4481_v3  ;;  %7438 = vmatprep.subr.bf16.mxu1 %v11238_v18  ;;  %v11101_v51 = vcombine.low %v4477_v63, %v4481_v3 }
 0x439   :  { %v4609_v46 = vld [vmem:[#allocation2 + $0xd20] sm:$0xff]  ;;  %7439 = vmatpush1.bf16.msra.mxu1 %v11237_v15 }
 0x43a   :  { %v11230_v37 = vcombine.high %v4605_v32, %v4609_v46  ;;  %v4469_v48 = vld [vmem:[#allocation2 + $0x8c0] sm:$0xff]  ;;  %7399 = vmatprep.subr.bf16.mxu0 %v11102_v7  ;;  %v11229_v52 = vcombine.low %v4605_v32, %v4609_v46 }
 0x43b   :  { %v4473_v49 = vld [vmem:[#allocation2 + $0x8e0] sm:$0xff]  ;;  %7400 = vmatpush1.bf16.msra.mxu0 %v11101_v51 }
 0x43c   :  { %v4597_v50 = vld [vmem:[#allocation2 + $0xcc0] sm:$0xff]  ;;  %v11094_v53 = vcombine.high %v4469_v48, %v4473_v49  ;;  %7440 = vmatprep.subr.bf16.mxu1 %v11230_v37  ;;  %v11093_v13 = vcombine.low %v4469_v48, %v4473_v49 }
 0x43d   :  { %v4601_v41 = vld [vmem:[#allocation2 + $0xce0] sm:$0xff]  ;;  %7441 = vmatpush1.bf16.msra.mxu1 %v11229_v52 }
 0x43e   :  { %v11222_v54 = vcombine.high %v4597_v50, %v4601_v41  ;;  %v4461_v61 = vld [vmem:[#allocation2 + $0x880] sm:$0xff]  ;;  %7401 = vmatprep.subr.bf16.mxu0 %v11094_v53  ;;  %v11221_v56 = vcombine.low %v4597_v50, %v4601_v41 }
 0x43f   :  { %v4465_v0 = vld [vmem:[#allocation2 + $0x8a0] sm:$0xff]  ;;  %7402 = vmatpush1.bf16.msra.mxu0 %v11093_v13 }
 0x440   :  { %v4589_v4 = vld [vmem:[#allocation2 + $0xc80] sm:$0xff]  ;;  %v11086_v57 = vcombine.high %v4461_v61, %v4465_v0  ;;  %7442 = vmatprep.subr.bf16.mxu1 %v11222_v54  ;;  %v11085_v8 = vcombine.low %v4461_v61, %v4465_v0 }
 0x441   :  { %v4593_v10 = vld [vmem:[#allocation2 + $0xca0] sm:$0xff]  ;;  %7443 = vmatpush1.bf16.msra.mxu1 %v11221_v56 }
 0x442   :  { %v11214_v62 = vcombine.high %v4589_v4, %v4593_v10  ;;  %v4453_v12 = vld [vmem:[#allocation2 + $0x840] sm:$0xff]  ;;  %7403 = vmatprep.subr.bf16.mxu0 %v11086_v57  ;;  %v11213_v59 = vcombine.low %v4589_v4, %v4593_v10 }
 0x443   :  { %v4457_v19 = vld [vmem:[#allocation2 + $0x860] sm:$0xff]  ;;  %7404 = vmatpush1.bf16.msra.mxu0 %v11085_v8 }
 0x444   :  { %v4581_v26 = vld [vmem:[#allocation2 + $0xc40] sm:$0xff]  ;;  %v11078_v28 = vcombine.high %v4453_v12, %v4457_v19  ;;  %7444 = vmatprep.subr.bf16.mxu1 %v11214_v62  ;;  %v11077_v1 = vcombine.low %v4453_v12, %v4457_v19 }
 0x445   :  { %v4585_v27 = vld [vmem:[#allocation2 + $0xc60] sm:$0xff]  ;;  %7445 = vmatpush1.bf16.msra.mxu1 %v11213_v59 }
 0x446   :  { %v11206_v20 = vcombine.high %v4581_v26, %v4585_v27  ;;  %v4445_v30 = vld [vmem:[#allocation2 + $0x800] sm:$0xff]  ;;  %7405 = vmatprep.subr.bf16.mxu0 %v11078_v28  ;;  %v11205_v39 = vcombine.low %v4581_v26, %v4585_v27 }
 0x447   :  { %v4449_v6 = vld [vmem:[#allocation2 + $0x820] sm:$0xff]  ;;  %7406 = vmatpush1.bf16.msra.mxu0 %v11077_v1 }
 0x448   :  { %v4573_v47 = vld [vmem:[#allocation2 + $0xc00] sm:$0xff]  ;;  %v11070_v42 = vcombine.high %v4445_v30, %v4449_v6  ;;  %7446 = vmatprep.subr.bf16.mxu1 %v11206_v20  ;;  %v11069_v35 = vcombine.low %v4445_v30, %v4449_v6 }
 0x449   :  { %v4577_v60 = vld [vmem:[#allocation2 + $0xc20] sm:$0xff]  ;;  %7447 = vmatpush1.bf16.msra.mxu1 %v11205_v39 }
 0x44a   :  { %v11198_v2 = vcombine.high %v4573_v47, %v4577_v60  ;;  %v4565_v38 = vld [vmem:[#allocation2 + $0xbc0] sm:$0xff]  ;;  %7407 = vmatprep.subr.bf16.mxu0 %v11070_v42  ;;  %v11197_v18 = vcombine.low %v4573_v47, %v4577_v60 }
 0x44b   :  { %v4569_v17 = vld [vmem:[#allocation2 + $0xbe0] sm:$0xff]  ;;  %7408 = vmatpush1.bf16.msra.mxu0 %v11069_v35 }
 0x44c   :  { %v4693_v21 = vld [vmem:[#allocation2 + $0xfc0] sm:$0xff]  ;;  %v11190_v63 = vcombine.high %v4565_v38, %v4569_v17  ;;  %7448 = vmatprep.subr.bf16.mxu1 %v11198_v2  ;;  %v11189_v7 = vcombine.low %v4565_v38, %v4569_v17 }
 0x44d   :  { %v4697_v43 = vld [vmem:[#allocation2 + $0xfe0] sm:$0xff]  ;;  %7449 = vmatpush1.bf16.msra.mxu1 %v11197_v18 }
 0x44e   :  { %v11318_v3 = vcombine.high %v4693_v21, %v4697_v43  ;;  %v4557_v32 = vld [vmem:[#allocation2 + $0xb80] sm:$0xff]  ;;  %7409 = vmatprep.subr.bf16.mxu0 %v11190_v63  ;;  %v11317_v37 = vcombine.low %v4693_v21, %v4697_v43 }
 0x44f   :  { %v4561_v46 = vld [vmem:[#allocation2 + $0xba0] sm:$0xff]  ;;  %7410 = vmatpush2.bf16.msra.mxu0 %v11189_v7 }
 0x450   :  { %v4685_v9 = vld [vmem:[#allocation2 + $0xf80] sm:$0xff]  ;;  %v11182_v48 = vcombine.high %v4557_v32, %v4561_v46  ;;  %7450 = vmatprep.subr.bf16.mxu1 %v11318_v3  ;;  %v11181_v53 = vcombine.low %v4557_v32, %v4561_v46 }
 0x451   :  { %v4689_v15 = vld [vmem:[#allocation2 + $0xfa0] sm:$0xff]  ;;  %7451 = vmatpush2.bf16.msra.mxu1 %v11317_v37 }
 0x452   :  { %v11310_v49 = vcombine.high %v4685_v9, %v4689_v15  ;;  %v4549_v50 = vld [vmem:[#allocation2 + $0xb40] sm:$0xff]  ;;  %7411 = vmatprep.subr.bf16.mxu0 %v11182_v48  ;;  %v11309_v54 = vcombine.low %v4685_v9, %v4689_v15 }
 0x453   :  { %v4553_v41 = vld [vmem:[#allocation2 + $0xb60] sm:$0xff]  ;;  %7412 = vmatpush2.bf16.msra.mxu0 %v11181_v53  ;;  %v4374_v53 = vld [vmem:[#allocation2 + $0x5c8] sm:$0xff] }
 0x454   :  { %v4677_v51 = vld [vmem:[#allocation2 + $0xf40] sm:$0xff]  ;;  %v11174_v61 = vcombine.high %v4549_v50, %v4553_v41  ;;  %7452 = vmatprep.subr.bf16.mxu1 %v11310_v49  ;;  %v11173_v57 = vcombine.low %v4549_v50, %v4553_v41 }
 0x455   :  { %v4681_v52 = vld [vmem:[#allocation2 + $0xf60] sm:$0xff]  ;;  %7453 = vmatpush2.bf16.msra.mxu1 %v11309_v54  ;;  %v4378_v54 = vld [vmem:[#allocation2 + $0x5e8] sm:$0xff] }
 0x456   :  { %v11302_v0 = vcombine.high %v4677_v51, %v4681_v52  ;;  %v4541_v4 = vld [vmem:[#allocation2 + $0xb00] sm:$0xff]  ;;  %7413 = vmatprep.subr.bf16.mxu0 %v11174_v61  ;;  %v11301_v62 = vcombine.low %v4677_v51, %v4681_v52  ;;  %v4246_v51 = vld [vmem:[#allocation2 + $0x1c8] sm:$0xff] }
 0x457   :  { %v4545_v10 = vld [vmem:[#allocation2 + $0xb20] sm:$0xff]  ;;  %7414 = vmatpush2.bf16.msra.mxu0 %v11173_v57  ;;  %v4250_v52 = vld [vmem:[#allocation2 + $0x1e8] sm:$0xff]  ;;  %v12335_v57 = vpack.c.bf16 %v4165_v34, %v4165_v34 }
 0x458   :  { %v4669_v13 = vld [vmem:[#allocation2 + $0xf00] sm:$0xff]  ;;  %v11166_v12 = vcombine.high %v4541_v4, %v4545_v10  ;;  %7454 = vmatprep.subr.bf16.mxu1 %v11302_v0  ;;  %v11165_v28 = vcombine.low %v4541_v4, %v4545_v10  ;;  %v10872_v4 = vcombine.high %v4246_v51, %v4250_v52  ;;  %v11000_v10 = vcombine.high %v4374_v53, %v4378_v54  ;;  %v4234_v34 = vld [vmem:[#allocation2 + $0x168] sm:$0xff] }
 0x459   :  { %v4673_v56 = vld [vmem:[#allocation2 + $0xf20] sm:$0xff]  ;;  %7455 = vmatpush2.bf16.msra.mxu1 %v11301_v62  ;;  %v4366_v62 = vld [vmem:[#allocation2 + $0x588] sm:$0xff] }
 0x45a   :  { %v11294_v19 = vcombine.high %v4669_v13, %v4673_v56  ;;  %v4533_v26 = vld [vmem:[#allocation2 + $0xac0] sm:$0xff]  ;;  %7415 = vmatprep.subr.bf16.mxu0 %v11166_v12  ;;  %v11293_v20 = vcombine.low %v4669_v13, %v4673_v56  ;;  %v4238_v13 = vld [vmem:[#allocation2 + $0x188] sm:$0xff] }
 0x45b   :  { %v4537_v27 = vld [vmem:[#allocation2 + $0xae0] sm:$0xff]  ;;  %7416 = vmatpush2.bf16.msra.mxu0 %v11165_v28  ;;  %v4242_v56 = vld [vmem:[#allocation2 + $0x1a8] sm:$0xff] }
 0x45c   :  { %v4661_v8 = vld [vmem:[#allocation2 + $0xec0] sm:$0xff]  ;;  %v11158_v30 = vcombine.high %v4533_v26, %v4537_v27  ;;  %7456 = vmatprep.subr.bf16.mxu1 %v11294_v19  ;;  %v11157_v42 = vcombine.low %v4533_v26, %v4537_v27  ;;  %v4370_v12 = vld [vmem:[#allocation2 + $0x5a8] sm:$0xff]  ;;  %v12340_v19 = vpack.c.bf16 %v4167_v5, %v4167_v5  ;;  %v10871_v26 = vcombine.low %v4246_v51, %v4250_v52 }
 0x45d   :  { %v4665_v59 = vld [vmem:[#allocation2 + $0xee0] sm:$0xff]  ;;  %7457 = vmatpush2.bf16.msra.mxu1 %v11293_v20  ;;  %v10999_v27 = vcombine.low %v4374_v53, %v4378_v54  ;;  %v10992_v29 = vcombine.high %v4366_v62, %v4370_v12  ;;  %v4230_v28 = vld [vmem:[#allocation2 + $0x148] sm:$0xff] }
 0x45e   :  { %v11286_v6 = vcombine.high %v4661_v8, %v4665_v59  ;;  %v4525_v47 = vld [vmem:[#allocation2 + $0xa80] sm:$0xff]  ;;  %7417 = vmatprep.subr.bf16.mxu0 %v11158_v30  ;;  %v11285_v2 = vcombine.low %v4661_v8, %v4665_v59  ;;  %v10864_v8 = vcombine.high %v4238_v13, %v4242_v56 }
 0x45f   :  { %v4529_v60 = vld [vmem:[#allocation2 + $0xaa0] sm:$0xff]  ;;  %7418 = vmatpush2.bf16.msra.mxu0 %v11157_v42 }
 0x460   :  { %v4653_v1 = vld [vmem:[#allocation2 + $0xe80] sm:$0xff]  ;;  %v11150_v38 = vcombine.high %v4525_v47, %v4529_v60  ;;  %7458 = vmatprep.subr.bf16.mxu1 %v11286_v6  ;;  %v11149_v63 = vcombine.low %v4525_v47, %v4529_v60 }
 0x461   :  { %v4657_v39 = vld [vmem:[#allocation2 + $0xea0] sm:$0xff]  ;;  %7459 = vmatpush2.bf16.msra.mxu1 %v11285_v2 }
 0x462   :  { %v11278_v17 = vcombine.high %v4653_v1, %v4657_v39  ;;  %v4517_v21 = vld [vmem:[#allocation2 + $0xa40] sm:$0xff]  ;;  %7419 = vmatprep.subr.bf16.mxu0 %v11150_v38  ;;  %v11277_v3 = vcombine.low %v4653_v1, %v4657_v39 }
 0x463   :  { %v4521_v43 = vld [vmem:[#allocation2 + $0xa60] sm:$0xff]  ;;  %7420 = vmatpush2.bf16.msra.mxu0 %v11149_v63 }
 0x464   :  { %v4645_v35 = vld [vmem:[#allocation2 + $0xe40] sm:$0xff]  ;;  %v11142_v32 = vcombine.high %v4517_v21, %v4521_v43  ;;  %7460 = vmatprep.subr.bf16.mxu1 %v11278_v17  ;;  %v11141_v48 = vcombine.low %v4517_v21, %v4521_v43 }
 0x465   :  { %v4649_v18 = vld [vmem:[#allocation2 + $0xe60] sm:$0xff]  ;;  %7461 = vmatpush2.bf16.msra.mxu1 %v11277_v3 }
 0x466   :  { %v11270_v46 = vcombine.high %v4645_v35, %v4649_v18  ;;  %v4509_v9 = vld [vmem:[#allocation2 + $0xa00] sm:$0xff]  ;;  %7421 = vmatprep.subr.bf16.mxu0 %v11142_v32  ;;  %v11269_v49 = vcombine.low %v4645_v35, %v4649_v18 }
 0x467   :  { %v4513_v15 = vld [vmem:[#allocation2 + $0xa20] sm:$0xff]  ;;  %7422 = vmatpush2.bf16.msra.mxu0 %v11141_v48 }
 0x468   :  { %v4637_v7 = vld [vmem:[#allocation2 + $0xe00] sm:$0xff]  ;;  %v11134_v50 = vcombine.high %v4509_v9, %v4513_v15  ;;  %7462 = vmatprep.subr.bf16.mxu1 %v11270_v46  ;;  %v11133_v61 = vcombine.low %v4509_v9, %v4513_v15 }
 0x469   :  { %v4641_v37 = vld [vmem:[#allocation2 + $0xe20] sm:$0xff]  ;;  %7463 = vmatpush2.bf16.msra.mxu1 %v11269_v49 }
 0x46a   :  { %v11262_v41 = vcombine.high %v4637_v7, %v4641_v37  ;;  %7423 = vmatprep.subr.bf16.mxu0 %v11134_v50  ;;  %v11261_v0 = vcombine.low %v4637_v7, %v4641_v37  ;;  %v12342_v59 = vld [vmem:[#allocation3] sm:$0xff] }
 0x46b   :  { %7424 = vmatpush2.bf16.msra.mxu0 %v11133_v61 }
 0x46c   :  { %7464 = vmatprep.subr.bf16.mxu1 %v11262_v41  ;;  %7475 = vmatprep.subr.bf16.mxu0 %v10872_v4 }
 0x46d   :  { %7465 = vmatpush2.bf16.msra.mxu1 %v11261_v0 }
 0x46e   :  { %7516 = vmatprep.subr.bf16.mxu1 %v11000_v10 }
 0x46f   :  { %11873 = shalt.err (!%p12037_p0)  }
 0x470   :  { %7990 = dma.hbm_to_vmem [thread:$0]  %s12524_s10, 128, %s12015_s25, [#allocation5]  ;;  %7426 = vmatmul.mubr.bf16.vlgmr.msra.gmra.mxu0 %v12335_v57  ;;  %v4358_v58 = vld [vmem:[#allocation2 + $0x548] sm:$0xff]  ;;  %7467 = vmatmul.mubr.bf16.vlgmr.msra.gmra.mxu1 %v12340_v19  ;;  %v10863_v20 = vcombine.low %v4238_v13, %v4242_v56  ;;  %v10991_v30 = vcombine.low %v4366_v62, %v4370_v12  ;;  %v10856_v6 = vcombine.high %v4230_v28, %v4234_v34 }
 0x471   :  { %v4362_v5 = vld [vmem:[#allocation2 + $0x568] sm:$0xff]  ;;  %7476 = vmatpush1.bf16.msra.mxu0 %v10871_v26  ;;  %7517 = vmatpush1.bf16.msra.mxu1 %v10999_v27  ;;  %v10855_v2 = vcombine.low %v4230_v28, %v4234_v34  ;;  %s11882_s10 = scalar_lea.vmem %s12013_s23, 4096 }
 0x472   :  { %7477 = vmatprep.subr.bf16.mxu0 %v10864_v8  ;;  %7518 = vmatprep.subr.bf16.mxu1 %v10992_v29  ;;  %v10984_v47 = vcombine.high %v4358_v58, %v4362_v5  ;;  %v4222_v60 = vld [vmem:[#allocation2 + $0x108] sm:$0xff]  ;;  %v10983_v38 = vcombine.low %v4358_v58, %v4362_v5  ;;  %p11883_p0 = scmp.ne.s32.totalorder %s12013_s23, %s11882_s10  ;;  %p11888_p2 = scmp.lt.s32.totalorder %s12020_s27, %s11882_s10 }
 0x473   :  { %v4226_v1 = vld [vmem:[#allocation2 + $0x128] sm:$0xff]  ;;  %7507 = vmatprep.mubr.bf16.mxu0 %v12299_v14  ;;  %7548 = vmatprep.mubr.bf16.mxu1 %v12304_v55 }
 0x474   :  { %v4350_v39 = vld [vmem:[#allocation2 + $0x508] sm:$0xff]  ;;  %v10848_v17 = vcombine.high %v4222_v60, %v4226_v1  ;;  %v10847_v3 = vcombine.low %v4222_v60, %v4226_v1  ;;  %p11889_p9 = por %p11888_p2, %p11707_p6 }
 0x475   :  { %v4354_v42 = vld [vmem:[#allocation2 + $0x528] sm:$0xff]  ;;  %7478 = vmatpush1.bf16.msra.mxu0 %v10863_v20  ;;  %7519 = vmatpush1.bf16.msra.mxu1 %v10991_v30 }
 0x476   :  { %7479 = vmatprep.subr.bf16.mxu0 %v10856_v6  ;;  %7520 = vmatprep.subr.bf16.mxu1 %v10984_v47  ;;  %v10976_v21 = vcombine.high %v4350_v39, %v4354_v42  ;;  %v4214_v43 = vld [vmem:[#allocation2 + $0xc8] sm:$0xff]  ;;  %v10975_v32 = vcombine.low %v4350_v39, %v4354_v42  ;;  %p11890_p10 = pnand %p11889_p9, %p11883_p0 }
 0x477   :  { %v4218_v35 = vld [vmem:[#allocation2 + $0xe8] sm:$0xff] }
 0x478   :  { %v4342_v18 = vld [vmem:[#allocation2 + $0x4c8] sm:$0xff]  ;;  %v10840_v46 = vcombine.high %v4214_v43, %v4218_v35  ;;  %v10839_v49 = vcombine.low %v4214_v43, %v4218_v35 }
 0x479   :  { %v4346_v63 = vld [vmem:[#allocation2 + $0x4e8] sm:$0xff]  ;;  %7480 = vmatpush1.bf16.msra.mxu0 %v10855_v2  ;;  %7521 = vmatpush1.bf16.msra.mxu1 %v10983_v38 }
 0x47a   :  { %7481 = vmatprep.subr.bf16.mxu0 %v10848_v17  ;;  %7522 = vmatprep.subr.bf16.mxu1 %v10976_v21  ;;  %v10968_v9 = vcombine.high %v4342_v18, %v4346_v63  ;;  %v4206_v15 = vld [vmem:[#allocation2 + $0x88] sm:$0xff]  ;;  %v10967_v50 = vcombine.low %v4342_v18, %v4346_v63 }
 0x47b   :  { %v4210_v7 = vld [vmem:[#allocation2 + $0xa8] sm:$0xff] }
 0x47c   :  { %v4334_v37 = vld [vmem:[#allocation2 + $0x488] sm:$0xff]  ;;  %v10832_v41 = vcombine.high %v4206_v15, %v4210_v7  ;;  %v10831_v0 = vcombine.low %v4206_v15, %v4210_v7 }
 0x47d   :  { %v4338_v48 = vld [vmem:[#allocation2 + $0x4a8] sm:$0xff]  ;;  %7482 = vmatpush1.bf16.msra.mxu0 %v10847_v3  ;;  %7523 = vmatpush1.bf16.msra.mxu1 %v10975_v32 }
 0x47e   :  { %7483 = vmatprep.subr.bf16.mxu0 %v10840_v46  ;;  %7524 = vmatprep.subr.bf16.mxu1 %v10968_v9  ;;  %v10960_v51 = vcombine.high %v4334_v37, %v4338_v48  ;;  %v4198_v52 = vld [vmem:[#allocation2 + $0x48] sm:$0xff]  ;;  %v10959_v4 = vcombine.low %v4334_v37, %v4338_v48 }
 0x47f   :  { %v4202_v53 = vld [vmem:[#allocation2 + $0x68] sm:$0xff] }
 0x480   :  { %v4326_v54 = vld [vmem:[#allocation2 + $0x448] sm:$0xff]  ;;  %v10824_v10 = vcombine.high %v4198_v52, %v4202_v53  ;;  %v10823_v27 = vcombine.low %v4198_v52, %v4202_v53 }
 0x481   :  { %v4330_v61 = vld [vmem:[#allocation2 + $0x468] sm:$0xff]  ;;  %7484 = vmatpush1.bf16.msra.mxu0 %v10839_v49  ;;  %7525 = vmatpush1.bf16.msra.mxu1 %v10967_v50 }
 0x482   :  { %7485 = vmatprep.subr.bf16.mxu0 %v10832_v41  ;;  %7526 = vmatprep.subr.bf16.mxu1 %v10960_v51  ;;  %v10952_v13 = vcombine.high %v4326_v54, %v4330_v61  ;;  %v4190_v56 = vld [vmem:[#allocation2 + $0x8] sm:$0xff]  ;;  %v10951_v8 = vcombine.low %v4326_v54, %v4330_v61 }
 0x483   :  { %v4194_v62 = vld [vmem:[#allocation2 + $0x28] sm:$0xff] }
 0x484   :  { %v4318_v12 = vld [vmem:[#allocation2 + $0x408] sm:$0xff]  ;;  %v10816_v29 = vcombine.high %v4190_v56, %v4194_v62  ;;  %v10815_v30 = vcombine.low %v4190_v56, %v4194_v62 }
 0x485   :  { %v4322_v26 = vld [vmem:[#allocation2 + $0x428] sm:$0xff]  ;;  %7486 = vmatpush1.bf16.msra.mxu0 %v10831_v0  ;;  %7527 = vmatpush1.bf16.msra.mxu1 %v10959_v4 }
 0x486   :  { %7487 = vmatprep.subr.bf16.mxu0 %v10824_v10  ;;  %7528 = vmatprep.subr.bf16.mxu1 %v10952_v13  ;;  %v10944_v28 = vcombine.high %v4318_v12, %v4322_v26  ;;  %v4310_v34 = vld [vmem:[#allocation2 + $0x3c8] sm:$0xff]  ;;  %v10943_v6 = vcombine.low %v4318_v12, %v4322_v26 }
 0x487   :  { %v4314_v58 = vld [vmem:[#allocation2 + $0x3e8] sm:$0xff] }
 0x488   :  { %v4438_v5 = vld [vmem:[#allocation2 + $0x7c8] sm:$0xff]  ;;  %v10936_v47 = vcombine.high %v4310_v34, %v4314_v58  ;;  %v10935_v38 = vcombine.low %v4310_v34, %v4314_v58 }
 0x489   :  { %v4442_v20 = vld [vmem:[#allocation2 + $0x7e8] sm:$0xff]  ;;  %7488 = vmatpush1.bf16.msra.mxu0 %v10823_v27  ;;  %7529 = vmatpush1.bf16.msra.mxu1 %v10951_v8 }
 0x48a   :  { %7489 = vmatprep.subr.bf16.mxu0 %v10816_v29  ;;  %7530 = vmatprep.subr.bf16.mxu1 %v10944_v28  ;;  %v11064_v60 = vcombine.high %v4438_v5, %v4442_v20  ;;  %v4302_v1 = vld [vmem:[#allocation2 + $0x388] sm:$0xff]  ;;  %v11063_v17 = vcombine.low %v4438_v5, %v4442_v20 }
 0x48b   :  { %v4306_v39 = vld [vmem:[#allocation2 + $0x3a8] sm:$0xff] }
 0x48c   :  { %v4430_v42 = vld [vmem:[#allocation2 + $0x788] sm:$0xff]  ;;  %v10928_v21 = vcombine.high %v4302_v1, %v4306_v39  ;;  %v10927_v32 = vcombine.low %v4302_v1, %v4306_v39 }
 0x48d   :  { %v4434_v2 = vld [vmem:[#allocation2 + $0x7a8] sm:$0xff]  ;;  %7490 = vmatpush1.bf16.msra.mxu0 %v10815_v30  ;;  %7531 = vmatpush1.bf16.msra.mxu1 %v10943_v6 }
 0x48e   :  { %7491 = vmatprep.subr.bf16.mxu0 %v10936_v47  ;;  %7532 = vmatprep.subr.bf16.mxu1 %v11064_v60  ;;  %v11056_v43 = vcombine.high %v4430_v42, %v4434_v2  ;;  %v4294_v35 = vld [vmem:[#allocation2 + $0x348] sm:$0xff]  ;;  %v11055_v46 = vcombine.low %v4430_v42, %v4434_v2 }
 0x48f   :  { %v4298_v18 = vld [vmem:[#allocation2 + $0x368] sm:$0xff] }
 0x490   :  { %v4422_v63 = vld [vmem:[#allocation2 + $0x748] sm:$0xff]  ;;  %v10920_v9 = vcombine.high %v4294_v35, %v4298_v18  ;;  %v10919_v50 = vcombine.low %v4294_v35, %v4298_v18 }
 0x491   :  { %v4426_v3 = vld [vmem:[#allocation2 + $0x768] sm:$0xff]  ;;  %7492 = vmatpush2.bf16.msra.mxu0 %v10935_v38  ;;  %7533 = vmatpush2.bf16.msra.mxu1 %v11063_v17 }
 0x492   :  { %7493 = vmatprep.subr.bf16.mxu0 %v10928_v21  ;;  %7534 = vmatprep.subr.bf16.mxu1 %v11056_v43  ;;  %v11048_v15 = vcombine.high %v4422_v63, %v4426_v3  ;;  %v4286_v7 = vld [vmem:[#allocation2 + $0x308] sm:$0xff]  ;;  %v11047_v41 = vcombine.low %v4422_v63, %v4426_v3 }
 0x493   :  { %v4290_v37 = vld [vmem:[#allocation2 + $0x328] sm:$0xff] }
 0x494   :  { %v4414_v48 = vld [vmem:[#allocation2 + $0x708] sm:$0xff]  ;;  %v10912_v51 = vcombine.high %v4286_v7, %v4290_v37  ;;  %v10911_v4 = vcombine.low %v4286_v7, %v4290_v37 }
 0x495   :  { %v4418_v49 = vld [vmem:[#allocation2 + $0x728] sm:$0xff]  ;;  %7494 = vmatpush2.bf16.msra.mxu0 %v10927_v32  ;;  %7535 = vmatpush2.bf16.msra.mxu1 %v11055_v46 }
 0x496   :  { %7495 = vmatprep.subr.bf16.mxu0 %v10920_v9  ;;  %7536 = vmatprep.subr.bf16.mxu1 %v11048_v15  ;;  %v11040_v52 = vcombine.high %v4414_v48, %v4418_v49  ;;  %v4278_v53 = vld [vmem:[#allocation2 + $0x2c8] sm:$0xff]  ;;  %v11039_v10 = vcombine.low %v4414_v48, %v4418_v49 }
 0x497   :  { %v4282_v54 = vld [vmem:[#allocation2 + $0x2e8] sm:$0xff] }
 0x498   :  { %v4406_v61 = vld [vmem:[#allocation2 + $0x6c8] sm:$0xff]  ;;  %v10904_v13 = vcombine.high %v4278_v53, %v4282_v54  ;;  %v10903_v8 = vcombine.low %v4278_v53, %v4282_v54 }
 0x499   :  { %v4410_v0 = vld [vmem:[#allocation2 + $0x6e8] sm:$0xff]  ;;  %7496 = vmatpush2.bf16.msra.mxu0 %v10919_v50  ;;  %7537 = vmatpush2.bf16.msra.mxu1 %v11047_v41 }
 0x49a   :  { %7497 = vmatprep.subr.bf16.mxu0 %v10912_v51  ;;  %7538 = vmatprep.subr.bf16.mxu1 %v11040_v52  ;;  %v11032_v56 = vcombine.high %v4406_v61, %v4410_v0  ;;  %v4270_v62 = vld [vmem:[#allocation2 + $0x288] sm:$0xff]  ;;  %v11031_v29 = vcombine.low %v4406_v61, %v4410_v0 }
 0x49b   :  { %v4274_v12 = vld [vmem:[#allocation2 + $0x2a8] sm:$0xff] }
 0x49c   :  { %v4398_v26 = vld [vmem:[#allocation2 + $0x688] sm:$0xff]  ;;  %v10896_v28 = vcombine.high %v4270_v62, %v4274_v12  ;;  %v10895_v6 = vcombine.low %v4270_v62, %v4274_v12 }
 0x49d   :  { %v4402_v27 = vld [vmem:[#allocation2 + $0x6a8] sm:$0xff]  ;;  %7498 = vmatpush2.bf16.msra.mxu0 %v10911_v4  ;;  %7539 = vmatpush2.bf16.msra.mxu1 %v11039_v10 }
 0x49e   :  { %7499 = vmatprep.subr.bf16.mxu0 %v10904_v13  ;;  %7540 = vmatprep.subr.bf16.mxu1 %v11032_v56  ;;  %v11024_v34 = vcombine.high %v4398_v26, %v4402_v27  ;;  %v4262_v58 = vld [vmem:[#allocation2 + $0x248] sm:$0xff]  ;;  %v11023_v47 = vcombine.low %v4398_v26, %v4402_v27 }
 0x49f   :  { %v4266_v5 = vld [vmem:[#allocation2 + $0x268] sm:$0xff] }
 0x4a0   :  { %v4390_v20 = vld [vmem:[#allocation2 + $0x648] sm:$0xff]  ;;  %v10888_v60 = vcombine.high %v4262_v58, %v4266_v5  ;;  %v10887_v17 = vcombine.low %v4262_v58, %v4266_v5 }
 0x4a1   :  { %v4394_v30 = vld [vmem:[#allocation2 + $0x668] sm:$0xff]  ;;  %7500 = vmatpush2.bf16.msra.mxu0 %v10903_v8  ;;  %7541 = vmatpush2.bf16.msra.mxu1 %v11031_v29 }
 0x4a2   :  { %7501 = vmatprep.subr.bf16.mxu0 %v10896_v28  ;;  %7542 = vmatprep.subr.bf16.mxu1 %v11024_v34  ;;  %v11016_v1 = vcombine.high %v4390_v20, %v4394_v30  ;;  %v4254_v39 = vld [vmem:[#allocation2 + $0x208] sm:$0xff]  ;;  %v11015_v21 = vcombine.low %v4390_v20, %v4394_v30 }
 0x4a3   :  { %v4258_v42 = vld [vmem:[#allocation2 + $0x228] sm:$0xff] }
 0x4a4   :  { %v4382_v2 = vld [vmem:[#allocation2 + $0x608] sm:$0xff]  ;;  %v10880_v43 = vcombine.high %v4254_v39, %v4258_v42  ;;  %v10879_v46 = vcombine.low %v4254_v39, %v4258_v42 }
 0x4a5   :  { %v4386_v38 = vld [vmem:[#allocation2 + $0x628] sm:$0xff]  ;;  %7502 = vmatpush2.bf16.msra.mxu0 %v10895_v6  ;;  %7543 = vmatpush2.bf16.msra.mxu1 %v11023_v47 }
 0x4a6   :  { %7503 = vmatprep.subr.bf16.mxu0 %v10888_v60  ;;  %7544 = vmatprep.subr.bf16.mxu1 %v11016_v1  ;;  %v11008_v35 = vcombine.high %v4382_v2, %v4386_v38  ;;  %v4502_v18 = vld [vmem:[#allocation2 + $0x9c8] sm:$0xff]  ;;  %v11007_v9 = vcombine.low %v4382_v2, %v4386_v38 }
 0x4a7   :  { %v4506_v63 = vld [vmem:[#allocation2 + $0x9e8] sm:$0xff] }
 0x4a8   :  { %v4630_v3 = vld [vmem:[#allocation2 + $0xdc8] sm:$0xff]  ;;  %v11128_v15 = vcombine.high %v4502_v18, %v4506_v63  ;;  %v11127_v41 = vcombine.low %v4502_v18, %v4506_v63 }
 0x4a9   :  { %v4634_v32 = vld [vmem:[#allocation2 + $0xde8] sm:$0xff]  ;;  %7504 = vmatpush2.bf16.msra.mxu0 %v10887_v17  ;;  %7545 = vmatpush2.bf16.msra.mxu1 %v11015_v21 }
 0x4aa   :  { %7505 = vmatprep.subr.bf16.mxu0 %v10880_v43  ;;  %7546 = vmatprep.subr.bf16.mxu1 %v11008_v35  ;;  %v11256_v7 = vcombine.high %v4630_v3, %v4634_v32  ;;  %v4494_v37 = vld [vmem:[#allocation2 + $0x988] sm:$0xff]  ;;  %v11255_v51 = vcombine.low %v4630_v3, %v4634_v32 }
 0x4ab   :  { %v4498_v48 = vld [vmem:[#allocation2 + $0x9a8] sm:$0xff] }
 0x4ac   :  { %v4622_v49 = vld [vmem:[#allocation2 + $0xd88] sm:$0xff]  ;;  %v11120_v52 = vcombine.high %v4494_v37, %v4498_v48  ;;  %v11119_v10 = vcombine.low %v4494_v37, %v4498_v48 }
 0x4ad   :  { %v4626_v50 = vld [vmem:[#allocation2 + $0xda8] sm:$0xff]  ;;  %7506 = vmatpush2.bf16.msra.mxu0 %v10879_v46  ;;  %7547 = vmatpush2.bf16.msra.mxu1 %v11007_v9 }
 0x4ae   :  { %7557 = vmatprep.subr.bf16.mxu0 %v11128_v15  ;;  %7598 = vmatprep.subr.bf16.mxu1 %v11256_v7  ;;  %v11248_v53 = vcombine.high %v4622_v49, %v4626_v50  ;;  %v4486_v54 = vld [vmem:[#allocation2 + $0x948] sm:$0xff]  ;;  %v11247_v13 = vcombine.low %v4622_v49, %v4626_v50 }
 0x4af   :  { %v4490_v61 = vld [vmem:[#allocation2 + $0x968] sm:$0xff] }
 0x4b0   :  { %7508 = vmatmul.mubr.bf16.vlgmr.msra.gmra.mxu0 %v12311_v11  ;;  %v4614_v0 = vld [vmem:[#allocation2 + $0xd48] sm:$0xff]  ;;  %7549 = vmatmul.mubr.bf16.vlgmr.msra.gmra.mxu1 %v12316_v31  ;;  %v11112_v56 = vcombine.high %v4486_v54, %v4490_v61  ;;  %v11111_v29 = vcombine.low %v4486_v54, %v4490_v61 }
 0x4b1   :  { %v4618_v4 = vld [vmem:[#allocation2 + $0xd68] sm:$0xff]  ;;  %7558 = vmatpush1.bf16.msra.mxu0 %v11127_v41  ;;  %7599 = vmatpush1.bf16.msra.mxu1 %v11255_v51 }
 0x4b2   :  { %7559 = vmatprep.subr.bf16.mxu0 %v11120_v52  ;;  %7600 = vmatprep.subr.bf16.mxu1 %v11248_v53  ;;  %v11240_v62 = vcombine.high %v4614_v0, %v4618_v4  ;;  %v4478_v12 = vld [vmem:[#allocation2 + $0x908] sm:$0xff]  ;;  %v11239_v28 = vcombine.low %v4614_v0, %v4618_v4 }
 0x4b3   :  { %v4482_v26 = vld [vmem:[#allocation2 + $0x928] sm:$0xff]  ;;  %7589 = vmatprep.mubr.bf16.mxu0 %v12321_v16  ;;  %7630 = vmatprep.mubr.bf16.mxu1 %v12327_v45 }
 0x4b4   :  { %v4606_v27 = vld [vmem:[#allocation2 + $0xd08] sm:$0xff]  ;;  %v11104_v34 = vcombine.high %v4478_v12, %v4482_v26  ;;  %v11103_v47 = vcombine.low %v4478_v12, %v4482_v26 }
 0x4b5   :  { %v4610_v8 = vld [vmem:[#allocation2 + $0xd28] sm:$0xff]  ;;  %7560 = vmatpush1.bf16.msra.mxu0 %v11119_v10  ;;  %7601 = vmatpush1.bf16.msra.mxu1 %v11247_v13 }
 0x4b6   :  { %7561 = vmatprep.subr.bf16.mxu0 %v11112_v56  ;;  %7602 = vmatprep.subr.bf16.mxu1 %v11240_v62  ;;  %v11232_v58 = vcombine.high %v4606_v27, %v4610_v8  ;;  %v4470_v5 = vld [vmem:[#allocation2 + $0x8c8] sm:$0xff]  ;;  %v11231_v60 = vcombine.low %v4606_v27, %v4610_v8 }
 0x4b7   :  { %v4474_v20 = vld [vmem:[#allocation2 + $0x8e8] sm:$0xff] }
 0x4b8   :  { %v4598_v30 = vld [vmem:[#allocation2 + $0xcc8] sm:$0xff]  ;;  %v11096_v1 = vcombine.high %v4470_v5, %v4474_v20  ;;  %v11095_v21 = vcombine.low %v4470_v5, %v4474_v20 }
 0x4b9   :  { %v4602_v6 = vld [vmem:[#allocation2 + $0xce8] sm:$0xff]  ;;  %7562 = vmatpush1.bf16.msra.mxu0 %v11111_v29  ;;  %7603 = vmatpush1.bf16.msra.mxu1 %v11239_v28 }
 0x4ba   :  { %7563 = vmatprep.subr.bf16.mxu0 %v11104_v34  ;;  %7604 = vmatprep.subr.bf16.mxu1 %v11232_v58  ;;  %v11224_v39 = vcombine.high %v4598_v30, %v4602_v6  ;;  %v4462_v42 = vld [vmem:[#allocation2 + $0x888] sm:$0xff]  ;;  %v11223_v43 = vcombine.low %v4598_v30, %v4602_v6 }
 0x4bb   :  { %v4466_v2 = vld [vmem:[#allocation2 + $0x8a8] sm:$0xff] }
 0x4bc   :  { %v4590_v38 = vld [vmem:[#allocation2 + $0xc88] sm:$0xff]  ;;  %v11088_v35 = vcombine.high %v4462_v42, %v4466_v2  ;;  %v11087_v9 = vcombine.low %v4462_v42, %v4466_v2 }
 0x4bd   :  { %v4594_v17 = vld [vmem:[#allocation2 + $0xca8] sm:$0xff]  ;;  %7564 = vmatpush1.bf16.msra.mxu0 %v11103_v47  ;;  %7605 = vmatpush1.bf16.msra.mxu1 %v11231_v60 }
 0x4be   :  { %7565 = vmatprep.subr.bf16.mxu0 %v11096_v1  ;;  %7606 = vmatprep.subr.bf16.mxu1 %v11224_v39  ;;  %v11216_v18 = vcombine.high %v4590_v38, %v4594_v17  ;;  %v4454_v63 = vld [vmem:[#allocation2 + $0x848] sm:$0xff]  ;;  %v11215_v15 = vcombine.low %v4590_v38, %v4594_v17 }
 0x4bf   :  { %v4458_v3 = vld [vmem:[#allocation2 + $0x868] sm:$0xff] }
 0x4c0   :  { %v4582_v32 = vld [vmem:[#allocation2 + $0xc48] sm:$0xff]  ;;  %v11080_v7 = vcombine.high %v4454_v63, %v4458_v3  ;;  %v11079_v51 = vcombine.low %v4454_v63, %v4458_v3 }
 0x4c1   :  { %v4586_v46 = vld [vmem:[#allocation2 + $0xc68] sm:$0xff]  ;;  %7566 = vmatpush1.bf16.msra.mxu0 %v11095_v21  ;;  %7607 = vmatpush1.bf16.msra.mxu1 %v11223_v43 }
 0x4c2   :  { %7567 = vmatprep.subr.bf16.mxu0 %v11088_v35  ;;  %7608 = vmatprep.subr.bf16.mxu1 %v11216_v18  ;;  %v11208_v37 = vcombine.high %v4582_v32, %v4586_v46  ;;  %v4446_v48 = vld [vmem:[#allocation2 + $0x808] sm:$0xff]  ;;  %v11207_v52 = vcombine.low %v4582_v32, %v4586_v46 }
 0x4c3   :  { %v4450_v49 = vld [vmem:[#allocation2 + $0x828] sm:$0xff] }
 0x4c4   :  { %v4574_v50 = vld [vmem:[#allocation2 + $0xc08] sm:$0xff]  ;;  %v11072_v53 = vcombine.high %v4446_v48, %v4450_v49  ;;  %v11071_v13 = vcombine.low %v4446_v48, %v4450_v49 }
 0x4c5   :  { %v4578_v41 = vld [vmem:[#allocation2 + $0xc28] sm:$0xff]  ;;  %7568 = vmatpush1.bf16.msra.mxu0 %v11087_v9  ;;  %7609 = vmatpush1.bf16.msra.mxu1 %v11215_v15 }
 0x4c6   :  { %7569 = vmatprep.subr.bf16.mxu0 %v11080_v7  ;;  %7610 = vmatprep.subr.bf16.mxu1 %v11208_v37  ;;  %v11200_v54 = vcombine.high %v4574_v50, %v4578_v41  ;;  %v4566_v61 = vld [vmem:[#allocation2 + $0xbc8] sm:$0xff]  ;;  %v11199_v56 = vcombine.low %v4574_v50, %v4578_v41 }
 0x4c7   :  { %v4570_v0 = vld [vmem:[#allocation2 + $0xbe8] sm:$0xff] }
 0x4c8   :  { %v4694_v4 = vld [vmem:[#allocation2 + $0xfc8] sm:$0xff]  ;;  %v11192_v62 = vcombine.high %v4566_v61, %v4570_v0  ;;  %v11191_v28 = vcombine.low %v4566_v61, %v4570_v0 }
 0x4c9   :  { %v4698_v10 = vld [vmem:[#allocation2 + $0xfe8] sm:$0xff]  ;;  %7570 = vmatpush1.bf16.msra.mxu0 %v11079_v51  ;;  %7611 = vmatpush1.bf16.msra.mxu1 %v11207_v52 }
 0x4ca   :  { %7571 = vmatprep.subr.bf16.mxu0 %v11072_v53  ;;  %7612 = vmatprep.subr.bf16.mxu1 %v11200_v54  ;;  %v11320_v12 = vcombine.high %v4694_v4, %v4698_v10  ;;  %v4558_v26 = vld [vmem:[#allocation2 + $0xb88] sm:$0xff]  ;;  %v11319_v34 = vcombine.low %v4694_v4, %v4698_v10 }
 0x4cb   :  { %v4562_v27 = vld [vmem:[#allocation2 + $0xba8] sm:$0xff] }
 0x4cc   :  { %v4686_v8 = vld [vmem:[#allocation2 + $0xf88] sm:$0xff]  ;;  %v11184_v58 = vcombine.high %v4558_v26, %v4562_v27  ;;  %v11183_v60 = vcombine.low %v4558_v26, %v4562_v27 }
 0x4cd   :  { %v4690_v29 = vld [vmem:[#allocation2 + $0xfa8] sm:$0xff]  ;;  %7572 = vmatpush1.bf16.msra.mxu0 %v11071_v13  ;;  %7613 = vmatpush1.bf16.msra.mxu1 %v11199_v56 }
 0x4ce   :  { %7573 = vmatprep.subr.bf16.mxu0 %v11192_v62  ;;  %7614 = vmatprep.subr.bf16.mxu1 %v11320_v12  ;;  %v11312_v5 = vcombine.high %v4686_v8, %v4690_v29  ;;  %v4550_v20 = vld [vmem:[#allocation2 + $0xb48] sm:$0xff]  ;;  %v11311_v1 = vcombine.low %v4686_v8, %v4690_v29 }
 0x4cf   :  { %v4554_v30 = vld [vmem:[#allocation2 + $0xb68] sm:$0xff] }
 0x4d0   :  { %v4678_v6 = vld [vmem:[#allocation2 + $0xf48] sm:$0xff]  ;;  %v11176_v39 = vcombine.high %v4550_v20, %v4554_v30  ;;  %v11175_v43 = vcombine.low %v4550_v20, %v4554_v30  ;;  %v4247_v30 = vld [vmem:[#allocation2 + $0x1d0] sm:$0xff] }
 0x4d1   :  { %v4682_v47 = vld [vmem:[#allocation2 + $0xf68] sm:$0xff]  ;;  %7574 = vmatpush2.bf16.msra.mxu0 %v11191_v28  ;;  %7615 = vmatpush2.bf16.msra.mxu1 %v11319_v34 }
 0x4d2   :  { %7575 = vmatprep.subr.bf16.mxu0 %v11184_v58  ;;  %7616 = vmatprep.subr.bf16.mxu1 %v11312_v5  ;;  %v11304_v42 = vcombine.high %v4678_v6, %v4682_v47  ;;  %v4542_v2 = vld [vmem:[#allocation2 + $0xb08] sm:$0xff]  ;;  %v11303_v35 = vcombine.low %v4678_v6, %v4682_v47  ;;  %v4251_v6 = vld [vmem:[#allocation2 + $0x1f0] sm:$0xff] }
 0x4d3   :  { %v4546_v38 = vld [vmem:[#allocation2 + $0xb28] sm:$0xff]  ;;  %v4375_v47 = vld [vmem:[#allocation2 + $0x5d0] sm:$0xff] }
 0x4d4   :  { %v4670_v17 = vld [vmem:[#allocation2 + $0xf08] sm:$0xff]  ;;  %v11168_v18 = vcombine.high %v4542_v2, %v4546_v38  ;;  %v11167_v15 = vcombine.low %v4542_v2, %v4546_v38  ;;  %v4239_v38 = vld [vmem:[#allocation2 + $0x190] sm:$0xff] }
 0x4d5   :  { %v4674_v21 = vld [vmem:[#allocation2 + $0xf28] sm:$0xff]  ;;  %7576 = vmatpush2.bf16.msra.mxu0 %v11183_v60  ;;  %7617 = vmatpush2.bf16.msra.mxu1 %v11311_v1  ;;  %v4379_v60 = vld [vmem:[#allocation2 + $0x5f0] sm:$0xff] }
 0x4d6   :  { %7577 = vmatprep.subr.bf16.mxu0 %v11176_v39  ;;  %7618 = vmatprep.subr.bf16.mxu1 %v11304_v42  ;;  %v11296_v63 = vcombine.high %v4670_v17, %v4674_v21  ;;  %v4534_v3 = vld [vmem:[#allocation2 + $0xac8] sm:$0xff]  ;;  %v11295_v7 = vcombine.low %v4670_v17, %v4674_v21  ;;  %v10874_v42 = vcombine.high %v4247_v30, %v4251_v6  ;;  %v4243_v17 = vld [vmem:[#allocation2 + $0x1b0] sm:$0xff] }
 0x4d7   :  { %v4538_v32 = vld [vmem:[#allocation2 + $0xae8] sm:$0xff]  ;;  %v11002_v2 = vcombine.high %v4375_v47, %v4379_v60  ;;  %v4367_v21 = vld [vmem:[#allocation2 + $0x590] sm:$0xff] }
 0x4d8   :  { %v4662_v46 = vld [vmem:[#allocation2 + $0xec8] sm:$0xff]  ;;  %v11160_v37 = vcombine.high %v4534_v3, %v4538_v32  ;;  %v11159_v52 = vcombine.low %v4534_v3, %v4538_v32  ;;  %v10866_v3 = vcombine.high %v4239_v38, %v4243_v17  ;;  %v4718_v32 = vrot.slane %v12342_v59, %v12110_v24 }
 0x4d9   :  { %v4666_v9 = vld [vmem:[#allocation2 + $0xee8] sm:$0xff]  ;;  %7578 = vmatpush2.bf16.msra.mxu0 %v11175_v43  ;;  %7619 = vmatpush2.bf16.msra.mxu1 %v11303_v35  ;;  %v4371_v43 = vld [vmem:[#allocation2 + $0x5b0] sm:$0xff]  ;;  %v4714_v35 = vrot.slane %v12342_v59, %v12106_v22 }
 0x4da   :  { %7579 = vmatprep.subr.bf16.mxu0 %v11168_v18  ;;  %7620 = vmatprep.subr.bf16.mxu1 %v11296_v63  ;;  %v11288_v48 = vcombine.high %v4662_v46, %v4666_v9  ;;  %v4526_v49 = vld [vmem:[#allocation2 + $0xa88] sm:$0xff]  ;;  %v11287_v53 = vcombine.low %v4662_v46, %v4666_v9  ;;  %v10873_v18 = vcombine.low %v4247_v30, %v4251_v6  ;;  %v4231_v9 = vld [vmem:[#allocation2 + $0x150] sm:$0xff] }
 0x4db   :  { %v4530_v50 = vld [vmem:[#allocation2 + $0xaa8] sm:$0xff]  ;;  %v11001_v63 = vcombine.low %v4375_v47, %v4379_v60  ;;  %v10994_v46 = vcombine.high %v4367_v21, %v4371_v43  ;;  %v4219_v30 = vld [vmem:[#allocation2 + $0xf0] sm:$0xff] }
 0x4dc   :  { %v4654_v41 = vld [vmem:[#allocation2 + $0xe88] sm:$0xff]  ;;  %v11152_v54 = vcombine.high %v4526_v49, %v4530_v50  ;;  %v11151_v56 = vcombine.low %v4526_v49, %v4530_v50  ;;  %v4343_v6 = vld [vmem:[#allocation2 + $0x4d0] sm:$0xff] }
 0x4dd   :  { %v4658_v51 = vld [vmem:[#allocation2 + $0xea8] sm:$0xff]  ;;  %7580 = vmatpush2.bf16.msra.mxu0 %v11167_v15  ;;  %7621 = vmatpush2.bf16.msra.mxu1 %v11295_v7  ;;  %v4235_v15 = vld [vmem:[#allocation2 + $0x170] sm:$0xff] }
 0x4de   :  { %7581 = vmatprep.subr.bf16.mxu0 %v11160_v37  ;;  %7622 = vmatprep.subr.bf16.mxu1 %v11288_v48  ;;  %v11280_v61 = vcombine.high %v4654_v41, %v4658_v51  ;;  %v4518_v0 = vld [vmem:[#allocation2 + $0xa48] sm:$0xff]  ;;  %v11279_v62 = vcombine.low %v4654_v41, %v4658_v51  ;;  %v4359_v37 = vld [vmem:[#allocation2 + $0x550] sm:$0xff]  ;;  %v10865_v41 = vcombine.low %v4239_v38, %v4243_v17 }
 0x4df   :  { %v4522_v4 = vld [vmem:[#allocation2 + $0xa68] sm:$0xff]  ;;  %v4363_v48 = vld [vmem:[#allocation2 + $0x570] sm:$0xff] }
 0x4e0   :  { %v4646_v10 = vld [vmem:[#allocation2 + $0xe48] sm:$0xff]  ;;  %v11144_v12 = vcombine.high %v4518_v0, %v4522_v4  ;;  %v11143_v34 = vcombine.low %v4518_v0, %v4522_v4  ;;  %v10986_v4 = vcombine.high %v4359_v37, %v4363_v48  ;;  %v4347_v47 = vld [vmem:[#allocation2 + $0x4f0] sm:$0xff] }
 0x4e1   :  { %v4650_v13 = vld [vmem:[#allocation2 + $0xe68] sm:$0xff]  ;;  %7582 = vmatpush2.bf16.msra.mxu0 %v11159_v52  ;;  %7623 = vmatpush2.bf16.msra.mxu1 %v11287_v53  ;;  %v10993_v52 = vcombine.low %v4367_v21, %v4371_v43  ;;  %v10858_v53 = vcombine.high %v4231_v9, %v4235_v15  ;;  %v4211_v38 = vld [vmem:[#allocation2 + $0xb0] sm:$0xff] }
 0x4e2   :  { %7583 = vmatprep.subr.bf16.mxu0 %v11152_v54  ;;  %7624 = vmatprep.subr.bf16.mxu1 %v11280_v61  ;;  %v11272_v26 = vcombine.high %v4646_v10, %v4650_v13  ;;  %v4510_v27 = vld [vmem:[#allocation2 + $0xa08] sm:$0xff]  ;;  %v11271_v58 = vcombine.low %v4646_v10, %v4650_v13  ;;  %v4223_v10 = vld [vmem:[#allocation2 + $0x110] sm:$0xff] }
 0x4e3   :  { %v4514_v8 = vld [vmem:[#allocation2 + $0xa28] sm:$0xff]  ;;  %v4227_v13 = vld [vmem:[#allocation2 + $0x130] sm:$0xff] }
 0x4e4   :  { %v4638_v29 = vld [vmem:[#allocation2 + $0xe08] sm:$0xff]  ;;  %v11136_v5 = vcombine.high %v4510_v27, %v4514_v8  ;;  %v11135_v1 = vcombine.low %v4510_v27, %v4514_v8  ;;  %v10857_v8 = vcombine.low %v4231_v9, %v4235_v15  ;;  %v10849_v60 = vcombine.low %v4223_v10, %v4227_v13  ;;  %v4335_v17 = vld [vmem:[#allocation2 + $0x490] sm:$0xff] }
 0x4e5   :  { %v4642_v28 = vld [vmem:[#allocation2 + $0xe28] sm:$0xff]  ;;  %7584 = vmatpush2.bf16.msra.mxu0 %v11151_v56  ;;  %7625 = vmatpush2.bf16.msra.mxu1 %v11279_v62  ;;  %v4351_v62 = vld [vmem:[#allocation2 + $0x510] sm:$0xff] }
 0x4e6   :  { %7585 = vmatprep.subr.bf16.mxu0 %v11144_v12  ;;  %7626 = vmatprep.subr.bf16.mxu1 %v11272_v26  ;;  %v11264_v20 = vcombine.high %v4638_v29, %v4642_v28  ;;  %v11263_v39 = vcombine.low %v4638_v29, %v4642_v28  ;;  %v4355_v12 = vld [vmem:[#allocation2 + $0x530] sm:$0xff]  ;;  %v10985_v28 = vcombine.low %v4359_v37, %v4363_v48 }
 0x4e7   :  { %v4339_v21 = vld [vmem:[#allocation2 + $0x4b0] sm:$0xff] }
 0x4e8   :  { %v4331_v9 = vld [vmem:[#allocation2 + $0x470] sm:$0xff] }
 0x4e9   :  { %7586 = vmatpush2.bf16.msra.mxu0 %v11143_v34  ;;  %7627 = vmatpush2.bf16.msra.mxu1 %v11271_v58  ;;  %v10850_v34 = vcombine.high %v4223_v10, %v4227_v13  ;;  %v4315_v10 = vld [vmem:[#allocation2 + $0x3f0] sm:$0xff] }
 0x4ea   :  { %7587 = vmatprep.subr.bf16.mxu0 %v11136_v5  ;;  %7628 = vmatprep.subr.bf16.mxu1 %v11264_v20  ;;  %v10978_v5 = vcombine.high %v4351_v62, %v4355_v12  ;;  %v4215_v20 = vld [vmem:[#allocation2 + $0xd0] sm:$0xff] }
 0x4eb   :  { %v10841_v43 = vcombine.low %v4215_v20, %v4219_v30  ;;  %v4439_v13 = vld [vmem:[#allocation2 + $0x7d0] sm:$0xff] }
 0x4ed   :  { %7588 = vmatpush2.bf16.msra.mxu0 %v11135_v1  ;;  %7629 = vmatpush2.bf16.msra.mxu1 %v11263_v39  ;;  %v10977_v1 = vcombine.low %v4351_v62, %v4355_v12  ;;  %v10842_v39 = vcombine.high %v4215_v20, %v4219_v30 }
 0x4ee   :  { %7639 = vmatprep.subr.bf16.mxu0 %v10874_v42  ;;  %7680 = vmatprep.subr.bf16.mxu1 %v11002_v2  ;;  %v7345_v7 = vpop.f32.mrf.mxu0  ;;  %v10970_v42 = vcombine.high %v4343_v6, %v4347_v47  ;;  %v4207_v2 = vld [vmem:[#allocation2 + $0x90] sm:$0xff] }
 0x4ef   :  { %v7346_v49 = vadd.f32 %v7345_v7, %v4714_v35  ;;  %v10969_v35 = vcombine.low %v4343_v6, %v4347_v47  ;;  %v10833_v15 = vcombine.low %v4207_v2, %v4211_v38  ;;  %v10961_v7 = vcombine.low %v4335_v17, %v4339_v21  ;;  %v4295_v47 = vld [vmem:[#allocation2 + $0x350] sm:$0xff] }
 0x4f0   :  { %7590 = vmatmul.mubr.bf16.vlgmr.msra.gmra.mxu0 %v12335_v57  ;;  %v7386_v50 = vpop.f32.mrf.mxu1  ;;  %7631 = vmatmul.mubr.bf16.vlgmr.msra.gmra.mxu1 %v12340_v19  ;;  %v7347_v51 = vpop.f32.mrf.mxu0 }
 0x4f1   :  { %7640 = vmatpush1.bf16.msra.mxu0 %v10873_v18  ;;  %7681 = vmatpush1.bf16.msra.mxu1 %v11001_v63  ;;  %v12364_v54 = vadd.f32 %v7386_v50, %v7346_v49  ;;  %v7348_v61 = vadd.f32 %v7347_v51, %v4718_v32  ;;  %v10834_v18 = vcombine.high %v4207_v2, %v4211_v38  ;;  %v4203_v32 = vld [vmem:[#allocation2 + $0x70] sm:$0xff] }
 0x4f2   :  { %7641 = vmatprep.subr.bf16.mxu0 %v10866_v3  ;;  %v7388_v0 = vpop.f32.mrf.mxu1  ;;  %7682 = vmatprep.subr.bf16.mxu1 %v10994_v46  ;;  %v7349_v56 = vpop.f32.mrf.mxu0  ;;  %v10962_v63 = vcombine.high %v4335_v17, %v4339_v21  ;;  %v4199_v3 = vld [vmem:[#allocation2 + $0x50] sm:$0xff] }
 0x4f3   :  { %7671 = vmatprep.mubr.bf16.mxu0 %v12299_v14  ;;  %7712 = vmatprep.mubr.bf16.mxu1 %v12304_v55  ;;  %v12368_v26 = vadd.f32 %v7388_v0, %v7348_v61  ;;  %v4327_v46 = vld [vmem:[#allocation2 + $0x450] sm:$0xff]  ;;  %v10826_v37 = vcombine.high %v4199_v3, %v4203_v32 }
 0x4f4   :  { %v7390_v27 = vpop.f32.mrf.mxu1  ;;  %v7350_v29 = vpop.f32.mrf.mxu0  ;;  %v10954_v48 = vcombine.high %v4327_v46, %v4331_v9  ;;  %v4191_v49 = vld [vmem:[#allocation2 + $0x10] sm:$0xff] }
 0x4f5   :  { %7642 = vmatpush1.bf16.msra.mxu0 %v10865_v41  ;;  %7683 = vmatpush1.bf16.msra.mxu1 %v10993_v52  ;;  %v4195_v50 = vld [vmem:[#allocation2 + $0x30] sm:$0xff]  ;;  %v10825_v52 = vcombine.low %v4199_v3, %v4203_v32 }
 0x4f6   :  { %7643 = vmatprep.subr.bf16.mxu0 %v10858_v53  ;;  %v7391_v58 = vpop.f32.mrf.mxu1  ;;  %7684 = vmatprep.subr.bf16.mxu1 %v10986_v4  ;;  %v4319_v41 = vld [vmem:[#allocation2 + $0x410] sm:$0xff]  ;;  %v10953_v53 = vcombine.low %v4327_v46, %v4331_v9  ;;  %v10818_v61 = vcombine.high %v4191_v49, %v4195_v50  ;;  %v10817_v62 = vcombine.low %v4191_v49, %v4195_v50 }
 0x4f7   :  { %v4323_v51 = vld [vmem:[#allocation2 + $0x430] sm:$0xff] }
 0x4f8   :  { %v10946_v0 = vcombine.high %v4319_v41, %v4323_v51  ;;  %v4311_v4 = vld [vmem:[#allocation2 + $0x3d0] sm:$0xff]  ;;  %v10945_v12 = vcombine.low %v4319_v41, %v4323_v51 }
 0x4f9   :  { %7644 = vmatpush1.bf16.msra.mxu0 %v10857_v8  ;;  %7685 = vmatpush1.bf16.msra.mxu1 %v10985_v28  ;;  %v4443_v56 = vld [vmem:[#allocation2 + $0x7f0] sm:$0xff]  ;;  %v10938_v27 = vcombine.high %v4311_v4, %v4315_v10 }
 0x4fa   :  { %7645 = vmatprep.subr.bf16.mxu0 %v10850_v34  ;;  %7686 = vmatprep.subr.bf16.mxu1 %v10978_v5  ;;  %v11066_v8 = vcombine.high %v4439_v13, %v4443_v56  ;;  %v4303_v29 = vld [vmem:[#allocation2 + $0x390] sm:$0xff]  ;;  %v10937_v5 = vcombine.low %v4311_v4, %v4315_v10  ;;  %v11065_v20 = vcombine.low %v4439_v13, %v4443_v56 }
 0x4fb   :  { %v4307_v28 = vld [vmem:[#allocation2 + $0x3b0] sm:$0xff] }
 0x4fc   :  { %v4431_v34 = vld [vmem:[#allocation2 + $0x790] sm:$0xff]  ;;  %v10930_v30 = vcombine.high %v4303_v29, %v4307_v28 }
 0x4fd   :  { %7646 = vmatpush1.bf16.msra.mxu0 %v10849_v60  ;;  %7687 = vmatpush1.bf16.msra.mxu1 %v10977_v1  ;;  %v4435_v58 = vld [vmem:[#allocation2 + $0x7b0] sm:$0xff] }
 0x4fe   :  { %7647 = vmatprep.subr.bf16.mxu0 %v10842_v39  ;;  %7688 = vmatprep.subr.bf16.mxu1 %v10970_v42  ;;  %v11058_v6 = vcombine.high %v4431_v34, %v4435_v58  ;;  %v4299_v60 = vld [vmem:[#allocation2 + $0x370] sm:$0xff]  ;;  %v10929_v42 = vcombine.low %v4303_v29, %v4307_v28  ;;  %v11057_v2 = vcombine.low %v4431_v34, %v4435_v58 }
 0x4ff   :  { %v4423_v1 = vld [vmem:[#allocation2 + $0x750] sm:$0xff]  ;;  %v10922_v38 = vcombine.high %v4295_v47, %v4299_v60 }
 0x500   :  { %v4427_v39 = vld [vmem:[#allocation2 + $0x770] sm:$0xff] }
 0x501   :  { %7648 = vmatpush1.bf16.msra.mxu0 %v10841_v43  ;;  %7689 = vmatpush1.bf16.msra.mxu1 %v10969_v35  ;;  %v11050_v17 = vcombine.high %v4423_v1, %v4427_v39  ;;  %v4287_v21 = vld [vmem:[#allocation2 + $0x310] sm:$0xff]  ;;  %v11049_v3 = vcombine.low %v4423_v1, %v4427_v39 }
 0x502   :  { %7649 = vmatprep.subr.bf16.mxu0 %v10834_v18  ;;  %7690 = vmatprep.subr.bf16.mxu1 %v10962_v63  ;;  %v4291_v43 = vld [vmem:[#allocation2 + $0x330] sm:$0xff]  ;;  %v10921_v63 = vcombine.low %v4295_v47, %v4299_v60 }
 0x503   :  { %v4415_v35 = vld [vmem:[#allocation2 + $0x710] sm:$0xff]  ;;  %v10914_v32 = vcombine.high %v4287_v21, %v4291_v43 }
 0x504   :  { %v4419_v18 = vld [vmem:[#allocation2 + $0x730] sm:$0xff] }
 0x505   :  { %7650 = vmatpush1.bf16.msra.mxu0 %v10833_v15  ;;  %7691 = vmatpush1.bf16.msra.mxu1 %v10961_v7  ;;  %v11042_v46 = vcombine.high %v4415_v35, %v4419_v18  ;;  %v4279_v9 = vld [vmem:[#allocation2 + $0x2d0] sm:$0xff]  ;;  %v11041_v49 = vcombine.low %v4415_v35, %v4419_v18 }
 0x506   :  { %7651 = vmatprep.subr.bf16.mxu0 %v10826_v37  ;;  %7692 = vmatprep.subr.bf16.mxu1 %v10954_v48  ;;  %v4283_v15 = vld [vmem:[#allocation2 + $0x2f0] sm:$0xff]  ;;  %v10913_v48 = vcombine.low %v4287_v21, %v4291_v43 }
 0x507   :  { %v4407_v7 = vld [vmem:[#allocation2 + $0x6d0] sm:$0xff]  ;;  %v10906_v50 = vcombine.high %v4279_v9, %v4283_v15 }
 0x508   :  { %v4411_v37 = vld [vmem:[#allocation2 + $0x6f0] sm:$0xff] }
 0x509   :  { %7652 = vmatpush1.bf16.msra.mxu0 %v10825_v52  ;;  %7693 = vmatpush1.bf16.msra.mxu1 %v10953_v53  ;;  %v11034_v41 = vcombine.high %v4407_v7, %v4411_v37  ;;  %v4271_v51 = vld [vmem:[#allocation2 + $0x290] sm:$0xff]  ;;  %v11033_v4 = vcombine.low %v4407_v7, %v4411_v37 }
 0x50a   :  { %7653 = vmatprep.subr.bf16.mxu0 %v10818_v61  ;;  %7694 = vmatprep.subr.bf16.mxu1 %v10946_v0  ;;  %v4275_v52 = vld [vmem:[#allocation2 + $0x2b0] sm:$0xff]  ;;  %v10905_v0 = vcombine.low %v4279_v9, %v4283_v15 }
 0x50b   :  { %v4399_v53 = vld [vmem:[#allocation2 + $0x690] sm:$0xff]  ;;  %v10898_v10 = vcombine.high %v4271_v51, %v4275_v52 }
 0x50c   :  { %v4403_v61 = vld [vmem:[#allocation2 + $0x6b0] sm:$0xff] }
 0x50d   :  { %7654 = vmatpush1.bf16.msra.mxu0 %v10817_v62  ;;  %7695 = vmatpush1.bf16.msra.mxu1 %v10945_v12  ;;  %v11026_v13 = vcombine.high %v4399_v53, %v4403_v61  ;;  %v4263_v56 = vld [vmem:[#allocation2 + $0x250] sm:$0xff]  ;;  %v11025_v29 = vcombine.low %v4399_v53, %v4403_v61 }
 0x50e   :  { %7655 = vmatprep.subr.bf16.mxu0 %v10938_v27  ;;  %7696 = vmatprep.subr.bf16.mxu1 %v11066_v8  ;;  %v4267_v62 = vld [vmem:[#allocation2 + $0x270] sm:$0xff]  ;;  %v10897_v8 = vcombine.low %v4271_v51, %v4275_v52 }
 0x50f   :  { %v4391_v12 = vld [vmem:[#allocation2 + $0x650] sm:$0xff]  ;;  %v10890_v28 = vcombine.high %v4263_v56, %v4267_v62 }
 0x510   :  { %v4395_v27 = vld [vmem:[#allocation2 + $0x670] sm:$0xff] }
 0x511   :  { %7656 = vmatpush2.bf16.msra.mxu0 %v10937_v5  ;;  %7697 = vmatpush2.bf16.msra.mxu1 %v11065_v20  ;;  %v11018_v34 = vcombine.high %v4391_v12, %v4395_v27  ;;  %v4255_v58 = vld [vmem:[#allocation2 + $0x210] sm:$0xff]  ;;  %v11017_v47 = vcombine.low %v4391_v12, %v4395_v27 }
 0x512   :  { %7657 = vmatprep.subr.bf16.mxu0 %v10930_v30  ;;  %7698 = vmatprep.subr.bf16.mxu1 %v11058_v6  ;;  %v4259_v5 = vld [vmem:[#allocation2 + $0x230] sm:$0xff]  ;;  %v10889_v6 = vcombine.low %v4263_v56, %v4267_v62 }
 0x513   :  { %v4383_v20 = vld [vmem:[#allocation2 + $0x610] sm:$0xff]  ;;  %v10882_v60 = vcombine.high %v4255_v58, %v4259_v5 }
 0x514   :  { %v4387_v30 = vld [vmem:[#allocation2 + $0x630] sm:$0xff] }
 0x515   :  { %7658 = vmatpush2.bf16.msra.mxu0 %v10929_v42  ;;  %7699 = vmatpush2.bf16.msra.mxu1 %v11057_v2  ;;  %v11010_v1 = vcombine.high %v4383_v20, %v4387_v30  ;;  %v4503_v39 = vld [vmem:[#allocation2 + $0x9d0] sm:$0xff]  ;;  %v11009_v21 = vcombine.low %v4383_v20, %v4387_v30 }
 0x516   :  { %7659 = vmatprep.subr.bf16.mxu0 %v10922_v38  ;;  %7700 = vmatprep.subr.bf16.mxu1 %v11050_v17  ;;  %v4507_v42 = vld [vmem:[#allocation2 + $0x9f0] sm:$0xff]  ;;  %v10881_v17 = vcombine.low %v4255_v58, %v4259_v5 }
 0x517   :  { %v4631_v2 = vld [vmem:[#allocation2 + $0xdd0] sm:$0xff]  ;;  %v11130_v43 = vcombine.high %v4503_v39, %v4507_v42 }
 0x518   :  { %v4635_v38 = vld [vmem:[#allocation2 + $0xdf0] sm:$0xff] }
 0x519   :  { %7660 = vmatpush2.bf16.msra.mxu0 %v10921_v63  ;;  %7701 = vmatpush2.bf16.msra.mxu1 %v11049_v3  ;;  %v11258_v35 = vcombine.high %v4631_v2, %v4635_v38  ;;  %v4495_v18 = vld [vmem:[#allocation2 + $0x990] sm:$0xff]  ;;  %v11257_v9 = vcombine.low %v4631_v2, %v4635_v38 }
 0x51a   :  { %7661 = vmatprep.subr.bf16.mxu0 %v10914_v32  ;;  %7702 = vmatprep.subr.bf16.mxu1 %v11042_v46  ;;  %v4499_v63 = vld [vmem:[#allocation2 + $0x9b0] sm:$0xff]  ;;  %v11129_v46 = vcombine.low %v4503_v39, %v4507_v42 }
 0x51b   :  { %v4623_v3 = vld [vmem:[#allocation2 + $0xd90] sm:$0xff]  ;;  %v11122_v15 = vcombine.high %v4495_v18, %v4499_v63  ;;  %v11121_v53 = vcombine.low %v4495_v18, %v4499_v63 }
 0x51c   :  { %v4627_v32 = vld [vmem:[#allocation2 + $0xdb0] sm:$0xff] }
 0x51d   :  { %7662 = vmatpush2.bf16.msra.mxu0 %v10913_v48  ;;  %7703 = vmatpush2.bf16.msra.mxu1 %v11041_v49  ;;  %v11250_v7 = vcombine.high %v4623_v3, %v4627_v32  ;;  %v4487_v37 = vld [vmem:[#allocation2 + $0x950] sm:$0xff] }
 0x51e   :  { %7663 = vmatprep.subr.bf16.mxu0 %v10906_v50  ;;  %7704 = vmatprep.subr.bf16.mxu1 %v11034_v41  ;;  %v4491_v48 = vld [vmem:[#allocation2 + $0x970] sm:$0xff] }
 0x51f   :  { %v4615_v50 = vld [vmem:[#allocation2 + $0xd50] sm:$0xff]  ;;  %v11113_v5 = vcombine.low %v4487_v37, %v4491_v48 }
 0x520   :  { %v4619_v41 = vld [vmem:[#allocation2 + $0xd70] sm:$0xff] }
 0x521   :  { %7664 = vmatpush2.bf16.msra.mxu0 %v10905_v0  ;;  %7705 = vmatpush2.bf16.msra.mxu1 %v11033_v4  ;;  %v11249_v0 = vcombine.low %v4623_v3, %v4627_v32  ;;  %v11114_v4 = vcombine.high %v4487_v37, %v4491_v48  ;;  %v11242_v62 = vcombine.high %v4615_v50, %v4619_v41  ;;  %v4479_v12 = vld [vmem:[#allocation2 + $0x910] sm:$0xff] }
 0x522   :  { %7665 = vmatprep.subr.bf16.mxu0 %v10898_v10  ;;  %7706 = vmatprep.subr.bf16.mxu1 %v11026_v13  ;;  %v4483_v27 = vld [vmem:[#allocation2 + $0x930] sm:$0xff]  ;;  %v11241_v20 = vcombine.low %v4615_v50, %v4619_v41 }
 0x523   :  { %v11106_v30 = vcombine.high %v4479_v12, %v4483_v27  ;;  %v4475_v39 = vld [vmem:[#allocation2 + $0x8f0] sm:$0xff]  ;;  %v11105_v38 = vcombine.low %v4479_v12, %v4483_v27 }
 0x524   :  { %v4599_v42 = vld [vmem:[#allocation2 + $0xcd0] sm:$0xff] }
 0x525   :  { %7666 = vmatpush2.bf16.msra.mxu0 %v10897_v8  ;;  %7707 = vmatpush2.bf16.msra.mxu1 %v11025_v29  ;;  %v4607_v8 = vld [vmem:[#allocation2 + $0xd10] sm:$0xff] }
 0x526   :  { %7667 = vmatprep.subr.bf16.mxu0 %v10890_v28  ;;  %7708 = vmatprep.subr.bf16.mxu1 %v11018_v34  ;;  %v4611_v29 = vld [vmem:[#allocation2 + $0xd30] sm:$0xff] }
 0x527   :  { %v4603_v2 = vld [vmem:[#allocation2 + $0xcf0] sm:$0xff] }
 0x528   :  { %v4467_v18 = vld [vmem:[#allocation2 + $0x8b0] sm:$0xff] }
 0x529   :  { %7668 = vmatpush2.bf16.msra.mxu0 %v10889_v6  ;;  %7709 = vmatpush2.bf16.msra.mxu1 %v11017_v47  ;;  %v4591_v63 = vld [vmem:[#allocation2 + $0xc90] sm:$0xff] }
 0x52a   :  { %7669 = vmatprep.subr.bf16.mxu0 %v10882_v60  ;;  %7710 = vmatprep.subr.bf16.mxu1 %v11010_v1  ;;  %v11234_v60 = vcombine.high %v4607_v8, %v4611_v29  ;;  %v4471_v1 = vld [vmem:[#allocation2 + $0x8d0] sm:$0xff] }
 0x52b   :  { %v4595_v3 = vld [vmem:[#allocation2 + $0xcb0] sm:$0xff]  ;;  %v11097_v32 = vcombine.low %v4471_v1, %v4475_v39 }
 0x52c   :  { %v4459_v37 = vld [vmem:[#allocation2 + $0x870] sm:$0xff]  ;;  %v11217_v41 = vcombine.low %v4591_v63, %v4595_v3 }
 0x52d   :  { %7670 = vmatpush2.bf16.msra.mxu0 %v10881_v17  ;;  %7711 = vmatpush2.bf16.msra.mxu1 %v11009_v21  ;;  %v11233_v17 = vcombine.low %v4607_v8, %v4611_v29  ;;  %v11098_v21 = vcombine.high %v4471_v1, %v4475_v39  ;;  %v4583_v48 = vld [vmem:[#allocation2 + $0xc50] sm:$0xff] }
 0x52e   :  { %7721 = vmatprep.subr.bf16.mxu0 %v11130_v43  ;;  %7762 = vmatprep.subr.bf16.mxu1 %v11258_v35  ;;  %v11226_v43 = vcombine.high %v4599_v42, %v4603_v2  ;;  %v4463_v35 = vld [vmem:[#allocation2 + $0x890] sm:$0xff] }
 0x52f   :  { %v11089_v50 = vcombine.low %v4463_v35, %v4467_v18  ;;  %v4567_v27 = vld [vmem:[#allocation2 + $0xbd0] sm:$0xff] }
 0x530   :  { %v7427_v49 = vpop.f32.mrf.mxu0  ;;  %7672 = vmatmul.mubr.bf16.vlgmr.msra.gmra.mxu0 %v12311_v11  ;;  %v7468_v52 = vpop.f32.mrf.mxu1  ;;  %7713 = vmatmul.mubr.bf16.vlgmr.msra.gmra.mxu1 %v12316_v31  ;;  %v4695_v8 = vld [vmem:[#allocation2 + $0xfd0] sm:$0xff] }
 0x531   :  { %v7428_v51 = vadd.f32 %v7427_v49, %v12364_v54  ;;  %7722 = vmatpush1.bf16.msra.mxu0 %v11129_v46  ;;  %7763 = vmatpush1.bf16.msra.mxu1 %v11257_v9  ;;  %v11225_v46 = vcombine.low %v4599_v42, %v4603_v2  ;;  %v11090_v9 = vcombine.high %v4463_v35, %v4467_v18  ;;  %v4587_v49 = vld [vmem:[#allocation2 + $0xc70] sm:$0xff] }
 0x532   :  { %v7429_v61 = vpop.f32.mrf.mxu0  ;;  %7723 = vmatprep.subr.bf16.mxu0 %v11122_v15  ;;  %v7470_v56 = vpop.f32.mrf.mxu1  ;;  %7764 = vmatprep.subr.bf16.mxu1 %v11250_v7  ;;  %v11218_v15 = vcombine.high %v4591_v63, %v4595_v3  ;;  %v4455_v7 = vld [vmem:[#allocation2 + $0x850] sm:$0xff] }
 0x533   :  { %v12373_v10 = vadd.f32 %v7468_v52, %v7428_v51  ;;  %v7430_v13 = vadd.f32 %v7429_v61, %v12368_v26  ;;  %7753 = vmatprep.mubr.bf16.mxu0 %v12321_v16  ;;  %7794 = vmatprep.mubr.bf16.mxu1 %v12327_v45  ;;  %v11082_v51 = vcombine.high %v4455_v7, %v4459_v37  ;;  %v4451_v61 = vld [vmem:[#allocation2 + $0x830] sm:$0xff] }
 0x534   :  { %v7431_v54 = vpop.f32.mrf.mxu0  ;;  %v7472_v58 = vpop.f32.mrf.mxu1  ;;  %v11210_v52 = vcombine.high %v4583_v48, %v4587_v49  ;;  %v4699_v29 = vld [vmem:[#allocation2 + $0xff0] sm:$0xff] }
 0x535   :  { %v7967_v28 = vmax.f32 %v12373_v10, 0.0  ;;  %v12379_v34 = vadd.f32 %v7470_v56, %v7430_v13  ;;  %7724 = vmatpush1.bf16.msra.mxu0 %v11121_v53  ;;  %7765 = vmatpush1.bf16.msra.mxu1 %v11249_v0  ;;  %v4447_v53 = vld [vmem:[#allocation2 + $0x810] sm:$0xff]  ;;  %v11081_v13 = vcombine.low %v4455_v7, %v4459_v37  ;;  %v11209_v56 = vcombine.low %v4583_v48, %v4587_v49 }
 0x536   :  { %v7432_v26 = vpop.f32.mrf.mxu0  ;;  %7725 = vmatprep.subr.bf16.mxu0 %v11114_v4  ;;  %v7473_v47 = vpop.f32.mrf.mxu1  ;;  %7766 = vmatprep.subr.bf16.mxu1 %v11242_v62  ;;  %v4575_v0 = vld [vmem:[#allocation2 + $0xc10] sm:$0xff]  ;;  %v11074_v62 = vcombine.high %v4447_v53, %v4451_v61  ;;  %v11073_v58 = vcombine.low %v4447_v53, %v4451_v61  ;;  %v11321_v42 = vcombine.low %v4695_v8, %v4699_v29 }
 0x537   :  { %v7968_v6 = vmax.f32 %v12379_v34, 0.0  ;;  %v4579_v4 = vld [vmem:[#allocation2 + $0xc30] sm:$0xff] }
 0x538   :  { %v11202_v12 = vcombine.high %v4575_v0, %v4579_v4  ;;  %v4571_v54 = vld [vmem:[#allocation2 + $0xbf0] sm:$0xff] }
 0x539   :  { %7726 = vmatpush1.bf16.msra.mxu0 %v11113_v5  ;;  %7767 = vmatpush1.bf16.msra.mxu1 %v11241_v20  ;;  %v11201_v5 = vcombine.low %v4575_v0, %v4579_v4  ;;  %v11194_v26 = vcombine.high %v4567_v27, %v4571_v54  ;;  %v11322_v20 = vcombine.high %v4695_v8, %v4699_v29  ;;  %v4563_v47 = vld [vmem:[#allocation2 + $0xbb0] sm:$0xff] }
 0x53a   :  { %7727 = vmatprep.subr.bf16.mxu0 %v11106_v30  ;;  %7768 = vmatprep.subr.bf16.mxu1 %v11234_v60  ;;  %v4559_v30 = vld [vmem:[#allocation2 + $0xb90] sm:$0xff]  ;;  %v11193_v39 = vcombine.low %v4567_v27, %v4571_v54 }
 0x53b   :  { %v4687_v60 = vld [vmem:[#allocation2 + $0xf90] sm:$0xff]  ;;  %v11186_v2 = vcombine.high %v4559_v30, %v4563_v47  ;;  %v11185_v18 = vcombine.low %v4559_v30, %v4563_v47 }
 0x53c   :  { %v4691_v1 = vld [vmem:[#allocation2 + $0xfb0] sm:$0xff] }
 0x53d   :  { %7728 = vmatpush1.bf16.msra.mxu0 %v11105_v38  ;;  %7769 = vmatpush1.bf16.msra.mxu1 %v11233_v17  ;;  %v11314_v38 = vcombine.high %v4687_v60, %v4691_v1  ;;  %v4551_v17 = vld [vmem:[#allocation2 + $0xb50] sm:$0xff]  ;;  %v11313_v63 = vcombine.low %v4687_v60, %v4691_v1 }
 0x53e   :  { %7729 = vmatprep.subr.bf16.mxu0 %v11098_v21  ;;  %7770 = vmatprep.subr.bf16.mxu1 %v11226_v43  ;;  %v4555_v21 = vld [vmem:[#allocation2 + $0xb70] sm:$0xff] }
 0x53f   :  { %v4679_v43 = vld [vmem:[#allocation2 + $0xf50] sm:$0xff]  ;;  %v11178_v3 = vcombine.high %v4551_v17, %v4555_v21  ;;  %v11177_v37 = vcombine.low %v4551_v17, %v4555_v21 }
 0x540   :  { %v4683_v35 = vld [vmem:[#allocation2 + $0xf70] sm:$0xff] }
 0x541   :  { %7730 = vmatpush1.bf16.msra.mxu0 %v11097_v32  ;;  %7771 = vmatpush1.bf16.msra.mxu1 %v11225_v46  ;;  %v11306_v32 = vcombine.high %v4679_v43, %v4683_v35  ;;  %v4543_v46 = vld [vmem:[#allocation2 + $0xb10] sm:$0xff]  ;;  %v11305_v48 = vcombine.low %v4679_v43, %v4683_v35 }
 0x542   :  { %7731 = vmatprep.subr.bf16.mxu0 %v11090_v9  ;;  %7772 = vmatprep.subr.bf16.mxu1 %v11218_v15  ;;  %v4547_v9 = vld [vmem:[#allocation2 + $0xb30] sm:$0xff] }
 0x543   :  { %v4671_v15 = vld [vmem:[#allocation2 + $0xf10] sm:$0xff]  ;;  %v11170_v49 = vcombine.high %v4543_v46, %v4547_v9  ;;  %v11169_v61 = vcombine.low %v4543_v46, %v4547_v9  ;;  %v4380_v46 = vld [vmem:[#allocation2 + $0x5f8] sm:$0xff] }
 0x544   :  { %v4675_v7 = vld [vmem:[#allocation2 + $0xf30] sm:$0xff] }
 0x545   :  { %7732 = vmatpush1.bf16.msra.mxu0 %v11089_v50  ;;  %7773 = vmatpush1.bf16.msra.mxu1 %v11217_v41  ;;  %v11298_v50 = vcombine.high %v4671_v15, %v4675_v7  ;;  %v4535_v41 = vld [vmem:[#allocation2 + $0xad0] sm:$0xff]  ;;  %v11297_v0 = vcombine.low %v4671_v15, %v4675_v7 }
 0x546   :  { %7733 = vmatprep.subr.bf16.mxu0 %v11082_v51  ;;  %7774 = vmatprep.subr.bf16.mxu1 %v11210_v52  ;;  %v4539_v51 = vld [vmem:[#allocation2 + $0xaf0] sm:$0xff] }
 0x547   :  { %v4663_v52 = vld [vmem:[#allocation2 + $0xed0] sm:$0xff]  ;;  %v11162_v4 = vcombine.high %v4535_v41, %v4539_v51  ;;  %v11161_v54 = vcombine.low %v4535_v41, %v4539_v51  ;;  %v4372_v41 = vld [vmem:[#allocation2 + $0x5b8] sm:$0xff]  ;;  %v4722_v51 = vrot.slane %v12342_v59, %v12108_v23 }
 0x548   :  { %v4667_v53 = vld [vmem:[#allocation2 + $0xef0] sm:$0xff] }
 0x549   :  { %7734 = vmatpush1.bf16.msra.mxu0 %v11081_v13  ;;  %7775 = vmatpush1.bf16.msra.mxu1 %v11209_v56  ;;  %v11290_v13 = vcombine.high %v4663_v52, %v4667_v53  ;;  %v4527_v56 = vld [vmem:[#allocation2 + $0xa90] sm:$0xff]  ;;  %v11289_v8 = vcombine.low %v4663_v52, %v4667_v53 }
 0x54a   :  { %7735 = vmatprep.subr.bf16.mxu0 %v11074_v62  ;;  %7776 = vmatprep.subr.bf16.mxu1 %v11202_v12  ;;  %v4531_v62 = vld [vmem:[#allocation2 + $0xab0] sm:$0xff] }
 0x54b   :  { %v4655_v12 = vld [vmem:[#allocation2 + $0xe90] sm:$0xff]  ;;  %v11154_v29 = vcombine.high %v4527_v56, %v4531_v62  ;;  %v11153_v47 = vcombine.low %v4527_v56, %v4531_v62  ;;  %v4236_v56 = vld [vmem:[#allocation2 + $0x178] sm:$0xff] }
 0x54c   :  { %v4659_v27 = vld [vmem:[#allocation2 + $0xeb0] sm:$0xff] }
 0x54d   :  { %7736 = vmatpush1.bf16.msra.mxu0 %v11073_v58  ;;  %7777 = vmatpush1.bf16.msra.mxu1 %v11201_v5  ;;  %v11282_v58 = vcombine.high %v4655_v12, %v4659_v27  ;;  %v4519_v5 = vld [vmem:[#allocation2 + $0xa50] sm:$0xff]  ;;  %v11281_v60 = vcombine.low %v4655_v12, %v4659_v27  ;;  %v4360_v12 = vld [vmem:[#allocation2 + $0x558] sm:$0xff] }
 0x54e   :  { %7737 = vmatprep.subr.bf16.mxu0 %v11194_v26  ;;  %7778 = vmatprep.subr.bf16.mxu1 %v11322_v20  ;;  %v4523_v26 = vld [vmem:[#allocation2 + $0xa70] sm:$0xff]  ;;  %v4364_v27 = vld [vmem:[#allocation2 + $0x578] sm:$0xff] }
 0x54f   :  { %v4647_v20 = vld [vmem:[#allocation2 + $0xe50] sm:$0xff]  ;;  %v11146_v1 = vcombine.high %v4519_v5, %v4523_v26  ;;  %v11145_v21 = vcombine.low %v4519_v5, %v4523_v26 }
 0x550   :  { %v4651_v30 = vld [vmem:[#allocation2 + $0xe70] sm:$0xff] }
 0x551   :  { %7738 = vmatpush2.bf16.msra.mxu0 %v11193_v39  ;;  %7779 = vmatpush2.bf16.msra.mxu1 %v11321_v42  ;;  %v11274_v39 = vcombine.high %v4647_v20, %v4651_v30  ;;  %v4511_v42 = vld [vmem:[#allocation2 + $0xa10] sm:$0xff]  ;;  %v11273_v43 = vcombine.low %v4647_v20, %v4651_v30 }
 0x552   :  { %7739 = vmatprep.subr.bf16.mxu0 %v11186_v2  ;;  %7780 = vmatprep.subr.bf16.mxu1 %v11314_v38  ;;  %v4515_v2 = vld [vmem:[#allocation2 + $0xa30] sm:$0xff] }
 0x553   :  { %v4639_v38 = vld [vmem:[#allocation2 + $0xe10] sm:$0xff]  ;;  %v11138_v35 = vcombine.high %v4511_v42, %v4515_v2  ;;  %v11137_v9 = vcombine.low %v4511_v42, %v4515_v2  ;;  %v4352_v2 = vld [vmem:[#allocation2 + $0x518] sm:$0xff] }
 0x554   :  { %v4643_v17 = vld [vmem:[#allocation2 + $0xe30] sm:$0xff] }
 0x555   :  { %7740 = vmatpush2.bf16.msra.mxu0 %v11185_v18  ;;  %7781 = vmatpush2.bf16.msra.mxu1 %v11313_v63  ;;  %v11266_v18 = vcombine.high %v4639_v38, %v4643_v17  ;;  %v4248_v63 = vld [vmem:[#allocation2 + $0x1d8] sm:$0xff]  ;;  %v11265_v15 = vcombine.low %v4639_v38, %v4643_v17 }
 0x556   :  { %7741 = vmatprep.subr.bf16.mxu0 %v11178_v3  ;;  %7782 = vmatprep.subr.bf16.mxu1 %v11306_v32  ;;  %v4252_v3 = vld [vmem:[#allocation2 + $0x1f8] sm:$0xff] }
 0x557   :  { %v4376_v32 = vld [vmem:[#allocation2 + $0x5d8] sm:$0xff]  ;;  %v10876_v7 = vcombine.high %v4248_v63, %v4252_v3  ;;  %v10875_v52 = vcombine.low %v4248_v63, %v4252_v3 }
 0x558   :  { %v11003_v53 = vcombine.low %v4376_v32, %v4380_v46  ;;  %v4356_v38 = vld [vmem:[#allocation2 + $0x538] sm:$0xff] }
 0x559   :  { %7742 = vmatpush2.bf16.msra.mxu0 %v11177_v37  ;;  %7783 = vmatpush2.bf16.msra.mxu1 %v11305_v48  ;;  %v11004_v37 = vcombine.high %v4376_v32, %v4380_v46  ;;  %v4240_v48 = vld [vmem:[#allocation2 + $0x198] sm:$0xff]  ;;  %v10980_v32 = vcombine.high %v4352_v2, %v4356_v38 }
 0x55a   :  { %7743 = vmatprep.subr.bf16.mxu0 %v11170_v49  ;;  %7784 = vmatprep.subr.bf16.mxu1 %v11298_v50  ;;  %v4244_v49 = vld [vmem:[#allocation2 + $0x1b8] sm:$0xff] }
 0x55b   :  { %v4368_v50 = vld [vmem:[#allocation2 + $0x598] sm:$0xff] }
 0x55c   :  { %v10995_v5 = vcombine.low %v4368_v50, %v4372_v41  ;;  %v4216_v46 = vld [vmem:[#allocation2 + $0xd8] sm:$0xff] }
 0x55d   :  { %7744 = vmatpush2.bf16.msra.mxu0 %v11169_v61  ;;  %7785 = vmatpush2.bf16.msra.mxu1 %v11297_v0  ;;  %v10868_v61 = vcombine.high %v4240_v48, %v4244_v49  ;;  %v4726_v0 = vrot.slane %v12342_v59, %v12112_v25 }
 0x55e   :  { %7745 = vmatprep.subr.bf16.mxu0 %v11162_v4  ;;  %7786 = vmatprep.subr.bf16.mxu1 %v11290_v13  ;;  %v10996_v4 = vcombine.high %v4368_v50, %v4372_v41  ;;  %v4232_v13 = vld [vmem:[#allocation2 + $0x158] sm:$0xff] }
 0x55f   :  { %v10860_v26 = vcombine.high %v4232_v13, %v4236_v56  ;;  %v4212_v50 = vld [vmem:[#allocation2 + $0xb8] sm:$0xff] }
 0x560   :  { %v4336_v41 = vld [vmem:[#allocation2 + $0x498] sm:$0xff] }
 0x561   :  { %7746 = vmatpush2.bf16.msra.mxu0 %v11161_v54  ;;  %7787 = vmatpush2.bf16.msra.mxu1 %v11289_v8 }
 0x562   :  { %7747 = vmatprep.subr.bf16.mxu0 %v11154_v29  ;;  %7788 = vmatprep.subr.bf16.mxu1 %v11282_v58  ;;  %v10867_v29 = vcombine.low %v4240_v48, %v4244_v49  ;;  %v4208_v49 = vld [vmem:[#allocation2 + $0x98] sm:$0xff] }
 0x565   :  { %7748 = vmatpush2.bf16.msra.mxu0 %v11153_v47  ;;  %7789 = vmatpush2.bf16.msra.mxu1 %v11281_v60  ;;  %v10988_v60 = vcombine.high %v4360_v12, %v4364_v27 }
 0x566   :  { %7749 = vmatprep.subr.bf16.mxu0 %v11146_v1  ;;  %7790 = vmatprep.subr.bf16.mxu1 %v11274_v39  ;;  %v4224_v1 = vld [vmem:[#allocation2 + $0x118] sm:$0xff] }
 0x567   :  { %v4228_v39 = vld [vmem:[#allocation2 + $0x138] sm:$0xff] }
 0x568   :  { %v10852_v63 = vcombine.high %v4224_v1, %v4228_v39 }
 0x569   :  { %7750 = vmatpush2.bf16.msra.mxu0 %v11145_v21  ;;  %7791 = vmatpush2.bf16.msra.mxu1 %v11273_v43  ;;  %v10859_v43 = vcombine.low %v4232_v13, %v4236_v56  ;;  %v4204_v13 = vld [vmem:[#allocation2 + $0x78] sm:$0xff] }
 0x56a   :  { %7751 = vmatprep.subr.bf16.mxu0 %v11138_v35  ;;  %7792 = vmatprep.subr.bf16.mxu1 %v11266_v18  ;;  %v10987_v18 = vcombine.low %v4360_v12, %v4364_v27  ;;  %v4328_v56 = vld [vmem:[#allocation2 + $0x458] sm:$0xff]  ;;  %v10835_v12 = vcombine.low %v4208_v49, %v4212_v50 }
 0x56d   :  { %7752 = vmatpush2.bf16.msra.mxu0 %v11137_v9  ;;  %7793 = vmatpush2.bf16.msra.mxu1 %v11265_v15  ;;  %v4344_v9 = vld [vmem:[#allocation2 + $0x4d8] sm:$0xff] }
 0x56e   :  { %7803 = vmatprep.subr.bf16.mxu0 %v10876_v7  ;;  %7844 = vmatprep.subr.bf16.mxu1 %v11004_v37  ;;  %v4348_v15 = vld [vmem:[#allocation2 + $0x4f8] sm:$0xff]  ;;  %v10851_v7 = vcombine.low %v4224_v1, %v4228_v39 }
 0x56f   :  { %v10972_v48 = vcombine.high %v4344_v9, %v4348_v15  ;;  %v4312_v39 = vld [vmem:[#allocation2 + $0x3d8] sm:$0xff] }
 0x570   :  { %v7509_v62 = vpop.f32.mrf.mxu0  ;;  %7754 = vmatmul.mubr.bf16.vlgmr.msra.gmra.mxu0 %v12335_v57  ;;  %v7550_v8 = vpop.f32.mrf.mxu1  ;;  %7795 = vmatmul.mubr.bf16.vlgmr.msra.gmra.mxu1 %v12340_v19 }
 0x571   :  { %v7510_v54 = vadd.f32 %v7509_v62, %v4722_v51  ;;  %7804 = vmatpush1.bf16.msra.mxu0 %v10875_v52  ;;  %7845 = vmatpush1.bf16.msra.mxu1 %v11003_v53  ;;  %v4340_v51 = vld [vmem:[#allocation2 + $0x4b8] sm:$0xff]  ;;  %v10971_v53 = vcombine.low %v4344_v9, %v4348_v15 }
 0x572   :  { %v7511_v58 = vpop.f32.mrf.mxu0  ;;  %7805 = vmatprep.subr.bf16.mxu0 %v10868_v61  ;;  %v7552_v47 = vpop.f32.mrf.mxu1  ;;  %7846 = vmatprep.subr.bf16.mxu1 %v10996_v4  ;;  %v10836_v61 = vcombine.high %v4208_v49, %v4212_v50  ;;  %v4200_v4 = vld [vmem:[#allocation2 + $0x58] sm:$0xff]  ;;  %v10963_v27 = vcombine.low %v4336_v41, %v4340_v51 }
 0x573   :  { %v12388_v20 = vadd.f32 %v7550_v8, %v7510_v54  ;;  %v7512_v30 = vadd.f32 %v7511_v58, %v4726_v0  ;;  %7835 = vmatprep.mubr.bf16.mxu0 %v12299_v14  ;;  %7876 = vmatprep.mubr.bf16.mxu1 %v12304_v55  ;;  %v4220_v14 = vld [vmem:[#allocation2 + $0xf8] sm:$0xff]  ;;  %v10979_v55 = vcombine.low %v4352_v2, %v4356_v38 }
 0x574   :  { %v7513_v42 = vpop.f32.mrf.mxu0  ;;  %v7554_v21 = vpop.f32.mrf.mxu1  ;;  %v10844_v37 = vcombine.high %v4216_v46, %v4220_v14  ;;  %v10843_v52 = vcombine.low %v4216_v46, %v4220_v14  ;;  %v10964_v0 = vcombine.high %v4336_v41, %v4340_v51  ;;  %v4332_v62 = vld [vmem:[#allocation2 + $0x478] sm:$0xff]  ;;  %v10828_v54 = vcombine.high %v4200_v4, %v4204_v13 }
 0x575   :  { %v12392_v17 = vadd.f32 %v7552_v47, %v7512_v30  ;;  %7806 = vmatpush1.bf16.msra.mxu0 %v10867_v29  ;;  %7847 = vmatpush1.bf16.msra.mxu1 %v10995_v5  ;;  %v10956_v8 = vcombine.high %v4328_v56, %v4332_v62  ;;  %v4192_v29 = vld [vmem:[#allocation2 + $0x18] sm:$0xff]  ;;  %v10827_v30 = vcombine.low %v4200_v4, %v4204_v13 }
 0x576   :  { %v7514_v35 = vpop.f32.mrf.mxu0  ;;  %7807 = vmatprep.subr.bf16.mxu0 %v10860_v26  ;;  %v7555_v3 = vpop.f32.mrf.mxu1  ;;  %7848 = vmatprep.subr.bf16.mxu1 %v10988_v60  ;;  %v4196_v58 = vld [vmem:[#allocation2 + $0x38] sm:$0xff]  ;;  %v10955_v47 = vcombine.low %v4328_v56, %v4332_v62 }
 0x577   :  { %v4320_v5 = vld [vmem:[#allocation2 + $0x418] sm:$0xff]  ;;  %v10820_v60 = vcombine.high %v4192_v29, %v4196_v58  ;;  %v10819_v21 = vcombine.low %v4192_v29, %v4196_v58 }
 0x578   :  { %v4324_v26 = vld [vmem:[#allocation2 + $0x438] sm:$0xff] }
 0x579   :  { %7808 = vmatpush1.bf16.msra.mxu0 %v10859_v43  ;;  %7849 = vmatpush1.bf16.msra.mxu1 %v10987_v18  ;;  %v10948_v1 = vcombine.high %v4320_v5, %v4324_v26  ;;  %v4316_v42 = vld [vmem:[#allocation2 + $0x3f8] sm:$0xff]  ;;  %v10947_v43 = vcombine.low %v4320_v5, %v4324_v26 }
 0x57a   :  { %7809 = vmatprep.subr.bf16.mxu0 %v10852_v63  ;;  %7850 = vmatprep.subr.bf16.mxu1 %v10980_v32  ;;  %v4440_v2 = vld [vmem:[#allocation2 + $0x7d8] sm:$0xff]  ;;  %v10940_v35 = vcombine.high %v4312_v39, %v4316_v42  ;;  %v10939_v14 = vcombine.low %v4312_v39, %v4316_v42 }
 0x57b   :  { %v4444_v38 = vld [vmem:[#allocation2 + $0x7f8] sm:$0xff] }
 0x57c   :  { %v11068_v18 = vcombine.high %v4440_v2, %v4444_v38  ;;  %v4304_v63 = vld [vmem:[#allocation2 + $0x398] sm:$0xff]  ;;  %v11067_v9 = vcombine.low %v4440_v2, %v4444_v38 }
 0x57d   :  { %7810 = vmatpush1.bf16.msra.mxu0 %v10851_v7  ;;  %7851 = vmatpush1.bf16.msra.mxu1 %v10979_v55  ;;  %v4308_v3 = vld [vmem:[#allocation2 + $0x3b8] sm:$0xff] }
 0x57e   :  { %7811 = vmatprep.subr.bf16.mxu0 %v10844_v37  ;;  %7852 = vmatprep.subr.bf16.mxu1 %v10972_v48  ;;  %v4432_v32 = vld [vmem:[#allocation2 + $0x798] sm:$0xff]  ;;  %v10932_v15 = vcombine.high %v4304_v63, %v4308_v3  ;;  %v10931_v50 = vcombine.low %v4304_v63, %v4308_v3 }
 0x57f   :  { %v4436_v46 = vld [vmem:[#allocation2 + $0x7b8] sm:$0xff] }
 0x580   :  { %v11060_v7 = vcombine.high %v4432_v32, %v4436_v46  ;;  %v4296_v55 = vld [vmem:[#allocation2 + $0x358] sm:$0xff]  ;;  %v11059_v41 = vcombine.low %v4432_v32, %v4436_v46 }
 0x581   :  { %7812 = vmatpush1.bf16.msra.mxu0 %v10843_v52  ;;  %7853 = vmatpush1.bf16.msra.mxu1 %v10971_v53  ;;  %v4300_v37 = vld [vmem:[#allocation2 + $0x378] sm:$0xff] }
 0x582   :  { %7813 = vmatprep.subr.bf16.mxu0 %v10836_v61  ;;  %7854 = vmatprep.subr.bf16.mxu1 %v10964_v0  ;;  %v4424_v48 = vld [vmem:[#allocation2 + $0x758] sm:$0xff]  ;;  %v10924_v51 = vcombine.high %v4296_v55, %v4300_v37  ;;  %v10923_v13 = vcombine.low %v4296_v55, %v4300_v37 }
 0x583   :  { %v4428_v49 = vld [vmem:[#allocation2 + $0x778] sm:$0xff] }
 0x584   :  { %v11052_v52 = vcombine.high %v4424_v48, %v4428_v49  ;;  %v4288_v53 = vld [vmem:[#allocation2 + $0x318] sm:$0xff]  ;;  %v11051_v56 = vcombine.low %v4424_v48, %v4428_v49 }
 0x585   :  { %7814 = vmatpush1.bf16.msra.mxu0 %v10835_v12  ;;  %7855 = vmatpush1.bf16.msra.mxu1 %v10963_v27  ;;  %v4292_v61 = vld [vmem:[#allocation2 + $0x338] sm:$0xff] }
 0x586   :  { %7815 = vmatprep.subr.bf16.mxu0 %v10828_v54  ;;  %7856 = vmatprep.subr.bf16.mxu1 %v10956_v8  ;;  %v4416_v0 = vld [vmem:[#allocation2 + $0x718] sm:$0xff]  ;;  %v10916_v62 = vcombine.high %v4288_v53, %v4292_v61  ;;  %v10915_v58 = vcombine.low %v4288_v53, %v4292_v61 }
 0x587   :  { %v4420_v4 = vld [vmem:[#allocation2 + $0x738] sm:$0xff] }
 0x588   :  { %v11044_v12 = vcombine.high %v4416_v0, %v4420_v4  ;;  %v4280_v27 = vld [vmem:[#allocation2 + $0x2d8] sm:$0xff]  ;;  %v11043_v5 = vcombine.low %v4416_v0, %v4420_v4 }
 0x589   :  { %7816 = vmatpush1.bf16.msra.mxu0 %v10827_v30  ;;  %7857 = vmatpush1.bf16.msra.mxu1 %v10955_v47  ;;  %v4284_v54 = vld [vmem:[#allocation2 + $0x2f8] sm:$0xff] }
 0x58a   :  { %7817 = vmatprep.subr.bf16.mxu0 %v10820_v60  ;;  %7858 = vmatprep.subr.bf16.mxu1 %v10948_v1  ;;  %v4408_v8 = vld [vmem:[#allocation2 + $0x6d8] sm:$0xff]  ;;  %v10908_v26 = vcombine.high %v4280_v27, %v4284_v54  ;;  %v10907_v42 = vcombine.low %v4280_v27, %v4284_v54 }
 0x58b   :  { %v4412_v29 = vld [vmem:[#allocation2 + $0x6f8] sm:$0xff] }
 0x58c   :  { %v11036_v30 = vcombine.high %v4408_v8, %v4412_v29  ;;  %v4272_v47 = vld [vmem:[#allocation2 + $0x298] sm:$0xff]  ;;  %v11035_v2 = vcombine.low %v4408_v8, %v4412_v29 }
 0x58d   :  { %7818 = vmatpush1.bf16.msra.mxu0 %v10819_v21  ;;  %7859 = vmatpush1.bf16.msra.mxu1 %v10947_v43  ;;  %v4276_v60 = vld [vmem:[#allocation2 + $0x2b8] sm:$0xff] }
 0x58e   :  { %7819 = vmatprep.subr.bf16.mxu0 %v10940_v35  ;;  %7860 = vmatprep.subr.bf16.mxu1 %v11068_v18  ;;  %v4400_v1 = vld [vmem:[#allocation2 + $0x698] sm:$0xff]  ;;  %v10900_v38 = vcombine.high %v4272_v47, %v4276_v60  ;;  %v10899_v3 = vcombine.low %v4272_v47, %v4276_v60 }
 0x58f   :  { %v4404_v39 = vld [vmem:[#allocation2 + $0x6b8] sm:$0xff] }
 0x590   :  { %v11028_v21 = vcombine.high %v4400_v1, %v4404_v39  ;;  %v4264_v43 = vld [vmem:[#allocation2 + $0x258] sm:$0xff]  ;;  %v11027_v32 = vcombine.low %v4400_v1, %v4404_v39 }
 0x591   :  { %7820 = vmatpush2.bf16.msra.mxu0 %v10939_v14  ;;  %7861 = vmatpush2.bf16.msra.mxu1 %v11067_v9  ;;  %v4268_v35 = vld [vmem:[#allocation2 + $0x278] sm:$0xff] }
 0x592   :  { %7821 = vmatprep.subr.bf16.mxu0 %v10932_v15  ;;  %7862 = vmatprep.subr.bf16.mxu1 %v11060_v7  ;;  %v4392_v18 = vld [vmem:[#allocation2 + $0x658] sm:$0xff]  ;;  %v10892_v46 = vcombine.high %v4264_v43, %v4268_v35  ;;  %v10891_v37 = vcombine.low %v4264_v43, %v4268_v35 }
 0x593   :  { %v4396_v63 = vld [vmem:[#allocation2 + $0x678] sm:$0xff] }
 0x594   :  { %v11020_v14 = vcombine.high %v4392_v18, %v4396_v63  ;;  %v4256_v9 = vld [vmem:[#allocation2 + $0x218] sm:$0xff]  ;;  %v11019_v48 = vcombine.low %v4392_v18, %v4396_v63 }
 0x595   :  { %7822 = vmatpush2.bf16.msra.mxu0 %v10931_v50  ;;  %7863 = vmatpush2.bf16.msra.mxu1 %v11059_v41  ;;  %v4260_v15 = vld [vmem:[#allocation2 + $0x238] sm:$0xff] }
 0x596   :  { %7823 = vmatprep.subr.bf16.mxu0 %v10924_v51  ;;  %7864 = vmatprep.subr.bf16.mxu1 %v11052_v52  ;;  %v4384_v7 = vld [vmem:[#allocation2 + $0x618] sm:$0xff]  ;;  %v10884_v49 = vcombine.high %v4256_v9, %v4260_v15  ;;  %v10883_v61 = vcombine.low %v4256_v9, %v4260_v15 }
 0x597   :  { %v4388_v55 = vld [vmem:[#allocation2 + $0x638] sm:$0xff] }
 0x598   :  { %v11012_v50 = vcombine.high %v4384_v7, %v4388_v55  ;;  %v4504_v41 = vld [vmem:[#allocation2 + $0x9d8] sm:$0xff]  ;;  %v11011_v0 = vcombine.low %v4384_v7, %v4388_v55 }
 0x599   :  { %7824 = vmatpush2.bf16.msra.mxu0 %v10923_v13  ;;  %7865 = vmatpush2.bf16.msra.mxu1 %v11051_v56  ;;  %v4508_v51 = vld [vmem:[#allocation2 + $0x9f8] sm:$0xff] }
 0x59a   :  { %7825 = vmatprep.subr.bf16.mxu0 %v10916_v62  ;;  %7866 = vmatprep.subr.bf16.mxu1 %v11044_v12  ;;  %v4632_v52 = vld [vmem:[#allocation2 + $0xdd8] sm:$0xff]  ;;  %v11132_v4 = vcombine.high %v4504_v41, %v4508_v51  ;;  %v11131_v54 = vcombine.low %v4504_v41, %v4508_v51 }
 0x59b   :  { %v4636_v53 = vld [vmem:[#allocation2 + $0xdf8] sm:$0xff] }
 0x59c   :  { %v11260_v13 = vcombine.high %v4632_v52, %v4636_v53  ;;  %v4496_v56 = vld [vmem:[#allocation2 + $0x998] sm:$0xff]  ;;  %v11259_v8 = vcombine.low %v4632_v52, %v4636_v53 }
 0x59d   :  { %7826 = vmatpush2.bf16.msra.mxu0 %v10915_v58  ;;  %7867 = vmatpush2.bf16.msra.mxu1 %v11043_v5  ;;  %v4500_v62 = vld [vmem:[#allocation2 + $0x9b8] sm:$0xff] }
 0x59e   :  { %7827 = vmatprep.subr.bf16.mxu0 %v10908_v26  ;;  %7868 = vmatprep.subr.bf16.mxu1 %v11036_v30  ;;  %v4624_v12 = vld [vmem:[#allocation2 + $0xd98] sm:$0xff]  ;;  %v11124_v29 = vcombine.high %v4496_v56, %v4500_v62 }
 0x59f   :  { %v4628_v27 = vld [vmem:[#allocation2 + $0xdb8] sm:$0xff] }
 0x5a0   :  { %v11252_v58 = vcombine.high %v4624_v12, %v4628_v27  ;;  %v4488_v5 = vld [vmem:[#allocation2 + $0x958] sm:$0xff] }
 0x5a1   :  { %7828 = vmatpush2.bf16.msra.mxu0 %v10907_v42  ;;  %7869 = vmatpush2.bf16.msra.mxu1 %v11035_v2  ;;  %v4492_v26 = vld [vmem:[#allocation2 + $0x978] sm:$0xff]  ;;  %v11123_v42 = vcombine.low %v4496_v56, %v4500_v62 }
 0x5a2   :  { %7829 = vmatprep.subr.bf16.mxu0 %v10900_v38  ;;  %7870 = vmatprep.subr.bf16.mxu1 %v11028_v21  ;;  %v4616_v47 = vld [vmem:[#allocation2 + $0xd58] sm:$0xff]  ;;  %v11251_v38 = vcombine.low %v4624_v12, %v4628_v27  ;;  %v11116_v21 = vcombine.high %v4488_v5, %v4492_v26  ;;  %v11115_v15 = vcombine.low %v4488_v5, %v4492_v26 }
 0x5a3   :  { %v4620_v60 = vld [vmem:[#allocation2 + $0xd78] sm:$0xff] }
 0x5a4   :  { %v4480_v63 = vld [vmem:[#allocation2 + $0x918] sm:$0xff]  ;;  %v11243_v7 = vcombine.low %v4616_v47, %v4620_v60 }
 0x5a5   :  { %7830 = vmatpush2.bf16.msra.mxu0 %v10899_v3  ;;  %7871 = vmatpush2.bf16.msra.mxu1 %v11027_v32  ;;  %v4484_v3 = vld [vmem:[#allocation2 + $0x938] sm:$0xff] }
 0x5a6   :  { %7831 = vmatprep.subr.bf16.mxu0 %v10892_v46  ;;  %7872 = vmatprep.subr.bf16.mxu1 %v11020_v14  ;;  %v4612_v32 = vld [vmem:[#allocation2 + $0xd38] sm:$0xff]  ;;  %v11108_v55 = vcombine.high %v4480_v63, %v4484_v3  ;;  %v11107_v51 = vcombine.low %v4480_v63, %v4484_v3 }
 0x5a7   :  { %v4604_v41 = vld [vmem:[#allocation2 + $0xcf8] sm:$0xff] }
 0x5a8   :  { %v4596_v56 = vld [vmem:[#allocation2 + $0xcb8] sm:$0xff] }
 0x5a9   :  { %7832 = vmatpush2.bf16.msra.mxu0 %v10891_v37  ;;  %7873 = vmatpush2.bf16.msra.mxu1 %v11019_v48  ;;  %v4588_v5 = vld [vmem:[#allocation2 + $0xc78] sm:$0xff] }
 0x5aa   :  { %7833 = vmatprep.subr.bf16.mxu0 %v10884_v49  ;;  %7874 = vmatprep.subr.bf16.mxu1 %v11012_v50  ;;  %v4472_v49 = vld [vmem:[#allocation2 + $0x8d8] sm:$0xff] }
 0x5ab   :  { %v4476_v50 = vld [vmem:[#allocation2 + $0x8f8] sm:$0xff] }
 0x5ac   :  { %v11100_v53 = vcombine.high %v4472_v49, %v4476_v50  ;;  %v11099_v62 = vcombine.low %v4472_v49, %v4476_v50  ;;  %v4572_v63 = vld [vmem:[#allocation2 + $0xbf8] sm:$0xff] }
 0x5ad   :  { %7834 = vmatpush2.bf16.msra.mxu0 %v10883_v61  ;;  %7875 = vmatpush2.bf16.msra.mxu1 %v11011_v0  ;;  %v4464_v0 = vld [vmem:[#allocation2 + $0x898] sm:$0xff] }
 0x5ae   :  { %7885 = vmatprep.subr.bf16.mxu0 %v11132_v4  ;;  %7926 = vmatprep.subr.bf16.mxu1 %v11260_v13  ;;  %v4468_v4 = vld [vmem:[#allocation2 + $0x8b8] sm:$0xff] }
 0x5af   :  { %v4592_v13 = vld [vmem:[#allocation2 + $0xc98] sm:$0xff]  ;;  %v11092_v27 = vcombine.high %v4464_v0, %v4468_v4  ;;  %v11091_v26 = vcombine.low %v4464_v0, %v4468_v4 }
 0x5b0   :  { %v7591_v30 = vpop.f32.mrf.mxu0  ;;  %7836 = vmatmul.mubr.bf16.vlgmr.msra.gmra.mxu0 %v12311_v11  ;;  %v7632_v39 = vpop.f32.mrf.mxu1  ;;  %7877 = vmatmul.mubr.bf16.vlgmr.msra.gmra.mxu1 %v12316_v31  ;;  %v11244_v11 = vcombine.high %v4616_v47, %v4620_v60  ;;  %v4608_v31 = vld [vmem:[#allocation2 + $0xd18] sm:$0xff] }
 0x5b1   :  { %v7592_v1 = vadd.f32 %v7591_v30, %v12388_v20  ;;  %7886 = vmatpush1.bf16.msra.mxu0 %v11131_v54  ;;  %7927 = vmatpush1.bf16.msra.mxu1 %v11259_v8  ;;  %v11236_v48 = vcombine.high %v4608_v31, %v4612_v32  ;;  %v11235_v52 = vcombine.low %v4608_v31, %v4612_v32  ;;  %v4456_v8 = vld [vmem:[#allocation2 + $0x858] sm:$0xff] }
 0x5b2   :  { %v7593_v2 = vpop.f32.mrf.mxu0  ;;  %7887 = vmatprep.subr.bf16.mxu0 %v11124_v29  ;;  %v7634_v18 = vpop.f32.mrf.mxu1  ;;  %7928 = vmatprep.subr.bf16.mxu1 %v11252_v58  ;;  %v11220_v54 = vcombine.high %v4592_v13, %v4596_v56  ;;  %v4460_v29 = vld [vmem:[#allocation2 + $0x878] sm:$0xff]  ;;  %v11219_v30 = vcombine.low %v4592_v13, %v4596_v56 }
 0x5b3   :  { %v12397_v43 = vadd.f32 %v7632_v39, %v7592_v1  ;;  %v7594_v35 = vadd.f32 %v7593_v2, %v12392_v17  ;;  %7917 = vmatprep.mubr.bf16.mxu0 %v12321_v16  ;;  %7958 = vmatprep.mubr.bf16.mxu1 %v12327_v45  ;;  %v4600_v45 = vld [vmem:[#allocation2 + $0xcd8] sm:$0xff]  ;;  %v11084_v47 = vcombine.high %v4456_v8, %v4460_v29 }
 0x5b4   :  { %v7595_v20 = vpop.f32.mrf.mxu0  ;;  %v7636_v9 = vpop.f32.mrf.mxu1  ;;  %v11228_v61 = vcombine.high %v4600_v45, %v4604_v41  ;;  %v11227_v12 = vcombine.low %v4600_v45, %v4604_v41  ;;  %v4584_v58 = vld [vmem:[#allocation2 + $0xc58] sm:$0xff] }
 0x5b5   :  { %v7969_v46 = vmax.f32 %v12397_v43, 0.0  ;;  %v12403_v14 = vadd.f32 %v7634_v18, %v7594_v35  ;;  %7888 = vmatpush1.bf16.msra.mxu0 %v11123_v42  ;;  %7929 = vmatpush1.bf16.msra.mxu1 %v11251_v38  ;;  %v11212_v60 = vcombine.high %v4584_v58, %v4588_v5  ;;  %v4448_v1 = vld [vmem:[#allocation2 + $0x818] sm:$0xff]  ;;  %v11083_v38 = vcombine.low %v4456_v8, %v4460_v29 }
 0x5b6   :  { %v7596_v17 = vpop.f32.mrf.mxu0  ;;  %7889 = vmatprep.subr.bf16.mxu0 %v11116_v21  ;;  %v7637_v16 = vpop.f32.mrf.mxu1  ;;  %7930 = vmatprep.subr.bf16.mxu1 %v11244_v11  ;;  %v4452_v39 = vld [vmem:[#allocation2 + $0x838] sm:$0xff]  ;;  %v11211_v21 = vcombine.low %v4584_v58, %v4588_v5 }
 0x5b7   :  { %v7970_v37 = vmax.f32 %v12403_v14, 0.0  ;;  %v4576_v42 = vld [vmem:[#allocation2 + $0xc18] sm:$0xff]  ;;  %v11076_v35 = vcombine.high %v4448_v1, %v4452_v39  ;;  %v11075_v31 = vcombine.low %v4448_v1, %v4452_v39 }
 0x5b8   :  { %v4580_v2 = vld [vmem:[#allocation2 + $0xc38] sm:$0xff] }
 0x5b9   :  { %7890 = vmatpush1.bf16.msra.mxu0 %v11115_v15  ;;  %7931 = vmatpush1.bf16.msra.mxu1 %v11243_v7  ;;  %v11204_v18 = vcombine.high %v4576_v42, %v4580_v2  ;;  %v4568_v11 = vld [vmem:[#allocation2 + $0xbd8] sm:$0xff]  ;;  %v11203_v32 = vcombine.low %v4576_v42, %v4580_v2 }
 0x5ba   :  { %7891 = vmatprep.subr.bf16.mxu0 %v11108_v55  ;;  %7932 = vmatprep.subr.bf16.mxu1 %v11236_v48  ;;  %v4696_v3 = vld [vmem:[#allocation2 + $0xfd8] sm:$0xff]  ;;  %v11196_v9 = vcombine.high %v4568_v11, %v4572_v63  ;;  %v11195_v48 = vcombine.low %v4568_v11, %v4572_v63 }
 0x5bb   :  { %v4700_v20 = vld [vmem:[#allocation2 + $0xff8] sm:$0xff] }
 0x5bc   :  { %v11324_v15 = vcombine.high %v4696_v3, %v4700_v20  ;;  %v4560_v17 = vld [vmem:[#allocation2 + $0xb98] sm:$0xff]  ;;  %v11323_v49 = vcombine.low %v4696_v3, %v4700_v20 }
 0x5bd   :  { %7892 = vmatpush1.bf16.msra.mxu0 %v11107_v51  ;;  %7933 = vmatpush1.bf16.msra.mxu1 %v11235_v52  ;;  %v4564_v7 = vld [vmem:[#allocation2 + $0xbb8] sm:$0xff] }
 0x5be   :  { %7893 = vmatprep.subr.bf16.mxu0 %v11100_v53  ;;  %7934 = vmatprep.subr.bf16.mxu1 %v11228_v61  ;;  %v4688_v55 = vld [vmem:[#allocation2 + $0xf98] sm:$0xff]  ;;  %v11188_v50 = vcombine.high %v4560_v17, %v4564_v7  ;;  %v11187_v61 = vcombine.low %v4560_v17, %v4564_v7 }
 0x5bf   :  { %v4692_v16 = vld [vmem:[#allocation2 + $0xfb8] sm:$0xff] }
 0x5c0   :  { %v11316_v45 = vcombine.high %v4688_v55, %v4692_v16  ;;  %v4552_v41 = vld [vmem:[#allocation2 + $0xb58] sm:$0xff]  ;;  %v11315_v0 = vcombine.low %v4688_v55, %v4692_v16 }
 0x5c1   :  { %7894 = vmatpush1.bf16.msra.mxu0 %v11099_v62  ;;  %7935 = vmatpush1.bf16.msra.mxu1 %v11227_v12  ;;  %v4556_v51 = vld [vmem:[#allocation2 + $0xb78] sm:$0xff] }
 0x5c2   :  { %7895 = vmatprep.subr.bf16.mxu0 %v11092_v27  ;;  %7936 = vmatprep.subr.bf16.mxu1 %v11220_v54  ;;  %v4680_v52 = vld [vmem:[#allocation2 + $0xf58] sm:$0xff]  ;;  %v11180_v4 = vcombine.high %v4552_v41, %v4556_v51  ;;  %v11179_v54 = vcombine.low %v4552_v41, %v4556_v51 }
 0x5c3   :  { %v4684_v53 = vld [vmem:[#allocation2 + $0xf78] sm:$0xff] }
 0x5c4   :  { %v11308_v13 = vcombine.high %v4680_v52, %v4684_v53  ;;  %v4544_v56 = vld [vmem:[#allocation2 + $0xb18] sm:$0xff]  ;;  %v11307_v8 = vcombine.low %v4680_v52, %v4684_v53 }
 0x5c5   :  { %7896 = vmatpush1.bf16.msra.mxu0 %v11091_v26  ;;  %7937 = vmatpush1.bf16.msra.mxu1 %v11219_v30  ;;  %v4548_v62 = vld [vmem:[#allocation2 + $0xb38] sm:$0xff] }
 0x5c6   :  { %7897 = vmatprep.subr.bf16.mxu0 %v11084_v47  ;;  %7938 = vmatprep.subr.bf16.mxu1 %v11212_v60  ;;  %v4672_v12 = vld [vmem:[#allocation2 + $0xf18] sm:$0xff]  ;;  %v11172_v29 = vcombine.high %v4544_v56, %v4548_v62  ;;  %v11171_v60 = vcombine.low %v4544_v56, %v4548_v62 }
 0x5c7   :  { %v4676_v27 = vld [vmem:[#allocation2 + $0xf38] sm:$0xff] }
 0x5c8   :  { %v11300_v58 = vcombine.high %v4672_v12, %v4676_v27  ;;  %v4536_v5 = vld [vmem:[#allocation2 + $0xad8] sm:$0xff]  ;;  %v11299_v1 = vcombine.low %v4672_v12, %v4676_v27 }
 0x5c9   :  { %7898 = vmatpush1.bf16.msra.mxu0 %v11083_v38  ;;  %7939 = vmatpush1.bf16.msra.mxu1 %v11211_v21  ;;  %v4540_v26 = vld [vmem:[#allocation2 + $0xaf8] sm:$0xff] }
 0x5ca   :  { %7899 = vmatprep.subr.bf16.mxu0 %v11076_v35  ;;  %7940 = vmatprep.subr.bf16.mxu1 %v11204_v18  ;;  %v4664_v30 = vld [vmem:[#allocation2 + $0xed8] sm:$0xff]  ;;  %v11164_v39 = vcombine.high %v4536_v5, %v4540_v26  ;;  %v11163_v18 = vcombine.low %v4536_v5, %v4540_v26 }
 0x5cb   :  { %v4668_v47 = vld [vmem:[#allocation2 + $0xef8] sm:$0xff] }
 0x5cc   :  { %v11292_v42 = vcombine.high %v4664_v30, %v4668_v47  ;;  %v4528_v2 = vld [vmem:[#allocation2 + $0xa98] sm:$0xff]  ;;  %v11291_v11 = vcombine.low %v4664_v30, %v4668_v47 }
 0x5cd   :  { %7900 = vmatpush1.bf16.msra.mxu0 %v11075_v31  ;;  %7941 = vmatpush1.bf16.msra.mxu1 %v11203_v32  ;;  %v4532_v38 = vld [vmem:[#allocation2 + $0xab8] sm:$0xff] }
 0x5ce   :  { %7901 = vmatprep.subr.bf16.mxu0 %v11196_v9  ;;  %7942 = vmatprep.subr.bf16.mxu1 %v11324_v15  ;;  %v4656_v21 = vld [vmem:[#allocation2 + $0xe98] sm:$0xff]  ;;  %v11156_v63 = vcombine.high %v4528_v2, %v4532_v38  ;;  %v11155_v15 = vcombine.low %v4528_v2, %v4532_v38 }
 0x5cf   :  { %v4660_v35 = vld [vmem:[#allocation2 + $0xeb8] sm:$0xff] }
 0x5d0   :  { %v11284_v3 = vcombine.high %v4656_v21, %v4660_v35  ;;  %v4520_v20 = vld [vmem:[#allocation2 + $0xa58] sm:$0xff]  ;;  %v11283_v17 = vcombine.low %v4656_v21, %v4660_v35 }
 0x5d1   :  { %7902 = vmatpush2.bf16.msra.mxu0 %v11195_v48  ;;  %7943 = vmatpush2.bf16.msra.mxu1 %v11323_v49  ;;  %v4524_v31 = vld [vmem:[#allocation2 + $0xa78] sm:$0xff] }
 0x5d2   :  { %7903 = vmatprep.subr.bf16.mxu0 %v11188_v50  ;;  %7944 = vmatprep.subr.bf16.mxu1 %v11316_v45  ;;  %v4648_v32 = vld [vmem:[#allocation2 + $0xe58] sm:$0xff]  ;;  %v11148_v7 = vcombine.high %v4520_v20, %v4524_v31  ;;  %v11147_v45 = vcombine.low %v4520_v20, %v4524_v31 }
 0x5d3   :  { %v4652_v9 = vld [vmem:[#allocation2 + $0xe78] sm:$0xff] }
 0x5d4   :  { %v11276_v55 = vcombine.high %v4648_v32, %v4652_v9  ;;  %v4512_v16 = vld [vmem:[#allocation2 + $0xa18] sm:$0xff]  ;;  %v11275_v41 = vcombine.low %v4648_v32, %v4652_v9 }
 0x5d5   :  { %7904 = vmatpush2.bf16.msra.mxu0 %v11187_v61  ;;  %7945 = vmatpush2.bf16.msra.mxu1 %v11315_v0  ;;  %v4516_v48 = vld [vmem:[#allocation2 + $0xa38] sm:$0xff]  ;;  %v4730_v0 = vrot.slane %v12342_v59, %v12124_v33 }
 0x5d6   :  { %7905 = vmatprep.subr.bf16.mxu0 %v11180_v4  ;;  %7946 = vmatprep.subr.bf16.mxu1 %v11308_v13  ;;  %v4640_v49 = vld [vmem:[#allocation2 + $0xe18] sm:$0xff]  ;;  %v11140_v51 = vcombine.high %v4512_v16, %v4516_v48  ;;  %v11139_v53 = vcombine.low %v4512_v16, %v4516_v48  ;;  %v4734_v4 = vrot.slane %v12342_v59, %v12131_v40 }
 0x5d7   :  { %v4644_v50 = vld [vmem:[#allocation2 + $0xe38] sm:$0xff] }
 0x5d8   :  { %v11268_v52 = vcombine.high %v4640_v49, %v4644_v50  ;;  %v11267_v61 = vcombine.low %v4640_v49, %v4644_v50 }
 0x5d9   :  { %7906 = vmatpush2.bf16.msra.mxu0 %v11179_v54  ;;  %7947 = vmatpush2.bf16.msra.mxu1 %v11307_v8 }
 0x5da   :  { %7907 = vmatprep.subr.bf16.mxu0 %v11172_v29  ;;  %7948 = vmatprep.subr.bf16.mxu1 %v11300_v58 }
 0x5dd   :  { %7908 = vmatpush2.bf16.msra.mxu0 %v11171_v60  ;;  %7949 = vmatpush2.bf16.msra.mxu1 %v11299_v1 }
 0x5de   :  { %7909 = vmatprep.subr.bf16.mxu0 %v11164_v39  ;;  %7950 = vmatprep.subr.bf16.mxu1 %v11292_v42 }
 0x5e1   :  { %7910 = vmatpush2.bf16.msra.mxu0 %v11163_v18  ;;  %7951 = vmatpush2.bf16.msra.mxu1 %v11291_v11 }
 0x5e2   :  { %7911 = vmatprep.subr.bf16.mxu0 %v11156_v63  ;;  %7952 = vmatprep.subr.bf16.mxu1 %v11284_v3 }
 0x5e5   :  { %7912 = vmatpush2.bf16.msra.mxu0 %v11155_v15  ;;  %7953 = vmatpush2.bf16.msra.mxu1 %v11283_v17 }
 0x5e6   :  { %7913 = vmatprep.subr.bf16.mxu0 %v11148_v7  ;;  %7954 = vmatprep.subr.bf16.mxu1 %v11276_v55 }
 0x5e9   :  { %7914 = vmatpush2.bf16.msra.mxu0 %v11147_v45  ;;  %7955 = vmatpush2.bf16.msra.mxu1 %v11275_v41 }
 0x5ea   :  { %7915 = vmatprep.subr.bf16.mxu0 %v11140_v51  ;;  %7956 = vmatprep.subr.bf16.mxu1 %v11268_v52 }
 0x5ed   :  { %7916 = vmatpush2.bf16.msra.mxu0 %v11139_v53  ;;  %7957 = vmatpush2.bf16.msra.mxu1 %v11267_v61 }
 0x5f0   :  { %v7673_v13 = vpop.f32.mrf.mxu0  ;;  %7918 = vmatmul.mubr.bf16.vlgmr.msra.gmra.mxu0 %v12335_v57  ;;  %v7714_v62 = vpop.f32.mrf.mxu1  ;;  %7959 = vmatmul.mubr.bf16.vlgmr.msra.gmra.mxu1 %v12340_v19 }
 0x5f1   :  { %v7674_v56 = vadd.f32 %v7673_v13, %v4730_v0 }
 0x5f2   :  { %v7675_v12 = vpop.f32.mrf.mxu0  ;;  %v7716_v8 = vpop.f32.mrf.mxu1 }
 0x5f3   :  { %v7715_v27 = vadd.f32 %v7714_v62, %v7674_v56  ;;  %v7676_v54 = vadd.f32 %v7675_v12, %v4734_v4 }
 0x5f4   :  { %v7677_v29 = vpop.f32.mrf.mxu0  ;;  %v7718_v5 = vpop.f32.mrf.mxu1 }
 0x5f5   :  { %v7717_v58 = vadd.f32 %v7716_v8, %v7676_v54 }
 0x5f6   :  { %v7678_v26 = vpop.f32.mrf.mxu0  ;;  %v7719_v33 = vpop.f32.mrf.mxu1 }
 0x630   :  { %v7755_v30 = vpop.f32.mrf.mxu0  ;;  %v7796_v57 = vpop.f32.mrf.mxu1 }
 0x631   :  { %v7756_v40 = vadd.f32 %v7755_v30, %v7715_v27 }
 0x632   :  { %v7757_v47 = vpop.f32.mrf.mxu0  ;;  %v7798_v1 = vpop.f32.mrf.mxu1 }
 0x633   :  { %v12412_v60 = vadd.f32 %v7796_v57, %v7756_v40  ;;  %v7758_v19 = vadd.f32 %v7757_v47, %v7717_v58 }
 0x634   :  { %v7759_v39 = vpop.f32.mrf.mxu0  ;;  %v7800_v38 = vpop.f32.mrf.mxu1 }
 0x635   :  { %v7971_v42 = vmax.f32 %v12412_v60, 0.0  ;;  %v12415_v2 = vadd.f32 %v7798_v1, %v7758_v19 }
 0x636   :  { %v7760_v21 = vpop.f32.mrf.mxu0  ;;  %v7801_v18 = vpop.f32.mrf.mxu1 }
 0x637   :  { %v7972_v35 = vmax.f32 %v12415_v2, 0.0 }
 0x638   :  { %11893 = shalt.err (!%p11890_p10)  }
 0x639   :  { %s11947_s25 = smov 64   ;;  %s11948_s12 = smov 4   ;;  %v4738_v17 = vrot.slane %v12342_v59, %v12128_v36  ;;  %v4742_v7 = vrot.slane %v12342_v59, %v12134_v44 }
 0x63a   :  { %7979 = dma.hbm_to_vmem [thread:$0]  %s12523_s9, 4096, %s12013_s23, [#allocation4], %s11947_s25, %s11945_s13, %s11948_s12 }
 0x670   :  { %v7837_v11 = vpop.f32.mrf.mxu0  ;;  %v7878_v63 = vpop.f32.mrf.mxu1 }
 0x671   :  { %v7838_v55 = vadd.f32 %v7837_v11, %v4738_v17 }
 0x672   :  { %v7839_v3 = vpop.f32.mrf.mxu0  ;;  %v7880_v20 = vpop.f32.mrf.mxu1 }
 0x673   :  { %v7840_v16 = vadd.f32 %v7839_v3, %v4742_v7  ;;  %v7879_v48 = vadd.f32 %v7878_v63, %v7838_v55 }
 0x674   :  { %v7841_v31 = vpop.f32.mrf.mxu0  ;;  %v7882_v32 = vpop.f32.mrf.mxu1 }
 0x675   :  { %v7881_v50 = vadd.f32 %v7880_v20, %v7840_v16 }
 0x676   :  { %v7842_v9 = vpop.f32.mrf.mxu0  ;;  %v7883_v15 = vpop.f32.mrf.mxu1 }
 0x6b0   :  { %v7919_v49 = vpop.f32.mrf.mxu0  ;;  %v7960_v41 = vpop.f32.mrf.mxu1 }
 0x6b1   :  { %v7920_v45 = vadd.f32 %v7919_v49, %v7879_v48 }
 0x6b2   :  { %v7921_v51 = vpop.f32.mrf.mxu0  ;;  %v7962_v61 = vpop.f32.mrf.mxu1 }
 0x6b3   :  { %v12433_v52 = vadd.f32 %v7960_v41, %v7920_v45  ;;  %v7922_v53 = vadd.f32 %v7921_v51, %v7881_v50 }
 0x6b4   :  { %v7923_v0 = vpop.f32.mrf.mxu0  ;;  %v7964_v36 = vpop.f32.mrf.mxu1 }
 0x6b5   :  { %v7973_v4 = vmax.f32 %v12433_v52, 0.0  ;;  %v12436_v13 = vadd.f32 %v7962_v61, %v7922_v53 }
 0x6b6   :  { %v7924_v56 = vpop.f32.mrf.mxu0  ;;  %v7965_v59 = vpop.f32.mrf.mxu1 }
 0x6b7   :  { %v7974_v44 = vmax.f32 %v12436_v13, 0.0 }
 0x6b8   :  { %11928 = dma.done.wait [#allocation4 + $0x1], 32768 }
 0x6b9   :  { %11929 = vsyncadd [#allocation4 + $0x1], 4294934528 }
 0x6ba   :  { %11930 = dma.done.wait [#allocation5 + $0x1], 128 }
 0x6bb   :  { %11931 = vsyncadd [#allocation5 + $0x1], 4294967168  ;;  %v12442_v62 = vpack.c.bf16 %v7968_v6, %v7968_v6  ;;  %v12447_v12 = vpack.c.bf16 %v7970_v37, %v7970_v37  ;;  %v8024_v27 = vld [vmem:[#allocation2 + $0x11c0] sm:$0xff]  ;;  %v8019_v60 = vld [vmem:[#allocation2 + $0x1168] sm:$0xff] }
 0x6bc   :  { %v8026_v54 = vld [vmem:[#allocation2 + $0x11e0] sm:$0xff] }
 0x6bd   :  { %9594 = vmatprep.mubr.bf16.mxu0 %v12442_v62  ;;  %9635 = vmatprep.mubr.bf16.mxu1 %v12447_v12  ;;  %v8088_v8 = vld [vmem:[#allocation2 + $0x15c0] sm:$0xff]  ;;  %v11354_v29 = vcombine.high %v8024_v27, %v8026_v54  ;;  %v11353_v5 = vcombine.low %v8024_v27, %v8026_v54 }
 0x6be   :  { %v8090_v58 = vld [vmem:[#allocation2 + $0x15e0] sm:$0xff] }
 0x6bf   :  { %v8020_v26 = vld [vmem:[#allocation2 + $0x1180] sm:$0xff]  ;;  %v11418_v33 = vcombine.high %v8088_v8, %v8090_v58  ;;  %v11417_v6 = vcombine.low %v8088_v8, %v8090_v58  ;;  %9562 = vmatprep.subr.bf16.mxu0 %v11354_v29 }
 0x6c0   :  { %v8022_v34 = vld [vmem:[#allocation2 + $0x11a0] sm:$0xff]  ;;  %9563 = vmatpush1.bf16.msra.mxu0 %v11353_v5 }
 0x6c1   :  { %v11350_v30 = vcombine.high %v8020_v26, %v8022_v34  ;;  %v8084_v40 = vld [vmem:[#allocation2 + $0x1580] sm:$0xff]  ;;  %9603 = vmatprep.subr.bf16.mxu1 %v11418_v33  ;;  %v11349_v39 = vcombine.low %v8020_v26, %v8022_v34 }
 0x6c2   :  { %v8086_v14 = vld [vmem:[#allocation2 + $0x15a0] sm:$0xff]  ;;  %9604 = vmatpush1.bf16.msra.mxu1 %v11417_v6 }
 0x6c3   :  { %v8016_v57 = vld [vmem:[#allocation2 + $0x1140] sm:$0xff]  ;;  %v11414_v37 = vcombine.high %v8084_v40, %v8086_v14  ;;  %9564 = vmatprep.subr.bf16.mxu0 %v11350_v30  ;;  %v11413_v38 = vcombine.low %v8084_v40, %v8086_v14 }
 0x6c4   :  { %v8018_v47 = vld [vmem:[#allocation2 + $0x1160] sm:$0xff]  ;;  %9565 = vmatpush1.bf16.msra.mxu0 %v11349_v39 }
 0x6c5   :  { %v8080_v19 = vld [vmem:[#allocation2 + $0x1540] sm:$0xff]  ;;  %v11346_v21 = vcombine.high %v8016_v57, %v8018_v47  ;;  %9605 = vmatprep.subr.bf16.mxu1 %v11414_v37  ;;  %v11345_v31 = vcombine.low %v8016_v57, %v8018_v47 }
 0x6c6   :  { %v8082_v1 = vld [vmem:[#allocation2 + $0x1560] sm:$0xff]  ;;  %9606 = vmatpush1.bf16.msra.mxu1 %v11413_v38 }
 0x6c7   :  { %v11410_v18 = vcombine.high %v8080_v19, %v8082_v1  ;;  %v8012_v11 = vld [vmem:[#allocation2 + $0x1100] sm:$0xff]  ;;  %9566 = vmatprep.subr.bf16.mxu0 %v11346_v21  ;;  %v11409_v32 = vcombine.low %v8080_v19, %v8082_v1 }
 0x6c8   :  { %v8014_v63 = vld [vmem:[#allocation2 + $0x1120] sm:$0xff]  ;;  %9567 = vmatpush1.bf16.msra.mxu0 %v11345_v31 }
 0x6c9   :  { %v8076_v3 = vld [vmem:[#allocation2 + $0x1500] sm:$0xff]  ;;  %v11342_v9 = vcombine.high %v8012_v11, %v8014_v63  ;;  %9607 = vmatprep.subr.bf16.mxu1 %v11410_v18  ;;  %v11341_v48 = vcombine.low %v8012_v11, %v8014_v63 }
 0x6ca   :  { %v8078_v20 = vld [vmem:[#allocation2 + $0x1520] sm:$0xff]  ;;  %9608 = vmatpush1.bf16.msra.mxu1 %v11409_v32 }
 0x6cb   :  { %v11406_v15 = vcombine.high %v8076_v3, %v8078_v20  ;;  %v8008_v17 = vld [vmem:[#allocation2 + $0x10c0] sm:$0xff]  ;;  %9568 = vmatprep.subr.bf16.mxu0 %v11342_v9  ;;  %v11405_v49 = vcombine.low %v8076_v3, %v8078_v20 }
 0x6cc   :  { %v8010_v7 = vld [vmem:[#allocation2 + $0x10e0] sm:$0xff]  ;;  %9569 = vmatpush1.bf16.msra.mxu0 %v11341_v48 }
 0x6cd   :  { %v8072_v55 = vld [vmem:[#allocation2 + $0x14c0] sm:$0xff]  ;;  %v11338_v50 = vcombine.high %v8008_v17, %v8010_v7  ;;  %9609 = vmatprep.subr.bf16.mxu1 %v11406_v15  ;;  %v11337_v0 = vcombine.low %v8008_v17, %v8010_v7 }
 0x6ce   :  { %v8074_v16 = vld [vmem:[#allocation2 + $0x14e0] sm:$0xff]  ;;  %9610 = vmatpush1.bf16.msra.mxu1 %v11405_v49 }
 0x6cf   :  { %v11402_v45 = vcombine.high %v8072_v55, %v8074_v16  ;;  %v8004_v41 = vld [vmem:[#allocation2 + $0x1080] sm:$0xff]  ;;  %9570 = vmatprep.subr.bf16.mxu0 %v11338_v50  ;;  %v11401_v36 = vcombine.low %v8072_v55, %v8074_v16 }
 0x6d0   :  { %v8006_v51 = vld [vmem:[#allocation2 + $0x10a0] sm:$0xff]  ;;  %9571 = vmatpush1.bf16.msra.mxu0 %v11337_v0 }
 0x6d1   :  { %v8068_v53 = vld [vmem:[#allocation2 + $0x1480] sm:$0xff]  ;;  %v11334_v56 = vcombine.high %v8004_v41, %v8006_v51  ;;  %9611 = vmatprep.subr.bf16.mxu1 %v11402_v45  ;;  %v11333_v58 = vcombine.low %v8004_v41, %v8006_v51 }
 0x6d2   :  { %v8070_v61 = vld [vmem:[#allocation2 + $0x14a0] sm:$0xff]  ;;  %9612 = vmatpush1.bf16.msra.mxu1 %v11401_v36 }
 0x6d3   :  { %v11398_v59 = vcombine.high %v8068_v53, %v8070_v61  ;;  %v8000_v27 = vld [vmem:[#allocation2 + $0x1040] sm:$0xff]  ;;  %9572 = vmatprep.subr.bf16.mxu0 %v11334_v56  ;;  %v11397_v5 = vcombine.low %v8068_v53, %v8070_v61 }
 0x6d4   :  { %v8002_v54 = vld [vmem:[#allocation2 + $0x1060] sm:$0xff]  ;;  %9573 = vmatpush1.bf16.msra.mxu0 %v11333_v58 }
 0x6d5   :  { %v8064_v8 = vld [vmem:[#allocation2 + $0x1440] sm:$0xff]  ;;  %v11330_v26 = vcombine.high %v8000_v27, %v8002_v54  ;;  %9613 = vmatprep.subr.bf16.mxu1 %v11398_v59  ;;  %v11329_v14 = vcombine.low %v8000_v27, %v8002_v54 }
 0x6d6   :  { %v8066_v29 = vld [vmem:[#allocation2 + $0x1460] sm:$0xff]  ;;  %9614 = vmatpush1.bf16.msra.mxu1 %v11397_v5 }
 0x6d7   :  { %v11394_v34 = vcombine.high %v8064_v8, %v8066_v29  ;;  %v7996_v33 = vld [vmem:[#allocation2 + $0x1000] sm:$0xff]  ;;  %9574 = vmatprep.subr.bf16.mxu0 %v11330_v26  ;;  %v11393_v57 = vcombine.low %v8064_v8, %v8066_v29 }
 0x6d8   :  { %v7998_v6 = vld [vmem:[#allocation2 + $0x1020] sm:$0xff]  ;;  %9575 = vmatpush1.bf16.msra.mxu0 %v11329_v14 }
 0x6d9   :  { %v8060_v30 = vld [vmem:[#allocation2 + $0x1400] sm:$0xff]  ;;  %v11326_v37 = vcombine.high %v7996_v33, %v7998_v6  ;;  %9615 = vmatprep.subr.bf16.mxu1 %v11394_v34  ;;  %v11325_v21 = vcombine.low %v7996_v33, %v7998_v6 }
 0x6da   :  { %v8062_v40 = vld [vmem:[#allocation2 + $0x1420] sm:$0xff]  ;;  %9616 = vmatpush1.bf16.msra.mxu1 %v11393_v57 }
 0x6db   :  { %v11390_v47 = vcombine.high %v8060_v30, %v8062_v40  ;;  %v8056_v19 = vld [vmem:[#allocation2 + $0x13c0] sm:$0xff]  ;;  %9576 = vmatprep.subr.bf16.mxu0 %v11326_v37  ;;  %v11389_v18 = vcombine.low %v8060_v30, %v8062_v40 }
 0x6dc   :  { %v8058_v1 = vld [vmem:[#allocation2 + $0x13e0] sm:$0xff]  ;;  %9577 = vmatpush1.bf16.msra.mxu0 %v11325_v21 }
 0x6dd   :  { %v8120_v39 = vld [vmem:[#allocation2 + $0x17c0] sm:$0xff]  ;;  %v11386_v11 = vcombine.high %v8056_v19, %v8058_v1  ;;  %9617 = vmatprep.subr.bf16.mxu1 %v11390_v47  ;;  %v11385_v9 = vcombine.low %v8056_v19, %v8058_v1 }
 0x6de   :  { %v8122_v38 = vld [vmem:[#allocation2 + $0x17e0] sm:$0xff]  ;;  %9618 = vmatpush1.bf16.msra.mxu1 %v11389_v18 }
 0x6df   :  { %v11450_v63 = vcombine.high %v8120_v39, %v8122_v38  ;;  %v8052_v3 = vld [vmem:[#allocation2 + $0x1380] sm:$0xff]  ;;  %9578 = vmatprep.subr.bf16.mxu0 %v11386_v11  ;;  %v11449_v15 = vcombine.low %v8120_v39, %v8122_v38 }
 0x6e0   :  { %v8054_v20 = vld [vmem:[#allocation2 + $0x13a0] sm:$0xff]  ;;  %9579 = vmatpush2.bf16.msra.mxu0 %v11385_v9 }
 0x6e1   :  { %v8116_v31 = vld [vmem:[#allocation2 + $0x1780] sm:$0xff]  ;;  %v11382_v17 = vcombine.high %v8052_v3, %v8054_v20  ;;  %9619 = vmatprep.subr.bf16.mxu1 %v11450_v63  ;;  %v11381_v50 = vcombine.low %v8052_v3, %v8054_v20 }
 0x6e2   :  { %v8118_v32 = vld [vmem:[#allocation2 + $0x17a0] sm:$0xff]  ;;  %9620 = vmatpush2.bf16.msra.mxu1 %v11449_v15 }
 0x6e3   :  { %v11446_v7 = vcombine.high %v8116_v31, %v8118_v32  ;;  %v8048_v55 = vld [vmem:[#allocation2 + $0x1340] sm:$0xff]  ;;  %9580 = vmatprep.subr.bf16.mxu0 %v11382_v17  ;;  %v11445_v45 = vcombine.low %v8116_v31, %v8118_v32 }
 0x6e4   :  { %v8050_v16 = vld [vmem:[#allocation2 + $0x1360] sm:$0xff]  ;;  %9581 = vmatpush2.bf16.msra.mxu0 %v11381_v50 }
 0x6e5   :  { %v8112_v48 = vld [vmem:[#allocation2 + $0x1740] sm:$0xff]  ;;  %v11378_v41 = vcombine.high %v8048_v55, %v8050_v16  ;;  %9621 = vmatprep.subr.bf16.mxu1 %v11446_v7  ;;  %v11377_v56 = vcombine.low %v8048_v55, %v8050_v16 }
 0x6e6   :  { %v8114_v49 = vld [vmem:[#allocation2 + $0x1760] sm:$0xff]  ;;  %9622 = vmatpush2.bf16.msra.mxu1 %v11445_v45 }
 0x6e7   :  { %v11442_v51 = vcombine.high %v8112_v48, %v8114_v49  ;;  %v8044_v53 = vld [vmem:[#allocation2 + $0x1300] sm:$0xff]  ;;  %9582 = vmatprep.subr.bf16.mxu0 %v11378_v41  ;;  %v11441_v59 = vcombine.low %v8112_v48, %v8114_v49 }
 0x6e8   :  { %v8046_v61 = vld [vmem:[#allocation2 + $0x1320] sm:$0xff]  ;;  %9583 = vmatpush2.bf16.msra.mxu0 %v11377_v56  ;;  %v12454_v56 = vpack.c.bf16 %v7967_v28, %v7967_v28  ;;  %v12464_v28 = vpack.c.bf16 %v7972_v35, %v7972_v35 }
 0x6e9   :  { %v8108_v0 = vld [vmem:[#allocation2 + $0x1700] sm:$0xff]  ;;  %v11374_v27 = vcombine.high %v8044_v53, %v8046_v61  ;;  %9623 = vmatprep.subr.bf16.mxu1 %v11442_v51  ;;  %v11373_v26 = vcombine.low %v8044_v53, %v8046_v61 }
 0x6ea   :  { %v8110_v36 = vld [vmem:[#allocation2 + $0x1720] sm:$0xff]  ;;  %9624 = vmatpush2.bf16.msra.mxu1 %v11441_v59 }
 0x6eb   :  { %v11438_v54 = vcombine.high %v8108_v0, %v8110_v36  ;;  %v8040_v8 = vld [vmem:[#allocation2 + $0x12c0] sm:$0xff]  ;;  %9584 = vmatprep.subr.bf16.mxu0 %v11374_v27  ;;  %v11437_v34 = vcombine.low %v8108_v0, %v8110_v36 }
 0x6ec   :  { %v8042_v29 = vld [vmem:[#allocation2 + $0x12e0] sm:$0xff]  ;;  %9585 = vmatpush2.bf16.msra.mxu0 %v11373_v26 }
 0x6ed   :  { %v8104_v58 = vld [vmem:[#allocation2 + $0x16c0] sm:$0xff]  ;;  %v11370_v33 = vcombine.high %v8040_v8, %v8042_v29  ;;  %9625 = vmatprep.subr.bf16.mxu1 %v11438_v54  ;;  %v11369_v37 = vcombine.low %v8040_v8, %v8042_v29  ;;  %v12459_v54 = vpack.c.bf16 %v7969_v46, %v7969_v46  ;;  %v12470_v46 = vpack.c.bf16 %v7974_v44, %v7974_v44 }
 0x6ee   :  { %v8106_v5 = vld [vmem:[#allocation2 + $0x16e0] sm:$0xff]  ;;  %9626 = vmatpush2.bf16.msra.mxu1 %v11437_v34 }
 0x6ef   :  { %v11434_v6 = vcombine.high %v8104_v58, %v8106_v5  ;;  %v8036_v30 = vld [vmem:[#allocation2 + $0x1280] sm:$0xff]  ;;  %9586 = vmatprep.subr.bf16.mxu0 %v11370_v33  ;;  %v11433_v47 = vcombine.low %v8104_v58, %v8106_v5 }
 0x6f0   :  { %v8038_v40 = vld [vmem:[#allocation2 + $0x12a0] sm:$0xff]  ;;  %9587 = vmatpush2.bf16.msra.mxu0 %v11369_v37 }
 0x6f1   :  { %v8100_v14 = vld [vmem:[#allocation2 + $0x1680] sm:$0xff]  ;;  %v11366_v19 = vcombine.high %v8036_v30, %v8038_v40  ;;  %9627 = vmatprep.subr.bf16.mxu1 %v11434_v6  ;;  %v11365_v11 = vcombine.low %v8036_v30, %v8038_v40 }
 0x6f2   :  { %v8102_v57 = vld [vmem:[#allocation2 + $0x16a0] sm:$0xff]  ;;  %9628 = vmatpush2.bf16.msra.mxu1 %v11433_v47 }
 0x6f3   :  { %v11430_v1 = vcombine.high %v8100_v14, %v8102_v57  ;;  %v8032_v39 = vld [vmem:[#allocation2 + $0x1240] sm:$0xff]  ;;  %9588 = vmatprep.subr.bf16.mxu0 %v11366_v19  ;;  %v11429_v63 = vcombine.low %v8100_v14, %v8102_v57 }
 0x6f4   :  { %v8034_v38 = vld [vmem:[#allocation2 + $0x1260] sm:$0xff]  ;;  %9589 = vmatpush2.bf16.msra.mxu0 %v11365_v11 }
 0x6f5   :  { %v8096_v21 = vld [vmem:[#allocation2 + $0x1640] sm:$0xff]  ;;  %v11362_v3 = vcombine.high %v8032_v39, %v8034_v38  ;;  %9629 = vmatprep.subr.bf16.mxu1 %v11430_v1  ;;  %v11361_v17 = vcombine.low %v8032_v39, %v8034_v38 }
 0x6f6   :  { %v8098_v18 = vld [vmem:[#allocation2 + $0x1660] sm:$0xff]  ;;  %9630 = vmatpush2.bf16.msra.mxu1 %v11429_v63 }
 0x6f7   :  { %v11426_v20 = vcombine.high %v8096_v21, %v8098_v18  ;;  %v8028_v31 = vld [vmem:[#allocation2 + $0x1200] sm:$0xff]  ;;  %9590 = vmatprep.subr.bf16.mxu0 %v11362_v3  ;;  %v11425_v7 = vcombine.low %v8096_v21, %v8098_v18 }
 0x6f8   :  { %v8030_v32 = vld [vmem:[#allocation2 + $0x1220] sm:$0xff]  ;;  %9591 = vmatpush2.bf16.msra.mxu0 %v11361_v17 }
 0x6f9   :  { %v8092_v9 = vld [vmem:[#allocation2 + $0x1600] sm:$0xff]  ;;  %v11358_v55 = vcombine.high %v8028_v31, %v8030_v32  ;;  %9631 = vmatprep.subr.bf16.mxu1 %v11426_v20  ;;  %v11357_v41 = vcombine.low %v8028_v31, %v8030_v32 }
 0x6fa   :  { %v8094_v15 = vld [vmem:[#allocation2 + $0x1620] sm:$0xff]  ;;  %9632 = vmatpush2.bf16.msra.mxu1 %v11425_v7 }
 0x6fb   :  { %v11422_v16 = vcombine.high %v8092_v9, %v8094_v15  ;;  %v8152_v48 = vld [vmem:[#allocation2 + $0x19c0] sm:$0xff]  ;;  %9592 = vmatprep.subr.bf16.mxu0 %v11358_v55  ;;  %v11421_v51 = vcombine.low %v8092_v9, %v8094_v15 }
 0x6fc   :  { %v8154_v49 = vld [vmem:[#allocation2 + $0x19e0] sm:$0xff]  ;;  %9593 = vmatpush2.bf16.msra.mxu0 %v11357_v41 }
 0x6fd   :  { %v8216_v50 = vld [vmem:[#allocation2 + $0x1dc0] sm:$0xff]  ;;  %v11482_v53 = vcombine.high %v8152_v48, %v8154_v49  ;;  %9633 = vmatprep.subr.bf16.mxu1 %v11422_v16  ;;  %v11481_v8 = vcombine.low %v8152_v48, %v8154_v49 }
 0x6fe   :  { %v8218_v45 = vld [vmem:[#allocation2 + $0x1de0] sm:$0xff]  ;;  %9634 = vmatpush2.bf16.msra.mxu1 %v11421_v51 }
 0x6ff   :  { %v11546_v61 = vcombine.high %v8216_v50, %v8218_v45  ;;  %v8148_v0 = vld [vmem:[#allocation2 + $0x1980] sm:$0xff]  ;;  %9644 = vmatprep.subr.bf16.mxu0 %v11482_v53  ;;  %v11545_v29 = vcombine.low %v8216_v50, %v8218_v45  ;;  %9595 = vmatmul.mubr.bf16.vlgmr.msra.gmra.mxu0 %v12454_v56 }
 0x700   :  { %v8150_v36 = vld [vmem:[#allocation2 + $0x19a0] sm:$0xff]  ;;  %9645 = vmatpush1.bf16.msra.mxu0 %v11481_v8  ;;  %9676 = vmatprep.mubr.bf16.mxu0 %v12464_v28 }
 0x701   :  { %v8212_v59 = vld [vmem:[#allocation2 + $0x1d80] sm:$0xff]  ;;  %v11478_v58 = vcombine.high %v8148_v0, %v8150_v36  ;;  %9685 = vmatprep.subr.bf16.mxu1 %v11546_v61  ;;  %9636 = vmatmul.mubr.bf16.vlgmr.msra.gmra.mxu1 %v12459_v54  ;;  %v11477_v33 = vcombine.low %v8148_v0, %v8150_v36 }
 0x702   :  { %v8214_v27 = vld [vmem:[#allocation2 + $0x1da0] sm:$0xff]  ;;  %9686 = vmatpush1.bf16.msra.mxu1 %v11545_v29  ;;  %9717 = vmatprep.mubr.bf16.mxu1 %v12470_v46 }
 0x703   :  { %v11542_v5 = vcombine.high %v8212_v59, %v8214_v27  ;;  %v8144_v26 = vld [vmem:[#allocation2 + $0x1940] sm:$0xff]  ;;  %9646 = vmatprep.subr.bf16.mxu0 %v11478_v58  ;;  %v11541_v6 = vcombine.low %v8212_v59, %v8214_v27 }
 0x704   :  { %v8146_v10 = vld [vmem:[#allocation2 + $0x1960] sm:$0xff]  ;;  %9647 = vmatpush1.bf16.msra.mxu0 %v11477_v33 }
 0x705   :  { %v8208_v43 = vld [vmem:[#allocation2 + $0x1d40] sm:$0xff]  ;;  %v11474_v2 = vcombine.high %v8144_v26, %v8146_v10  ;;  %9687 = vmatprep.subr.bf16.mxu1 %v11542_v5  ;;  %v11473_v13 = vcombine.low %v8144_v26, %v8146_v10 }
 0x706   :  { %v8210_v34 = vld [vmem:[#allocation2 + $0x1d60] sm:$0xff]  ;;  %9688 = vmatpush1.bf16.msra.mxu1 %v11541_v6 }
 0x707   :  { %v11538_v35 = vcombine.high %v8208_v43, %v8210_v34  ;;  %v8140_v30 = vld [vmem:[#allocation2 + $0x1900] sm:$0xff]  ;;  %9648 = vmatprep.subr.bf16.mxu0 %v11474_v2  ;;  %v11537_v44 = vcombine.low %v8208_v43, %v8210_v34 }
 0x708   :  { %v8142_v40 = vld [vmem:[#allocation2 + $0x1920] sm:$0xff]  ;;  %9649 = vmatpush1.bf16.msra.mxu0 %v11473_v13 }
 0x709   :  { %v8204_v14 = vld [vmem:[#allocation2 + $0x1d00] sm:$0xff]  ;;  %v11470_v37 = vcombine.high %v8140_v30, %v8142_v40  ;;  %9689 = vmatprep.subr.bf16.mxu1 %v11538_v35  ;;  %v11469_v21 = vcombine.low %v8140_v30, %v8142_v40 }
 0x70a   :  { %v8206_v57 = vld [vmem:[#allocation2 + $0x1d20] sm:$0xff]  ;;  %9690 = vmatpush1.bf16.msra.mxu1 %v11537_v44 }
 0x70b   :  { %v11534_v47 = vcombine.high %v8204_v14, %v8206_v57  ;;  %v8136_v19 = vld [vmem:[#allocation2 + $0x18c0] sm:$0xff]  ;;  %9650 = vmatprep.subr.bf16.mxu0 %v11470_v37  ;;  %v11533_v18 = vcombine.low %v8204_v14, %v8206_v57 }
 0x70c   :  { %v8138_v1 = vld [vmem:[#allocation2 + $0x18e0] sm:$0xff]  ;;  %9651 = vmatpush1.bf16.msra.mxu0 %v11469_v21 }
 0x70d   :  { %v8200_v39 = vld [vmem:[#allocation2 + $0x1cc0] sm:$0xff]  ;;  %v11466_v11 = vcombine.high %v8136_v19, %v8138_v1  ;;  %9691 = vmatprep.subr.bf16.mxu1 %v11534_v47  ;;  %v11465_v9 = vcombine.low %v8136_v19, %v8138_v1 }
 0x70e   :  { %v8202_v38 = vld [vmem:[#allocation2 + $0x1ce0] sm:$0xff]  ;;  %9692 = vmatpush1.bf16.msra.mxu1 %v11533_v18 }
 0x70f   :  { %v11530_v63 = vcombine.high %v8200_v39, %v8202_v38  ;;  %v8132_v3 = vld [vmem:[#allocation2 + $0x1880] sm:$0xff]  ;;  %9652 = vmatprep.subr.bf16.mxu0 %v11466_v11  ;;  %v11529_v15 = vcombine.low %v8200_v39, %v8202_v38 }
 0x710   :  { %v8134_v20 = vld [vmem:[#allocation2 + $0x18a0] sm:$0xff]  ;;  %9653 = vmatpush1.bf16.msra.mxu0 %v11465_v9 }
 0x711   :  { %v8196_v31 = vld [vmem:[#allocation2 + $0x1c80] sm:$0xff]  ;;  %v11462_v17 = vcombine.high %v8132_v3, %v8134_v20  ;;  %9693 = vmatprep.subr.bf16.mxu1 %v11530_v63  ;;  %v11461_v50 = vcombine.low %v8132_v3, %v8134_v20 }
 0x712   :  { %v8198_v32 = vld [vmem:[#allocation2 + $0x1ca0] sm:$0xff]  ;;  %9694 = vmatpush1.bf16.msra.mxu1 %v11529_v15 }
 0x713   :  { %v11526_v7 = vcombine.high %v8196_v31, %v8198_v32  ;;  %v8128_v55 = vld [vmem:[#allocation2 + $0x1840] sm:$0xff]  ;;  %9654 = vmatprep.subr.bf16.mxu0 %v11462_v17  ;;  %v11525_v45 = vcombine.low %v8196_v31, %v8198_v32 }
 0x714   :  { %v8130_v16 = vld [vmem:[#allocation2 + $0x1860] sm:$0xff]  ;;  %9655 = vmatpush1.bf16.msra.mxu0 %v11461_v50 }
 0x715   :  { %v8192_v48 = vld [vmem:[#allocation2 + $0x1c40] sm:$0xff]  ;;  %v11458_v41 = vcombine.high %v8128_v55, %v8130_v16  ;;  %9695 = vmatprep.subr.bf16.mxu1 %v11526_v7  ;;  %v11457_v59 = vcombine.low %v8128_v55, %v8130_v16 }
 0x716   :  { %v8194_v49 = vld [vmem:[#allocation2 + $0x1c60] sm:$0xff]  ;;  %9696 = vmatpush1.bf16.msra.mxu1 %v11525_v45 }
 0x717   :  { %v11522_v51 = vcombine.high %v8192_v48, %v8194_v49  ;;  %v8124_v53 = vld [vmem:[#allocation2 + $0x1800] sm:$0xff]  ;;  %9656 = vmatprep.subr.bf16.mxu0 %v11458_v41  ;;  %v11521_v27 = vcombine.low %v8192_v48, %v8194_v49 }
 0x718   :  { %v8126_v61 = vld [vmem:[#allocation2 + $0x1820] sm:$0xff]  ;;  %9657 = vmatpush1.bf16.msra.mxu0 %v11457_v59 }
 0x719   :  { %v8188_v0 = vld [vmem:[#allocation2 + $0x1c00] sm:$0xff]  ;;  %v11454_v8 = vcombine.high %v8124_v53, %v8126_v61  ;;  %9697 = vmatprep.subr.bf16.mxu1 %v11522_v51  ;;  %v11453_v43 = vcombine.low %v8124_v53, %v8126_v61 }
 0x71a   :  { %v8190_v36 = vld [vmem:[#allocation2 + $0x1c20] sm:$0xff]  ;;  %9698 = vmatpush1.bf16.msra.mxu1 %v11521_v27 }
 0x71b   :  { %v11518_v29 = vcombine.high %v8188_v0, %v8190_v36  ;;  %v8184_v58 = vld [vmem:[#allocation2 + $0x1bc0] sm:$0xff]  ;;  %9658 = vmatprep.subr.bf16.mxu0 %v11454_v8  ;;  %v11517_v34 = vcombine.low %v8188_v0, %v8190_v36 }
 0x71c   :  { %v8186_v5 = vld [vmem:[#allocation2 + $0x1be0] sm:$0xff]  ;;  %9659 = vmatpush1.bf16.msra.mxu0 %v11453_v43 }
 0x71d   :  { %v8248_v26 = vld [vmem:[#allocation2 + $0x1fc0] sm:$0xff]  ;;  %v11514_v33 = vcombine.high %v8184_v58, %v8186_v5  ;;  %9699 = vmatprep.subr.bf16.mxu1 %v11518_v29  ;;  %v11513_v14 = vcombine.low %v8184_v58, %v8186_v5 }
 0x71e   :  { %v8250_v10 = vld [vmem:[#allocation2 + $0x1fe0] sm:$0xff]  ;;  %9700 = vmatpush1.bf16.msra.mxu1 %v11517_v34 }
 0x71f   :  { %v11578_v6 = vcombine.high %v8248_v26, %v8250_v10  ;;  %v8180_v2 = vld [vmem:[#allocation2 + $0x1b80] sm:$0xff]  ;;  %9660 = vmatprep.subr.bf16.mxu0 %v11514_v33  ;;  %v11577_v57 = vcombine.low %v8248_v26, %v8250_v10 }
 0x720   :  { %v8182_v35 = vld [vmem:[#allocation2 + $0x1ba0] sm:$0xff]  ;;  %9661 = vmatpush2.bf16.msra.mxu0 %v11513_v14 }
 0x721   :  { %v8244_v30 = vld [vmem:[#allocation2 + $0x1f80] sm:$0xff]  ;;  %v11510_v13 = vcombine.high %v8180_v2, %v8182_v35  ;;  %9701 = vmatprep.subr.bf16.mxu1 %v11578_v6  ;;  %v11509_v39 = vcombine.low %v8180_v2, %v8182_v35 }
 0x722   :  { %v8246_v40 = vld [vmem:[#allocation2 + $0x1fa0] sm:$0xff]  ;;  %9702 = vmatpush2.bf16.msra.mxu1 %v11577_v57 }
 0x723   :  { %v11574_v44 = vcombine.high %v8244_v30, %v8246_v40  ;;  %v8176_v37 = vld [vmem:[#allocation2 + $0x1b40] sm:$0xff]  ;;  %9662 = vmatprep.subr.bf16.mxu0 %v11510_v13  ;;  %v11573_v38 = vcombine.low %v8244_v30, %v8246_v40  ;;  %v8025_v13 = vld [vmem:[#allocation2 + $0x11c8] sm:$0xff] }
 0x724   :  { %v8178_v47 = vld [vmem:[#allocation2 + $0x1b60] sm:$0xff]  ;;  %9663 = vmatpush2.bf16.msra.mxu0 %v11509_v39 }
 0x725   :  { %v8240_v19 = vld [vmem:[#allocation2 + $0x1f40] sm:$0xff]  ;;  %v11506_v21 = vcombine.high %v8176_v37, %v8178_v47  ;;  %9703 = vmatprep.subr.bf16.mxu1 %v11574_v44  ;;  %v11505_v31 = vcombine.low %v8176_v37, %v8178_v47  ;;  %v8027_v44 = vld [vmem:[#allocation2 + $0x11e8] sm:$0xff] }
 0x726   :  { %v8242_v1 = vld [vmem:[#allocation2 + $0x1f60] sm:$0xff]  ;;  %9704 = vmatpush2.bf16.msra.mxu1 %v11573_v38  ;;  %v8089_v37 = vld [vmem:[#allocation2 + $0x15c8] sm:$0xff]  ;;  %v11356_v39 = vcombine.high %v8025_v13, %v8027_v44 }
 0x727   :  { %v11570_v18 = vcombine.high %v8240_v19, %v8242_v1  ;;  %v8172_v11 = vld [vmem:[#allocation2 + $0x1b00] sm:$0xff]  ;;  %9664 = vmatprep.subr.bf16.mxu0 %v11506_v21  ;;  %v11569_v32 = vcombine.low %v8240_v19, %v8242_v1  ;;  %v8091_v47 = vld [vmem:[#allocation2 + $0x15e8] sm:$0xff] }
 0x728   :  { %v8174_v63 = vld [vmem:[#allocation2 + $0x1b20] sm:$0xff]  ;;  %9665 = vmatpush2.bf16.msra.mxu0 %v11505_v31  ;;  %v11420_v38 = vcombine.high %v8089_v37, %v8091_v47  ;;  %v8021_v21 = vld [vmem:[#allocation2 + $0x1188] sm:$0xff]  ;;  %v11355_v31 = vcombine.low %v8025_v13, %v8027_v44 }
 0x729   :  { %v8236_v3 = vld [vmem:[#allocation2 + $0x1f00] sm:$0xff]  ;;  %v11502_v9 = vcombine.high %v8172_v11, %v8174_v63  ;;  %9705 = vmatprep.subr.bf16.mxu1 %v11570_v18  ;;  %v11501_v48 = vcombine.low %v8172_v11, %v8174_v63  ;;  %v8023_v18 = vld [vmem:[#allocation2 + $0x11a8] sm:$0xff]  ;;  %v12478_v11 = vpack.c.bf16 %v7971_v42, %v7971_v42 }
 0x72a   :  { %v8238_v20 = vld [vmem:[#allocation2 + $0x1f20] sm:$0xff]  ;;  %9706 = vmatpush2.bf16.msra.mxu1 %v11569_v32  ;;  %v8085_v63 = vld [vmem:[#allocation2 + $0x1588] sm:$0xff]  ;;  %v11419_v32 = vcombine.low %v8089_v37, %v8091_v47  ;;  %v11351_v52 = vcombine.low %v8021_v21, %v8023_v18 }
 0x72b   :  { %v11566_v15 = vcombine.high %v8236_v3, %v8238_v20  ;;  %v8168_v17 = vld [vmem:[#allocation2 + $0x1ac0] sm:$0xff]  ;;  %9666 = vmatprep.subr.bf16.mxu0 %v11502_v9  ;;  %v11565_v49 = vcombine.low %v8236_v3, %v8238_v20  ;;  %v8087_v3 = vld [vmem:[#allocation2 + $0x15a8] sm:$0xff]  ;;  %v12483_v20 = vpack.c.bf16 %v7973_v4, %v7973_v4  ;;  %v11352_v9 = vcombine.high %v8021_v21, %v8023_v18 }
 0x72c   :  { %v8170_v7 = vld [vmem:[#allocation2 + $0x1ae0] sm:$0xff]  ;;  %9667 = vmatpush2.bf16.msra.mxu0 %v11501_v48  ;;  %v8081_v42 = vld [vmem:[#allocation2 + $0x1548] sm:$0xff]  ;;  %v11415_v4 = vcombine.low %v8085_v63, %v8087_v3 }
 0x72d   :  { %v8232_v55 = vld [vmem:[#allocation2 + $0x1ec0] sm:$0xff]  ;;  %v11498_v50 = vcombine.high %v8168_v17, %v8170_v7  ;;  %9707 = vmatprep.subr.bf16.mxu1 %v11566_v15  ;;  %v11497_v0 = vcombine.low %v8168_v17, %v8170_v7  ;;  %v11416_v15 = vcombine.high %v8085_v63, %v8087_v3  ;;  %v8017_v17 = vld [vmem:[#allocation2 + $0x1148] sm:$0xff] }
 0x72e   :  { %v8234_v16 = vld [vmem:[#allocation2 + $0x1ee0] sm:$0xff]  ;;  %9708 = vmatpush2.bf16.msra.mxu1 %v11565_v49  ;;  %v8083_v7 = vld [vmem:[#allocation2 + $0x1568] sm:$0xff] }
 0x72f   :  { %v11562_v45 = vcombine.high %v8232_v55, %v8234_v16  ;;  %v8164_v41 = vld [vmem:[#allocation2 + $0x1a80] sm:$0xff]  ;;  %9668 = vmatprep.subr.bf16.mxu0 %v11498_v50  ;;  %v11561_v36 = vcombine.low %v8232_v55, %v8234_v16  ;;  %v11348_v55 = vcombine.high %v8017_v17, %v8019_v60  ;;  %v11412_v16 = vcombine.high %v8081_v42, %v8083_v7  ;;  %v8013_v48 = vld [vmem:[#allocation2 + $0x1108] sm:$0xff] }
 0x730   :  { %v8166_v51 = vld [vmem:[#allocation2 + $0x1aa0] sm:$0xff]  ;;  %9669 = vmatpush2.bf16.msra.mxu0 %v11497_v0  ;;  %v8015_v49 = vld [vmem:[#allocation2 + $0x1128] sm:$0xff] }
 0x731   :  { %v8228_v53 = vld [vmem:[#allocation2 + $0x1e80] sm:$0xff]  ;;  %v11494_v59 = vcombine.high %v8164_v41, %v8166_v51  ;;  %9709 = vmatprep.subr.bf16.mxu1 %v11562_v45  ;;  %v11493_v26 = vcombine.low %v8164_v41, %v8166_v51  ;;  %v8077_v50 = vld [vmem:[#allocation2 + $0x1508] sm:$0xff]  ;;  %v11347_v41 = vcombine.low %v8017_v17, %v8019_v60  ;;  %v11411_v51 = vcombine.low %v8081_v42, %v8083_v7 }
 0x732   :  { %v8230_v61 = vld [vmem:[#allocation2 + $0x1ea0] sm:$0xff]  ;;  %9710 = vmatpush2.bf16.msra.mxu1 %v11561_v36  ;;  %v8079_v45 = vld [vmem:[#allocation2 + $0x1528] sm:$0xff] }
 0x733   :  { %v11558_v27 = vcombine.high %v8228_v53, %v8230_v61  ;;  %v8160_v8 = vld [vmem:[#allocation2 + $0x1a40] sm:$0xff]  ;;  %9670 = vmatprep.subr.bf16.mxu0 %v11494_v59  ;;  %v11557_v10 = vcombine.low %v8228_v53, %v8230_v61  ;;  %v11344_v53 = vcombine.high %v8013_v48, %v8015_v49  ;;  %v11408_v61 = vcombine.high %v8077_v50, %v8079_v45  ;;  %v8009_v0 = vld [vmem:[#allocation2 + $0x10c8] sm:$0xff] }
 0x734   :  { %v8162_v29 = vld [vmem:[#allocation2 + $0x1a60] sm:$0xff]  ;;  %9671 = vmatpush2.bf16.msra.mxu0 %v11493_v26  ;;  %v8011_v36 = vld [vmem:[#allocation2 + $0x10e8] sm:$0xff] }
 0x735   :  { %v8224_v58 = vld [vmem:[#allocation2 + $0x1e40] sm:$0xff]  ;;  %v11490_v43 = vcombine.high %v8160_v8, %v8162_v29  ;;  %9711 = vmatprep.subr.bf16.mxu1 %v11558_v27  ;;  %v11489_v30 = vcombine.low %v8160_v8, %v8162_v29  ;;  %v8073_v59 = vld [vmem:[#allocation2 + $0x14c8] sm:$0xff]  ;;  %v11343_v8 = vcombine.low %v8013_v48, %v8015_v49  ;;  %v11340_v29 = vcombine.high %v8009_v0, %v8011_v36 }
 0x736   :  { %v8226_v5 = vld [vmem:[#allocation2 + $0x1e60] sm:$0xff]  ;;  %9712 = vmatpush2.bf16.msra.mxu1 %v11557_v10  ;;  %v8075_v27 = vld [vmem:[#allocation2 + $0x14e8] sm:$0xff] }
 0x737   :  { %v11554_v34 = vcombine.high %v8224_v58, %v8226_v5  ;;  %v8156_v33 = vld [vmem:[#allocation2 + $0x1a00] sm:$0xff]  ;;  %9672 = vmatprep.subr.bf16.mxu0 %v11490_v43  ;;  %v11553_v40 = vcombine.low %v8224_v58, %v8226_v5  ;;  %v8005_v58 = vld [vmem:[#allocation2 + $0x1088] sm:$0xff]  ;;  %v11339_v43 = vcombine.low %v8009_v0, %v8011_v36 }
 0x738   :  { %v8158_v6 = vld [vmem:[#allocation2 + $0x1a20] sm:$0xff]  ;;  %9673 = vmatpush2.bf16.msra.mxu0 %v11489_v30  ;;  %v8007_v5 = vld [vmem:[#allocation2 + $0x10a8] sm:$0xff] }
 0x739   :  { %v8220_v2 = vld [vmem:[#allocation2 + $0x1e00] sm:$0xff]  ;;  %v11486_v14 = vcombine.high %v8156_v33, %v8158_v6  ;;  %9713 = vmatprep.subr.bf16.mxu1 %v11554_v34  ;;  %v11485_v19 = vcombine.low %v8156_v33, %v8158_v6  ;;  %v8069_v26 = vld [vmem:[#allocation2 + $0x1488] sm:$0xff]  ;;  %v11403_v34 = vcombine.low %v8073_v59, %v8075_v27  ;;  %v11336_v33 = vcombine.high %v8005_v58, %v8007_v5 }
 0x73a   :  { %v8222_v35 = vld [vmem:[#allocation2 + $0x1e20] sm:$0xff]  ;;  %9714 = vmatpush2.bf16.msra.mxu1 %v11553_v40  ;;  %v8071_v10 = vld [vmem:[#allocation2 + $0x14a8] sm:$0xff] }
 0x73b   :  { %v11550_v57 = vcombine.high %v8220_v2, %v8222_v35  ;;  %9674 = vmatprep.subr.bf16.mxu0 %v11486_v14  ;;  %v11549_v1 = vcombine.low %v8220_v2, %v8222_v35  ;;  %v11400_v6 = vcombine.high %v8069_v26, %v8071_v10  ;;  %v8001_v2 = vld [vmem:[#allocation2 + $0x1048] sm:$0xff]  ;;  %v11335_v14 = vcombine.low %v8005_v58, %v8007_v5 }
 0x73c   :  { %9675 = vmatpush2.bf16.msra.mxu0 %v11485_v19  ;;  %v8003_v35 = vld [vmem:[#allocation2 + $0x1068] sm:$0xff] }
 0x73d   :  { %9715 = vmatprep.subr.bf16.mxu1 %v11550_v57  ;;  %9726 = vmatprep.subr.bf16.mxu0 %v11356_v39  ;;  %v8065_v30 = vld [vmem:[#allocation2 + $0x1448] sm:$0xff]  ;;  %v11399_v57 = vcombine.low %v8069_v26, %v8071_v10  ;;  %v11332_v13 = vcombine.high %v8001_v2, %v8003_v35  ;;  %v11331_v39 = vcombine.low %v8001_v2, %v8003_v35 }
 0x73e   :  { %9716 = vmatpush2.bf16.msra.mxu1 %v11549_v1  ;;  %v8067_v40 = vld [vmem:[#allocation2 + $0x1468] sm:$0xff] }
 0x73f   :  { %9767 = vmatprep.subr.bf16.mxu1 %v11420_v38  ;;  %9677 = vmatmul.mubr.bf16.vlgmr.msra.gmra.mxu0 %v12478_v11  ;;  %v11396_v44 = vcombine.high %v8065_v30, %v8067_v40  ;;  %v7997_v37 = vld [vmem:[#allocation2 + $0x1008] sm:$0xff]  ;;  %v11395_v38 = vcombine.low %v8065_v30, %v8067_v40 }
 0x740   :  { %9727 = vmatpush1.bf16.msra.mxu0 %v11355_v31  ;;  %9758 = vmatprep.mubr.bf16.mxu0 %v12442_v62  ;;  %v11407_v62 = vcombine.low %v8077_v50, %v8079_v45  ;;  %v7999_v47 = vld [vmem:[#allocation2 + $0x1028] sm:$0xff] }
 0x741   :  { %9718 = vmatmul.mubr.bf16.vlgmr.msra.gmra.mxu1 %v12483_v20  ;;  %9728 = vmatprep.subr.bf16.mxu0 %v11352_v9  ;;  %v8061_v19 = vld [vmem:[#allocation2 + $0x1408] sm:$0xff]  ;;  %v11328_v21 = vcombine.high %v7997_v37, %v7999_v47  ;;  %v11327_v9 = vcombine.low %v7997_v37, %v7999_v47 }
 0x742   :  { %9768 = vmatpush1.bf16.msra.mxu1 %v11419_v32  ;;  %9799 = vmatprep.mubr.bf16.mxu1 %v12447_v12  ;;  %v11404_v12 = vcombine.high %v8073_v59, %v8075_v27  ;;  %v8063_v1 = vld [vmem:[#allocation2 + $0x1428] sm:$0xff] }
 0x743   :  { %9769 = vmatprep.subr.bf16.mxu1 %v11416_v15  ;;  %v11392_v18 = vcombine.high %v8061_v19, %v8063_v1  ;;  %v8057_v63 = vld [vmem:[#allocation2 + $0x13c8] sm:$0xff]  ;;  %v11391_v15 = vcombine.low %v8061_v19, %v8063_v1 }
 0x744   :  { %9729 = vmatpush1.bf16.msra.mxu0 %v11351_v52  ;;  %v8059_v3 = vld [vmem:[#allocation2 + $0x13e8] sm:$0xff] }
 0x745   :  { %9730 = vmatprep.subr.bf16.mxu0 %v11348_v55  ;;  %v8121_v31 = vld [vmem:[#allocation2 + $0x17c8] sm:$0xff]  ;;  %v11388_v17 = vcombine.high %v8057_v63, %v8059_v3  ;;  %v11387_v55 = vcombine.low %v8057_v63, %v8059_v3 }
 0x746   :  { %9770 = vmatpush1.bf16.msra.mxu1 %v11415_v4  ;;  %v8123_v32 = vld [vmem:[#allocation2 + $0x17e8] sm:$0xff] }
 0x747   :  { %9771 = vmatprep.subr.bf16.mxu1 %v11412_v16  ;;  %v11452_v60 = vcombine.high %v8121_v31, %v8123_v32  ;;  %v8053_v42 = vld [vmem:[#allocation2 + $0x1388] sm:$0xff]  ;;  %v11451_v16 = vcombine.low %v8121_v31, %v8123_v32 }
 0x748   :  { %9731 = vmatpush1.bf16.msra.mxu0 %v11347_v41  ;;  %v8055_v7 = vld [vmem:[#allocation2 + $0x13a8] sm:$0xff] }
 0x749   :  { %9732 = vmatprep.subr.bf16.mxu0 %v11344_v53  ;;  %v8117_v52 = vld [vmem:[#allocation2 + $0x1788] sm:$0xff]  ;;  %v11384_v48 = vcombine.high %v8053_v42, %v8055_v7  ;;  %v11383_v53 = vcombine.low %v8053_v42, %v8055_v7 }
 0x74a   :  { %9772 = vmatpush1.bf16.msra.mxu1 %v11411_v51  ;;  %v8119_v4 = vld [vmem:[#allocation2 + $0x17a8] sm:$0xff] }
 0x74b   :  { %9773 = vmatprep.subr.bf16.mxu1 %v11408_v61  ;;  %v11448_v49 = vcombine.high %v8117_v52, %v8119_v4  ;;  %v8049_v50 = vld [vmem:[#allocation2 + $0x1348] sm:$0xff]  ;;  %v11447_v61 = vcombine.low %v8117_v52, %v8119_v4 }
 0x74c   :  { %9733 = vmatpush1.bf16.msra.mxu0 %v11343_v8  ;;  %v8051_v45 = vld [vmem:[#allocation2 + $0x1368] sm:$0xff] }
 0x74d   :  { %9734 = vmatprep.subr.bf16.mxu0 %v11340_v29  ;;  %v8113_v41 = vld [vmem:[#allocation2 + $0x1748] sm:$0xff]  ;;  %v11380_v0 = vcombine.high %v8049_v50, %v8051_v45  ;;  %v11379_v29 = vcombine.low %v8049_v50, %v8051_v45 }
 0x74e   :  { %9774 = vmatpush1.bf16.msra.mxu1 %v11407_v62  ;;  %v8115_v51 = vld [vmem:[#allocation2 + $0x1768] sm:$0xff] }
 0x74f   :  { %9775 = vmatprep.subr.bf16.mxu1 %v11404_v12  ;;  %v11444_v36 = vcombine.high %v8113_v41, %v8115_v51  ;;  %v8045_v59 = vld [vmem:[#allocation2 + $0x1308] sm:$0xff]  ;;  %v11443_v12 = vcombine.low %v8113_v41, %v8115_v51 }
 0x750   :  { %9735 = vmatpush1.bf16.msra.mxu0 %v11339_v43  ;;  %v8047_v27 = vld [vmem:[#allocation2 + $0x1328] sm:$0xff] }
 0x751   :  { %9736 = vmatprep.subr.bf16.mxu0 %v11336_v33  ;;  %v8109_v8 = vld [vmem:[#allocation2 + $0x1708] sm:$0xff]  ;;  %v11376_v58 = vcombine.high %v8045_v59, %v8047_v27  ;;  %v11375_v33 = vcombine.low %v8045_v59, %v8047_v27 }
 0x752   :  { %9776 = vmatpush1.bf16.msra.mxu1 %v11403_v34  ;;  %v8111_v62 = vld [vmem:[#allocation2 + $0x1728] sm:$0xff] }
 0x753   :  { %9777 = vmatprep.subr.bf16.mxu1 %v11400_v6  ;;  %v11440_v5 = vcombine.high %v8109_v8, %v8111_v62  ;;  %v8041_v26 = vld [vmem:[#allocation2 + $0x12c8] sm:$0xff]  ;;  %v11439_v6 = vcombine.low %v8109_v8, %v8111_v62 }
 0x754   :  { %9737 = vmatpush1.bf16.msra.mxu0 %v11335_v14  ;;  %v8043_v10 = vld [vmem:[#allocation2 + $0x12e8] sm:$0xff] }
 0x755   :  { %9738 = vmatprep.subr.bf16.mxu0 %v11332_v13  ;;  %v8105_v43 = vld [vmem:[#allocation2 + $0x16c8] sm:$0xff]  ;;  %v11372_v2 = vcombine.high %v8041_v26, %v8043_v10  ;;  %v11371_v13 = vcombine.low %v8041_v26, %v8043_v10 }
 0x756   :  { %9778 = vmatpush1.bf16.msra.mxu1 %v11399_v57  ;;  %v8107_v34 = vld [vmem:[#allocation2 + $0x16e8] sm:$0xff] }
 0x757   :  { %9779 = vmatprep.subr.bf16.mxu1 %v11396_v44  ;;  %v11436_v35 = vcombine.high %v8105_v43, %v8107_v34  ;;  %v8037_v30 = vld [vmem:[#allocation2 + $0x1288] sm:$0xff]  ;;  %v11435_v44 = vcombine.low %v8105_v43, %v8107_v34 }
 0x758   :  { %9739 = vmatpush1.bf16.msra.mxu0 %v11331_v39  ;;  %v8039_v40 = vld [vmem:[#allocation2 + $0x12a8] sm:$0xff] }
 0x759   :  { %9740 = vmatprep.subr.bf16.mxu0 %v11328_v21  ;;  %v8101_v14 = vld [vmem:[#allocation2 + $0x1688] sm:$0xff]  ;;  %v11368_v37 = vcombine.high %v8037_v30, %v8039_v40  ;;  %v11367_v21 = vcombine.low %v8037_v30, %v8039_v40 }
 0x75a   :  { %9780 = vmatpush1.bf16.msra.mxu1 %v11395_v38  ;;  %v8103_v57 = vld [vmem:[#allocation2 + $0x16a8] sm:$0xff] }
 0x75b   :  { %9781 = vmatprep.subr.bf16.mxu1 %v11392_v18  ;;  %v11432_v47 = vcombine.high %v8101_v14, %v8103_v57  ;;  %v8033_v19 = vld [vmem:[#allocation2 + $0x1248] sm:$0xff]  ;;  %v11431_v18 = vcombine.low %v8101_v14, %v8103_v57 }
 0x75c   :  { %9741 = vmatpush1.bf16.msra.mxu0 %v11327_v9  ;;  %v8035_v1 = vld [vmem:[#allocation2 + $0x1268] sm:$0xff] }
 0x75d   :  { %9742 = vmatprep.subr.bf16.mxu0 %v11388_v17  ;;  %v8097_v39 = vld [vmem:[#allocation2 + $0x1648] sm:$0xff]  ;;  %v11364_v63 = vcombine.high %v8033_v19, %v8035_v1  ;;  %v11363_v17 = vcombine.low %v8033_v19, %v8035_v1 }
 0x75e   :  { %9782 = vmatpush1.bf16.msra.mxu1 %v11391_v15  ;;  %v8099_v38 = vld [vmem:[#allocation2 + $0x1668] sm:$0xff] }
 0x75f   :  { %9783 = vmatprep.subr.bf16.mxu1 %v11452_v60  ;;  %v11428_v3 = vcombine.high %v8097_v39, %v8099_v38  ;;  %v8029_v31 = vld [vmem:[#allocation2 + $0x1208] sm:$0xff]  ;;  %v11427_v60 = vcombine.low %v8097_v39, %v8099_v38 }
 0x760   :  { %9743 = vmatpush2.bf16.msra.mxu0 %v11387_v55  ;;  %v8031_v32 = vld [vmem:[#allocation2 + $0x1228] sm:$0xff] }
 0x761   :  { %9744 = vmatprep.subr.bf16.mxu0 %v11384_v48  ;;  %v8093_v9 = vld [vmem:[#allocation2 + $0x1608] sm:$0xff]  ;;  %v11360_v42 = vcombine.high %v8029_v31, %v8031_v32  ;;  %v11359_v48 = vcombine.low %v8029_v31, %v8031_v32 }
 0x762   :  { %9784 = vmatpush2.bf16.msra.mxu1 %v11451_v16  ;;  %v8095_v15 = vld [vmem:[#allocation2 + $0x1628] sm:$0xff] }
 0x763   :  { %9785 = vmatprep.subr.bf16.mxu1 %v11448_v49  ;;  %v11424_v7 = vcombine.high %v8093_v9, %v8095_v15  ;;  %v8153_v52 = vld [vmem:[#allocation2 + $0x19c8] sm:$0xff]  ;;  %v11423_v49 = vcombine.low %v8093_v9, %v8095_v15 }
 0x764   :  { %9745 = vmatpush2.bf16.msra.mxu0 %v11383_v53  ;;  %v8155_v4 = vld [vmem:[#allocation2 + $0x19e8] sm:$0xff] }
 0x765   :  { %9746 = vmatprep.subr.bf16.mxu0 %v11380_v0  ;;  %v8217_v55 = vld [vmem:[#allocation2 + $0x1dc8] sm:$0xff]  ;;  %v11484_v50 = vcombine.high %v8153_v52, %v8155_v4  ;;  %v11483_v0 = vcombine.low %v8153_v52, %v8155_v4 }
 0x766   :  { %9786 = vmatpush2.bf16.msra.mxu1 %v11447_v61  ;;  %v8219_v16 = vld [vmem:[#allocation2 + $0x1de8] sm:$0xff] }
 0x767   :  { %9787 = vmatprep.subr.bf16.mxu1 %v11444_v36  ;;  %v11548_v45 = vcombine.high %v8217_v55, %v8219_v16  ;;  %v8149_v41 = vld [vmem:[#allocation2 + $0x1988] sm:$0xff]  ;;  %v11547_v36 = vcombine.low %v8217_v55, %v8219_v16 }
 0x768   :  { %9747 = vmatpush2.bf16.msra.mxu0 %v11379_v29  ;;  %v8151_v51 = vld [vmem:[#allocation2 + $0x19a8] sm:$0xff] }
 0x769   :  { %9748 = vmatprep.subr.bf16.mxu0 %v11376_v58  ;;  %v8213_v53 = vld [vmem:[#allocation2 + $0x1d88] sm:$0xff]  ;;  %v11480_v59 = vcombine.high %v8149_v41, %v8151_v51  ;;  %v11479_v58 = vcombine.low %v8149_v41, %v8151_v51 }
 0x76a   :  { %9788 = vmatpush2.bf16.msra.mxu1 %v11443_v12  ;;  %v8215_v61 = vld [vmem:[#allocation2 + $0x1da8] sm:$0xff] }
 0x76b   :  { %9789 = vmatprep.subr.bf16.mxu1 %v11440_v5  ;;  %v11544_v27 = vcombine.high %v8213_v53, %v8215_v61  ;;  %v8145_v8 = vld [vmem:[#allocation2 + $0x1948] sm:$0xff]  ;;  %v11543_v5 = vcombine.low %v8213_v53, %v8215_v61 }
 0x76c   :  { %9749 = vmatpush2.bf16.msra.mxu0 %v11375_v33  ;;  %v8147_v62 = vld [vmem:[#allocation2 + $0x1968] sm:$0xff] }
 0x76d   :  { %9750 = vmatprep.subr.bf16.mxu0 %v11372_v2  ;;  %v8209_v29 = vld [vmem:[#allocation2 + $0x1d48] sm:$0xff]  ;;  %v11476_v26 = vcombine.high %v8145_v8, %v8147_v62 }
 0x76e   :  { %9790 = vmatpush2.bf16.msra.mxu1 %v11439_v6  ;;  %v8211_v12 = vld [vmem:[#allocation2 + $0x1d68] sm:$0xff] }
 0x76f   :  { %9791 = vmatprep.subr.bf16.mxu1 %v11436_v35  ;;  %v11540_v10 = vcombine.high %v8209_v29, %v8211_v12  ;;  %v8141_v43 = vld [vmem:[#allocation2 + $0x1908] sm:$0xff] }
 0x770   :  { %9751 = vmatpush2.bf16.msra.mxu0 %v11371_v13  ;;  %v8143_v34 = vld [vmem:[#allocation2 + $0x1928] sm:$0xff] }
 0x771   :  { %9752 = vmatprep.subr.bf16.mxu0 %v11368_v37  ;;  %v8205_v33 = vld [vmem:[#allocation2 + $0x1d08] sm:$0xff]  ;;  %v11472_v2 = vcombine.high %v8141_v43, %v8143_v34  ;;  %v11471_v13 = vcombine.low %v8141_v43, %v8143_v34 }
 0x772   :  { %9792 = vmatpush2.bf16.msra.mxu1 %v11435_v44  ;;  %v8207_v6 = vld [vmem:[#allocation2 + $0x1d28] sm:$0xff] }
 0x773   :  { %9793 = vmatprep.subr.bf16.mxu1 %v11432_v47  ;;  %v11536_v35 = vcombine.high %v8205_v33, %v8207_v6  ;;  %v8137_v30 = vld [vmem:[#allocation2 + $0x18c8] sm:$0xff] }
 0x774   :  { %9753 = vmatpush2.bf16.msra.mxu0 %v11367_v21  ;;  %v8139_v40 = vld [vmem:[#allocation2 + $0x18e8] sm:$0xff] }
 0x775   :  { %9754 = vmatprep.subr.bf16.mxu0 %v11364_v63  ;;  %v8201_v14 = vld [vmem:[#allocation2 + $0x1cc8] sm:$0xff]  ;;  %v11468_v44 = vcombine.high %v8137_v30, %v8139_v40  ;;  %v11467_v39 = vcombine.low %v8137_v30, %v8139_v40 }
 0x776   :  { %9794 = vmatpush2.bf16.msra.mxu1 %v11431_v18  ;;  %v8203_v57 = vld [vmem:[#allocation2 + $0x1ce8] sm:$0xff] }
 0x777   :  { %9795 = vmatprep.subr.bf16.mxu1 %v11428_v3  ;;  %v8133_v37 = vld [vmem:[#allocation2 + $0x1888] sm:$0xff]  ;;  %v11531_v38 = vcombine.low %v8201_v14, %v8203_v57 }
 0x778   :  { %9755 = vmatpush2.bf16.msra.mxu0 %v11363_v17  ;;  %v8135_v47 = vld [vmem:[#allocation2 + $0x18a8] sm:$0xff] }
 0x779   :  { %9756 = vmatprep.subr.bf16.mxu0 %v11360_v42  ;;  %v8197_v19 = vld [vmem:[#allocation2 + $0x1c88] sm:$0xff]  ;;  %v11464_v21 = vcombine.high %v8133_v37, %v8135_v47  ;;  %v11463_v9 = vcombine.low %v8133_v37, %v8135_v47 }
 0x77a   :  { %9796 = vmatpush2.bf16.msra.mxu1 %v11427_v60  ;;  %v8199_v1 = vld [vmem:[#allocation2 + $0x1ca8] sm:$0xff] }
 0x77b   :  { %9797 = vmatprep.subr.bf16.mxu1 %v11424_v7  ;;  %v11528_v18 = vcombine.high %v8197_v19, %v8199_v1  ;;  %v8129_v63 = vld [vmem:[#allocation2 + $0x1848] sm:$0xff]  ;;  %v11527_v15 = vcombine.low %v8197_v19, %v8199_v1 }
 0x77c   :  { %9757 = vmatpush2.bf16.msra.mxu0 %v11359_v48  ;;  %v8131_v3 = vld [vmem:[#allocation2 + $0x1868] sm:$0xff] }
 0x77d   :  { %9808 = vmatprep.subr.bf16.mxu0 %v11484_v50  ;;  %v8193_v31 = vld [vmem:[#allocation2 + $0x1c48] sm:$0xff]  ;;  %v11460_v17 = vcombine.high %v8129_v63, %v8131_v3  ;;  %v11459_v55 = vcombine.low %v8129_v63, %v8131_v3 }
 0x77e   :  { %9798 = vmatpush2.bf16.msra.mxu1 %v11423_v49  ;;  %v8195_v32 = vld [vmem:[#allocation2 + $0x1c68] sm:$0xff] }
 0x77f   :  { %9849 = vmatprep.subr.bf16.mxu1 %v11548_v45  ;;  %9759 = vmatmul.mubr.bf16.vlgmr.msra.gmra.mxu0 %v12454_v56  ;;  %v11475_v56 = vcombine.low %v8145_v8, %v8147_v62  ;;  %v11524_v60 = vcombine.high %v8193_v31, %v8195_v32  ;;  %v8125_v42 = vld [vmem:[#allocation2 + $0x1808] sm:$0xff]  ;;  %v11523_v16 = vcombine.low %v8193_v31, %v8195_v32 }
 0x780   :  { %9809 = vmatpush1.bf16.msra.mxu0 %v11483_v0  ;;  %9840 = vmatprep.mubr.bf16.mxu0 %v12464_v28  ;;  %v11535_v28 = vcombine.low %v8205_v33, %v8207_v6  ;;  %v8127_v7 = vld [vmem:[#allocation2 + $0x1828] sm:$0xff] }
 0x781   :  { %9800 = vmatmul.mubr.bf16.vlgmr.msra.gmra.mxu1 %v12459_v54  ;;  %9810 = vmatprep.subr.bf16.mxu0 %v11480_v59  ;;  %v11539_v54 = vcombine.low %v8209_v29, %v8211_v12  ;;  %v8189_v52 = vld [vmem:[#allocation2 + $0x1c08] sm:$0xff]  ;;  %v11456_v48 = vcombine.high %v8125_v42, %v8127_v7  ;;  %v11455_v53 = vcombine.low %v8125_v42, %v8127_v7 }
 0x782   :  { %9850 = vmatpush1.bf16.msra.mxu1 %v11547_v36  ;;  %9881 = vmatprep.mubr.bf16.mxu1 %v12470_v46  ;;  %v11532_v46 = vcombine.high %v8201_v14, %v8203_v57  ;;  %v8191_v4 = vld [vmem:[#allocation2 + $0x1c28] sm:$0xff] }
 0x783   :  { %9851 = vmatprep.subr.bf16.mxu1 %v11544_v27  ;;  %v11520_v49 = vcombine.high %v8189_v52, %v8191_v4  ;;  %v8185_v50 = vld [vmem:[#allocation2 + $0x1bc8] sm:$0xff]  ;;  %v11519_v61 = vcombine.low %v8189_v52, %v8191_v4 }
 0x784   :  { %9811 = vmatpush1.bf16.msra.mxu0 %v11479_v58  ;;  %v8187_v45 = vld [vmem:[#allocation2 + $0x1be8] sm:$0xff] }
 0x785   :  { %9812 = vmatprep.subr.bf16.mxu0 %v11476_v26  ;;  %v8249_v41 = vld [vmem:[#allocation2 + $0x1fc8] sm:$0xff]  ;;  %v11516_v0 = vcombine.high %v8185_v50, %v8187_v45  ;;  %v11515_v29 = vcombine.low %v8185_v50, %v8187_v45 }
 0x786   :  { %9852 = vmatpush1.bf16.msra.mxu1 %v11543_v5  ;;  %v8251_v51 = vld [vmem:[#allocation2 + $0x1fe8] sm:$0xff] }
 0x787   :  { %9853 = vmatprep.subr.bf16.mxu1 %v11540_v10  ;;  %v11580_v36 = vcombine.high %v8249_v41, %v8251_v51  ;;  %v8181_v59 = vld [vmem:[#allocation2 + $0x1b88] sm:$0xff]  ;;  %v11579_v12 = vcombine.low %v8249_v41, %v8251_v51 }
 0x788   :  { %9813 = vmatpush1.bf16.msra.mxu0 %v11475_v56  ;;  %v8183_v27 = vld [vmem:[#allocation2 + $0x1ba8] sm:$0xff] }
 0x789   :  { %9814 = vmatprep.subr.bf16.mxu0 %v11472_v2  ;;  %v8245_v8 = vld [vmem:[#allocation2 + $0x1f88] sm:$0xff]  ;;  %v11512_v58 = vcombine.high %v8181_v59, %v8183_v27  ;;  %v11511_v33 = vcombine.low %v8181_v59, %v8183_v27 }
 0x78a   :  { %9854 = vmatpush1.bf16.msra.mxu1 %v11539_v54  ;;  %v8247_v62 = vld [vmem:[#allocation2 + $0x1fa8] sm:$0xff] }
 0x78b   :  { %9855 = vmatprep.subr.bf16.mxu1 %v11536_v35  ;;  %v11576_v5 = vcombine.high %v8245_v8, %v8247_v62  ;;  %v8177_v26 = vld [vmem:[#allocation2 + $0x1b48] sm:$0xff]  ;;  %v11575_v6 = vcombine.low %v8245_v8, %v8247_v62 }
 0x78c   :  { %9815 = vmatpush1.bf16.msra.mxu0 %v11471_v13  ;;  %v8179_v10 = vld [vmem:[#allocation2 + $0x1b68] sm:$0xff] }
 0x78d   :  { %9816 = vmatprep.subr.bf16.mxu0 %v11468_v44  ;;  %v8241_v43 = vld [vmem:[#allocation2 + $0x1f48] sm:$0xff]  ;;  %v11508_v56 = vcombine.high %v8177_v26, %v8179_v10  ;;  %v11507_v14 = vcombine.low %v8177_v26, %v8179_v10 }
 0x78e   :  { %9856 = vmatpush1.bf16.msra.mxu1 %v11535_v28  ;;  %v8243_v34 = vld [vmem:[#allocation2 + $0x1f68] sm:$0xff] }
 0x78f   :  { %9857 = vmatprep.subr.bf16.mxu1 %v11532_v46  ;;  %v11572_v54 = vcombine.high %v8241_v43, %v8243_v34  ;;  %v8173_v2 = vld [vmem:[#allocation2 + $0x1b08] sm:$0xff]  ;;  %v11571_v57 = vcombine.low %v8241_v43, %v8243_v34 }
 0x790   :  { %9817 = vmatpush1.bf16.msra.mxu0 %v11467_v39  ;;  %v8175_v35 = vld [vmem:[#allocation2 + $0x1b28] sm:$0xff] }
 0x791   :  { %9818 = vmatprep.subr.bf16.mxu0 %v11464_v21  ;;  %v8237_v30 = vld [vmem:[#allocation2 + $0x1f08] sm:$0xff]  ;;  %v11504_v13 = vcombine.high %v8173_v2, %v8175_v35  ;;  %v11503_v19 = vcombine.low %v8173_v2, %v8175_v35 }
 0x792   :  { %9858 = vmatpush1.bf16.msra.mxu1 %v11531_v38  ;;  %v8239_v40 = vld [vmem:[#allocation2 + $0x1f28] sm:$0xff] }
 0x793   :  { %9859 = vmatprep.subr.bf16.mxu1 %v11528_v18  ;;  %v11568_v28 = vcombine.high %v8237_v30, %v8239_v40  ;;  %v8169_v44 = vld [vmem:[#allocation2 + $0x1ac8] sm:$0xff]  ;;  %v11567_v1 = vcombine.low %v8237_v30, %v8239_v40 }
 0x794   :  { %9819 = vmatpush1.bf16.msra.mxu0 %v11463_v9  ;;  %v8171_v46 = vld [vmem:[#allocation2 + $0x1ae8] sm:$0xff] }
 0x795   :  { %9820 = vmatprep.subr.bf16.mxu0 %v11460_v17  ;;  %v8233_v37 = vld [vmem:[#allocation2 + $0x1ec8] sm:$0xff]  ;;  %v11500_v39 = vcombine.high %v8169_v44, %v8171_v46  ;;  %v11499_v31 = vcombine.low %v8169_v44, %v8171_v46 }
 0x796   :  { %9860 = vmatpush1.bf16.msra.mxu1 %v11527_v15  ;;  %v8235_v47 = vld [vmem:[#allocation2 + $0x1ee8] sm:$0xff] }
 0x797   :  { %9861 = vmatprep.subr.bf16.mxu1 %v11524_v60  ;;  %v11564_v38 = vcombine.high %v8233_v37, %v8235_v47  ;;  %v8165_v21 = vld [vmem:[#allocation2 + $0x1a88] sm:$0xff]  ;;  %v11563_v32 = vcombine.low %v8233_v37, %v8235_v47 }
 0x798   :  { %9821 = vmatpush1.bf16.msra.mxu0 %v11459_v55  ;;  %v8167_v18 = vld [vmem:[#allocation2 + $0x1aa8] sm:$0xff] }
 0x799   :  { %9822 = vmatprep.subr.bf16.mxu0 %v11456_v48  ;;  %v8229_v63 = vld [vmem:[#allocation2 + $0x1e88] sm:$0xff]  ;;  %v11496_v9 = vcombine.high %v8165_v21, %v8167_v18  ;;  %v11495_v52 = vcombine.low %v8165_v21, %v8167_v18 }
 0x79a   :  { %9862 = vmatpush1.bf16.msra.mxu1 %v11523_v16  ;;  %v8231_v3 = vld [vmem:[#allocation2 + $0x1ea8] sm:$0xff] }
 0x79b   :  { %9863 = vmatprep.subr.bf16.mxu1 %v11520_v49  ;;  %v11560_v15 = vcombine.high %v8229_v63, %v8231_v3  ;;  %v8161_v17 = vld [vmem:[#allocation2 + $0x1a48] sm:$0xff]  ;;  %v11559_v4 = vcombine.low %v8229_v63, %v8231_v3 }
 0x79c   :  { %9823 = vmatpush1.bf16.msra.mxu0 %v11455_v53  ;;  %v8163_v60 = vld [vmem:[#allocation2 + $0x1a68] sm:$0xff] }
 0x79d   :  { %9824 = vmatprep.subr.bf16.mxu0 %v11516_v0  ;;  %v8225_v42 = vld [vmem:[#allocation2 + $0x1e48] sm:$0xff]  ;;  %v11492_v55 = vcombine.high %v8161_v17, %v8163_v60  ;;  %v11491_v41 = vcombine.low %v8161_v17, %v8163_v60 }
 0x79e   :  { %9864 = vmatpush1.bf16.msra.mxu1 %v11519_v61  ;;  %v8227_v7 = vld [vmem:[#allocation2 + $0x1e68] sm:$0xff] }
 0x79f   :  { %9865 = vmatprep.subr.bf16.mxu1 %v11580_v36  ;;  %v11556_v16 = vcombine.high %v8225_v42, %v8227_v7  ;;  %v8157_v48 = vld [vmem:[#allocation2 + $0x1a08] sm:$0xff]  ;;  %v11555_v51 = vcombine.low %v8225_v42, %v8227_v7 }
 0x7a0   :  { %9825 = vmatpush2.bf16.msra.mxu0 %v11515_v29  ;;  %v8159_v49 = vld [vmem:[#allocation2 + $0x1a28] sm:$0xff] }
 0x7a1   :  { %9826 = vmatprep.subr.bf16.mxu0 %v11512_v58  ;;  %v8221_v50 = vld [vmem:[#allocation2 + $0x1e08] sm:$0xff]  ;;  %v11488_v53 = vcombine.high %v8157_v48, %v8159_v49  ;;  %v11487_v0 = vcombine.low %v8157_v48, %v8159_v49 }
 0x7a2   :  { %9866 = vmatpush2.bf16.msra.mxu1 %v11579_v12  ;;  %v8223_v45 = vld [vmem:[#allocation2 + $0x1e28] sm:$0xff] }
 0x7a3   :  { %9867 = vmatprep.subr.bf16.mxu1 %v11576_v5  ;;  %v11552_v61 = vcombine.high %v8221_v50, %v8223_v45  ;;  %v11551_v36 = vcombine.low %v8221_v50, %v8223_v45  ;;  %v8252_v59 = vld [vmem:[#allocation3 + $0x8] sm:$0xf] }
 0x7a4   :  { %9827 = vmatpush2.bf16.msra.mxu0 %v11511_v33  ;;  %v8265_v27 = vrot.slane %v8252_v59, %v12106_v22  ;;  %v8269_v8 = vrot.slane %v8252_v59, %v12110_v24  ;;  %v8273_v18 = vrot.slane %v8252_v59, %v12108_v23  ;;  %v8277_v63 = vrot.slane %v8252_v59, %v12112_v25 }
 0x7a5   :  { %9828 = vmatprep.subr.bf16.mxu0 %v11508_v56 }
 0x7a6   :  { %9868 = vmatpush2.bf16.msra.mxu1 %v11575_v6 }
 0x7a7   :  { %9869 = vmatprep.subr.bf16.mxu1 %v11572_v54 }
 0x7a8   :  { %9829 = vmatpush2.bf16.msra.mxu0 %v11507_v14 }
 0x7a9   :  { %9830 = vmatprep.subr.bf16.mxu0 %v11504_v13 }
 0x7aa   :  { %9870 = vmatpush2.bf16.msra.mxu1 %v11571_v57 }
 0x7ab   :  { %9871 = vmatprep.subr.bf16.mxu1 %v11568_v28 }
 0x7ac   :  { %9831 = vmatpush2.bf16.msra.mxu0 %v11503_v19 }
 0x7ad   :  { %9832 = vmatprep.subr.bf16.mxu0 %v11500_v39 }
 0x7ae   :  { %9872 = vmatpush2.bf16.msra.mxu1 %v11567_v1 }
 0x7af   :  { %9873 = vmatprep.subr.bf16.mxu1 %v11564_v38 }
 0x7b0   :  { %9833 = vmatpush2.bf16.msra.mxu0 %v11499_v31 }
 0x7b1   :  { %9834 = vmatprep.subr.bf16.mxu0 %v11496_v9 }
 0x7b2   :  { %9874 = vmatpush2.bf16.msra.mxu1 %v11563_v32 }
 0x7b3   :  { %9875 = vmatprep.subr.bf16.mxu1 %v11560_v15 }
 0x7b4   :  { %9835 = vmatpush2.bf16.msra.mxu0 %v11495_v52 }
 0x7b5   :  { %9836 = vmatprep.subr.bf16.mxu0 %v11492_v55 }
 0x7b6   :  { %9876 = vmatpush2.bf16.msra.mxu1 %v11559_v4 }
 0x7b7   :  { %9877 = vmatprep.subr.bf16.mxu1 %v11556_v16 }
 0x7b8   :  { %9837 = vmatpush2.bf16.msra.mxu0 %v11491_v41 }
 0x7b9   :  { %9838 = vmatprep.subr.bf16.mxu0 %v11488_v53 }
 0x7ba   :  { %9878 = vmatpush2.bf16.msra.mxu1 %v11555_v51 }
 0x7bb   :  { %9879 = vmatprep.subr.bf16.mxu1 %v11552_v61 }
 0x7bc   :  { %9839 = vmatpush2.bf16.msra.mxu0 %v11487_v0 }
 0x7be   :  { %9880 = vmatpush2.bf16.msra.mxu1 %v11551_v36 }
 0x7bf   :  { %v9596_v62 = vpop.f32.mrf.mxu0  ;;  %9841 = vmatmul.mubr.bf16.vlgmr.msra.gmra.mxu0 %v12478_v11 }
 0x7c0   :  { %v9597_v29 = vadd.f32 %v9596_v62, %v8265_v27 }
 0x7c1   :  { %v9637_v12 = vpop.f32.mrf.mxu1  ;;  %9882 = vmatmul.mubr.bf16.vlgmr.msra.gmra.mxu1 %v12483_v20  ;;  %v9598_v58 = vpop.f32.mrf.mxu0 }
 0x7c2   :  { %v9638_v5 = vadd.f32 %v9637_v12, %v9597_v29  ;;  %v9599_v26 = vadd.f32 %v9598_v58, %v8269_v8 }
 0x7c3   :  { %v9639_v10 = vpop.f32.mrf.mxu1  ;;  %v9600_v43 = vpop.f32.mrf.mxu0 }
 0x7c4   :  { %v9640_v34 = vadd.f32 %v9639_v10, %v9599_v26 }
 0x7c5   :  { %v9641_v33 = vpop.f32.mrf.mxu1  ;;  %v9601_v6 = vpop.f32.mrf.mxu0 }
 0x7c7   :  { %v9642_v56 = vpop.f32.mrf.mxu1 }
 0x7ff   :  { %v9678_v22 = vpop.f32.mrf.mxu0 }
 0x800   :  { %v9679_v54 = vadd.f32 %v9678_v22, %v9638_v5 }
 0x801   :  { %v9719_v2 = vpop.f32.mrf.mxu1  ;;  %v9680_v24 = vpop.f32.mrf.mxu0 }
 0x802   :  { %v12497_v35 = vadd.f32 %v9719_v2, %v9679_v54  ;;  %v9681_v11 = vadd.f32 %v9680_v24, %v9640_v34 }
 0x803   :  { %v9721_v30 = vpop.f32.mrf.mxu1  ;;  %v9682_v40 = vpop.f32.mrf.mxu0 }
 0x804   :  { %v9890_v20 = vmax.f32 %v12497_v35, 0.0  ;;  %v9722_v14 = vadd.f32 %v9721_v30, %v9681_v11 }
 0x805   :  { %v9723_v57 = vpop.f32.mrf.mxu1  ;;  %v9683_v13 = vpop.f32.mrf.mxu0 }
 0x806   :  { %v9891_v28 = vmax.f32 %v9722_v14, 0.0 }
 0x807   :  { %v9724_v44 = vpop.f32.mrf.mxu1 }
 0x83f   :  { %v9760_v46 = vpop.f32.mrf.mxu0 }
 0x840   :  { %v9761_v3 = vadd.f32 %v9760_v46, %v8273_v18 }
 0x841   :  { %v9801_v37 = vpop.f32.mrf.mxu1  ;;  %v9762_v47 = vpop.f32.mrf.mxu0 }
 0x842   :  { %v9763_v31 = vadd.f32 %v9762_v47, %v8277_v63  ;;  %v9802_v32 = vadd.f32 %v9801_v37, %v9761_v3 }
 0x843   :  { %v9803_v19 = vpop.f32.mrf.mxu1  ;;  %v9764_v1 = vpop.f32.mrf.mxu0 }
 0x844   :  { %v9804_v15 = vadd.f32 %v9803_v19, %v9763_v31 }
 0x845   :  { %v9805_v39 = vpop.f32.mrf.mxu1  ;;  %v9765_v38 = vpop.f32.mrf.mxu0 }
 0x847   :  { %v9806_v21 = vpop.f32.mrf.mxu1 }
 0x87f   :  { %v9842_v9 = vpop.f32.mrf.mxu0 }
 0x880   :  { %v9843_v17 = vadd.f32 %v9842_v9, %v9802_v32 }
 0x881   :  { %v9883_v60 = vpop.f32.mrf.mxu1  ;;  %v9844_v42 = vpop.f32.mrf.mxu0 }
 0x882   :  { %v12502_v7 = vadd.f32 %v9883_v60, %v9843_v17  ;;  %v9845_v52 = vadd.f32 %v9844_v42, %v9804_v15 }
 0x883   :  { %v9885_v4 = vpop.f32.mrf.mxu1  ;;  %v9846_v55 = vpop.f32.mrf.mxu0 }
 0x884   :  { %v9892_v16 = vmax.f32 %v12502_v7, 0.0  ;;  %v9886_v48 = vadd.f32 %v9885_v4, %v9845_v52 }
 0x885   :  { %v9887_v49 = vpop.f32.mrf.mxu1  ;;  %v9847_v23 = vpop.f32.mrf.mxu0 }
 0x886   :  { %v9893_v50 = vmax.f32 %v9886_v48, 0.0 }
 0x887   :  { %v9888_v25 = vpop.f32.mrf.mxu1 }
 0x888   :  { %11932 = dma.done.wait [#allocation4], 4096 }
 0x889   :  { %11933 = vsyncadd [#allocation4], 4294963200 }
 0x88a   :  { %11934 = dma.done.wait [#allocation5], 128 }
 0x88b   :  { %11935 = vsyncadd [#allocation5], 4294967168  ;;  %v9966_v45 = vpack.c.bf16 %v9891_v28, %v9891_v28  ;;  %v9968_v41 = vpack.c.bf16 %v9893_v50, %v9893_v50  ;;  %v9930_v51 = vld [vmem:[#allocation2 + $0x3c0] sm:$0xf]  ;;  %s11949_s9 = smov [#allocation9]  }
 0x88c   :  { %v9931_v53 = vld [vmem:[#allocation2 + $0x3e0] sm:$0xf]  ;;  %s10254_s23 = sshll.u32 %s11949_s9, 4  ;;  %s10255_s23 = int_to_ptr.vmem [resolvable:$true] %s10254_s23 }
 0x88d   :  { %10199 = vmatprep.mubr.bf16.mxu0 %v9966_v45  ;;  %10239 = vmatprep.mubr.bf16.mxu1 %v9968_v41  ;;  %v9962_v61 = vld [vmem:[#allocation2 + $0x7c0] sm:$0xf]  ;;  %v11597_v0 = vcombine.low %v9930_v51, %v9931_v53  ;;  %s11894_s27 = scalar_lea.vmem %s10255_s23, 128  ;;  %p11899_p11 = scmp.lt.s32.totalorder %s10255_s23, %s10255_s23 }
 0x88e   :  { %v9963_v36 = vld [vmem:[#allocation2 + $0x7e0] sm:$0xf]  ;;  %p11895_p6 = scmp.ne.s32.totalorder %s10255_s23, %s11894_s27  ;;  %p11900_p12 = scmp.lt.s32.totalorder %s11894_s27, %s11894_s27 }
 0x88f   :  { %v9914_v59 = vld [vmem:[#allocation2 + $0x1c0] sm:$0xf]  ;;  %v11613_v8 = vcombine.low %v9962_v61, %v9963_v36  ;;  %11618 = vmatprep.subr.bf16.mxu0 %v11597_v0 }
 0x890   :  { %v9915_v27 = vld [vmem:[#allocation2 + $0x1e0] sm:$0xf]  ;;  %p11901_p13 = por %p11900_p12, %p11899_p11 }
 0x891   :  { %v11589_v62 = vcombine.low %v9914_v59, %v9915_v27  ;;  %v9946_v29 = vld [vmem:[#allocation2 + $0x5c0] sm:$0xf]  ;;  %11640 = vmatprep.subr.bf16.mxu1 %v11613_v8 }
 0x892   :  { %v9947_v12 = vld [vmem:[#allocation2 + $0x5e0] sm:$0xf]  ;;  %p11902_p1 = pnand %p11901_p13, %p11895_p6 }
 0x893   :  { %v9928_v58 = vld [vmem:[#allocation2 + $0x380] sm:$0xf]  ;;  %v11605_v5 = vcombine.low %v9946_v29, %v9947_v12  ;;  %11619 = vmatpush3.bf16.msra.mxu0 %v11589_v62 }
 0x894   :  { %v9929_v26 = vld [vmem:[#allocation2 + $0x3a0] sm:$0xf] }
 0x895   :  { %v9960_v10 = vld [vmem:[#allocation2 + $0x780] sm:$0xf]  ;;  %v11596_v34 = vcombine.low %v9928_v58, %v9929_v26  ;;  %11641 = vmatpush3.bf16.msra.mxu1 %v11605_v5 }
 0x896   :  { %v9961_v43 = vld [vmem:[#allocation2 + $0x7a0] sm:$0xf] }
 0x897   :  { %v11612_v33 = vcombine.low %v9960_v10, %v9961_v43  ;;  %v9912_v6 = vld [vmem:[#allocation2 + $0x180] sm:$0xf]  ;;  %11620 = vmatprep.subr.bf16.mxu0 %v11596_v34 }
 0x898   :  { %v9913_v56 = vld [vmem:[#allocation2 + $0x1a0] sm:$0xf] }
 0x899   :  { %v9944_v22 = vld [vmem:[#allocation2 + $0x580] sm:$0xf]  ;;  %v11588_v54 = vcombine.low %v9912_v6, %v9913_v56  ;;  %11642 = vmatprep.subr.bf16.mxu1 %v11612_v33 }
 0x89a   :  { %v9945_v2 = vld [vmem:[#allocation2 + $0x5a0] sm:$0xf] }
 0x89b   :  { %v9926_v24 = vld [vmem:[#allocation2 + $0x340] sm:$0xf]  ;;  %v11604_v30 = vcombine.low %v9944_v22, %v9945_v2  ;;  %11621 = vmatpush3.bf16.msra.mxu0 %v11588_v54 }
 0x89c   :  { %v9927_v11 = vld [vmem:[#allocation2 + $0x360] sm:$0xf] }
 0x89d   :  { %v11595_v40 = vcombine.low %v9926_v24, %v9927_v11  ;;  %v9958_v14 = vld [vmem:[#allocation2 + $0x740] sm:$0xf]  ;;  %11643 = vmatpush3.bf16.msra.mxu1 %v11604_v30 }
 0x89e   :  { %v9959_v57 = vld [vmem:[#allocation2 + $0x760] sm:$0xf] }
 0x89f   :  { %v9910_v13 = vld [vmem:[#allocation2 + $0x140] sm:$0xf]  ;;  %v11611_v28 = vcombine.low %v9958_v14, %v9959_v57  ;;  %11622 = vmatprep.subr.bf16.mxu0 %v11595_v40 }
 0x8a0   :  { %v9911_v44 = vld [vmem:[#allocation2 + $0x160] sm:$0xf] }
 0x8a1   :  { %v9942_v46 = vld [vmem:[#allocation2 + $0x540] sm:$0xf]  ;;  %v11587_v47 = vcombine.low %v9910_v13, %v9911_v44  ;;  %11644 = vmatprep.subr.bf16.mxu1 %v11611_v28 }
 0x8a2   :  { %v9943_v37 = vld [vmem:[#allocation2 + $0x560] sm:$0xf] }
 0x8a3   :  { %v9924_v19 = vld [vmem:[#allocation2 + $0x300] sm:$0xf]  ;;  %v11603_v38 = vcombine.low %v9942_v46, %v9943_v37  ;;  %11623 = vmatpush3.bf16.msra.mxu0 %v11587_v47 }
 0x8a4   :  { %v9925_v1 = vld [vmem:[#allocation2 + $0x320] sm:$0xf] }
 0x8a5   :  { %v9956_v39 = vld [vmem:[#allocation2 + $0x700] sm:$0xf]  ;;  %v11594_v21 = vcombine.low %v9924_v19, %v9925_v1  ;;  %11645 = vmatpush3.bf16.msra.mxu1 %v11603_v38  ;;  %v9965_v1 = vpack.c.bf16 %v9890_v20, %v9890_v20 }
 0x8a6   :  { %v9957_v18 = vld [vmem:[#allocation2 + $0x720] sm:$0xf] }
 0x8a7   :  { %v9908_v63 = vld [vmem:[#allocation2 + $0x100] sm:$0xf]  ;;  %v11610_v31 = vcombine.low %v9956_v39, %v9957_v18  ;;  %11624 = vmatprep.subr.bf16.mxu0 %v11594_v21  ;;  %v9967_v39 = vpack.c.bf16 %v9892_v16, %v9892_v16 }
 0x8a8   :  { %v9909_v3 = vld [vmem:[#allocation2 + $0x120] sm:$0xf] }
 0x8a9   :  { %v9940_v32 = vld [vmem:[#allocation2 + $0x500] sm:$0xf]  ;;  %v11586_v52 = vcombine.low %v9908_v63, %v9909_v3  ;;  %11646 = vmatprep.subr.bf16.mxu1 %v11610_v31 }
 0x8aa   :  { %v9941_v9 = vld [vmem:[#allocation2 + $0x520] sm:$0xf] }
 0x8ab   :  { %v9922_v15 = vld [vmem:[#allocation2 + $0x2c0] sm:$0xf]  ;;  %v11602_v4 = vcombine.low %v9940_v32, %v9941_v9  ;;  %11625 = vmatpush3.bf16.msra.mxu0 %v11586_v52 }
 0x8ac   :  { %v9923_v17 = vld [vmem:[#allocation2 + $0x2e0] sm:$0xf] }
 0x8ad   :  { %v9954_v60 = vld [vmem:[#allocation2 + $0x6c0] sm:$0xf]  ;;  %v11593_v55 = vcombine.low %v9922_v15, %v9923_v17  ;;  %11647 = vmatpush3.bf16.msra.mxu1 %v11602_v4 }
 0x8ae   :  { %v9955_v42 = vld [vmem:[#allocation2 + $0x6e0] sm:$0xf] }
 0x8af   :  { %v9906_v48 = vld [vmem:[#allocation2 + $0xc0] sm:$0xf]  ;;  %v11609_v50 = vcombine.low %v9954_v60, %v9955_v42  ;;  %11626 = vmatprep.subr.bf16.mxu0 %v11593_v55 }
 0x8b0   :  { %v9907_v49 = vld [vmem:[#allocation2 + $0xe0] sm:$0xf] }
 0x8b1   :  { %v9938_v23 = vld [vmem:[#allocation2 + $0x4c0] sm:$0xf]  ;;  %v11585_v61 = vcombine.low %v9906_v48, %v9907_v49  ;;  %11648 = vmatprep.subr.bf16.mxu1 %v11609_v50 }
 0x8b2   :  { %v9939_v25 = vld [vmem:[#allocation2 + $0x4e0] sm:$0xf] }
 0x8b3   :  { %v9920_v45 = vld [vmem:[#allocation2 + $0x280] sm:$0xf]  ;;  %v11601_v0 = vcombine.low %v9938_v23, %v9939_v25  ;;  %11627 = vmatpush3.bf16.msra.mxu0 %v11585_v61 }
 0x8b4   :  { %v9921_v41 = vld [vmem:[#allocation2 + $0x2a0] sm:$0xf] }
 0x8b5   :  { %v9952_v51 = vld [vmem:[#allocation2 + $0x680] sm:$0xf]  ;;  %v11592_v36 = vcombine.low %v9920_v45, %v9921_v41  ;;  %11649 = vmatpush3.bf16.msra.mxu1 %v11601_v0 }
 0x8b6   :  { %v9953_v53 = vld [vmem:[#allocation2 + $0x6a0] sm:$0xf] }
 0x8b7   :  { %v9904_v59 = vld [vmem:[#allocation2 + $0x80] sm:$0xf]  ;;  %v11608_v62 = vcombine.low %v9952_v51, %v9953_v53  ;;  %11628 = vmatprep.subr.bf16.mxu0 %v11592_v36 }
 0x8b8   :  { %v9905_v27 = vld [vmem:[#allocation2 + $0xa0] sm:$0xf] }
 0x8b9   :  { %v9936_v8 = vld [vmem:[#allocation2 + $0x480] sm:$0xf]  ;;  %v11584_v10 = vcombine.low %v9904_v59, %v9905_v27  ;;  %11650 = vmatprep.subr.bf16.mxu1 %v11608_v62 }
 0x8ba   :  { %v9937_v29 = vld [vmem:[#allocation2 + $0x4a0] sm:$0xf] }
 0x8bb   :  { %v9918_v12 = vld [vmem:[#allocation2 + $0x240] sm:$0xf]  ;;  %v11600_v43 = vcombine.low %v9936_v8, %v9937_v29  ;;  %11629 = vmatpush3.bf16.msra.mxu0 %v11584_v10 }
 0x8bc   :  { %v9919_v58 = vld [vmem:[#allocation2 + $0x260] sm:$0xf] }
 0x8bd   :  { %v9950_v5 = vld [vmem:[#allocation2 + $0x640] sm:$0xf]  ;;  %v11591_v34 = vcombine.low %v9918_v12, %v9919_v58  ;;  %11651 = vmatpush3.bf16.msra.mxu1 %v11600_v43 }
 0x8be   :  { %v9951_v26 = vld [vmem:[#allocation2 + $0x660] sm:$0xf] }
 0x8bf   :  { %v9902_v33 = vld [vmem:[#allocation2 + $0x40] sm:$0xf]  ;;  %v11607_v22 = vcombine.low %v9950_v5, %v9951_v26  ;;  %11630 = vmatprep.subr.bf16.mxu0 %v11591_v34 }
 0x8c0   :  { %v9903_v6 = vld [vmem:[#allocation2 + $0x60] sm:$0xf] }
 0x8c1   :  { %v9934_v56 = vld [vmem:[#allocation2 + $0x440] sm:$0xf]  ;;  %v11583_v40 = vcombine.low %v9902_v33, %v9903_v6  ;;  %11652 = vmatprep.subr.bf16.mxu1 %v11607_v22 }
 0x8c2   :  { %v9935_v54 = vld [vmem:[#allocation2 + $0x460] sm:$0xf] }
 0x8c3   :  { %v9916_v2 = vld [vmem:[#allocation2 + $0x200] sm:$0xf]  ;;  %v11599_v14 = vcombine.low %v9934_v56, %v9935_v54  ;;  %11631 = vmatpush3.bf16.msra.mxu0 %v11583_v40 }
 0x8c4   :  { %v9917_v24 = vld [vmem:[#allocation2 + $0x220] sm:$0xf] }
 0x8c5   :  { %v9948_v11 = vld [vmem:[#allocation2 + $0x600] sm:$0xf]  ;;  %v11590_v57 = vcombine.low %v9916_v2, %v9917_v24  ;;  %11653 = vmatpush3.bf16.msra.mxu1 %v11599_v14 }
 0x8c6   :  { %v9949_v30 = vld [vmem:[#allocation2 + $0x620] sm:$0xf] }
 0x8c7   :  { %v9900_v13 = vld [vmem:[#allocation2] sm:$0xf]  ;;  %v11606_v44 = vcombine.low %v9948_v11, %v9949_v30  ;;  %11632 = vmatprep.subr.bf16.mxu0 %v11590_v57 }
 0x8c8   :  { %v9901_v28 = vld [vmem:[#allocation2 + $0x20] sm:$0xf] }
 0x8c9   :  { %v9932_v46 = vld [vmem:[#allocation2 + $0x400] sm:$0xf]  ;;  %v11582_v47 = vcombine.low %v9900_v13, %v9901_v28  ;;  %11654 = vmatprep.subr.bf16.mxu1 %v11606_v44 }
 0x8ca   :  { %v9933_v37 = vld [vmem:[#allocation2 + $0x420] sm:$0xf] }
 0x8cb   :  { %v11598_v19 = vcombine.low %v9932_v46, %v9933_v37  ;;  %11633 = vmatpush3.bf16.msra.mxu0 %v11582_v47  ;;  %v11581_v18 = vld [vmem:[#allocation3] ss:$0 sm:$0xff] }
 0x8cd   :  { %11655 = vmatpush3.bf16.msra.mxu1 %v11598_v19 }
 0x8ce   :  { %10200 = vmatmul.mubr.bf16.vlgmr.msra.gmra.mxu0 %v9965_v1 }
 0x8d0   :  { %10240 = vmatmul.mubr.bf16.vlgmr.msra.gmra.mxu1 %v9967_v39 }
 0x98e   :  { %v11634_v38 = vpop.f32.mrf.mxu0 }
 0x990   :  { %v11656_v21 = vpop.f32.mrf.mxu1  ;;  %v11635_v63 = vpop.f32.mrf.mxu0 }
 0x991   :  { %v11636_v3 = vadd.f32 %v11635_v63, %v11634_v38 }
 0x992   :  { %v11657_v31 = vpop.f32.mrf.mxu1  ;;  %v11637_v32 = vpop.f32.mrf.mxu0 }
 0x993   :  { %v10202_v35 = vadd.f32 %v11636_v3, %v11581_v18  ;;  %v11658_v9 = vadd.f32 %v11657_v31, %v11656_v21 }
 0x994   :  { %v11659_v20 = vpop.f32.mrf.mxu1  ;;  %v11638_v15 = vpop.f32.mrf.mxu0 }
 0x995   :  { %v10242_v17 = vadd.f32 %v11658_v9, %v10202_v35 }
 0x996   :  { %v11660_v7 = vpop.f32.mrf.mxu1 }
 0x997   :  { %10247 = vst [vmem:[#allocation9] sm:$0xff] %v10242_v17 }
 0x998   :  { %11905 = shalt.err (!%p11902_p1)
}
 0x999   :  { %10257 = dma.vmem_to_hbm [thread:$0]  %s10255_s23, 128, %s12525_s11, [#allocation8]  }
 0x99a   :  { %11936 = dma.done.wait [#allocation8], 128  }
 0x99b   :  { %11937 = vsyncadd [#allocation8], 4294967168 }
 0x99c   :  { %10261 = vsyncpa [#allocation7], 1 }
 0x99d   :  { %10262 = vsyncpa [#allocation8], 1 }
 0x99e   :  { %10263 = vsyncmov [#allocation4] }
 0x9a1   :  { %s10264_s20 = vpop.sfrf %10263 }
 0x9a2   :  { %p11614_p3 = scmp.ne.s32.totalorder %s10264_s20, 0 }
 0x9a4   :  { %10268 = shalt.err (%p11614_p3)  }
 0x9a5   :  { %10270 = vsyncmov [#allocation4 + $0x1] }
 0x9a8   :  { %s10271_s21 = vpop.sfrf %10270 }
 0x9a9   :  { %p11615_p4 = scmp.ne.s32.totalorder %s10271_s21, 0 }
 0x9ab   :  { %10275 = shalt.err (%p11615_p4)  }
 0x9ac   :  { %10276 = vsyncmov [#allocation5] }
 0x9af   :  { %s10277_s22 = vpop.sfrf %10276 }
 0x9b0   :  { %p11616_p5 = scmp.ne.s32.totalorder %s10277_s22, 0 }
 0x9b2   :  { %10281 = shalt.err (%p11616_p5)  }
 0x9b3   :  { %10283 = vsyncmov [#allocation5 + $0x1] }
 0x9b6   :  { %s10284_s3 = vpop.sfrf %10283 }
 0x9b7   :  { %p11617_p7 = scmp.ne.s32.totalorder %s10284_s3, 0 }
 0x9b9   :  { %10288 = shalt.err (%p11617_p7)  }

</bundles_post_ra>
